<compile_context>
chip_gen: v7x
topology: tpu7x:2x2x1
jax: 0.10.0
libtpu: 0.0.40
codegen_flags: <defaults>
</compile_context>

<pallas_src>
import functools

import jax
import jax.numpy as jnp
from jax import lax
from jax.experimental import pallas as pl
from jax.experimental.pallas import tpu as pltpu

LEAK = 0.2          # LeakyReLU negative slope
BN_EPS = 1e-5
HEAD_PAD = 128      # lane-dense padded width of the fused adv/aux head output
_TAPS = ((0, 0), (0, 1), (1, 0), (1, 1))   # 2x2 super-pixel taps of the s2d-rewritten conv


# ----------------------------------------------------------------------------
# Small helpers
# ----------------------------------------------------------------------------
def _compiler_params():
    return pltpu.CompilerParams(
        dimension_semantics=("parallel",),        # batch-tile axis: independent work
        vmem_limit_bytes=32 * 1024 * 1024,
    )


def _pick_batch_tile(batch, bytes_per_sample, budget=4 * 1024 * 1024):
    """Largest divisor of `batch` whose input block stays under a VMEM budget."""
    bt = max(1, min(batch, budget // max(int(bytes_per_sample), 1)))
    while batch % bt:
        bt -= 1
    return bt


def _pad_space_to_depth(x_nhwc):
    """NHWC -> pad(+1) -> 2x2 space-to-depth.  (B,H,W,C) -> (B,H//2+1,W//2+1,4C).

    This turns the stride-2, k=3, p=1 conv into a unit-stride 2x2-tap conv, so the
    kernels never need strided reads and no im2col blowup is written to HBM.
    """
    B, H, W, C = x_nhwc.shape
    xp = jnp.pad(x_nhwc, ((0, 0), (1, 1), (1, 1), (0, 0)))
    hs, ws = (H + 2) // 2, (W + 2) // 2
    xs = xp.reshape(B, hs, 2, ws, 2, C)
    xs = jnp.transpose(xs, (0, 1, 3, 2, 4, 5))     # (B, hs, ws, sh, sw, C)
    return xs.reshape(B, hs, ws, 4 * C)            # channel index = (sh*2+sw)*C + c


# ----------------------------------------------------------------------------
# Pallas kernels
# ----------------------------------------------------------------------------
def _conv_block_gemm_kernel(x_ref, w_ref, b_ref, s_ref, t_ref, o_ref, *, ho, wo):
    """Fused conv(3x3,s=2,p=1) + bias + LeakyReLU + folded BN for larger spatial extents.

    x_ref: (bt, ho+1, wo+1, 4*cin) space-to-depth input block
    w_ref: (4, 4*cin, cout) per-tap weights; b/s/t: (1, cout)
    o_ref: (bt*ho*wo, cout)  (rows in (b, h, w) raster order)
    """
    bt = x_ref.shape[0]
    c2 = x_ref.shape[3]
    acc = None
    for t_idx, (da, db) in enumerate(_TAPS):
        # Unit-stride window load, flattened to a clean 2D GEMM operand (wo % 8 == 0).
        lhs = x_ref[:, da:da + ho, db:db + wo, :].reshape(bt * ho * wo, c2)
        part = jnp.dot(lhs, w_ref[t_idx], preferred_element_type=jnp.float32)
        acc = part if acc is None else acc + part
    y = acc + b_ref[...]
    y = jnp.where(y >= 0.0, y, LEAK * y)           # LeakyReLU(0.2); Dropout2d = id (eval)
    y = y * s_ref[...] + t_ref[...]                # folded eval BatchNorm (or 1/0)
    o_ref[...] = y.astype(o_ref.dtype)


def _conv_positions(x_ref, w_ref, b, s, t, ho, wo):
    """Per-output-position fused conv+LeakyReLU+BN for tiny spatial extents.

    Returns a list of (bt, cout) values in (h, w) raster order; avoids any reshape
    of sub-8-sublane tiles.
    """
    outs = []
    for oh in range(ho):
        for ow in range(wo):
            acc = None
            for t_idx, (da, db) in enumerate(_TAPS):
                v = x_ref[:, oh + da, ow + db, :]                    # (bt, 4*cin)
                part = jnp.dot(v, w_ref[t_idx], preferred_element_type=jnp.float32)
                acc = part if acc is None else acc + part
            y = acc + b
            y = jnp.where(y >= 0.0, y, LEAK * y)
            outs.append(y * s + t)
    return outs


def _conv_block_small_kernel(x_ref, w_ref, b_ref, s_ref, t_ref, o_ref, *, ho, wo):
    """Small-spatial conv block; single lane-dense (bt, ho*wo*cout) store in (h,w,c) order."""
    cols = _conv_positions(x_ref, w_ref, b_ref[...], s_ref[...], t_ref[...], ho, wo)
    o_ref[...] = jnp.concatenate(cols, axis=-1).astype(o_ref.dtype)


def _conv_head_kernel(x_ref, w_ref, b_ref, s_ref, t_ref, wh_ref, bh_ref, o_ref, *, ho, wo):
    """Final conv block fused with the adv(sigmoid)/aux linear heads.

    wh_ref: (ho*wo*cout, 128) head weights pre-permuted to the kernel's (h,w,c) flatten
    order and zero-padded to 128 output lanes (col 0 = adv, 1..n_classes = aux).
    """
    feats = _conv_positions(x_ref, w_ref, b_ref[...], s_ref[...], t_ref[...], ho, wo)
    flat = jnp.concatenate(feats, axis=-1)                           # (bt, ho*wo*cout)
    z = jnp.dot(flat, wh_ref[...], preferred_element_type=jnp.float32) + bh_ref[...]
    col = lax.broadcasted_iota(jnp.int32, z.shape, 1)
    sig = 1.0 / (1.0 + jnp.exp(-z))
    o_ref[...] = jnp.where(col == 0, sig, z).astype(o_ref.dtype)     # sigmoid only on adv col


# ----------------------------------------------------------------------------
# pallas_call wrappers (batch-tiled, 'parallel' grid)
# ----------------------------------------------------------------------------
def conv_block_gemm(x_s2d, w2, b, scale, shift, ho, wo):
    B, hs, ws, c2 = x_s2d.shape
    cout = w2.shape[-1]
    bt = _pick_batch_tile(B, hs * ws * c2 * 4)
    kern = functools.partial(_conv_block_gemm_kernel, ho=ho, wo=wo)
    out = pl.pallas_call(
        kern,
        out_shape=jax.ShapeDtypeStruct((B * ho * wo, cout), jnp.float32),
        grid=(B // bt,),
        in_specs=[
            pl.BlockSpec((bt, hs, ws, c2), lambda i: (i, 0, 0, 0)),
            pl.BlockSpec((4, c2, cout), lambda i: (0, 0, 0)),
            pl.BlockSpec((1, cout), lambda i: (0, 0)),
            pl.BlockSpec((1, cout), lambda i: (0, 0)),
            pl.BlockSpec((1, cout), lambda i: (0, 0)),
        ],
        out_specs=pl.BlockSpec((bt * ho * wo, cout), lambda i: (i, 0)),
        compiler_params=_compiler_params(),
    )(x_s2d, w2, b, scale, shift)
    return out.reshape(B, ho, wo, cout)


def conv_block_small(x_s2d, w2, b, scale, shift, ho, wo):
    B, hs, ws, c2 = x_s2d.shape
    cout = w2.shape[-1]
    bt = _pick_batch_tile(B, hs * ws * c2 * 4)
    kern = functools.partial(_conv_block_small_kernel, ho=ho, wo=wo)
    out = pl.pallas_call(
        kern,
        out_shape=jax.ShapeDtypeStruct((B, ho * wo * cout), jnp.float32),
        grid=(B // bt,),
        in_specs=[
            pl.BlockSpec((bt, hs, ws, c2), lambda i: (i, 0, 0, 0)),
            pl.BlockSpec((4, c2, cout), lambda i: (0, 0, 0)),
            pl.BlockSpec((1, cout), lambda i: (0, 0)),
            pl.BlockSpec((1, cout), lambda i: (0, 0)),
            pl.BlockSpec((1, cout), lambda i: (0, 0)),
        ],
        out_specs=pl.BlockSpec((bt, ho * wo * cout), lambda i: (i, 0)),
        compiler_params=_compiler_params(),
    )(x_s2d, w2, b, scale, shift)
    return out.reshape(B, ho, wo, cout)


def conv_head(x_s2d, w2, b, scale, shift, w_head, b_head, ho, wo):
    B, hs, ws, c2 = x_s2d.shape
    cout = w2.shape[-1]
    bt = _pick_batch_tile(B, hs * ws * c2 * 4)
    kern = functools.partial(_conv_head_kernel, ho=ho, wo=wo)
    return pl.pallas_call(
        kern,
        out_shape=jax.ShapeDtypeStruct((B, HEAD_PAD), jnp.float32),
        grid=(B // bt,),
        in_specs=[
            pl.BlockSpec((bt, hs, ws, c2), lambda i: (i, 0, 0, 0)),
            pl.BlockSpec((4, c2, cout), lambda i: (0, 0, 0)),
            pl.BlockSpec((1, cout), lambda i: (0, 0)),
            pl.BlockSpec((1, cout), lambda i: (0, 0)),
            pl.BlockSpec((1, cout), lambda i: (0, 0)),
            pl.BlockSpec((ho * wo * cout, HEAD_PAD), lambda i: (0, 0)),
            pl.BlockSpec((1, HEAD_PAD), lambda i: (0, 0)),
        ],
        out_specs=pl.BlockSpec((bt, HEAD_PAD), lambda i: (i, 0)),
        compiler_params=_compiler_params(),
    )(x_s2d, w2, b, scale, shift, w_head, b_head)


# ----------------------------------------------------------------------------
# One-time parameter packing (torch layouts -> kernel layouts)
# ----------------------------------------------------------------------------
def _conv_weight_s2d(w_oihw):
    """PyTorch (O, I, 3, 3), stride 2, pad 1  ->  (4, 4*I, O) taps over the s2d input."""
    cout, cin, kh, kw = w_oihw.shape
    assert (kh, kw) == (3, 3)
    w2 = jnp.zeros((2, 2, 2, 2, cin, cout), jnp.float32)   # [a, b, sh, sw, i, o]
    for di in range(3):
        for dj in range(3):
            w2 = w2.at[di // 2, dj // 2, di % 2, dj % 2].set(w_oihw[:, :, di, dj].T)
    return w2.reshape(4, 4 * cin, cout)                     # tap = a*2+b ; q = (sh*2+sw)*cin+i


def _fold_bn(gamma, beta, mean, var):
    scale = gamma / jnp.sqrt(var + BN_EPS)
    shift = beta - mean * scale
    return scale.reshape(1, -1), shift.reshape(1, -1)


def _prep_head(adv_w, adv_b, aux_w, aux_b, cout, ho, wo):
    """Fuse adv+aux Linear layers into one (feat, 128) matrix in the kernel's flatten order."""
    n_classes = aux_w.shape[0]
    n_used = 1 + n_classes
    assert n_used <= HEAD_PAD
    w = jnp.concatenate([adv_w, aux_w], axis=0).T.astype(jnp.float32)   # (feat, 1+n) torch order
    w = jnp.pad(w, ((0, 0), (0, HEAD_PAD - n_used)))
    bias = jnp.concatenate([adv_b, aux_b], axis=0)
    bias = jnp.pad(bias, ((0, HEAD_PAD - n_used),)).reshape(1, HEAD_PAD)
    # rows are indexed by torch flatten (c, h, w); permute to the kernel's (h, w, c)
    w = w.reshape(cout, ho, wo, HEAD_PAD).transpose(1, 2, 0, 3).reshape(cout * ho * wo, HEAD_PAD)
    return w, bias


def pack_params(raw):
    p = {}
    for li in (1, 2, 3, 4):
        w = raw[f"conv{li}_w"]
        cout = w.shape[0]
        p[f"w{li}"] = _conv_weight_s2d(w)
        p[f"b{li}"] = raw[f"conv{li}_b"].reshape(1, cout)
        if f"bn{li}" in raw:
            p[f"s{li}"], p[f"t{li}"] = _fold_bn(*raw[f"bn{li}"])
        else:  # block 1 has no BatchNorm
            p[f"s{li}"] = jnp.ones((1, cout), jnp.float32)
            p[f"t{li}"] = jnp.zeros((1, cout), jnp.float32)
    p["wh"], p["bh"] = _prep_head(raw["adv_w"], raw["adv_b"], raw["aux_w"], raw["aux_b"],
                                  cout=128, ho=2, wo=2)
    return p


def init_raw_params(key, channels, n_classes):
    """Deterministic PyTorch-layout parameters (OIHW convs, (out,in) linears, BN stats)."""
    def uni(k, shape, fan_in):
        bound = 1.0 / (fan_in ** 0.5)
        return jax.random.uniform(k, shape, jnp.float32, -bound, bound)

    ks = jax.random.split(key, 32)
    raw = {}
    idx = 0
    for li, (cin, cout) in enumerate(((channels, 16), (16, 32), (32, 64), (64, 128)), start=1):
        raw[f"conv{li}_w"] = uni(ks[idx], (cout, cin, 3, 3), cin * 9); idx += 1
        raw[f"conv{li}_b"] = uni(ks[idx], (cout,), cin * 9); idx += 1
    for li, c in ((2, 32), (3, 64), (4, 128)):
        gamma = jax.random.uniform(ks[idx], (c,), jnp.float32, 0.5, 1.5); idx += 1
        beta = jax.random.uniform(ks[idx], (c,), jnp.float32, -0.1, 0.1); idx += 1
        mean = jax.random.uniform(ks[idx], (c,), jnp.float32, -0.1, 0.1); idx += 1
        var = jax.random.uniform(ks[idx], (c,), jnp.float32, 0.5, 1.5); idx += 1
        raw[f"bn{li}"] = (gamma, beta, mean, var)
    feat = 128 * 2 * 2
    raw["adv_w"] = uni(ks[idx], (1, feat), feat); idx += 1
    raw["adv_b"] = uni(ks[idx], (1,), feat); idx += 1
    raw["aux_w"] = uni(ks[idx], (n_classes, feat), feat); idx += 1
    raw["aux_b"] = uni(ks[idx], (n_classes,), feat); idx += 1
    return raw


# ----------------------------------------------------------------------------
# Forward pass (matches Discriminator.forward in eval mode)
# ----------------------------------------------------------------------------
def make_forward(n_classes):
    @jax.jit
    def forward(img_nchw, params):
        x = jnp.transpose(img_nchw, (0, 2, 3, 1)).astype(jnp.float32)   # NHWC
        x = conv_block_gemm(_pad_space_to_depth(x), params["w1"], params["b1"],
                            params["s1"], params["t1"], x.shape[1] // 2, x.shape[2] // 2)
        x = conv_block_gemm(_pad_space_to_depth(x), params["w2"], params["b2"],
                            params["s2"], params["t2"], x.shape[1] // 2, x.shape[2] // 2)
        x = conv_block_small(_pad_space_to_depth(x), params["w3"], params["b3"],
                             params["s3"], params["t3"], x.shape[1] // 2, x.shape[2] // 2)
        out = conv_head(_pad_space_to_depth(x), params["w4"], params["b4"],
                        params["s4"], params["t4"], params["wh"], params["bh"],
                        x.shape[1] // 2, x.shape[2] // 2)
        validity = out[:, 0:1]
        label = out[:, 1:1 + n_classes]
        return validity, label
    return forward


# ----------------------------------------------------------------------------
# Pure-JAX reference (same eval-mode semantics) for a correctness cross-check
# ----------------------------------------------------------------------------
def reference_forward(img, raw, n_classes):
    hp = lax.Precision.HIGHEST

    def block(x, w, b, bn):
        y = lax.conv_general_dilated(x, w, window_strides=(2, 2), padding=((1, 1), (1, 1)),
                                     dimension_numbers=("NCHW", "OIHW", "NCHW"), precision=hp)
        y = y + b.reshape(1, -1, 1, 1)
        y = jnp.where(y >= 0.0, y, LEAK * y)
        if bn is not None:
            gamma, beta, mean, var = (v.reshape(1, -1, 1, 1) for v in bn)
            y = (y - mean) / jnp.sqrt(var + BN_EPS) * gamma + beta
        return y

    x = block(img, raw["conv1_w"], raw["conv1_b"], None)
    x = block(x, raw["conv2_w"], raw["conv2_b"], raw["bn2"])
    x = block(x, raw["conv3_w"], raw["conv3_b"], raw["bn3"])
    x = block(x, raw["conv4_w"], raw["conv4_b"], raw["bn4"])
    flat = x.reshape(x.shape[0], -1)
    validity = jax.nn.sigmoid(jnp.dot(flat, raw["adv_w"].T, precision=hp) + raw["adv_b"])
    label = jnp.dot(flat, raw["aux_w"].T, precision=hp) + raw["aux_b"]
    return validity, label


if __name__ == "__main__":
    # ds_size = 2 is hard-coded in the module -> 32x32 input (four stride-2 convs -> 2x2).
    B, C, H, W = 2, 3, 32, 32
    N_CLASSES = 10

    img = jax.random.normal(jax.random.PRNGKey(0), (B, C, H, W), dtype=jnp.float32)
    raw = init_raw_params(jax.random.PRNGKey(42), channels=C, n_classes=N_CLASSES)
    params = pack_params(raw)

    forward = make_forward(N_CLASSES)
    validity, label = forward(img, params)
    jax.block_until_ready((validity, label))

    assert validity.shape == (B, 1), validity.shape
    assert label.shape == (B, N_CLASSES), label.shape
    assert bool(jnp.all(jnp.isfinite(validity))) and bool(jnp.all(jnp.isfinite(label)))
    assert bool(jnp.all((validity >= 0.0) & (validity <= 1.0)))

    ref_validity, ref_label = reference_forward(img, raw, N_CLASSES)
    assert bool(jnp.allclose(validity, ref_validity, rtol=5e-3, atol=5e-3)), "validity mismatch"
    assert bool(jnp.allclose(label, ref_label, rtol=5e-3, atol=5e-3)), "label mismatch"

    print("KERNEL_OK")
</pallas_src>

<mosaic_0001>
module attributes {stable_mosaic.version = 11 : i64} {
  func.func @_conv_block_gemm_kernel(%arg0: i32, %arg1: memref<2x17x17x12xf32, #tpu.memory_space<vmem>>, %arg2: memref<4x12x16xf32, #tpu.memory_space<vmem>>, %arg3: memref<1x16xf32, #tpu.memory_space<vmem>>, %arg4: memref<1x16xf32, #tpu.memory_space<vmem>>, %arg5: memref<1x16xf32, #tpu.memory_space<vmem>>, %arg6: memref<512x16xf32, #tpu.memory_space<vmem>>) attributes {dimension_semantics = [#tpu.dimension_semantics<parallel>], iteration_bounds = array<i64: 1>, scalar_prefetch = 0 : i64, scratch_operands = 0 : i64, tpu.core_type = #tpu.core_type<tc>, window_params = [{transform_indices = @transform_0, window_bounds = array<i64: 2, 17, 17, 12>}, {pipeline_mode = #tpu.pipeline_mode<synchronous>, transform_indices = @transform_1, window_bounds = array<i64: 4, 12, 16>}, {pipeline_mode = #tpu.pipeline_mode<synchronous>, transform_indices = @transform_2, window_bounds = array<i64: 1, 16>}, {pipeline_mode = #tpu.pipeline_mode<synchronous>, transform_indices = @transform_3, window_bounds = array<i64: 1, 16>}, {pipeline_mode = #tpu.pipeline_mode<synchronous>, transform_indices = @transform_4, window_bounds = array<i64: 1, 16>}, {transform_indices = @transform_5, window_bounds = array<i64: 512, 16>}]} {
    %c0 = arith.constant 0 : index
    %c0_0 = arith.constant 0 : index
    %c0_1 = arith.constant 0 : index
    %c0_2 = arith.constant 0 : index
    %0 = vector.load %arg1[%c0, %c0_0, %c0_1, %c0_2] : memref<2x17x17x12xf32, #tpu.memory_space<vmem>>, vector<2x16x16x12xf32>
    %1 = vector.shape_cast %0 : vector<2x16x16x12xf32> to vector<512x12xf32>
    %c0_3 = arith.constant 0 : index
    %c0_4 = arith.constant 0 : index
    %c0_5 = arith.constant 0 : index
    %2 = vector.load %arg2[%c0_3, %c0_4, %c0_5] : memref<4x12x16xf32, #tpu.memory_space<vmem>>, vector<1x12x16xf32>
    %3 = vector.shape_cast %2 : vector<1x12x16xf32> to vector<12x16xf32>
    %cst = arith.constant dense<0.000000e+00> : vector<512x16xf32>
    %4 = tpu.matmul %1, %3, %cst {dimension_numbers = #tpu.dot_dimension_numbers<[1], [0], [0], [1], [0, 0, 1, 1], [], []>} : vector<512x12xf32>, vector<12x16xf32>, vector<512x16xf32> -> vector<512x16xf32>
    %c0_6 = arith.constant 0 : index
    %c0_7 = arith.constant 0 : index
    %c1 = arith.constant 1 : index
    %c0_8 = arith.constant 0 : index
    %5 = vector.load %arg1[%c0_6, %c0_7, %c1, %c0_8] : memref<2x17x17x12xf32, #tpu.memory_space<vmem>>, vector<2x16x16x12xf32>
    %6 = vector.shape_cast %5 : vector<2x16x16x12xf32> to vector<512x12xf32>
    %c1_9 = arith.constant 1 : index
    %c0_10 = arith.constant 0 : index
    %c0_11 = arith.constant 0 : index
    %7 = vector.load %arg2[%c1_9, %c0_10, %c0_11] : memref<4x12x16xf32, #tpu.memory_space<vmem>>, vector<1x12x16xf32>
    %8 = vector.shape_cast %7 : vector<1x12x16xf32> to vector<12x16xf32>
    %cst_12 = arith.constant dense<0.000000e+00> : vector<512x16xf32>
    %9 = tpu.matmul %6, %8, %cst_12 {dimension_numbers = #tpu.dot_dimension_numbers<[1], [0], [0], [1], [0, 0, 1, 1], [], []>} : vector<512x12xf32>, vector<12x16xf32>, vector<512x16xf32> -> vector<512x16xf32>
    %10 = arith.addf %4, %9 : vector<512x16xf32>
    %c0_13 = arith.constant 0 : index
    %c1_14 = arith.constant 1 : index
    %c0_15 = arith.constant 0 : index
    %c0_16 = arith.constant 0 : index
    %11 = vector.load %arg1[%c0_13, %c1_14, %c0_15, %c0_16] : memref<2x17x17x12xf32, #tpu.memory_space<vmem>>, vector<2x16x16x12xf32>
    %12 = vector.shape_cast %11 : vector<2x16x16x12xf32> to vector<512x12xf32>
    %c2 = arith.constant 2 : index
    %c0_17 = arith.constant 0 : index
    %c0_18 = arith.constant 0 : index
    %13 = vector.load %arg2[%c2, %c0_17, %c0_18] : memref<4x12x16xf32, #tpu.memory_space<vmem>>, vector<1x12x16xf32>
    %14 = vector.shape_cast %13 : vector<1x12x16xf32> to vector<12x16xf32>
    %cst_19 = arith.constant dense<0.000000e+00> : vector<512x16xf32>
    %15 = tpu.matmul %12, %14, %cst_19 {dimension_numbers = #tpu.dot_dimension_numbers<[1], [0], [0], [1], [0, 0, 1, 1], [], []>} : vector<512x12xf32>, vector<12x16xf32>, vector<512x16xf32> -> vector<512x16xf32>
    %16 = arith.addf %10, %15 : vector<512x16xf32>
    %c0_20 = arith.constant 0 : index
    %c1_21 = arith.constant 1 : index
    %c1_22 = arith.constant 1 : index
    %c0_23 = arith.constant 0 : index
    %17 = vector.load %arg1[%c0_20, %c1_21, %c1_22, %c0_23] : memref<2x17x17x12xf32, #tpu.memory_space<vmem>>, vector<2x16x16x12xf32>
    %18 = vector.shape_cast %17 : vector<2x16x16x12xf32> to vector<512x12xf32>
    %c3 = arith.constant 3 : index
    %c0_24 = arith.constant 0 : index
    %c0_25 = arith.constant 0 : index
    %19 = vector.load %arg2[%c3, %c0_24, %c0_25] : memref<4x12x16xf32, #tpu.memory_space<vmem>>, vector<1x12x16xf32>
    %20 = vector.shape_cast %19 : vector<1x12x16xf32> to vector<12x16xf32>
    %cst_26 = arith.constant dense<0.000000e+00> : vector<512x16xf32>
    %21 = tpu.matmul %18, %20, %cst_26 {dimension_numbers = #tpu.dot_dimension_numbers<[1], [0], [0], [1], [0, 0, 1, 1], [], []>} : vector<512x12xf32>, vector<12x16xf32>, vector<512x16xf32> -> vector<512x16xf32>
    %22 = arith.addf %16, %21 : vector<512x16xf32>
    %c0_27 = arith.constant 0 : index
    %c0_28 = arith.constant 0 : index
    %23 = vector.load %arg3[%c0_27, %c0_28] : memref<1x16xf32, #tpu.memory_space<vmem>>, vector<1x16xf32>
    %24 = vector.broadcast %23 : vector<1x16xf32> to vector<512x16xf32>
    %25 = arith.addf %22, %24 : vector<512x16xf32>
    %cst_29 = arith.constant 0.000000e+00 : f32
    %26 = vector.broadcast %cst_29 : f32 to vector<512x16xf32>
    %27 = arith.cmpf oge, %25, %26 : vector<512x16xf32>
    %cst_30 = arith.constant 2.000000e-01 : f32
    %28 = vector.broadcast %cst_30 : f32 to vector<512x16xf32>
    %29 = arith.mulf %28, %25 : vector<512x16xf32>
    %30 = arith.select %27, %25, %29 : vector<512x16xi1>, vector<512x16xf32>
    %c0_31 = arith.constant 0 : index
    %c0_32 = arith.constant 0 : index
    %31 = vector.load %arg4[%c0_31, %c0_32] : memref<1x16xf32, #tpu.memory_space<vmem>>, vector<1x16xf32>
    %32 = vector.broadcast %31 : vector<1x16xf32> to vector<512x16xf32>
    %33 = arith.mulf %30, %32 : vector<512x16xf32>
    %c0_33 = arith.constant 0 : index
    %c0_34 = arith.constant 0 : index
    %34 = vector.load %arg5[%c0_33, %c0_34] : memref<1x16xf32, #tpu.memory_space<vmem>>, vector<1x16xf32>
    %35 = vector.broadcast %34 : vector<1x16xf32> to vector<512x16xf32>
    %36 = arith.addf %33, %35 : vector<512x16xf32>
    %c0_35 = arith.constant 0 : index
    %c0_36 = arith.constant 0 : index
    %37 = vector.load %arg6[%c0_35, %c0_36] : memref<512x16xf32, #tpu.memory_space<vmem>>, vector<512x16xf32>
    tpu.vector_store %arg6[%c0_35, %c0_36], %36 {strides = array<i32>} : memref<512x16xf32, #tpu.memory_space<vmem>>, vector<512x16xf32>,
    return
  }
  func.func @transform_0(%arg0: i32) -> (i32, i32, i32, i32) {
    %c0_i32 = arith.constant 0 : i32
    %c0_i32_0 = arith.constant 0 : i32
    %c0_i32_1 = arith.constant 0 : i32
    %c0_i32_2 = arith.constant 0 : i32
    return %arg0, %c0_i32, %c0_i32_0, %c0_i32_1 : i32, i32, i32, i32
  }
  func.func @transform_1(%arg0: i32) -> (i32, i32, i32) {
    %c0_i32 = arith.constant 0 : i32
    %c0_i32_0 = arith.constant 0 : i32
    %c0_i32_1 = arith.constant 0 : i32
    %c0_i32_2 = arith.constant 0 : i32
    return %c0_i32, %c0_i32_0, %c0_i32_1 : i32, i32, i32
  }
  func.func @transform_2(%arg0: i32) -> (i32, i32) {
    %c0_i32 = arith.constant 0 : i32
    %c0_i32_0 = arith.constant 0 : i32
    %c0_i32_1 = arith.constant 0 : i32
    return %c0_i32, %c0_i32_0 : i32, i32
  }
  func.func @transform_3(%arg0: i32) -> (i32, i32) {
    %c0_i32 = arith.constant 0 : i32
    %c0_i32_0 = arith.constant 0 : i32
    %c0_i32_1 = arith.constant 0 : i32
    return %c0_i32, %c0_i32_0 : i32, i32
  }
  func.func @transform_4(%arg0: i32) -> (i32, i32) {
    %c0_i32 = arith.constant 0 : i32
    %c0_i32_0 = arith.constant 0 : i32
    %c0_i32_1 = arith.constant 0 : i32
    return %c0_i32, %c0_i32_0 : i32, i32
  }
  func.func @transform_5(%arg0: i32) -> (i32, i32) {
    %c0_i32 = arith.constant 0 : i32
    %c0_i32_0 = arith.constant 0 : i32
    return %arg0, %c0_i32 : i32, i32
  }
}

module attributes {stable_mosaic.version = 11 : i64} {
  func.func @_conv_block_gemm_kernel(%arg0: i32, %arg1: memref<2x9x9x64xf32, #tpu.memory_space<vmem>>, %arg2: memref<4x64x32xf32, #tpu.memory_space<vmem>>, %arg3: memref<1x32xf32, #tpu.memory_space<vmem>>, %arg4: memref<1x32xf32, #tpu.memory_space<vmem>>, %arg5: memref<1x32xf32, #tpu.memory_space<vmem>>, %arg6: memref<128x32xf32, #tpu.memory_space<vmem>>) attributes {dimension_semantics = [#tpu.dimension_semantics<parallel>], iteration_bounds = array<i64: 1>, scalar_prefetch = 0 : i64, scratch_operands = 0 : i64, tpu.core_type = #tpu.core_type<tc>, window_params = [{transform_indices = @transform_0, window_bounds = array<i64: 2, 9, 9, 64>}, {pipeline_mode = #tpu.pipeline_mode<synchronous>, transform_indices = @transform_1, window_bounds = array<i64: 4, 64, 32>}, {pipeline_mode = #tpu.pipeline_mode<synchronous>, transform_indices = @transform_2, window_bounds = array<i64: 1, 32>}, {pipeline_mode = #tpu.pipeline_mode<synchronous>, transform_indices = @transform_3, window_bounds = array<i64: 1, 32>}, {pipeline_mode = #tpu.pipeline_mode<synchronous>, transform_indices = @transform_4, window_bounds = array<i64: 1, 32>}, {transform_indices = @transform_5, window_bounds = array<i64: 128, 32>}]} {
    %c0 = arith.constant 0 : index
    %c0_0 = arith.constant 0 : index
    %c0_1 = arith.constant 0 : index
    %c0_2 = arith.constant 0 : index
    %0 = vector.load %arg1[%c0, %c0_0, %c0_1, %c0_2] : memref<2x9x9x64xf32, #tpu.memory_space<vmem>>, vector<2x8x8x64xf32>
    %1 = vector.shape_cast %0 : vector<2x8x8x64xf32> to vector<128x64xf32>
    %c0_3 = arith.constant 0 : index
    %c0_4 = arith.constant 0 : index
    %c0_5 = arith.constant 0 : index
    %2 = vector.load %arg2[%c0_3, %c0_4, %c0_5] : memref<4x64x32xf32, #tpu.memory_space<vmem>>, vector<1x64x32xf32>
    %3 = vector.shape_cast %2 : vector<1x64x32xf32> to vector<64x32xf32>
    %cst = arith.constant dense<0.000000e+00> : vector<128x32xf32>
    %4 = tpu.matmul %1, %3, %cst {dimension_numbers = #tpu.dot_dimension_numbers<[1], [0], [0], [1], [0, 0, 1, 1], [], []>} : vector<128x64xf32>, vector<64x32xf32>, vector<128x32xf32> -> vector<128x32xf32>
    %c0_6 = arith.constant 0 : index
    %c0_7 = arith.constant 0 : index
    %c1 = arith.constant 1 : index
    %c0_8 = arith.constant 0 : index
    %5 = vector.load %arg1[%c0_6, %c0_7, %c1, %c0_8] : memref<2x9x9x64xf32, #tpu.memory_space<vmem>>, vector<2x8x8x64xf32>
    %6 = vector.shape_cast %5 : vector<2x8x8x64xf32> to vector<128x64xf32>
    %c1_9 = arith.constant 1 : index
    %c0_10 = arith.constant 0 : index
    %c0_11 = arith.constant 0 : index
    %7 = vector.load %arg2[%c1_9, %c0_10, %c0_11] : memref<4x64x32xf32, #tpu.memory_space<vmem>>, vector<1x64x32xf32>
    %8 = vector.shape_cast %7 : vector<1x64x32xf32> to vector<64x32xf32>
    %cst_12 = arith.constant dense<0.000000e+00> : vector<128x32xf32>
    %9 = tpu.matmul %6, %8, %cst_12 {dimension_numbers = #tpu.dot_dimension_numbers<[1], [0], [0], [1], [0, 0, 1, 1], [], []>} : vector<128x64xf32>, vector<64x32xf32>, vector<128x32xf32> -> vector<128x32xf32>
    %10 = arith.addf %4, %9 : vector<128x32xf32>
    %c0_13 = arith.constant 0 : index
    %c1_14 = arith.constant 1 : index
    %c0_15 = arith.constant 0 : index
    %c0_16 = arith.constant 0 : index
    %11 = vector.load %arg1[%c0_13, %c1_14, %c0_15, %c0_16] : memref<2x9x9x64xf32, #tpu.memory_space<vmem>>, vector<2x8x8x64xf32>
    %12 = vector.shape_cast %11 : vector<2x8x8x64xf32> to vector<128x64xf32>
    %c2 = arith.constant 2 : index
    %c0_17 = arith.constant 0 : index
    %c0_18 = arith.constant 0 : index
    %13 = vector.load %arg2[%c2, %c0_17, %c0_18] : memref<4x64x32xf32, #tpu.memory_space<vmem>>, vector<1x64x32xf32>
    %14 = vector.shape_cast %13 : vector<1x64x32xf32> to vector<64x32xf32>
    %cst_19 = arith.constant dense<0.000000e+00> : vector<128x32xf32>
    %15 = tpu.matmul %12, %14, %cst_19 {dimension_numbers = #tpu.dot_dimension_numbers<[1], [0], [0], [1], [0, 0, 1, 1], [], []>} : vector<128x64xf32>, vector<64x32xf32>, vector<128x32xf32> -> vector<128x32xf32>
    %16 = arith.addf %10, %15 : vector<128x32xf32>
    %c0_20 = arith.constant 0 : index
    %c1_21 = arith.constant 1 : index
    %c1_22 = arith.constant 1 : index
    %c0_23 = arith.constant 0 : index
    %17 = vector.load %arg1[%c0_20, %c1_21, %c1_22, %c0_23] : memref<2x9x9x64xf32, #tpu.memory_space<vmem>>, vector<2x8x8x64xf32>
    %18 = vector.shape_cast %17 : vector<2x8x8x64xf32> to vector<128x64xf32>
    %c3 = arith.constant 3 : index
    %c0_24 = arith.constant 0 : index
    %c0_25 = arith.constant 0 : index
    %19 = vector.load %arg2[%c3, %c0_24, %c0_25] : memref<4x64x32xf32, #tpu.memory_space<vmem>>, vector<1x64x32xf32>
    %20 = vector.shape_cast %19 : vector<1x64x32xf32> to vector<64x32xf32>
    %cst_26 = arith.constant dense<0.000000e+00> : vector<128x32xf32>
    %21 = tpu.matmul %18, %20, %cst_26 {dimension_numbers = #tpu.dot_dimension_numbers<[1], [0], [0], [1], [0, 0, 1, 1], [], []>} : vector<128x64xf32>, vector<64x32xf32>, vector<128x32xf32> -> vector<128x32xf32>
    %22 = arith.addf %16, %21 : vector<128x32xf32>
    %c0_27 = arith.constant 0 : index
    %c0_28 = arith.constant 0 : index
    %23 = vector.load %arg3[%c0_27, %c0_28] : memref<1x32xf32, #tpu.memory_space<vmem>>, vector<1x32xf32>
    %24 = vector.broadcast %23 : vector<1x32xf32> to vector<128x32xf32>
    %25 = arith.addf %22, %24 : vector<128x32xf32>
    %cst_29 = arith.constant 0.000000e+00 : f32
    %26 = vector.broadcast %cst_29 : f32 to vector<128x32xf32>
    %27 = arith.cmpf oge, %25, %26 : vector<128x32xf32>
    %cst_30 = arith.constant 2.000000e-01 : f32
    %28 = vector.broadcast %cst_30 : f32 to vector<128x32xf32>
    %29 = arith.mulf %28, %25 : vector<128x32xf32>
    %30 = arith.select %27, %25, %29 : vector<128x32xi1>, vector<128x32xf32>
    %c0_31 = arith.constant 0 : index
    %c0_32 = arith.constant 0 : index
    %31 = vector.load %arg4[%c0_31, %c0_32] : memref<1x32xf32, #tpu.memory_space<vmem>>, vector<1x32xf32>
    %32 = vector.broadcast %31 : vector<1x32xf32> to vector<128x32xf32>
    %33 = arith.mulf %30, %32 : vector<128x32xf32>
    %c0_33 = arith.constant 0 : index
    %c0_34 = arith.constant 0 : index
    %34 = vector.load %arg5[%c0_33, %c0_34] : memref<1x32xf32, #tpu.memory_space<vmem>>, vector<1x32xf32>
    %35 = vector.broadcast %34 : vector<1x32xf32> to vector<128x32xf32>
    %36 = arith.addf %33, %35 : vector<128x32xf32>
    %c0_35 = arith.constant 0 : index
    %c0_36 = arith.constant 0 : index
    %37 = vector.load %arg6[%c0_35, %c0_36] : memref<128x32xf32, #tpu.memory_space<vmem>>, vector<128x32xf32>
    tpu.vector_store %arg6[%c0_35, %c0_36], %36 {strides = array<i32>} : memref<128x32xf32, #tpu.memory_space<vmem>>, vector<128x32xf32>,
    return
  }
  func.func @transform_0(%arg0: i32) -> (i32, i32, i32, i32) {
    %c0_i32 = arith.constant 0 : i32
    %c0_i32_0 = arith.constant 0 : i32
    %c0_i32_1 = arith.constant 0 : i32
    %c0_i32_2 = arith.constant 0 : i32
    return %arg0, %c0_i32, %c0_i32_0, %c0_i32_1 : i32, i32, i32, i32
  }
  func.func @transform_1(%arg0: i32) -> (i32, i32, i32) {
    %c0_i32 = arith.constant 0 : i32
    %c0_i32_0 = arith.constant 0 : i32
    %c0_i32_1 = arith.constant 0 : i32
    %c0_i32_2 = arith.constant 0 : i32
    return %c0_i32, %c0_i32_0, %c0_i32_1 : i32, i32, i32
  }
  func.func @transform_2(%arg0: i32) -> (i32, i32) {
    %c0_i32 = arith.constant 0 : i32
    %c0_i32_0 = arith.constant 0 : i32
    %c0_i32_1 = arith.constant 0 : i32
    return %c0_i32, %c0_i32_0 : i32, i32
  }
  func.func @transform_3(%arg0: i32) -> (i32, i32) {
    %c0_i32 = arith.constant 0 : i32
    %c0_i32_0 = arith.constant 0 : i32
    %c0_i32_1 = arith.constant 0 : i32
    return %c0_i32, %c0_i32_0 : i32, i32
  }
  func.func @transform_4(%arg0: i32) -> (i32, i32) {
    %c0_i32 = arith.constant 0 : i32
    %c0_i32_0 = arith.constant 0 : i32
    %c0_i32_1 = arith.constant 0 : i32
    return %c0_i32, %c0_i32_0 : i32, i32
  }
  func.func @transform_5(%arg0: i32) -> (i32, i32) {
    %c0_i32 = arith.constant 0 : i32
    %c0_i32_0 = arith.constant 0 : i32
    return %arg0, %c0_i32 : i32, i32
  }
}

module attributes {stable_mosaic.version = 11 : i64} {
  func.func @_conv_block_small_kernel(%arg0: i32, %arg1: memref<2x5x5x128xf32, #tpu.memory_space<vmem>>, %arg2: memref<4x128x64xf32, #tpu.memory_space<vmem>>, %arg3: memref<1x64xf32, #tpu.memory_space<vmem>>, %arg4: memref<1x64xf32, #tpu.memory_space<vmem>>, %arg5: memref<1x64xf32, #tpu.memory_space<vmem>>, %arg6: memref<2x1024xf32, #tpu.memory_space<vmem>>) attributes {dimension_semantics = [#tpu.dimension_semantics<parallel>], iteration_bounds = array<i64: 1>, scalar_prefetch = 0 : i64, scratch_operands = 0 : i64, tpu.core_type = #tpu.core_type<tc>, window_params = [{transform_indices = @transform_0, window_bounds = array<i64: 2, 5, 5, 128>}, {pipeline_mode = #tpu.pipeline_mode<synchronous>, transform_indices = @transform_1, window_bounds = array<i64: 4, 128, 64>}, {pipeline_mode = #tpu.pipeline_mode<synchronous>, transform_indices = @transform_2, window_bounds = array<i64: 1, 64>}, {pipeline_mode = #tpu.pipeline_mode<synchronous>, transform_indices = @transform_3, window_bounds = array<i64: 1, 64>}, {pipeline_mode = #tpu.pipeline_mode<synchronous>, transform_indices = @transform_4, window_bounds = array<i64: 1, 64>}, {transform_indices = @transform_5, window_bounds = array<i64: 2, 1024>}]} {
    %c0 = arith.constant 0 : index
    %c0_0 = arith.constant 0 : index
    %0 = vector.load %arg3[%c0, %c0_0] : memref<1x64xf32, #tpu.memory_space<vmem>>, vector<1x64xf32>
    %c0_1 = arith.constant 0 : index
    %c0_2 = arith.constant 0 : index
    %1 = vector.load %arg4[%c0_1, %c0_2] : memref<1x64xf32, #tpu.memory_space<vmem>>, vector<1x64xf32>
    %c0_3 = arith.constant 0 : index
    %c0_4 = arith.constant 0 : index
    %2 = vector.load %arg5[%c0_3, %c0_4] : memref<1x64xf32, #tpu.memory_space<vmem>>, vector<1x64xf32>
    %c0_5 = arith.constant 0 : index
    %c0_6 = arith.constant 0 : index
    %c0_7 = arith.constant 0 : index
    %c0_8 = arith.constant 0 : index
    %3 = vector.load %arg1[%c0_5, %c0_6, %c0_7, %c0_8] : memref<2x5x5x128xf32, #tpu.memory_space<vmem>>, vector<2x1x1x128xf32>
    %4 = vector.shape_cast %3 : vector<2x1x1x128xf32> to vector<2x128xf32>
    %c0_9 = arith.constant 0 : index
    %c0_10 = arith.constant 0 : index
    %c0_11 = arith.constant 0 : index
    %5 = vector.load %arg2[%c0_9, %c0_10, %c0_11] : memref<4x128x64xf32, #tpu.memory_space<vmem>>, vector<1x128x64xf32>
    %6 = vector.shape_cast %5 : vector<1x128x64xf32> to vector<128x64xf32>
    %cst = arith.constant dense<0.000000e+00> : vector<2x64xf32>
    %7 = tpu.matmul %4, %6, %cst {dimension_numbers = #tpu.dot_dimension_numbers<[1], [0], [0], [1], [0, 0, 1, 1], [], []>} : vector<2x128xf32>, vector<128x64xf32>, vector<2x64xf32> -> vector<2x64xf32>
    %c0_12 = arith.constant 0 : index
    %c0_13 = arith.constant 0 : index
    %c1 = arith.constant 1 : index
    %c0_14 = arith.constant 0 : index
    %8 = vector.load %arg1[%c0_12, %c0_13, %c1, %c0_14] : memref<2x5x5x128xf32, #tpu.memory_space<vmem>>, vector<2x1x1x128xf32>
    %9 = vector.shape_cast %8 : vector<2x1x1x128xf32> to vector<2x128xf32>
    %c1_15 = arith.constant 1 : index
    %c0_16 = arith.constant 0 : index
    %c0_17 = arith.constant 0 : index
    %10 = vector.load %arg2[%c1_15, %c0_16, %c0_17] : memref<4x128x64xf32, #tpu.memory_space<vmem>>, vector<1x128x64xf32>
    %11 = vector.shape_cast %10 : vector<1x128x64xf32> to vector<128x64xf32>
    %cst_18 = arith.constant dense<0.000000e+00> : vector<2x64xf32>
    %12 = tpu.matmul %9, %11, %cst_18 {dimension_numbers = #tpu.dot_dimension_numbers<[1], [0], [0], [1], [0, 0, 1, 1], [], []>} : vector<2x128xf32>, vector<128x64xf32>, vector<2x64xf32> -> vector<2x64xf32>
    %13 = arith.addf %7, %12 : vector<2x64xf32>
    %c0_19 = arith.constant 0 : index
    %c1_20 = arith.constant 1 : index
    %c0_21 = arith.constant 0 : index
    %c0_22 = arith.constant 0 : index
    %14 = vector.load %arg1[%c0_19, %c1_20, %c0_21, %c0_22] : memref<2x5x5x128xf32, #tpu.memory_space<vmem>>, vector<2x1x1x128xf32>
    %15 = vector.shape_cast %14 : vector<2x1x1x128xf32> to vector<2x128xf32>
    %c2 = arith.constant 2 : index
    %c0_23 = arith.constant 0 : index
    %c0_24 = arith.constant 0 : index
    %16 = vector.load %arg2[%c2, %c0_23, %c0_24] : memref<4x128x64xf32, #tpu.memory_space<vmem>>, vector<1x128x64xf32>
    %17 = vector.shape_cast %16 : vector<1x128x64xf32> to vector<128x64xf32>
    %cst_25 = arith.constant dense<0.000000e+00> : vector<2x64xf32>
    %18 = tpu.matmul %15, %17, %cst_25 {dimension_numbers = #tpu.dot_dimension_numbers<[1], [0], [0], [1], [0, 0, 1, 1], [], []>} : vector<2x128xf32>, vector<128x64xf32>, vector<2x64xf32> -> vector<2x64xf32>
    %19 = arith.addf %13, %18 : vector<2x64xf32>
    %c0_26 = arith.constant 0 : index
    %c1_27 = arith.constant 1 : index
    %c1_28 = arith.constant 1 : index
    %c0_29 = arith.constant 0 : index
    %20 = vector.load %arg1[%c0_26, %c1_27, %c1_28, %c0_29] : memref<2x5x5x128xf32, #tpu.memory_space<vmem>>, vector<2x1x1x128xf32>
    %21 = vector.shape_cast %20 : vector<2x1x1x128xf32> to vector<2x128xf32>
    %c3 = arith.constant 3 : index
    %c0_30 = arith.constant 0 : index
    %c0_31 = arith.constant 0 : index
    %22 = vector.load %arg2[%c3, %c0_30, %c0_31] : memref<4x128x64xf32, #tpu.memory_space<vmem>>, vector<1x128x64xf32>
    %23 = vector.shape_cast %22 : vector<1x128x64xf32> to vector<128x64xf32>
    %cst_32 = arith.constant dense<0.000000e+00> : vector<2x64xf32>
    %24 = tpu.matmul %21, %23, %cst_32 {dimension_numbers = #tpu.dot_dimension_numbers<[1], [0], [0], [1], [0, 0, 1, 1], [], []>} : vector<2x128xf32>, vector<128x64xf32>, vector<2x64xf32> -> vector<2x64xf32>
    %25 = arith.addf %19, %24 : vector<2x64xf32>
    %26 = vector.broadcast %0 : vector<1x64xf32> to vector<2x64xf32>
    %27 = arith.addf %25, %26 : vector<2x64xf32>
    %cst_33 = arith.constant 0.000000e+00 : f32
    %28 = vector.broadcast %cst_33 : f32 to vector<2x64xf32>
    %29 = arith.cmpf oge, %27, %28 : vector<2x64xf32>
    %cst_34 = arith.constant 2.000000e-01 : f32
    %30 = vector.broadcast %cst_34 : f32 to vector<2x64xf32>
    %31 = arith.mulf %30, %27 : vector<2x64xf32>
    %32 = arith.select %29, %27, %31 : vector<2x64xi1>, vector<2x64xf32>
    %33 = vector.broadcast %1 : vector<1x64xf32> to vector<2x64xf32>
    %34 = arith.mulf %32, %33 : vector<2x64xf32>
    %35 = vector.broadcast %2 : vector<1x64xf32> to vector<2x64xf32>
    %36 = arith.addf %34, %35 : vector<2x64xf32>
    %c0_35 = arith.constant 0 : index
    %c0_36 = arith.constant 0 : index
    %c1_37 = arith.constant 1 : index
    %c0_38 = arith.constant 0 : index
    %37 = vector.load %arg1[%c0_35, %c0_36, %c1_37, %c0_38] : memref<2x5x5x128xf32, #tpu.memory_space<vmem>>, vector<2x1x1x128xf32>
    %38 = vector.shape_cast %37 : vector<2x1x1x128xf32> to vector<2x128xf32>
    %c0_39 = arith.constant 0 : index
    %c0_40 = arith.constant 0 : index
    %c0_41 = arith.constant 0 : index
    %39 = vector.load %arg2[%c0_39, %c0_40, %c0_41] : memref<4x128x64xf32, #tpu.memory_space<vmem>>, vector<1x128x64xf32>
    %40 = vector.shape_cast %39 : vector<1x128x64xf32> to vector<128x64xf32>
    %cst_42 = arith.constant dense<0.000000e+00> : vector<2x64xf32>
    %41 = tpu.matmul %38, %40, %cst_42 {dimension_numbers = #tpu.dot_dimension_numbers<[1], [0], [0], [1], [0, 0, 1, 1], [], []>} : vector<2x128xf32>, vector<128x64xf32>, vector<2x64xf32> -> vector<2x64xf32>
    %c0_43 = arith.constant 0 : index
    %c0_44 = arith.constant 0 : index
    %c2_45 = arith.constant 2 : index
    %c0_46 = arith.constant 0 : index
    %42 = vector.load %arg1[%c0_43, %c0_44, %c2_45, %c0_46] : memref<2x5x5x128xf32, #tpu.memory_space<vmem>>, vector<2x1x1x128xf32>
    %43 = vector.shape_cast %42 : vector<2x1x1x128xf32> to vector<2x128xf32>
    %c1_47 = arith.constant 1 : index
    %c0_48 = arith.constant 0 : index
    %c0_49 = arith.constant 0 : index
    %44 = vector.load %arg2[%c1_47, %c0_48, %c0_49] : memref<4x128x64xf32, #tpu.memory_space<vmem>>, vector<1x128x64xf32>
    %45 = vector.shape_cast %44 : vector<1x128x64xf32> to vector<128x64xf32>
    %cst_50 = arith.constant dense<0.000000e+00> : vector<2x64xf32>
    %46 = tpu.matmul %43, %45, %cst_50 {dimension_numbers = #tpu.dot_dimension_numbers<[1], [0], [0], [1], [0, 0, 1, 1], [], []>} : vector<2x128xf32>, vector<128x64xf32>, vector<2x64xf32> -> vector<2x64xf32>
    %47 = arith.addf %41, %46 : vector<2x64xf32>
    %c0_51 = arith.constant 0 : index
    %c1_52 = arith.constant 1 : index
    %c1_53 = arith.constant 1 : index
    %c0_54 = arith.constant 0 : index
    %48 = vector.load %arg1[%c0_51, %c1_52, %c1_53, %c0_54] : memref<2x5x5x128xf32, #tpu.memory_space<vmem>>, vector<2x1x1x128xf32>
    %49 = vector.shape_cast %48 : vector<2x1x1x128xf32> to vector<2x128xf32>
    %c2_55 = arith.constant 2 : index
    %c0_56 = arith.constant 0 : index
    %c0_57 = arith.constant 0 : index
    %50 = vector.load %arg2[%c2_55, %c0_56, %c0_57] : memref<4x128x64xf32, #tpu.memory_space<vmem>>, vector<1x128x64xf32>
    %51 = vector.shape_cast %50 : vector<1x128x64xf32> to vector<128x64xf32>
    %cst_58 = arith.constant dense<0.000000e+00> : vector<2x64xf32>
    %52 = tpu.matmul %49, %51, %cst_58 {dimension_numbers = #tpu.dot_dimension_numbers<[1], [0], [0], [1], [0, 0, 1, 1], [], []>} : vector<2x128xf32>, vector<128x64xf32>, vector<2x64xf32> -> vector<2x64xf32>
    %53 = arith.addf %47, %52 : vector<2x64xf32>
    %c0_59 = arith.constant 0 : index
    %c1_60 = arith.constant 1 : index
    %c2_61 = arith.constant 2 : index
    %c0_62 = arith.constant 0 : index
    %54 = vector.load %arg1[%c0_59, %c1_60, %c2_61, %c0_62] : memref<2x5x5x128xf32, #tpu.memory_space<vmem>>, vector<2x1x1x128xf32>
    %55 = vector.shape_cast %54 : vector<2x1x1x128xf32> to vector<2x128xf32>
    %c3_63 = arith.constant 3 : index
    %c0_64 = arith.constant 0 : index
    %c0_65 = arith.constant 0 : index
    %56 = vector.load %arg2[%c3_63, %c0_64, %c0_65] : memref<4x128x64xf32, #tpu.memory_space<vmem>>, vector<1x128x64xf32>
    %57 = vector.shape_cast %56 : vector<1x128x64xf32> to vector<128x64xf32>
    %cst_66 = arith.constant dense<0.000000e+00> : vector<2x64xf32>
    %58 = tpu.matmul %55, %57, %cst_66 {dimension_numbers = #tpu.dot_dimension_numbers<[1], [0], [0], [1], [0, 0, 1, 1], [], []>} : vector<2x128xf32>, vector<128x64xf32>, vector<2x64xf32> -> vector<2x64xf32>
    %59 = arith.addf %53, %58 : vector<2x64xf32>
    %60 = vector.broadcast %0 : vector<1x64xf32> to vector<2x64xf32>
    %61 = arith.addf %59, %60 : vector<2x64xf32>
    %cst_67 = arith.constant 0.000000e+00 : f32
    %62 = vector.broadcast %cst_67 : f32 to vector<2x64xf32>
    %63 = arith.cmpf oge, %61, %62 : vector<2x64xf32>
    %cst_68 = arith.constant 2.000000e-01 : f32
    %64 = vector.broadcast %cst_68 : f32 to vector<2x64xf32>
    %65 = arith.mulf %64, %61 : vector<2x64xf32>
    %66 = arith.select %63, %61, %65 : vector<2x64xi1>, vector<2x64xf32>
    %67 = vector.broadcast %1 : vector<1x64xf32> to vector<2x64xf32>
    %68 = arith.mulf %66, %67 : vector<2x64xf32>
    %69 = vector.broadcast %2 : vector<1x64xf32> to vector<2x64xf32>
    %70 = arith.addf %68, %69 : vector<2x64xf32>
    %c0_69 = arith.constant 0 : index
    %c0_70 = arith.constant 0 : index
    %c2_71 = arith.constant 2 : index
    %c0_72 = arith.constant 0 : index
    %71 = vector.load %arg1[%c0_69, %c0_70, %c2_71, %c0_72] : memref<2x5x5x128xf32, #tpu.memory_space<vmem>>, vector<2x1x1x128xf32>
    %72 = vector.shape_cast %71 : vector<2x1x1x128xf32> to vector<2x128xf32>
    %c0_73 = arith.constant 0 : index
    %c0_74 = arith.constant 0 : index
    %c0_75 = arith.constant 0 : index
    %73 = vector.load %arg2[%c0_73, %c0_74, %c0_75] : memref<4x128x64xf32, #tpu.memory_space<vmem>>, vector<1x128x64xf32>
    %74 = vector.shape_cast %73 : vector<1x128x64xf32> to vector<128x64xf32>
    %cst_76 = arith.constant dense<0.000000e+00> : vector<2x64xf32>
    %75 = tpu.matmul %72, %74, %cst_76 {dimension_numbers = #tpu.dot_dimension_numbers<[1], [0], [0], [1], [0, 0, 1, 1], [], []>} : vector<2x128xf32>, vector<128x64xf32>, vector<2x64xf32> -> vector<2x64xf32>
    %c0_77 = arith.constant 0 : index
    %c0_78 = arith.constant 0 : index
    %c3_79 = arith.constant 3 : index
    %c0_80 = arith.constant 0 : index
    %76 = vector.load %arg1[%c0_77, %c0_78, %c3_79, %c0_80] : memref<2x5x5x128xf32, #tpu.memory_space<vmem>>, vector<2x1x1x128xf32>
    %77 = vector.shape_cast %76 : vector<2x1x1x128xf32> to vector<2x128xf32>
    %c1_81 = arith.constant 1 : index
    %c0_82 = arith.constant 0 : index
    %c0_83 = arith.constant 0 : index
    %78 = vector.load %arg2[%c1_81, %c0_82, %c0_83] : memref<4x128x64xf32, #tpu.memory_space<vmem>>, vector<1x128x64xf32>
    %79 = vector.shape_cast %78 : vector<1x128x64xf32> to vector<128x64xf32>
    %cst_84 = arith.constant dense<0.000000e+00> : vector<2x64xf32>
    %80 = tpu.matmul %77, %79, %cst_84 {dimension_numbers = #tpu.dot_dimension_numbers<[1], [0], [0], [1], [0, 0, 1, 1], [], []>} : vector<2x128xf32>, vector<128x64xf32>, vector<2x64xf32> -> vector<2x64xf32>
    %81 = arith.addf %75, %80 : vector<2x64xf32>
    %c0_85 = arith.constant 0 : index
    %c1_86 = arith.constant 1 : index
    %c2_87 = arith.constant 2 : index
    %c0_88 = arith.constant 0 : index
    %82 = vector.load %arg1[%c0_85, %c1_86, %c2_87, %c0_88] : memref<2x5x5x128xf32, #tpu.memory_space<vmem>>, vector<2x1x1x128xf32>
    %83 = vector.shape_cast %82 : vector<2x1x1x128xf32> to vector<2x128xf32>
    %c2_89 = arith.constant 2 : index
    %c0_90 = arith.constant 0 : index
    %c0_91 = arith.constant 0 : index
    %84 = vector.load %arg2[%c2_89, %c0_90, %c0_91] : memref<4x128x64xf32, #tpu.memory_space<vmem>>, vector<1x128x64xf32>
    %85 = vector.shape_cast %84 : vector<1x128x64xf32> to vector<128x64xf32>
    %cst_92 = arith.constant dense<0.000000e+00> : vector<2x64xf32>
    %86 = tpu.matmul %83, %85, %cst_92 {dimension_numbers = #tpu.dot_dimension_numbers<[1], [0], [0], [1], [0, 0, 1, 1], [], []>} : vector<2x128xf32>, vector<128x64xf32>, vector<2x64xf32> -> vector<2x64xf32>
    %87 = arith.addf %81, %86 : vector<2x64xf32>
    %c0_93 = arith.constant 0 : index
    %c1_94 = arith.constant 1 : index
    %c3_95 = arith.constant 3 : index
    %c0_96 = arith.constant 0 : index
    %88 = vector.load %arg1[%c0_93, %c1_94, %c3_95, %c0_96] : memref<2x5x5x128xf32, #tpu.memory_space<vmem>>, vector<2x1x1x128xf32>
    %89 = vector.shape_cast %88 : vector<2x1x1x128xf32> to vector<2x128xf32>
    %c3_97 = arith.constant 3 : index
    %c0_98 = arith.constant 0 : index
    %c0_99 = arith.constant 0 : index
    %90 = vector.load %arg2[%c3_97, %c0_98, %c0_99] : memref<4x128x64xf32, #tpu.memory_space<vmem>>, vector<1x128x64xf32>
    %91 = vector.shape_cast %90 : vector<1x128x64xf32> to vector<128x64xf32>
    %cst_100 = arith.constant dense<0.000000e+00> : vector<2x64xf32>
    %92 = tpu.matmul %89, %91, %cst_100 {dimension_numbers = #tpu.dot_dimension_numbers<[1], [0], [0], [1], [0, 0, 1, 1], [], []>} : vector<2x128xf32>, vector<128x64xf32>, vector<2x64xf32> -> vector<2x64xf32>
    %93 = arith.addf %87, %92 : vector<2x64xf32>
    %94 = vector.broadcast %0 : vector<1x64xf32> to vector<2x64xf32>
    %95 = arith.addf %93, %94 : vector<2x64xf32>
    %cst_101 = arith.constant 0.000000e+00 : f32
    %96 = vector.broadcast %cst_101 : f32 to vector<2x64xf32>
    %97 = arith.cmpf oge, %95, %96 : vector<2x64xf32>
    %cst_102 = arith.constant 2.000000e-01 : f32
    %98 = vector.broadcast %cst_102 : f32 to vector<2x64xf32>
    %99 = arith.mulf %98, %95 : vector<2x64xf32>
    %100 = arith.select %97, %95, %99 : vector<2x64xi1>, vector<2x64xf32>
    %101 = vector.broadcast %1 : vector<1x64xf32> to vector<2x64xf32>
    %102 = arith.mulf %100, %101 : vector<2x64xf32>
    %103 = vector.broadcast %2 : vector<1x64xf32> to vector<2x64xf32>
    %104 = arith.addf %102, %103 : vector<2x64xf32>
    %c0_103 = arith.constant 0 : index
    %c0_104 = arith.constant 0 : index
    %c3_105 = arith.constant 3 : index
    %c0_106 = arith.constant 0 : index
    %105 = vector.load %arg1[%c0_103, %c0_104, %c3_105, %c0_106] : memref<2x5x5x128xf32, #tpu.memory_space<vmem>>, vector<2x1x1x128xf32>
    %106 = vector.shape_cast %105 : vector<2x1x1x128xf32> to vector<2x128xf32>
    %c0_107 = arith.constant 0 : index
    %c0_108 = arith.constant 0 : index
    %c0_109 = arith.constant 0 : index
    %107 = vector.load %arg2[%c0_107, %c0_108, %c0_109] : memref<4x128x64xf32, #tpu.memory_space<vmem>>, vector<1x128x64xf32>
    %108 = vector.shape_cast %107 : vector<1x128x64xf32> to vector<128x64xf32>
    %cst_110 = arith.constant dense<0.000000e+00> : vector<2x64xf32>
    %109 = tpu.matmul %106, %108, %cst_110 {dimension_numbers = #tpu.dot_dimension_numbers<[1], [0], [0], [1], [0, 0, 1, 1], [], []>} : vector<2x128xf32>, vector<128x64xf32>, vector<2x64xf32> -> vector<2x64xf32>
    %c0_111 = arith.constant 0 : index
    %c0_112 = arith.constant 0 : index
    %c4 = arith.constant 4 : index
    %c0_113 = arith.constant 0 : index
    %110 = vector.load %arg1[%c0_111, %c0_112, %c4, %c0_113] : memref<2x5x5x128xf32, #tpu.memory_space<vmem>>, vector<2x1x1x128xf32>
    %111 = vector.shape_cast %110 : vector<2x1x1x128xf32> to vector<2x128xf32>
    %c1_114 = arith.constant 1 : index
    %c0_115 = arith.constant 0 : index
    %c0_116 = arith.constant 0 : index
    %112 = vector.load %arg2[%c1_114, %c0_115, %c0_116] : memref<4x128x64xf32, #tpu.memory_space<vmem>>, vector<1x128x64xf32>
    %113 = vector.shape_cast %112 : vector<1x128x64xf32> to vector<128x64xf32>
    %cst_117 = arith.constant dense<0.000000e+00> : vector<2x64xf32>
    %114 = tpu.matmul %111, %113, %cst_117 {dimension_numbers = #tpu.dot_dimension_numbers<[1], [0], [0], [1], [0, 0, 1, 1], [], []>} : vector<2x128xf32>, vector<128x64xf32>, vector<2x64xf32> -> vector<2x64xf32>
    %115 = arith.addf %109, %114 : vector<2x64xf32>
    %c0_118 = arith.constant 0 : index
    %c1_119 = arith.constant 1 : index
    %c3_120 = arith.constant 3 : index
    %c0_121 = arith.constant 0 : index
    %116 = vector.load %arg1[%c0_118, %c1_119, %c3_120, %c0_121] : memref<2x5x5x128xf32, #tpu.memory_space<vmem>>, vector<2x1x1x128xf32>
    %117 = vector.shape_cast %116 : vector<2x1x1x128xf32> to vector<2x128xf32>
    %c2_122 = arith.constant 2 : index
    %c0_123 = arith.constant 0 : index
    %c0_124 = arith.constant 0 : index
    %118 = vector.load %arg2[%c2_122, %c0_123, %c0_124] : memref<4x128x64xf32, #tpu.memory_space<vmem>>, vector<1x128x64xf32>
    %119 = vector.shape_cast %118 : vector<1x128x64xf32> to vector<128x64xf32>
    %cst_125 = arith.constant dense<0.000000e+00> : vector<2x64xf32>
    %120 = tpu.matmul %117, %119, %cst_125 {dimension_numbers = #tpu.dot_dimension_numbers<[1], [0], [0], [1], [0, 0, 1, 1], [], []>} : vector<2x128xf32>, vector<128x64xf32>, vector<2x64xf32> -> vector<2x64xf32>
    %121 = arith.addf %115, %120 : vector<2x64xf32>
    %c0_126 = arith.constant 0 : index
    %c1_127 = arith.constant 1 : index
    %c4_128 = arith.constant 4 : index
    %c0_129 = arith.constant 0 : index
    %122 = vector.load %arg1[%c0_126, %c1_127, %c4_128, %c0_129] : memref<2x5x5x128xf32, #tpu.memory_space<vmem>>, vector<2x1x1x128xf32>
    %123 = vector.shape_cast %122 : vector<2x1x1x128xf32> to vector<2x128xf32>
    %c3_130 = arith.constant 3 : index
    %c0_131 = arith.constant 0 : index
    %c0_132 = arith.constant 0 : index
    %124 = vector.load %arg2[%c3_130, %c0_131, %c0_132] : memref<4x128x64xf32, #tpu.memory_space<vmem>>, vector<1x128x64xf32>
    %125 = vector.shape_cast %124 : vector<1x128x64xf32> to vector<128x64xf32>
    %cst_133 = arith.constant dense<0.000000e+00> : vector<2x64xf32>
    %126 = tpu.matmul %123, %125, %cst_133 {dimension_numbers = #tpu.dot_dimension_numbers<[1], [0], [0], [1], [0, 0, 1, 1], [], []>} : vector<2x128xf32>, vector<128x64xf32>, vector<2x64xf32> -> vector<2x64xf32>
    %127 = arith.addf %121, %126 : vector<2x64xf32>
    %128 = vector.broadcast %0 : vector<1x64xf32> to vector<2x64xf32>
    %129 = arith.addf %127, %128 : vector<2x64xf32>
    %cst_134 = arith.constant 0.000000e+00 : f32
    %130 = vector.broadcast %cst_134 : f32 to vector<2x64xf32>
    %131 = arith.cmpf oge, %129, %130 : vector<2x64xf32>
    %cst_135 = arith.constant 2.000000e-01 : f32
    %132 = vector.broadcast %cst_135 : f32 to vector<2x64xf32>
    %133 = arith.mulf %132, %129 : vector<2x64xf32>
    %134 = arith.select %131, %129, %133 : vector<2x64xi1>, vector<2x64xf32>
    %135 = vector.broadcast %1 : vector<1x64xf32> to vector<2x64xf32>
    %136 = arith.mulf %134, %135 : vector<2x64xf32>
    %137 = vector.broadcast %2 : vector<1x64xf32> to vector<2x64xf32>
    %138 = arith.addf %136, %137 : vector<2x64xf32>
    %c0_136 = arith.constant 0 : index
    %c1_137 = arith.constant 1 : index
    %c0_138 = arith.constant 0 : index
    %c0_139 = arith.constant 0 : index
    %139 = vector.load %arg1[%c0_136, %c1_137, %c0_138, %c0_139] : memref<2x5x5x128xf32, #tpu.memory_space<vmem>>, vector<2x1x1x128xf32>
    %140 = vector.shape_cast %139 : vector<2x1x1x128xf32> to vector<2x128xf32>
    %c0_140 = arith.constant 0 : index
    %c0_141 = arith.constant 0 : index
    %c0_142 = arith.constant 0 : index
    %141 = vector.load %arg2[%c0_140, %c0_141, %c0_142] : memref<4x128x64xf32, #tpu.memory_space<vmem>>, vector<1x128x64xf32>
    %142 = vector.shape_cast %141 : vector<1x128x64xf32> to vector<128x64xf32>
    %cst_143 = arith.constant dense<0.000000e+00> : vector<2x64xf32>
    %143 = tpu.matmul %140, %142, %cst_143 {dimension_numbers = #tpu.dot_dimension_numbers<[1], [0], [0], [1], [0, 0, 1, 1], [], []>} : vector<2x128xf32>, vector<128x64xf32>, vector<2x64xf32> -> vector<2x64xf32>
    %c0_144 = arith.constant 0 : index
    %c1_145 = arith.constant 1 : index
    %c1_146 = arith.constant 1 : index
    %c0_147 = arith.constant 0 : index
    %144 = vector.load %arg1[%c0_144, %c1_145, %c1_146, %c0_147] : memref<2x5x5x128xf32, #tpu.memory_space<vmem>>, vector<2x1x1x128xf32>
    %145 = vector.shape_cast %144 : vector<2x1x1x128xf32> to vector<2x128xf32>
    %c1_148 = arith.constant 1 : index
    %c0_149 = arith.constant 0 : index
    %c0_150 = arith.constant 0 : index
    %146 = vector.load %arg2[%c1_148, %c0_149, %c0_150] : memref<4x128x64xf32, #tpu.memory_space<vmem>>, vector<1x128x64xf32>
    %147 = vector.shape_cast %146 : vector<1x128x64xf32> to vector<128x64xf32>
    %cst_151 = arith.constant dense<0.000000e+00> : vector<2x64xf32>
    %148 = tpu.matmul %145, %147, %cst_151 {dimension_numbers = #tpu.dot_dimension_numbers<[1], [0], [0], [1], [0, 0, 1, 1], [], []>} : vector<2x128xf32>, vector<128x64xf32>, vector<2x64xf32> -> vector<2x64xf32>
    %149 = arith.addf %143, %148 : vector<2x64xf32>
    %c0_152 = arith.constant 0 : index
    %c2_153 = arith.constant 2 : index
    %c0_154 = arith.constant 0 : index
    %c0_155 = arith.constant 0 : index
    %150 = vector.load %arg1[%c0_152, %c2_153, %c0_154, %c0_155] : memref<2x5x5x128xf32, #tpu.memory_space<vmem>>, vector<2x1x1x128xf32>
    %151 = vector.shape_cast %150 : vector<2x1x1x128xf32> to vector<2x128xf32>
    %c2_156 = arith.constant 2 : index
    %c0_157 = arith.constant 0 : index
    %c0_158 = arith.constant 0 : index
    %152 = vector.load %arg2[%c2_156, %c0_157, %c0_158] : memref<4x128x64xf32, #tpu.memory_space<vmem>>, vector<1x128x64xf32>
    %153 = vector.shape_cast %152 : vector<1x128x64xf32> to vector<128x64xf32>
    %cst_159 = arith.constant dense<0.000000e+00> : vector<2x64xf32>
    %154 = tpu.matmul %151, %153, %cst_159 {dimension_numbers = #tpu.dot_dimension_numbers<[1], [0], [0], [1], [0, 0, 1, 1], [], []>} : vector<2x128xf32>, vector<128x64xf32>, vector<2x64xf32> -> vector<2x64xf32>
    %155 = arith.addf %149, %154 : vector<2x64xf32>
    %c0_160 = arith.constant 0 : index
    %c2_161 = arith.constant 2 : index
    %c1_162 = arith.constant 1 : index
    %c0_163 = arith.constant 0 : index
    %156 = vector.load %arg1[%c0_160, %c2_161, %c1_162, %c0_163] : memref<2x5x5x128xf32, #tpu.memory_space<vmem>>, vector<2x1x1x128xf32>
    %157 = vector.shape_cast %156 : vector<2x1x1x128xf32> to vector<2x128xf32>
    %c3_164 = arith.constant 3 : index
    %c0_165 = arith.constant 0 : index
    %c0_166 = arith.constant 0 : index
    %158 = vector.load %arg2[%c3_164, %c0_165, %c0_166] : memref<4x128x64xf32, #tpu.memory_space<vmem>>, vector<1x128x64xf32>
    %159 = vector.shape_cast %158 : vector<1x128x64xf32> to vector<128x64xf32>
    %cst_167 = arith.constant dense<0.000000e+00> : vector<2x64xf32>
    %160 = tpu.matmul %157, %159, %cst_167 {dimension_numbers = #tpu.dot_dimension_numbers<[1], [0], [0], [1], [0, 0, 1, 1], [], []>} : vector<2x128xf32>, vector<128x64xf32>, vector<2x64xf32> -> vector<2x64xf32>
    %161 = arith.addf %155, %160 : vector<2x64xf32>
    %162 = vector.broadcast %0 : vector<1x64xf32> to vector<2x64xf32>
    %163 = arith.addf %161, %162 : vector<2x64xf32>
    %cst_168 = arith.constant 0.000000e+00 : f32
    %164 = vector.broadcast %cst_168 : f32 to vector<2x64xf32>
    %165 = arith.cmpf oge, %163, %164 : vector<2x64xf32>
    %cst_169 = arith.constant 2.000000e-01 : f32
    %166 = vector.broadcast %cst_169 : f32 to vector<2x64xf32>
    %167 = arith.mulf %166, %163 : vector<2x64xf32>
    %168 = arith.select %165, %163, %167 : vector<2x64xi1>, vector<2x64xf32>
    %169 = vector.broadcast %1 : vector<1x64xf32> to vector<2x64xf32>
    %170 = arith.mulf %168, %169 : vector<2x64xf32>
    %171 = vector.broadcast %2 : vector<1x64xf32> to vector<2x64xf32>
    %172 = arith.addf %170, %171 : vector<2x64xf32>
    %c0_170 = arith.constant 0 : index
    %c1_171 = arith.constant 1 : index
    %c1_172 = arith.constant 1 : index
    %c0_173 = arith.constant 0 : index
    %173 = vector.load %arg1[%c0_170, %c1_171, %c1_172, %c0_173] : memref<2x5x5x128xf32, #tpu.memory_space<vmem>>, vector<2x1x1x128xf32>
    %174 = vector.shape_cast %173 : vector<2x1x1x128xf32> to vector<2x128xf32>
    %c0_174 = arith.constant 0 : index
    %c0_175 = arith.constant 0 : index
    %c0_176 = arith.constant 0 : index
    %175 = vector.load %arg2[%c0_174, %c0_175, %c0_176] : memref<4x128x64xf32, #tpu.memory_space<vmem>>, vector<1x128x64xf32>
    %176 = vector.shape_cast %175 : vector<1x128x64xf32> to vector<128x64xf32>
    %cst_177 = arith.constant dense<0.000000e+00> : vector<2x64xf32>
    %177 = tpu.matmul %174, %176, %cst_177 {dimension_numbers = #tpu.dot_dimension_numbers<[1], [0], [0], [1], [0, 0, 1, 1], [], []>} : vector<2x128xf32>, vector<128x64xf32>, vector<2x64xf32> -> vector<2x64xf32>
    %c0_178 = arith.constant 0 : index
    %c1_179 = arith.constant 1 : index
    %c2_180 = arith.constant 2 : index
    %c0_181 = arith.constant 0 : index
    %178 = vector.load %arg1[%c0_178, %c1_179, %c2_180, %c0_181] : memref<2x5x5x128xf32, #tpu.memory_space<vmem>>, vector<2x1x1x128xf32>
    %179 = vector.shape_cast %178 : vector<2x1x1x128xf32> to vector<2x128xf32>
    %c1_182 = arith.constant 1 : index
    %c0_183 = arith.constant 0 : index
    %c0_184 = arith.constant 0 : index
    %180 = vector.load %arg2[%c1_182, %c0_183, %c0_184] : memref<4x128x64xf32, #tpu.memory_space<vmem>>, vector<1x128x64xf32>
    %181 = vector.shape_cast %180 : vector<1x128x64xf32> to vector<128x64xf32>
    %cst_185 = arith.constant dense<0.000000e+00> : vector<2x64xf32>
    %182 = tpu.matmul %179, %181, %cst_185 {dimension_numbers = #tpu.dot_dimension_numbers<[1], [0], [0], [1], [0, 0, 1, 1], [], []>} : vector<2x128xf32>, vector<128x64xf32>, vector<2x64xf32> -> vector<2x64xf32>
    %183 = arith.addf %177, %182 : vector<2x64xf32>
    %c0_186 = arith.constant 0 : index
    %c2_187 = arith.constant 2 : index
    %c1_188 = arith.constant 1 : index
    %c0_189 = arith.constant 0 : index
    %184 = vector.load %arg1[%c0_186, %c2_187, %c1_188, %c0_189] : memref<2x5x5x128xf32, #tpu.memory_space<vmem>>, vector<2x1x1x128xf32>
    %185 = vector.shape_cast %184 : vector<2x1x1x128xf32> to vector<2x128xf32>
    %c2_190 = arith.constant 2 : index
    %c0_191 = arith.constant 0 : index
    %c0_192 = arith.constant 0 : index
    %186 = vector.load %arg2[%c2_190, %c0_191, %c0_192] : memref<4x128x64xf32, #tpu.memory_space<vmem>>, vector<1x128x64xf32>
    %187 = vector.shape_cast %186 : vector<1x128x64xf32> to vector<128x64xf32>
    %cst_193 = arith.constant dense<0.000000e+00> : vector<2x64xf32>
    %188 = tpu.matmul %185, %187, %cst_193 {dimension_numbers = #tpu.dot_dimension_numbers<[1], [0], [0], [1], [0, 0, 1, 1], [], []>} : vector<2x128xf32>, vector<128x64xf32>, vector<2x64xf32> -> vector<2x64xf32>
    %189 = arith.addf %183, %188 : vector<2x64xf32>
    %c0_194 = arith.constant 0 : index
    %c2_195 = arith.constant 2 : index
    %c2_196 = arith.constant 2 : index
    %c0_197 = arith.constant 0 : index
    %190 = vector.load %arg1[%c0_194, %c2_195, %c2_196, %c0_197] : memref<2x5x5x128xf32, #tpu.memory_space<vmem>>, vector<2x1x1x128xf32>
    %191 = vector.shape_cast %190 : vector<2x1x1x128xf32> to vector<2x128xf32>
    %c3_198 = arith.constant 3 : index
    %c0_199 = arith.constant 0 : index
    %c0_200 = arith.constant 0 : index
    %192 = vector.load %arg2[%c3_198, %c0_199, %c0_200] : memref<4x128x64xf32, #tpu.memory_space<vmem>>, vector<1x128x64xf32>
    %193 = vector.shape_cast %192 : vector<1x128x64xf32> to vector<128x64xf32>
    %cst_201 = arith.constant dense<0.000000e+00> : vector<2x64xf32>
    %194 = tpu.matmul %191, %193, %cst_201 {dimension_numbers = #tpu.dot_dimension_numbers<[1], [0], [0], [1], [0, 0, 1, 1], [], []>} : vector<2x128xf32>, vector<128x64xf32>, vector<2x64xf32> -> vector<2x64xf32>
    %195 = arith.addf %189, %194 : vector<2x64xf32>
    %196 = vector.broadcast %0 : vector<1x64xf32> to vector<2x64xf32>
    %197 = arith.addf %195, %196 : vector<2x64xf32>
    %cst_202 = arith.constant 0.000000e+00 : f32
    %198 = vector.broadcast %cst_202 : f32 to vector<2x64xf32>
    %199 = arith.cmpf oge, %197, %198 : vector<2x64xf32>
    %cst_203 = arith.constant 2.000000e-01 : f32
    %200 = vector.broadcast %cst_203 : f32 to vector<2x64xf32>
    %201 = arith.mulf %200, %197 : vector<2x64xf32>
    %202 = arith.select %199, %197, %201 : vector<2x64xi1>, vector<2x64xf32>
    %203 = vector.broadcast %1 : vector<1x64xf32> to vector<2x64xf32>
    %204 = arith.mulf %202, %203 : vector<2x64xf32>
    %205 = vector.broadcast %2 : vector<1x64xf32> to vector<2x64xf32>
    %206 = arith.addf %204, %205 : vector<2x64xf32>
    %c0_204 = arith.constant 0 : index
    %c1_205 = arith.constant 1 : index
    %c2_206 = arith.constant 2 : index
    %c0_207 = arith.constant 0 : index
    %207 = vector.load %arg1[%c0_204, %c1_205, %c2_206, %c0_207] : memref<2x5x5x128xf32, #tpu.memory_space<vmem>>, vector<2x1x1x128xf32>
    %208 = vector.shape_cast %207 : vector<2x1x1x128xf32> to vector<2x128xf32>
    %c0_208 = arith.constant 0 : index
    %c0_209 = arith.constant 0 : index
    %c0_210 = arith.constant 0 : index
    %209 = vector.load %arg2[%c0_208, %c0_209, %c0_210] : memref<4x128x64xf32, #tpu.memory_space<vmem>>, vector<1x128x64xf32>
    %210 = vector.shape_cast %209 : vector<1x128x64xf32> to vector<128x64xf32>
    %cst_211 = arith.constant dense<0.000000e+00> : vector<2x64xf32>
    %211 = tpu.matmul %208, %210, %cst_211 {dimension_numbers = #tpu.dot_dimension_numbers<[1], [0], [0], [1], [0, 0, 1, 1], [], []>} : vector<2x128xf32>, vector<128x64xf32>, vector<2x64xf32> -> vector<2x64xf32>
    %c0_212 = arith.constant 0 : index
    %c1_213 = arith.constant 1 : index
    %c3_214 = arith.constant 3 : index
    %c0_215 = arith.constant 0 : index
    %212 = vector.load %arg1[%c0_212, %c1_213, %c3_214, %c0_215] : memref<2x5x5x128xf32, #tpu.memory_space<vmem>>, vector<2x1x1x128xf32>
    %213 = vector.shape_cast %212 : vector<2x1x1x128xf32> to vector<2x128xf32>
    %c1_216 = arith.constant 1 : index
    %c0_217 = arith.constant 0 : index
    %c0_218 = arith.constant 0 : index
    %214 = vector.load %arg2[%c1_216, %c0_217, %c0_218] : memref<4x128x64xf32, #tpu.memory_space<vmem>>, vector<1x128x64xf32>
    %215 = vector.shape_cast %214 : vector<1x128x64xf32> to vector<128x64xf32>
    %cst_219 = arith.constant dense<0.000000e+00> : vector<2x64xf32>
    %216 = tpu.matmul %213, %215, %cst_219 {dimension_numbers = #tpu.dot_dimension_numbers<[1], [0], [0], [1], [0, 0, 1, 1], [], []>} : vector<2x128xf32>, vector<128x64xf32>, vector<2x64xf32> -> vector<2x64xf32>
    %217 = arith.addf %211, %216 : vector<2x64xf32>
    %c0_220 = arith.constant 0 : index
    %c2_221 = arith.constant 2 : index
    %c2_222 = arith.constant 2 : index
    %c0_223 = arith.constant 0 : index
    %218 = vector.load %arg1[%c0_220, %c2_221, %c2_222, %c0_223] : memref<2x5x5x128xf32, #tpu.memory_space<vmem>>, vector<2x1x1x128xf32>
    %219 = vector.shape_cast %218 : vector<2x1x1x128xf32> to vector<2x128xf32>
    %c2_224 = arith.constant 2 : index
    %c0_225 = arith.constant 0 : index
    %c0_226 = arith.constant 0 : index
    %220 = vector.load %arg2[%c2_224, %c0_225, %c0_226] : memref<4x128x64xf32, #tpu.memory_space<vmem>>, vector<1x128x64xf32>
    %221 = vector.shape_cast %220 : vector<1x128x64xf32> to vector<128x64xf32>
    %cst_227 = arith.constant dense<0.000000e+00> : vector<2x64xf32>
    %222 = tpu.matmul %219, %221, %cst_227 {dimension_numbers = #tpu.dot_dimension_numbers<[1], [0], [0], [1], [0, 0, 1, 1], [], []>} : vector<2x128xf32>, vector<128x64xf32>, vector<2x64xf32> -> vector<2x64xf32>
    %223 = arith.addf %217, %222 : vector<2x64xf32>
    %c0_228 = arith.constant 0 : index
    %c2_229 = arith.constant 2 : index
    %c3_230 = arith.constant 3 : index
    %c0_231 = arith.constant 0 : index
    %224 = vector.load %arg1[%c0_228, %c2_229, %c3_230, %c0_231] : memref<2x5x5x128xf32, #tpu.memory_space<vmem>>, vector<2x1x1x128xf32>
    %225 = vector.shape_cast %224 : vector<2x1x1x128xf32> to vector<2x128xf32>
    %c3_232 = arith.constant 3 : index
    %c0_233 = arith.constant 0 : index
    %c0_234 = arith.constant 0 : index
    %226 = vector.load %arg2[%c3_232, %c0_233, %c0_234] : memref<4x128x64xf32, #tpu.memory_space<vmem>>, vector<1x128x64xf32>
    %227 = vector.shape_cast %226 : vector<1x128x64xf32> to vector<128x64xf32>
    %cst_235 = arith.constant dense<0.000000e+00> : vector<2x64xf32>
    %228 = tpu.matmul %225, %227, %cst_235 {dimension_numbers = #tpu.dot_dimension_numbers<[1], [0], [0], [1], [0, 0, 1, 1], [], []>} : vector<2x128xf32>, vector<128x64xf32>, vector<2x64xf32> -> vector<2x64xf32>
    %229 = arith.addf %223, %228 : vector<2x64xf32>
    %230 = vector.broadcast %0 : vector<1x64xf32> to vector<2x64xf32>
    %231 = arith.addf %229, %230 : vector<2x64xf32>
    %cst_236 = arith.constant 0.000000e+00 : f32
    %232 = vector.broadcast %cst_236 : f32 to vector<2x64xf32>
    %233 = arith.cmpf oge, %231, %232 : vector<2x64xf32>
    %cst_237 = arith.constant 2.000000e-01 : f32
    %234 = vector.broadcast %cst_237 : f32 to vector<2x64xf32>
    %235 = arith.mulf %234, %231 : vector<2x64xf32>
    %236 = arith.select %233, %231, %235 : vector<2x64xi1>, vector<2x64xf32>
    %237 = vector.broadcast %1 : vector<1x64xf32> to vector<2x64xf32>
    %238 = arith.mulf %236, %237 : vector<2x64xf32>
    %239 = vector.broadcast %2 : vector<1x64xf32> to vector<2x64xf32>
    %240 = arith.addf %238, %239 : vector<2x64xf32>
    %c0_238 = arith.constant 0 : index
    %c1_239 = arith.constant 1 : index
    %c3_240 = arith.constant 3 : index
    %c0_241 = arith.constant 0 : index
    %241 = vector.load %arg1[%c0_238, %c1_239, %c3_240, %c0_241] : memref<2x5x5x128xf32, #tpu.memory_space<vmem>>, vector<2x1x1x128xf32>
    %242 = vector.shape_cast %241 : vector<2x1x1x128xf32> to vector<2x128xf32>
    %c0_242 = arith.constant 0 : index
    %c0_243 = arith.constant 0 : index
    %c0_244 = arith.constant 0 : index
    %243 = vector.load %arg2[%c0_242, %c0_243, %c0_244] : memref<4x128x64xf32, #tpu.memory_space<vmem>>, vector<1x128x64xf32>
    %244 = vector.shape_cast %243 : vector<1x128x64xf32> to vector<128x64xf32>
    %cst_245 = arith.constant dense<0.000000e+00> : vector<2x64xf32>
    %245 = tpu.matmul %242, %244, %cst_245 {dimension_numbers = #tpu.dot_dimension_numbers<[1], [0], [0], [1], [0, 0, 1, 1], [], []>} : vector<2x128xf32>, vector<128x64xf32>, vector<2x64xf32> -> vector<2x64xf32>
    %c0_246 = arith.constant 0 : index
    %c1_247 = arith.constant 1 : index
    %c4_248 = arith.constant 4 : index
    %c0_249 = arith.constant 0 : index
    %246 = vector.load %arg1[%c0_246, %c1_247, %c4_248, %c0_249] : memref<2x5x5x128xf32, #tpu.memory_space<vmem>>, vector<2x1x1x128xf32>
    %247 = vector.shape_cast %246 : vector<2x1x1x128xf32> to vector<2x128xf32>
    %c1_250 = arith.constant 1 : index
    %c0_251 = arith.constant 0 : index
    %c0_252 = arith.constant 0 : index
    %248 = vector.load %arg2[%c1_250, %c0_251, %c0_252] : memref<4x128x64xf32, #tpu.memory_space<vmem>>, vector<1x128x64xf32>
    %249 = vector.shape_cast %248 : vector<1x128x64xf32> to vector<128x64xf32>
    %cst_253 = arith.constant dense<0.000000e+00> : vector<2x64xf32>
    %250 = tpu.matmul %247, %249, %cst_253 {dimension_numbers = #tpu.dot_dimension_numbers<[1], [0], [0], [1], [0, 0, 1, 1], [], []>} : vector<2x128xf32>, vector<128x64xf32>, vector<2x64xf32> -> vector<2x64xf32>
    %251 = arith.addf %245, %250 : vector<2x64xf32>
    %c0_254 = arith.constant 0 : index
    %c2_255 = arith.constant 2 : index
    %c3_256 = arith.constant 3 : index
    %c0_257 = arith.constant 0 : index
    %252 = vector.load %arg1[%c0_254, %c2_255, %c3_256, %c0_257] : memref<2x5x5x128xf32, #tpu.memory_space<vmem>>, vector<2x1x1x128xf32>
    %253 = vector.shape_cast %252 : vector<2x1x1x128xf32> to vector<2x128xf32>
    %c2_258 = arith.constant 2 : index
    %c0_259 = arith.constant 0 : index
    %c0_260 = arith.constant 0 : index
    %254 = vector.load %arg2[%c2_258, %c0_259, %c0_260] : memref<4x128x64xf32, #tpu.memory_space<vmem>>, vector<1x128x64xf32>
    %255 = vector.shape_cast %254 : vector<1x128x64xf32> to vector<128x64xf32>
    %cst_261 = arith.constant dense<0.000000e+00> : vector<2x64xf32>
    %256 = tpu.matmul %253, %255, %cst_261 {dimension_numbers = #tpu.dot_dimension_numbers<[1], [0], [0], [1], [0, 0, 1, 1], [], []>} : vector<2x128xf32>, vector<128x64xf32>, vector<2x64xf32> -> vector<2x64xf32>
    %257 = arith.addf %251, %256 : vector<2x64xf32>
    %c0_262 = arith.constant 0 : index
    %c2_263 = arith.constant 2 : index
    %c4_264 = arith.constant 4 : index
    %c0_265 = arith.constant 0 : index
    %258 = vector.load %arg1[%c0_262, %c2_263, %c4_264, %c0_265] : memref<2x5x5x128xf32, #tpu.memory_space<vmem>>, vector<2x1x1x128xf32>
    %259 = vector.shape_cast %258 : vector<2x1x1x128xf32> to vector<2x128xf32>
    %c3_266 = arith.constant 3 : index
    %c0_267 = arith.constant 0 : index
    %c0_268 = arith.constant 0 : index
    %260 = vector.load %arg2[%c3_266, %c0_267, %c0_268] : memref<4x128x64xf32, #tpu.memory_space<vmem>>, vector<1x128x64xf32>
    %261 = vector.shape_cast %260 : vector<1x128x64xf32> to vector<128x64xf32>
    %cst_269 = arith.constant dense<0.000000e+00> : vector<2x64xf32>
    %262 = tpu.matmul %259, %261, %cst_269 {dimension_numbers = #tpu.dot_dimension_numbers<[1], [0], [0], [1], [0, 0, 1, 1], [], []>} : vector<2x128xf32>, vector<128x64xf32>, vector<2x64xf32> -> vector<2x64xf32>
    %263 = arith.addf %257, %262 : vector<2x64xf32>
    %264 = vector.broadcast %0 : vector<1x64xf32> to vector<2x64xf32>
    %265 = arith.addf %263, %264 : vector<2x64xf32>
    %cst_270 = arith.constant 0.000000e+00 : f32
    %266 = vector.broadcast %cst_270 : f32 to vector<2x64xf32>
    %267 = arith.cmpf oge, %265, %266 : vector<2x64xf32>
    %cst_271 = arith.constant 2.000000e-01 : f32
    %268 = vector.broadcast %cst_271 : f32 to vector<2x64xf32>
    %269 = arith.mulf %268, %265 : vector<2x64xf32>
    %270 = arith.select %267, %265, %269 : vector<2x64xi1>, vector<2x64xf32>
    %271 = vector.broadcast %1 : vector<1x64xf32> to vector<2x64xf32>
    %272 = arith.mulf %270, %271 : vector<2x64xf32>
    %273 = vector.broadcast %2 : vector<1x64xf32> to vector<2x64xf32>
    %274 = arith.addf %272, %273 : vector<2x64xf32>
    %c0_272 = arith.constant 0 : index
    %c2_273 = arith.constant 2 : index
    %c0_274 = arith.constant 0 : index
    %c0_275 = arith.constant 0 : index
    %275 = vector.load %arg1[%c0_272, %c2_273, %c0_274, %c0_275] : memref<2x5x5x128xf32, #tpu.memory_space<vmem>>, vector<2x1x1x128xf32>
    %276 = vector.shape_cast %275 : vector<2x1x1x128xf32> to vector<2x128xf32>
    %c0_276 = arith.constant 0 : index
    %c0_277 = arith.constant 0 : index
    %c0_278 = arith.constant 0 : index
    %277 = vector.load %arg2[%c0_276, %c0_277, %c0_278] : memref<4x128x64xf32, #tpu.memory_space<vmem>>, vector<1x128x64xf32>
    %278 = vector.shape_cast %277 : vector<1x128x64xf32> to vector<128x64xf32>
    %cst_279 = arith.constant dense<0.000000e+00> : vector<2x64xf32>
    %279 = tpu.matmul %276, %278, %cst_279 {dimension_numbers = #tpu.dot_dimension_numbers<[1], [0], [0], [1], [0, 0, 1, 1], [], []>} : vector<2x128xf32>, vector<128x64xf32>, vector<2x64xf32> -> vector<2x64xf32>
    %c0_280 = arith.constant 0 : index
    %c2_281 = arith.constant 2 : index
    %c1_282 = arith.constant 1 : index
    %c0_283 = arith.constant 0 : index
    %280 = vector.load %arg1[%c0_280, %c2_281, %c1_282, %c0_283] : memref<2x5x5x128xf32, #tpu.memory_space<vmem>>, vector<2x1x1x128xf32>
    %281 = vector.shape_cast %280 : vector<2x1x1x128xf32> to vector<2x128xf32>
    %c1_284 = arith.constant 1 : index
    %c0_285 = arith.constant 0 : index
    %c0_286 = arith.constant 0 : index
    %282 = vector.load %arg2[%c1_284, %c0_285, %c0_286] : memref<4x128x64xf32, #tpu.memory_space<vmem>>, vector<1x128x64xf32>
    %283 = vector.shape_cast %282 : vector<1x128x64xf32> to vector<128x64xf32>
    %cst_287 = arith.constant dense<0.000000e+00> : vector<2x64xf32>
    %284 = tpu.matmul %281, %283, %cst_287 {dimension_numbers = #tpu.dot_dimension_numbers<[1], [0], [0], [1], [0, 0, 1, 1], [], []>} : vector<2x128xf32>, vector<128x64xf32>, vector<2x64xf32> -> vector<2x64xf32>
    %285 = arith.addf %279, %284 : vector<2x64xf32>
    %c0_288 = arith.constant 0 : index
    %c3_289 = arith.constant 3 : index
    %c0_290 = arith.constant 0 : index
    %c0_291 = arith.constant 0 : index
    %286 = vector.load %arg1[%c0_288, %c3_289, %c0_290, %c0_291] : memref<2x5x5x128xf32, #tpu.memory_space<vmem>>, vector<2x1x1x128xf32>
    %287 = vector.shape_cast %286 : vector<2x1x1x128xf32> to vector<2x128xf32>
    %c2_292 = arith.constant 2 : index
    %c0_293 = arith.constant 0 : index
    %c0_294 = arith.constant 0 : index
    %288 = vector.load %arg2[%c2_292, %c0_293, %c0_294] : memref<4x128x64xf32, #tpu.memory_space<vmem>>, vector<1x128x64xf32>
    %289 = vector.shape_cast %288 : vector<1x128x64xf32> to vector<128x64xf32>
    %cst_295 = arith.constant dense<0.000000e+00> : vector<2x64xf32>
    %290 = tpu.matmul %287, %289, %cst_295 {dimension_numbers = #tpu.dot_dimension_numbers<[1], [0], [0], [1], [0, 0, 1, 1], [], []>} : vector<2x128xf32>, vector<128x64xf32>, vector<2x64xf32> -> vector<2x64xf32>
    %291 = arith.addf %285, %290 : vector<2x64xf32>
    %c0_296 = arith.constant 0 : index
    %c3_297 = arith.constant 3 : index
    %c1_298 = arith.constant 1 : index
    %c0_299 = arith.constant 0 : index
    %292 = vector.load %arg1[%c0_296, %c3_297, %c1_298, %c0_299] : memref<2x5x5x128xf32, #tpu.memory_space<vmem>>, vector<2x1x1x128xf32>
    %293 = vector.shape_cast %292 : vector<2x1x1x128xf32> to vector<2x128xf32>
    %c3_300 = arith.constant 3 : index
    %c0_301 = arith.constant 0 : index
    %c0_302 = arith.constant 0 : index
    %294 = vector.load %arg2[%c3_300, %c0_301, %c0_302] : memref<4x128x64xf32, #tpu.memory_space<vmem>>, vector<1x128x64xf32>
    %295 = vector.shape_cast %294 : vector<1x128x64xf32> to vector<128x64xf32>
    %cst_303 = arith.constant dense<0.000000e+00> : vector<2x64xf32>
    %296 = tpu.matmul %293, %295, %cst_303 {dimension_numbers = #tpu.dot_dimension_numbers<[1], [0], [0], [1], [0, 0, 1, 1], [], []>} : vector<2x128xf32>, vector<128x64xf32>, vector<2x64xf32> -> vector<2x64xf32>
    %297 = arith.addf %291, %296 : vector<2x64xf32>
    %298 = vector.broadcast %0 : vector<1x64xf32> to vector<2x64xf32>
    %299 = arith.addf %297, %298 : vector<2x64xf32>
    %cst_304 = arith.constant 0.000000e+00 : f32
    %300 = vector.broadcast %cst_304 : f32 to vector<2x64xf32>
    %301 = arith.cmpf oge, %299, %300 : vector<2x64xf32>
    %cst_305 = arith.constant 2.000000e-01 : f32
    %302 = vector.broadcast %cst_305 : f32 to vector<2x64xf32>
    %303 = arith.mulf %302, %299 : vector<2x64xf32>
    %304 = arith.select %301, %299, %303 : vector<2x64xi1>, vector<2x64xf32>
    %305 = vector.broadcast %1 : vector<1x64xf32> to vector<2x64xf32>
    %306 = arith.mulf %304, %305 : vector<2x64xf32>
    %307 = vector.broadcast %2 : vector<1x64xf32> to vector<2x64xf32>
    %308 = arith.addf %306, %307 : vector<2x64xf32>
    %c0_306 = arith.constant 0 : index
    %c2_307 = arith.constant 2 : index
    %c1_308 = arith.constant 1 : index
    %c0_309 = arith.constant 0 : index
    %309 = vector.load %arg1[%c0_306, %c2_307, %c1_308, %c0_309] : memref<2x5x5x128xf32, #tpu.memory_space<vmem>>, vector<2x1x1x128xf32>
    %310 = vector.shape_cast %309 : vector<2x1x1x128xf32> to vector<2x128xf32>
    %c0_310 = arith.constant 0 : index
    %c0_311 = arith.constant 0 : index
    %c0_312 = arith.constant 0 : index
    %311 = vector.load %arg2[%c0_310, %c0_311, %c0_312] : memref<4x128x64xf32, #tpu.memory_space<vmem>>, vector<1x128x64xf32>
    %312 = vector.shape_cast %311 : vector<1x128x64xf32> to vector<128x64xf32>
    %cst_313 = arith.constant dense<0.000000e+00> : vector<2x64xf32>
    %313 = tpu.matmul %310, %312, %cst_313 {dimension_numbers = #tpu.dot_dimension_numbers<[1], [0], [0], [1], [0, 0, 1, 1], [], []>} : vector<2x128xf32>, vector<128x64xf32>, vector<2x64xf32> -> vector<2x64xf32>
    %c0_314 = arith.constant 0 : index
    %c2_315 = arith.constant 2 : index
    %c2_316 = arith.constant 2 : index
    %c0_317 = arith.constant 0 : index
    %314 = vector.load %arg1[%c0_314, %c2_315, %c2_316, %c0_317] : memref<2x5x5x128xf32, #tpu.memory_space<vmem>>, vector<2x1x1x128xf32>
    %315 = vector.shape_cast %314 : vector<2x1x1x128xf32> to vector<2x128xf32>
    %c1_318 = arith.constant 1 : index
    %c0_319 = arith.constant 0 : index
    %c0_320 = arith.constant 0 : index
    %316 = vector.load %arg2[%c1_318, %c0_319, %c0_320] : memref<4x128x64xf32, #tpu.memory_space<vmem>>, vector<1x128x64xf32>
    %317 = vector.shape_cast %316 : vector<1x128x64xf32> to vector<128x64xf32>
    %cst_321 = arith.constant dense<0.000000e+00> : vector<2x64xf32>
    %318 = tpu.matmul %315, %317, %cst_321 {dimension_numbers = #tpu.dot_dimension_numbers<[1], [0], [0], [1], [0, 0, 1, 1], [], []>} : vector<2x128xf32>, vector<128x64xf32>, vector<2x64xf32> -> vector<2x64xf32>
    %319 = arith.addf %313, %318 : vector<2x64xf32>
    %c0_322 = arith.constant 0 : index
    %c3_323 = arith.constant 3 : index
    %c1_324 = arith.constant 1 : index
    %c0_325 = arith.constant 0 : index
    %320 = vector.load %arg1[%c0_322, %c3_323, %c1_324, %c0_325] : memref<2x5x5x128xf32, #tpu.memory_space<vmem>>, vector<2x1x1x128xf32>
    %321 = vector.shape_cast %320 : vector<2x1x1x128xf32> to vector<2x128xf32>
    %c2_326 = arith.constant 2 : index
    %c0_327 = arith.constant 0 : index
    %c0_328 = arith.constant 0 : index
    %322 = vector.load %arg2[%c2_326, %c0_327, %c0_328] : memref<4x128x64xf32, #tpu.memory_space<vmem>>, vector<1x128x64xf32>
    %323 = vector.shape_cast %322 : vector<1x128x64xf32> to vector<128x64xf32>
    %cst_329 = arith.constant dense<0.000000e+00> : vector<2x64xf32>
    %324 = tpu.matmul %321, %323, %cst_329 {dimension_numbers = #tpu.dot_dimension_numbers<[1], [0], [0], [1], [0, 0, 1, 1], [], []>} : vector<2x128xf32>, vector<128x64xf32>, vector<2x64xf32> -> vector<2x64xf32>
    %325 = arith.addf %319, %324 : vector<2x64xf32>
    %c0_330 = arith.constant 0 : index
    %c3_331 = arith.constant 3 : index
    %c2_332 = arith.constant 2 : index
    %c0_333 = arith.constant 0 : index
    %326 = vector.load %arg1[%c0_330, %c3_331, %c2_332, %c0_333] : memref<2x5x5x128xf32, #tpu.memory_space<vmem>>, vector<2x1x1x128xf32>
    %327 = vector.shape_cast %326 : vector<2x1x1x128xf32> to vector<2x128xf32>
    %c3_334 = arith.constant 3 : index
    %c0_335 = arith.constant 0 : index
    %c0_336 = arith.constant 0 : index
    %328 = vector.load %arg2[%c3_334, %c0_335, %c0_336] : memref<4x128x64xf32, #tpu.memory_space<vmem>>, vector<1x128x64xf32>
    %329 = vector.shape_cast %328 : vector<1x128x64xf32> to vector<128x64xf32>
    %cst_337 = arith.constant dense<0.000000e+00> : vector<2x64xf32>
    %330 = tpu.matmul %327, %329, %cst_337 {dimension_numbers = #tpu.dot_dimension_numbers<[1], [0], [0], [1], [0, 0, 1, 1], [], []>} : vector<2x128xf32>, vector<128x64xf32>, vector<2x64xf32> -> vector<2x64xf32>
    %331 = arith.addf %325, %330 : vector<2x64xf32>
    %332 = vector.broadcast %0 : vector<1x64xf32> to vector<2x64xf32>
    %333 = arith.addf %331, %332 : vector<2x64xf32>
    %cst_338 = arith.constant 0.000000e+00 : f32
    %334 = vector.broadcast %cst_338 : f32 to vector<2x64xf32>
    %335 = arith.cmpf oge, %333, %334 : vector<2x64xf32>
    %cst_339 = arith.constant 2.000000e-01 : f32
    %336 = vector.broadcast %cst_339 : f32 to vector<2x64xf32>
    %337 = arith.mulf %336, %333 : vector<2x64xf32>
    %338 = arith.select %335, %333, %337 : vector<2x64xi1>, vector<2x64xf32>
    %339 = vector.broadcast %1 : vector<1x64xf32> to vector<2x64xf32>
    %340 = arith.mulf %338, %339 : vector<2x64xf32>
    %341 = vector.broadcast %2 : vector<1x64xf32> to vector<2x64xf32>
    %342 = arith.addf %340, %341 : vector<2x64xf32>
    %c0_340 = arith.constant 0 : index
    %c2_341 = arith.constant 2 : index
    %c2_342 = arith.constant 2 : index
    %c0_343 = arith.constant 0 : index
    %343 = vector.load %arg1[%c0_340, %c2_341, %c2_342, %c0_343] : memref<2x5x5x128xf32, #tpu.memory_space<vmem>>, vector<2x1x1x128xf32>
    %344 = vector.shape_cast %343 : vector<2x1x1x128xf32> to vector<2x128xf32>
    %c0_344 = arith.constant 0 : index
    %c0_345 = arith.constant 0 : index
    %c0_346 = arith.constant 0 : index
    %345 = vector.load %arg2[%c0_344, %c0_345, %c0_346] : memref<4x128x64xf32, #tpu.memory_space<vmem>>, vector<1x128x64xf32>
    %346 = vector.shape_cast %345 : vector<1x128x64xf32> to vector<128x64xf32>
    %cst_347 = arith.constant dense<0.000000e+00> : vector<2x64xf32>
    %347 = tpu.matmul %344, %346, %cst_347 {dimension_numbers = #tpu.dot_dimension_numbers<[1], [0], [0], [1], [0, 0, 1, 1], [], []>} : vector<2x128xf32>, vector<128x64xf32>, vector<2x64xf32> -> vector<2x64xf32>
    %c0_348 = arith.constant 0 : index
    %c2_349 = arith.constant 2 : index
    %c3_350 = arith.constant 3 : index
    %c0_351 = arith.constant 0 : index
    %348 = vector.load %arg1[%c0_348, %c2_349, %c3_350, %c0_351] : memref<2x5x5x128xf32, #tpu.memory_space<vmem>>, vector<2x1x1x128xf32>
    %349 = vector.shape_cast %348 : vector<2x1x1x128xf32> to vector<2x128xf32>
    %c1_352 = arith.constant 1 : index
    %c0_353 = arith.constant 0 : index
    %c0_354 = arith.constant 0 : index
    %350 = vector.load %arg2[%c1_352, %c0_353, %c0_354] : memref<4x128x64xf32, #tpu.memory_space<vmem>>, vector<1x128x64xf32>
    %351 = vector.shape_cast %350 : vector<1x128x64xf32> to vector<128x64xf32>
    %cst_355 = arith.constant dense<0.000000e+00> : vector<2x64xf32>
    %352 = tpu.matmul %349, %351, %cst_355 {dimension_numbers = #tpu.dot_dimension_numbers<[1], [0], [0], [1], [0, 0, 1, 1], [], []>} : vector<2x128xf32>, vector<128x64xf32>, vector<2x64xf32> -> vector<2x64xf32>
    %353 = arith.addf %347, %352 : vector<2x64xf32>
    %c0_356 = arith.constant 0 : index
    %c3_357 = arith.constant 3 : index
    %c2_358 = arith.constant 2 : index
    %c0_359 = arith.constant 0 : index
    %354 = vector.load %arg1[%c0_356, %c3_357, %c2_358, %c0_359] : memref<2x5x5x128xf32, #tpu.memory_space<vmem>>, vector<2x1x1x128xf32>
    %355 = vector.shape_cast %354 : vector<2x1x1x128xf32> to vector<2x128xf32>
    %c2_360 = arith.constant 2 : index
    %c0_361 = arith.constant 0 : index
    %c0_362 = arith.constant 0 : index
    %356 = vector.load %arg2[%c2_360, %c0_361, %c0_362] : memref<4x128x64xf32, #tpu.memory_space<vmem>>, vector<1x128x64xf32>
    %357 = vector.shape_cast %356 : vector<1x128x64xf32> to vector<128x64xf32>
    %cst_363 = arith.constant dense<0.000000e+00> : vector<2x64xf32>
    %358 = tpu.matmul %355, %357, %cst_363 {dimension_numbers = #tpu.dot_dimension_numbers<[1], [0], [0], [1], [0, 0, 1, 1], [], []>} : vector<2x128xf32>, vector<128x64xf32>, vector<2x64xf32> -> vector<2x64xf32>
    %359 = arith.addf %353, %358 : vector<2x64xf32>
    %c0_364 = arith.constant 0 : index
    %c3_365 = arith.constant 3 : index
    %c3_366 = arith.constant 3 : index
    %c0_367 = arith.constant 0 : index
    %360 = vector.load %arg1[%c0_364, %c3_365, %c3_366, %c0_367] : memref<2x5x5x128xf32, #tpu.memory_space<vmem>>, vector<2x1x1x128xf32>
    %361 = vector.shape_cast %360 : vector<2x1x1x128xf32> to vector<2x128xf32>
    %c3_368 = arith.constant 3 : index
    %c0_369 = arith.constant 0 : index
    %c0_370 = arith.constant 0 : index
    %362 = vector.load %arg2[%c3_368, %c0_369, %c0_370] : memref<4x128x64xf32, #tpu.memory_space<vmem>>, vector<1x128x64xf32>
    %363 = vector.shape_cast %362 : vector<1x128x64xf32> to vector<128x64xf32>
    %cst_371 = arith.constant dense<0.000000e+00> : vector<2x64xf32>
    %364 = tpu.matmul %361, %363, %cst_371 {dimension_numbers = #tpu.dot_dimension_numbers<[1], [0], [0], [1], [0, 0, 1, 1], [], []>} : vector<2x128xf32>, vector<128x64xf32>, vector<2x64xf32> -> vector<2x64xf32>
    %365 = arith.addf %359, %364 : vector<2x64xf32>
    %366 = vector.broadcast %0 : vector<1x64xf32> to vector<2x64xf32>
    %367 = arith.addf %365, %366 : vector<2x64xf32>
    %cst_372 = arith.constant 0.000000e+00 : f32
    %368 = vector.broadcast %cst_372 : f32 to vector<2x64xf32>
    %369 = arith.cmpf oge, %367, %368 : vector<2x64xf32>
    %cst_373 = arith.constant 2.000000e-01 : f32
    %370 = vector.broadcast %cst_373 : f32 to vector<2x64xf32>
    %371 = arith.mulf %370, %367 : vector<2x64xf32>
    %372 = arith.select %369, %367, %371 : vector<2x64xi1>, vector<2x64xf32>
    %373 = vector.broadcast %1 : vector<1x64xf32> to vector<2x64xf32>
    %374 = arith.mulf %372, %373 : vector<2x64xf32>
    %375 = vector.broadcast %2 : vector<1x64xf32> to vector<2x64xf32>
    %376 = arith.addf %374, %375 : vector<2x64xf32>
    %c0_374 = arith.constant 0 : index
    %c2_375 = arith.constant 2 : index
    %c3_376 = arith.constant 3 : index
    %c0_377 = arith.constant 0 : index
    %377 = vector.load %arg1[%c0_374, %c2_375, %c3_376, %c0_377] : memref<2x5x5x128xf32, #tpu.memory_space<vmem>>, vector<2x1x1x128xf32>
    %378 = vector.shape_cast %377 : vector<2x1x1x128xf32> to vector<2x128xf32>
    %c0_378 = arith.constant 0 : index
    %c0_379 = arith.constant 0 : index
    %c0_380 = arith.constant 0 : index
    %379 = vector.load %arg2[%c0_378, %c0_379, %c0_380] : memref<4x128x64xf32, #tpu.memory_space<vmem>>, vector<1x128x64xf32>
    %380 = vector.shape_cast %379 : vector<1x128x64xf32> to vector<128x64xf32>
    %cst_381 = arith.constant dense<0.000000e+00> : vector<2x64xf32>
    %381 = tpu.matmul %378, %380, %cst_381 {dimension_numbers = #tpu.dot_dimension_numbers<[1], [0], [0], [1], [0, 0, 1, 1], [], []>} : vector<2x128xf32>, vector<128x64xf32>, vector<2x64xf32> -> vector<2x64xf32>
    %c0_382 = arith.constant 0 : index
    %c2_383 = arith.constant 2 : index
    %c4_384 = arith.constant 4 : index
    %c0_385 = arith.constant 0 : index
    %382 = vector.load %arg1[%c0_382, %c2_383, %c4_384, %c0_385] : memref<2x5x5x128xf32, #tpu.memory_space<vmem>>, vector<2x1x1x128xf32>
    %383 = vector.shape_cast %382 : vector<2x1x1x128xf32> to vector<2x128xf32>
    %c1_386 = arith.constant 1 : index
    %c0_387 = arith.constant 0 : index
    %c0_388 = arith.constant 0 : index
    %384 = vector.load %arg2[%c1_386, %c0_387, %c0_388] : memref<4x128x64xf32, #tpu.memory_space<vmem>>, vector<1x128x64xf32>
    %385 = vector.shape_cast %384 : vector<1x128x64xf32> to vector<128x64xf32>
    %cst_389 = arith.constant dense<0.000000e+00> : vector<2x64xf32>
    %386 = tpu.matmul %383, %385, %cst_389 {dimension_numbers = #tpu.dot_dimension_numbers<[1], [0], [0], [1], [0, 0, 1, 1], [], []>} : vector<2x128xf32>, vector<128x64xf32>, vector<2x64xf32> -> vector<2x64xf32>
    %387 = arith.addf %381, %386 : vector<2x64xf32>
    %c0_390 = arith.constant 0 : index
    %c3_391 = arith.constant 3 : index
    %c3_392 = arith.constant 3 : index
    %c0_393 = arith.constant 0 : index
    %388 = vector.load %arg1[%c0_390, %c3_391, %c3_392, %c0_393] : memref<2x5x5x128xf32, #tpu.memory_space<vmem>>, vector<2x1x1x128xf32>
    %389 = vector.shape_cast %388 : vector<2x1x1x128xf32> to vector<2x128xf32>
    %c2_394 = arith.constant 2 : index
    %c0_395 = arith.constant 0 : index
    %c0_396 = arith.constant 0 : index
    %390 = vector.load %arg2[%c2_394, %c0_395, %c0_396] : memref<4x128x64xf32, #tpu.memory_space<vmem>>, vector<1x128x64xf32>
    %391 = vector.shape_cast %390 : vector<1x128x64xf32> to vector<128x64xf32>
    %cst_397 = arith.constant dense<0.000000e+00> : vector<2x64xf32>
    %392 = tpu.matmul %389, %391, %cst_397 {dimension_numbers = #tpu.dot_dimension_numbers<[1], [0], [0], [1], [0, 0, 1, 1], [], []>} : vector<2x128xf32>, vector<128x64xf32>, vector<2x64xf32> -> vector<2x64xf32>
    %393 = arith.addf %387, %392 : vector<2x64xf32>
    %c0_398 = arith.constant 0 : index
    %c3_399 = arith.constant 3 : index
    %c4_400 = arith.constant 4 : index
    %c0_401 = arith.constant 0 : index
    %394 = vector.load %arg1[%c0_398, %c3_399, %c4_400, %c0_401] : memref<2x5x5x128xf32, #tpu.memory_space<vmem>>, vector<2x1x1x128xf32>
    %395 = vector.shape_cast %394 : vector<2x1x1x128xf32> to vector<2x128xf32>
    %c3_402 = arith.constant 3 : index
    %c0_403 = arith.constant 0 : index
    %c0_404 = arith.constant 0 : index
    %396 = vector.load %arg2[%c3_402, %c0_403, %c0_404] : memref<4x128x64xf32, #tpu.memory_space<vmem>>, vector<1x128x64xf32>
    %397 = vector.shape_cast %396 : vector<1x128x64xf32> to vector<128x64xf32>
    %cst_405 = arith.constant dense<0.000000e+00> : vector<2x64xf32>
    %398 = tpu.matmul %395, %397, %cst_405 {dimension_numbers = #tpu.dot_dimension_numbers<[1], [0], [0], [1], [0, 0, 1, 1], [], []>} : vector<2x128xf32>, vector<128x64xf32>, vector<2x64xf32> -> vector<2x64xf32>
    %399 = arith.addf %393, %398 : vector<2x64xf32>
    %400 = vector.broadcast %0 : vector<1x64xf32> to vector<2x64xf32>
    %401 = arith.addf %399, %400 : vector<2x64xf32>
    %cst_406 = arith.constant 0.000000e+00 : f32
    %402 = vector.broadcast %cst_406 : f32 to vector<2x64xf32>
    %403 = arith.cmpf oge, %401, %402 : vector<2x64xf32>
    %cst_407 = arith.constant 2.000000e-01 : f32
    %404 = vector.broadcast %cst_407 : f32 to vector<2x64xf32>
    %405 = arith.mulf %404, %401 : vector<2x64xf32>
    %406 = arith.select %403, %401, %405 : vector<2x64xi1>, vector<2x64xf32>
    %407 = vector.broadcast %1 : vector<1x64xf32> to vector<2x64xf32>
    %408 = arith.mulf %406, %407 : vector<2x64xf32>
    %409 = vector.broadcast %2 : vector<1x64xf32> to vector<2x64xf32>
    %410 = arith.addf %408, %409 : vector<2x64xf32>
    %c0_408 = arith.constant 0 : index
    %c3_409 = arith.constant 3 : index
    %c0_410 = arith.constant 0 : index
    %c0_411 = arith.constant 0 : index
    %411 = vector.load %arg1[%c0_408, %c3_409, %c0_410, %c0_411] : memref<2x5x5x128xf32, #tpu.memory_space<vmem>>, vector<2x1x1x128xf32>
    %412 = vector.shape_cast %411 : vector<2x1x1x128xf32> to vector<2x128xf32>
    %c0_412 = arith.constant 0 : index
    %c0_413 = arith.constant 0 : index
    %c0_414 = arith.constant 0 : index
    %413 = vector.load %arg2[%c0_412, %c0_413, %c0_414] : memref<4x128x64xf32, #tpu.memory_space<vmem>>, vector<1x128x64xf32>
    %414 = vector.shape_cast %413 : vector<1x128x64xf32> to vector<128x64xf32>
    %cst_415 = arith.constant dense<0.000000e+00> : vector<2x64xf32>
    %415 = tpu.matmul %412, %414, %cst_415 {dimension_numbers = #tpu.dot_dimension_numbers<[1], [0], [0], [1], [0, 0, 1, 1], [], []>} : vector<2x128xf32>, vector<128x64xf32>, vector<2x64xf32> -> vector<2x64xf32>
    %c0_416 = arith.constant 0 : index
    %c3_417 = arith.constant 3 : index
    %c1_418 = arith.constant 1 : index
    %c0_419 = arith.constant 0 : index
    %416 = vector.load %arg1[%c0_416, %c3_417, %c1_418, %c0_419] : memref<2x5x5x128xf32, #tpu.memory_space<vmem>>, vector<2x1x1x128xf32>
    %417 = vector.shape_cast %416 : vector<2x1x1x128xf32> to vector<2x128xf32>
    %c1_420 = arith.constant 1 : index
    %c0_421 = arith.constant 0 : index
    %c0_422 = arith.constant 0 : index
    %418 = vector.load %arg2[%c1_420, %c0_421, %c0_422] : memref<4x128x64xf32, #tpu.memory_space<vmem>>, vector<1x128x64xf32>
    %419 = vector.shape_cast %418 : vector<1x128x64xf32> to vector<128x64xf32>
    %cst_423 = arith.constant dense<0.000000e+00> : vector<2x64xf32>
    %420 = tpu.matmul %417, %419, %cst_423 {dimension_numbers = #tpu.dot_dimension_numbers<[1], [0], [0], [1], [0, 0, 1, 1], [], []>} : vector<2x128xf32>, vector<128x64xf32>, vector<2x64xf32> -> vector<2x64xf32>
    %421 = arith.addf %415, %420 : vector<2x64xf32>
    %c0_424 = arith.constant 0 : index
    %c4_425 = arith.constant 4 : index
    %c0_426 = arith.constant 0 : index
    %c0_427 = arith.constant 0 : index
    %422 = vector.load %arg1[%c0_424, %c4_425, %c0_426, %c0_427] : memref<2x5x5x128xf32, #tpu.memory_space<vmem>>, vector<2x1x1x128xf32>
    %423 = vector.shape_cast %422 : vector<2x1x1x128xf32> to vector<2x128xf32>
    %c2_428 = arith.constant 2 : index
    %c0_429 = arith.constant 0 : index
    %c0_430 = arith.constant 0 : index
    %424 = vector.load %arg2[%c2_428, %c0_429, %c0_430] : memref<4x128x64xf32, #tpu.memory_space<vmem>>, vector<1x128x64xf32>
    %425 = vector.shape_cast %424 : vector<1x128x64xf32> to vector<128x64xf32>
    %cst_431 = arith.constant dense<0.000000e+00> : vector<2x64xf32>
    %426 = tpu.matmul %423, %425, %cst_431 {dimension_numbers = #tpu.dot_dimension_numbers<[1], [0], [0], [1], [0, 0, 1, 1], [], []>} : vector<2x128xf32>, vector<128x64xf32>, vector<2x64xf32> -> vector<2x64xf32>
    %427 = arith.addf %421, %426 : vector<2x64xf32>
    %c0_432 = arith.constant 0 : index
    %c4_433 = arith.constant 4 : index
    %c1_434 = arith.constant 1 : index
    %c0_435 = arith.constant 0 : index
    %428 = vector.load %arg1[%c0_432, %c4_433, %c1_434, %c0_435] : memref<2x5x5x128xf32, #tpu.memory_space<vmem>>, vector<2x1x1x128xf32>
    %429 = vector.shape_cast %428 : vector<2x1x1x128xf32> to vector<2x128xf32>
    %c3_436 = arith.constant 3 : index
    %c0_437 = arith.constant 0 : index
    %c0_438 = arith.constant 0 : index
    %430 = vector.load %arg2[%c3_436, %c0_437, %c0_438] : memref<4x128x64xf32, #tpu.memory_space<vmem>>, vector<1x128x64xf32>
    %431 = vector.shape_cast %430 : vector<1x128x64xf32> to vector<128x64xf32>
    %cst_439 = arith.constant dense<0.000000e+00> : vector<2x64xf32>
    %432 = tpu.matmul %429, %431, %cst_439 {dimension_numbers = #tpu.dot_dimension_numbers<[1], [0], [0], [1], [0, 0, 1, 1], [], []>} : vector<2x128xf32>, vector<128x64xf32>, vector<2x64xf32> -> vector<2x64xf32>
    %433 = arith.addf %427, %432 : vector<2x64xf32>
    %434 = vector.broadcast %0 : vector<1x64xf32> to vector<2x64xf32>
    %435 = arith.addf %433, %434 : vector<2x64xf32>
    %cst_440 = arith.constant 0.000000e+00 : f32
    %436 = vector.broadcast %cst_440 : f32 to vector<2x64xf32>
    %437 = arith.cmpf oge, %435, %436 : vector<2x64xf32>
    %cst_441 = arith.constant 2.000000e-01 : f32
    %438 = vector.broadcast %cst_441 : f32 to vector<2x64xf32>
    %439 = arith.mulf %438, %435 : vector<2x64xf32>
    %440 = arith.select %437, %435, %439 : vector<2x64xi1>, vector<2x64xf32>
    %441 = vector.broadcast %1 : vector<1x64xf32> to vector<2x64xf32>
    %442 = arith.mulf %440, %441 : vector<2x64xf32>
    %443 = vector.broadcast %2 : vector<1x64xf32> to vector<2x64xf32>
    %444 = arith.addf %442, %443 : vector<2x64xf32>
    %c0_442 = arith.constant 0 : index
    %c3_443 = arith.constant 3 : index
    %c1_444 = arith.constant 1 : index
    %c0_445 = arith.constant 0 : index
    %445 = vector.load %arg1[%c0_442, %c3_443, %c1_444, %c0_445] : memref<2x5x5x128xf32, #tpu.memory_space<vmem>>, vector<2x1x1x128xf32>
    %446 = vector.shape_cast %445 : vector<2x1x1x128xf32> to vector<2x128xf32>
    %c0_446 = arith.constant 0 : index
    %c0_447 = arith.constant 0 : index
    %c0_448 = arith.constant 0 : index
    %447 = vector.load %arg2[%c0_446, %c0_447, %c0_448] : memref<4x128x64xf32, #tpu.memory_space<vmem>>, vector<1x128x64xf32>
    %448 = vector.shape_cast %447 : vector<1x128x64xf32> to vector<128x64xf32>
    %cst_449 = arith.constant dense<0.000000e+00> : vector<2x64xf32>
    %449 = tpu.matmul %446, %448, %cst_449 {dimension_numbers = #tpu.dot_dimension_numbers<[1], [0], [0], [1], [0, 0, 1, 1], [], []>} : vector<2x128xf32>, vector<128x64xf32>, vector<2x64xf32> -> vector<2x64xf32>
    %c0_450 = arith.constant 0 : index
    %c3_451 = arith.constant 3 : index
    %c2_452 = arith.constant 2 : index
    %c0_453 = arith.constant 0 : index
    %450 = vector.load %arg1[%c0_450, %c3_451, %c2_452, %c0_453] : memref<2x5x5x128xf32, #tpu.memory_space<vmem>>, vector<2x1x1x128xf32>
    %451 = vector.shape_cast %450 : vector<2x1x1x128xf32> to vector<2x128xf32>
    %c1_454 = arith.constant 1 : index
    %c0_455 = arith.constant 0 : index
    %c0_456 = arith.constant 0 : index
    %452 = vector.load %arg2[%c1_454, %c0_455, %c0_456] : memref<4x128x64xf32, #tpu.memory_space<vmem>>, vector<1x128x64xf32>
    %453 = vector.shape_cast %452 : vector<1x128x64xf32> to vector<128x64xf32>
    %cst_457 = arith.constant dense<0.000000e+00> : vector<2x64xf32>
    %454 = tpu.matmul %451, %453, %cst_457 {dimension_numbers = #tpu.dot_dimension_numbers<[1], [0], [0], [1], [0, 0, 1, 1], [], []>} : vector<2x128xf32>, vector<128x64xf32>, vector<2x64xf32> -> vector<2x64xf32>
    %455 = arith.addf %449, %454 : vector<2x64xf32>
    %c0_458 = arith.constant 0 : index
    %c4_459 = arith.constant 4 : index
    %c1_460 = arith.constant 1 : index
    %c0_461 = arith.constant 0 : index
    %456 = vector.load %arg1[%c0_458, %c4_459, %c1_460, %c0_461] : memref<2x5x5x128xf32, #tpu.memory_space<vmem>>, vector<2x1x1x128xf32>
    %457 = vector.shape_cast %456 : vector<2x1x1x128xf32> to vector<2x128xf32>
    %c2_462 = arith.constant 2 : index
    %c0_463 = arith.constant 0 : index
    %c0_464 = arith.constant 0 : index
    %458 = vector.load %arg2[%c2_462, %c0_463, %c0_464] : memref<4x128x64xf32, #tpu.memory_space<vmem>>, vector<1x128x64xf32>
    %459 = vector.shape_cast %458 : vector<1x128x64xf32> to vector<128x64xf32>
    %cst_465 = arith.constant dense<0.000000e+00> : vector<2x64xf32>
    %460 = tpu.matmul %457, %459, %cst_465 {dimension_numbers = #tpu.dot_dimension_numbers<[1], [0], [0], [1], [0, 0, 1, 1], [], []>} : vector<2x128xf32>, vector<128x64xf32>, vector<2x64xf32> -> vector<2x64xf32>
    %461 = arith.addf %455, %460 : vector<2x64xf32>
    %c0_466 = arith.constant 0 : index
    %c4_467 = arith.constant 4 : index
    %c2_468 = arith.constant 2 : index
    %c0_469 = arith.constant 0 : index
    %462 = vector.load %arg1[%c0_466, %c4_467, %c2_468, %c0_469] : memref<2x5x5x128xf32, #tpu.memory_space<vmem>>, vector<2x1x1x128xf32>
    %463 = vector.shape_cast %462 : vector<2x1x1x128xf32> to vector<2x128xf32>
    %c3_470 = arith.constant 3 : index
    %c0_471 = arith.constant 0 : index
    %c0_472 = arith.constant 0 : index
    %464 = vector.load %arg2[%c3_470, %c0_471, %c0_472] : memref<4x128x64xf32, #tpu.memory_space<vmem>>, vector<1x128x64xf32>
    %465 = vector.shape_cast %464 : vector<1x128x64xf32> to vector<128x64xf32>
    %cst_473 = arith.constant dense<0.000000e+00> : vector<2x64xf32>
    %466 = tpu.matmul %463, %465, %cst_473 {dimension_numbers = #tpu.dot_dimension_numbers<[1], [0], [0], [1], [0, 0, 1, 1], [], []>} : vector<2x128xf32>, vector<128x64xf32>, vector<2x64xf32> -> vector<2x64xf32>
    %467 = arith.addf %461, %466 : vector<2x64xf32>
    %468 = vector.broadcast %0 : vector<1x64xf32> to vector<2x64xf32>
    %469 = arith.addf %467, %468 : vector<2x64xf32>
    %cst_474 = arith.constant 0.000000e+00 : f32
    %470 = vector.broadcast %cst_474 : f32 to vector<2x64xf32>
    %471 = arith.cmpf oge, %469, %470 : vector<2x64xf32>
    %cst_475 = arith.constant 2.000000e-01 : f32
    %472 = vector.broadcast %cst_475 : f32 to vector<2x64xf32>
    %473 = arith.mulf %472, %469 : vector<2x64xf32>
    %474 = arith.select %471, %469, %473 : vector<2x64xi1>, vector<2x64xf32>
    %475 = vector.broadcast %1 : vector<1x64xf32> to vector<2x64xf32>
    %476 = arith.mulf %474, %475 : vector<2x64xf32>
    %477 = vector.broadcast %2 : vector<1x64xf32> to vector<2x64xf32>
    %478 = arith.addf %476, %477 : vector<2x64xf32>
    %c0_476 = arith.constant 0 : index
    %c3_477 = arith.constant 3 : index
    %c2_478 = arith.constant 2 : index
    %c0_479 = arith.constant 0 : index
    %479 = vector.load %arg1[%c0_476, %c3_477, %c2_478, %c0_479] : memref<2x5x5x128xf32, #tpu.memory_space<vmem>>, vector<2x1x1x128xf32>
    %480 = vector.shape_cast %479 : vector<2x1x1x128xf32> to vector<2x128xf32>
    %c0_480 = arith.constant 0 : index
    %c0_481 = arith.constant 0 : index
    %c0_482 = arith.constant 0 : index
    %481 = vector.load %arg2[%c0_480, %c0_481, %c0_482] : memref<4x128x64xf32, #tpu.memory_space<vmem>>, vector<1x128x64xf32>
    %482 = vector.shape_cast %481 : vector<1x128x64xf32> to vector<128x64xf32>
    %cst_483 = arith.constant dense<0.000000e+00> : vector<2x64xf32>
    %483 = tpu.matmul %480, %482, %cst_483 {dimension_numbers = #tpu.dot_dimension_numbers<[1], [0], [0], [1], [0, 0, 1, 1], [], []>} : vector<2x128xf32>, vector<128x64xf32>, vector<2x64xf32> -> vector<2x64xf32>
    %c0_484 = arith.constant 0 : index
    %c3_485 = arith.constant 3 : index
    %c3_486 = arith.constant 3 : index
    %c0_487 = arith.constant 0 : index
    %484 = vector.load %arg1[%c0_484, %c3_485, %c3_486, %c0_487] : memref<2x5x5x128xf32, #tpu.memory_space<vmem>>, vector<2x1x1x128xf32>
    %485 = vector.shape_cast %484 : vector<2x1x1x128xf32> to vector<2x128xf32>
    %c1_488 = arith.constant 1 : index
    %c0_489 = arith.constant 0 : index
    %c0_490 = arith.constant 0 : index
    %486 = vector.load %arg2[%c1_488, %c0_489, %c0_490] : memref<4x128x64xf32, #tpu.memory_space<vmem>>, vector<1x128x64xf32>
    %487 = vector.shape_cast %486 : vector<1x128x64xf32> to vector<128x64xf32>
    %cst_491 = arith.constant dense<0.000000e+00> : vector<2x64xf32>
    %488 = tpu.matmul %485, %487, %cst_491 {dimension_numbers = #tpu.dot_dimension_numbers<[1], [0], [0], [1], [0, 0, 1, 1], [], []>} : vector<2x128xf32>, vector<128x64xf32>, vector<2x64xf32> -> vector<2x64xf32>
    %489 = arith.addf %483, %488 : vector<2x64xf32>
    %c0_492 = arith.constant 0 : index
    %c4_493 = arith.constant 4 : index
    %c2_494 = arith.constant 2 : index
    %c0_495 = arith.constant 0 : index
    %490 = vector.load %arg1[%c0_492, %c4_493, %c2_494, %c0_495] : memref<2x5x5x128xf32, #tpu.memory_space<vmem>>, vector<2x1x1x128xf32>
    %491 = vector.shape_cast %490 : vector<2x1x1x128xf32> to vector<2x128xf32>
    %c2_496 = arith.constant 2 : index
    %c0_497 = arith.constant 0 : index
    %c0_498 = arith.constant 0 : index
    %492 = vector.load %arg2[%c2_496, %c0_497, %c0_498] : memref<4x128x64xf32, #tpu.memory_space<vmem>>, vector<1x128x64xf32>
    %493 = vector.shape_cast %492 : vector<1x128x64xf32> to vector<128x64xf32>
    %cst_499 = arith.constant dense<0.000000e+00> : vector<2x64xf32>
    %494 = tpu.matmul %491, %493, %cst_499 {dimension_numbers = #tpu.dot_dimension_numbers<[1], [0], [0], [1], [0, 0, 1, 1], [], []>} : vector<2x128xf32>, vector<128x64xf32>, vector<2x64xf32> -> vector<2x64xf32>
    %495 = arith.addf %489, %494 : vector<2x64xf32>
    %c0_500 = arith.constant 0 : index
    %c4_501 = arith.constant 4 : index
    %c3_502 = arith.constant 3 : index
    %c0_503 = arith.constant 0 : index
    %496 = vector.load %arg1[%c0_500, %c4_501, %c3_502, %c0_503] : memref<2x5x5x128xf32, #tpu.memory_space<vmem>>, vector<2x1x1x128xf32>
    %497 = vector.shape_cast %496 : vector<2x1x1x128xf32> to vector<2x128xf32>
    %c3_504 = arith.constant 3 : index
    %c0_505 = arith.constant 0 : index
    %c0_506 = arith.constant 0 : index
    %498 = vector.load %arg2[%c3_504, %c0_505, %c0_506] : memref<4x128x64xf32, #tpu.memory_space<vmem>>, vector<1x128x64xf32>
    %499 = vector.shape_cast %498 : vector<1x128x64xf32> to vector<128x64xf32>
    %cst_507 = arith.constant dense<0.000000e+00> : vector<2x64xf32>
    %500 = tpu.matmul %497, %499, %cst_507 {dimension_numbers = #tpu.dot_dimension_numbers<[1], [0], [0], [1], [0, 0, 1, 1], [], []>} : vector<2x128xf32>, vector<128x64xf32>, vector<2x64xf32> -> vector<2x64xf32>
    %501 = arith.addf %495, %500 : vector<2x64xf32>
    %502 = vector.broadcast %0 : vector<1x64xf32> to vector<2x64xf32>
    %503 = arith.addf %501, %502 : vector<2x64xf32>
    %cst_508 = arith.constant 0.000000e+00 : f32
    %504 = vector.broadcast %cst_508 : f32 to vector<2x64xf32>
    %505 = arith.cmpf oge, %503, %504 : vector<2x64xf32>
    %cst_509 = arith.constant 2.000000e-01 : f32
    %506 = vector.broadcast %cst_509 : f32 to vector<2x64xf32>
    %507 = arith.mulf %506, %503 : vector<2x64xf32>
    %508 = arith.select %505, %503, %507 : vector<2x64xi1>, vector<2x64xf32>
    %509 = vector.broadcast %1 : vector<1x64xf32> to vector<2x64xf32>
    %510 = arith.mulf %508, %509 : vector<2x64xf32>
    %511 = vector.broadcast %2 : vector<1x64xf32> to vector<2x64xf32>
    %512 = arith.addf %510, %511 : vector<2x64xf32>
    %c0_510 = arith.constant 0 : index
    %c3_511 = arith.constant 3 : index
    %c3_512 = arith.constant 3 : index
    %c0_513 = arith.constant 0 : index
    %513 = vector.load %arg1[%c0_510, %c3_511, %c3_512, %c0_513] : memref<2x5x5x128xf32, #tpu.memory_space<vmem>>, vector<2x1x1x128xf32>
    %514 = vector.shape_cast %513 : vector<2x1x1x128xf32> to vector<2x128xf32>
    %c0_514 = arith.constant 0 : index
    %c0_515 = arith.constant 0 : index
    %c0_516 = arith.constant 0 : index
    %515 = vector.load %arg2[%c0_514, %c0_515, %c0_516] : memref<4x128x64xf32, #tpu.memory_space<vmem>>, vector<1x128x64xf32>
    %516 = vector.shape_cast %515 : vector<1x128x64xf32> to vector<128x64xf32>
    %cst_517 = arith.constant dense<0.000000e+00> : vector<2x64xf32>
    %517 = tpu.matmul %514, %516, %cst_517 {dimension_numbers = #tpu.dot_dimension_numbers<[1], [0], [0], [1], [0, 0, 1, 1], [], []>} : vector<2x128xf32>, vector<128x64xf32>, vector<2x64xf32> -> vector<2x64xf32>
    %c0_518 = arith.constant 0 : index
    %c3_519 = arith.constant 3 : index
    %c4_520 = arith.constant 4 : index
    %c0_521 = arith.constant 0 : index
    %518 = vector.load %arg1[%c0_518, %c3_519, %c4_520, %c0_521] : memref<2x5x5x128xf32, #tpu.memory_space<vmem>>, vector<2x1x1x128xf32>
    %519 = vector.shape_cast %518 : vector<2x1x1x128xf32> to vector<2x128xf32>
    %c1_522 = arith.constant 1 : index
    %c0_523 = arith.constant 0 : index
    %c0_524 = arith.constant 0 : index
    %520 = vector.load %arg2[%c1_522, %c0_523, %c0_524] : memref<4x128x64xf32, #tpu.memory_space<vmem>>, vector<1x128x64xf32>
    %521 = vector.shape_cast %520 : vector<1x128x64xf32> to vector<128x64xf32>
    %cst_525 = arith.constant dense<0.000000e+00> : vector<2x64xf32>
    %522 = tpu.matmul %519, %521, %cst_525 {dimension_numbers = #tpu.dot_dimension_numbers<[1], [0], [0], [1], [0, 0, 1, 1], [], []>} : vector<2x128xf32>, vector<128x64xf32>, vector<2x64xf32> -> vector<2x64xf32>
    %523 = arith.addf %517, %522 : vector<2x64xf32>
    %c0_526 = arith.constant 0 : index
    %c4_527 = arith.constant 4 : index
    %c3_528 = arith.constant 3 : index
    %c0_529 = arith.constant 0 : index
    %524 = vector.load %arg1[%c0_526, %c4_527, %c3_528, %c0_529] : memref<2x5x5x128xf32, #tpu.memory_space<vmem>>, vector<2x1x1x128xf32>
    %525 = vector.shape_cast %524 : vector<2x1x1x128xf32> to vector<2x128xf32>
    %c2_530 = arith.constant 2 : index
    %c0_531 = arith.constant 0 : index
    %c0_532 = arith.constant 0 : index
    %526 = vector.load %arg2[%c2_530, %c0_531, %c0_532] : memref<4x128x64xf32, #tpu.memory_space<vmem>>, vector<1x128x64xf32>
    %527 = vector.shape_cast %526 : vector<1x128x64xf32> to vector<128x64xf32>
    %cst_533 = arith.constant dense<0.000000e+00> : vector<2x64xf32>
    %528 = tpu.matmul %525, %527, %cst_533 {dimension_numbers = #tpu.dot_dimension_numbers<[1], [0], [0], [1], [0, 0, 1, 1], [], []>} : vector<2x128xf32>, vector<128x64xf32>, vector<2x64xf32> -> vector<2x64xf32>
    %529 = arith.addf %523, %528 : vector<2x64xf32>
    %c0_534 = arith.constant 0 : index
    %c4_535 = arith.constant 4 : index
    %c4_536 = arith.constant 4 : index
    %c0_537 = arith.constant 0 : index
    %530 = vector.load %arg1[%c0_534, %c4_535, %c4_536, %c0_537] : memref<2x5x5x128xf32, #tpu.memory_space<vmem>>, vector<2x1x1x128xf32>
    %531 = vector.shape_cast %530 : vector<2x1x1x128xf32> to vector<2x128xf32>
    %c3_538 = arith.constant 3 : index
    %c0_539 = arith.constant 0 : index
    %c0_540 = arith.constant 0 : index
    %532 = vector.load %arg2[%c3_538, %c0_539, %c0_540] : memref<4x128x64xf32, #tpu.memory_space<vmem>>, vector<1x128x64xf32>
    %533 = vector.shape_cast %532 : vector<1x128x64xf32> to vector<128x64xf32>
    %cst_541 = arith.constant dense<0.000000e+00> : vector<2x64xf32>
    %534 = tpu.matmul %531, %533, %cst_541 {dimension_numbers = #tpu.dot_dimension_numbers<[1], [0], [0], [1], [0, 0, 1, 1], [], []>} : vector<2x128xf32>, vector<128x64xf32>, vector<2x64xf32> -> vector<2x64xf32>
    %535 = arith.addf %529, %534 : vector<2x64xf32>
    %536 = vector.broadcast %0 : vector<1x64xf32> to vector<2x64xf32>
    %537 = arith.addf %535, %536 : vector<2x64xf32>
    %cst_542 = arith.constant 0.000000e+00 : f32
    %538 = vector.broadcast %cst_542 : f32 to vector<2x64xf32>
    %539 = arith.cmpf oge, %537, %538 : vector<2x64xf32>
    %cst_543 = arith.constant 2.000000e-01 : f32
    %540 = vector.broadcast %cst_543 : f32 to vector<2x64xf32>
    %541 = arith.mulf %540, %537 : vector<2x64xf32>
    %542 = arith.select %539, %537, %541 : vector<2x64xi1>, vector<2x64xf32>
    %543 = vector.broadcast %1 : vector<1x64xf32> to vector<2x64xf32>
    %544 = arith.mulf %542, %543 : vector<2x64xf32>
    %545 = vector.broadcast %2 : vector<1x64xf32> to vector<2x64xf32>
    %546 = arith.addf %544, %545 : vector<2x64xf32>
    %547 = tpu.concatenate %36, %70, %104, %138, %172, %206, %240, %274, %308, %342, %376, %410, %444, %478, %512, %546 in 1 : vector<2x64xf32>, vector<2x64xf32>, vector<2x64xf32>, vector<2x64xf32>, vector<2x64xf32>, vector<2x64xf32>, vector<2x64xf32>, vector<2x64xf32>, vector<2x64xf32>, vector<2x64xf32>, vector<2x64xf32>, vector<2x64xf32>, vector<2x64xf32>, vector<2x64xf32>, vector<2x64xf32>, vector<2x64xf32> -> vector<2x1024xf32>
    %c0_544 = arith.constant 0 : index
    %c0_545 = arith.constant 0 : index
    %548 = vector.load %arg6[%c0_544, %c0_545] : memref<2x1024xf32, #tpu.memory_space<vmem>>, vector<2x1024xf32>
    tpu.vector_store %arg6[%c0_544, %c0_545], %547 {strides = array<i32>} : memref<2x1024xf32, #tpu.memory_space<vmem>>, vector<2x1024xf32>,
    return
  }
  func.func @transform_0(%arg0: i32) -> (i32, i32, i32, i32) {
    %c0_i32 = arith.constant 0 : i32
    %c0_i32_0 = arith.constant 0 : i32
    %c0_i32_1 = arith.constant 0 : i32
    %c0_i32_2 = arith.constant 0 : i32
    return %arg0, %c0_i32, %c0_i32_0, %c0_i32_1 : i32, i32, i32, i32
  }
  func.func @transform_1(%arg0: i32) -> (i32, i32, i32) {
    %c0_i32 = arith.constant 0 : i32
    %c0_i32_0 = arith.constant 0 : i32
    %c0_i32_1 = arith.constant 0 : i32
    %c0_i32_2 = arith.constant 0 : i32
    return %c0_i32, %c0_i32_0, %c0_i32_1 : i32, i32, i32
  }
  func.func @transform_2(%arg0: i32) -> (i32, i32) {
    %c0_i32 = arith.constant 0 : i32
    %c0_i32_0 = arith.constant 0 : i32
    %c0_i32_1 = arith.constant 0 : i32
    return %c0_i32, %c0_i32_0 : i32, i32
  }
  func.func @transform_3(%arg0: i32) -> (i32, i32) {
    %c0_i32 = arith.constant 0 : i32
    %c0_i32_0 = arith.constant 0 : i32
    %c0_i32_1 = arith.constant 0 : i32
    return %c0_i32, %c0_i32_0 : i32, i32
  }
  func.func @transform_4(%arg0: i32) -> (i32, i32) {
    %c0_i32 = arith.constant 0 : i32
    %c0_i32_0 = arith.constant 0 : i32
    %c0_i32_1 = arith.constant 0 : i32
    return %c0_i32, %c0_i32_0 : i32, i32
  }
  func.func @transform_5(%arg0: i32) -> (i32, i32) {
    %c0_i32 = arith.constant 0 : i32
    %c0_i32_0 = arith.constant 0 : i32
    return %arg0, %c0_i32 : i32, i32
  }
}

module attributes {stable_mosaic.version = 11 : i64} {
  func.func @_conv_head_kernel(%arg0: i32, %arg1: memref<2x3x3x256xf32, #tpu.memory_space<vmem>>, %arg2: memref<4x256x128xf32, #tpu.memory_space<vmem>>, %arg3: memref<1x128xf32, #tpu.memory_space<vmem>>, %arg4: memref<1x128xf32, #tpu.memory_space<vmem>>, %arg5: memref<1x128xf32, #tpu.memory_space<vmem>>, %arg6: memref<512x128xf32, #tpu.memory_space<vmem>>, %arg7: memref<1x128xf32, #tpu.memory_space<vmem>>, %arg8: memref<2x128xf32, #tpu.memory_space<vmem>>) attributes {dimension_semantics = [#tpu.dimension_semantics<parallel>], iteration_bounds = array<i64: 1>, scalar_prefetch = 0 : i64, scratch_operands = 0 : i64, tpu.core_type = #tpu.core_type<tc>, window_params = [{transform_indices = @transform_0, window_bounds = array<i64: 2, 3, 3, 256>}, {pipeline_mode = #tpu.pipeline_mode<synchronous>, transform_indices = @transform_1, window_bounds = array<i64: 4, 256, 128>}, {pipeline_mode = #tpu.pipeline_mode<synchronous>, transform_indices = @transform_2, window_bounds = array<i64: 1, 128>}, {pipeline_mode = #tpu.pipeline_mode<synchronous>, transform_indices = @transform_3, window_bounds = array<i64: 1, 128>}, {pipeline_mode = #tpu.pipeline_mode<synchronous>, transform_indices = @transform_4, window_bounds = array<i64: 1, 128>}, {pipeline_mode = #tpu.pipeline_mode<synchronous>, transform_indices = @transform_5, window_bounds = array<i64: 512, 128>}, {pipeline_mode = #tpu.pipeline_mode<synchronous>, transform_indices = @transform_6, window_bounds = array<i64: 1, 128>}, {transform_indices = @transform_7, window_bounds = array<i64: 2, 128>}]} {
    %c0 = arith.constant 0 : index
    %c0_0 = arith.constant 0 : index
    %0 = vector.load %arg3[%c0, %c0_0] : memref<1x128xf32, #tpu.memory_space<vmem>>, vector<1x128xf32>
    %c0_1 = arith.constant 0 : index
    %c0_2 = arith.constant 0 : index
    %1 = vector.load %arg4[%c0_1, %c0_2] : memref<1x128xf32, #tpu.memory_space<vmem>>, vector<1x128xf32>
    %c0_3 = arith.constant 0 : index
    %c0_4 = arith.constant 0 : index
    %2 = vector.load %arg5[%c0_3, %c0_4] : memref<1x128xf32, #tpu.memory_space<vmem>>, vector<1x128xf32>
    %c0_5 = arith.constant 0 : index
    %c0_6 = arith.constant 0 : index
    %c0_7 = arith.constant 0 : index
    %c0_8 = arith.constant 0 : index
    %3 = vector.load %arg1[%c0_5, %c0_6, %c0_7, %c0_8] : memref<2x3x3x256xf32, #tpu.memory_space<vmem>>, vector<2x1x1x256xf32>
    %4 = vector.shape_cast %3 : vector<2x1x1x256xf32> to vector<2x256xf32>
    %c0_9 = arith.constant 0 : index
    %c0_10 = arith.constant 0 : index
    %c0_11 = arith.constant 0 : index
    %5 = vector.load %arg2[%c0_9, %c0_10, %c0_11] : memref<4x256x128xf32, #tpu.memory_space<vmem>>, vector<1x256x128xf32>
    %6 = vector.shape_cast %5 : vector<1x256x128xf32> to vector<256x128xf32>
    %cst = arith.constant dense<0.000000e+00> : vector<2x128xf32>
    %7 = tpu.matmul %4, %6, %cst {dimension_numbers = #tpu.dot_dimension_numbers<[1], [0], [0], [1], [0, 0, 1, 1], [], []>} : vector<2x256xf32>, vector<256x128xf32>, vector<2x128xf32> -> vector<2x128xf32>
    %c0_12 = arith.constant 0 : index
    %c0_13 = arith.constant 0 : index
    %c1 = arith.constant 1 : index
    %c0_14 = arith.constant 0 : index
    %8 = vector.load %arg1[%c0_12, %c0_13, %c1, %c0_14] : memref<2x3x3x256xf32, #tpu.memory_space<vmem>>, vector<2x1x1x256xf32>
    %9 = vector.shape_cast %8 : vector<2x1x1x256xf32> to vector<2x256xf32>
    %c1_15 = arith.constant 1 : index
    %c0_16 = arith.constant 0 : index
    %c0_17 = arith.constant 0 : index
    %10 = vector.load %arg2[%c1_15, %c0_16, %c0_17] : memref<4x256x128xf32, #tpu.memory_space<vmem>>, vector<1x256x128xf32>
    %11 = vector.shape_cast %10 : vector<1x256x128xf32> to vector<256x128xf32>
    %cst_18 = arith.constant dense<0.000000e+00> : vector<2x128xf32>
    %12 = tpu.matmul %9, %11, %cst_18 {dimension_numbers = #tpu.dot_dimension_numbers<[1], [0], [0], [1], [0, 0, 1, 1], [], []>} : vector<2x256xf32>, vector<256x128xf32>, vector<2x128xf32> -> vector<2x128xf32>
    %13 = arith.addf %7, %12 : vector<2x128xf32>
    %c0_19 = arith.constant 0 : index
    %c1_20 = arith.constant 1 : index
    %c0_21 = arith.constant 0 : index
    %c0_22 = arith.constant 0 : index
    %14 = vector.load %arg1[%c0_19, %c1_20, %c0_21, %c0_22] : memref<2x3x3x256xf32, #tpu.memory_space<vmem>>, vector<2x1x1x256xf32>
    %15 = vector.shape_cast %14 : vector<2x1x1x256xf32> to vector<2x256xf32>
    %c2 = arith.constant 2 : index
    %c0_23 = arith.constant 0 : index
    %c0_24 = arith.constant 0 : index
    %16 = vector.load %arg2[%c2, %c0_23, %c0_24] : memref<4x256x128xf32, #tpu.memory_space<vmem>>, vector<1x256x128xf32>
    %17 = vector.shape_cast %16 : vector<1x256x128xf32> to vector<256x128xf32>
    %cst_25 = arith.constant dense<0.000000e+00> : vector<2x128xf32>
    %18 = tpu.matmul %15, %17, %cst_25 {dimension_numbers = #tpu.dot_dimension_numbers<[1], [0], [0], [1], [0, 0, 1, 1], [], []>} : vector<2x256xf32>, vector<256x128xf32>, vector<2x128xf32> -> vector<2x128xf32>
    %19 = arith.addf %13, %18 : vector<2x128xf32>
    %c0_26 = arith.constant 0 : index
    %c1_27 = arith.constant 1 : index
    %c1_28 = arith.constant 1 : index
    %c0_29 = arith.constant 0 : index
    %20 = vector.load %arg1[%c0_26, %c1_27, %c1_28, %c0_29] : memref<2x3x3x256xf32, #tpu.memory_space<vmem>>, vector<2x1x1x256xf32>
    %21 = vector.shape_cast %20 : vector<2x1x1x256xf32> to vector<2x256xf32>
    %c3 = arith.constant 3 : index
    %c0_30 = arith.constant 0 : index
    %c0_31 = arith.constant 0 : index
    %22 = vector.load %arg2[%c3, %c0_30, %c0_31] : memref<4x256x128xf32, #tpu.memory_space<vmem>>, vector<1x256x128xf32>
    %23 = vector.shape_cast %22 : vector<1x256x128xf32> to vector<256x128xf32>
    %cst_32 = arith.constant dense<0.000000e+00> : vector<2x128xf32>
    %24 = tpu.matmul %21, %23, %cst_32 {dimension_numbers = #tpu.dot_dimension_numbers<[1], [0], [0], [1], [0, 0, 1, 1], [], []>} : vector<2x256xf32>, vector<256x128xf32>, vector<2x128xf32> -> vector<2x128xf32>
    %25 = arith.addf %19, %24 : vector<2x128xf32>
    %26 = vector.broadcast %0 : vector<1x128xf32> to vector<2x128xf32>
    %27 = arith.addf %25, %26 : vector<2x128xf32>
    %cst_33 = arith.constant 0.000000e+00 : f32
    %28 = vector.broadcast %cst_33 : f32 to vector<2x128xf32>
    %29 = arith.cmpf oge, %27, %28 : vector<2x128xf32>
    %cst_34 = arith.constant 2.000000e-01 : f32
    %30 = vector.broadcast %cst_34 : f32 to vector<2x128xf32>
    %31 = arith.mulf %30, %27 : vector<2x128xf32>
    %32 = arith.select %29, %27, %31 : vector<2x128xi1>, vector<2x128xf32>
    %33 = vector.broadcast %1 : vector<1x128xf32> to vector<2x128xf32>
    %34 = arith.mulf %32, %33 : vector<2x128xf32>
    %35 = vector.broadcast %2 : vector<1x128xf32> to vector<2x128xf32>
    %36 = arith.addf %34, %35 : vector<2x128xf32>
    %c0_35 = arith.constant 0 : index
    %c0_36 = arith.constant 0 : index
    %c1_37 = arith.constant 1 : index
    %c0_38 = arith.constant 0 : index
    %37 = vector.load %arg1[%c0_35, %c0_36, %c1_37, %c0_38] : memref<2x3x3x256xf32, #tpu.memory_space<vmem>>, vector<2x1x1x256xf32>
    %38 = vector.shape_cast %37 : vector<2x1x1x256xf32> to vector<2x256xf32>
    %c0_39 = arith.constant 0 : index
    %c0_40 = arith.constant 0 : index
    %c0_41 = arith.constant 0 : index
    %39 = vector.load %arg2[%c0_39, %c0_40, %c0_41] : memref<4x256x128xf32, #tpu.memory_space<vmem>>, vector<1x256x128xf32>
    %40 = vector.shape_cast %39 : vector<1x256x128xf32> to vector<256x128xf32>
    %cst_42 = arith.constant dense<0.000000e+00> : vector<2x128xf32>
    %41 = tpu.matmul %38, %40, %cst_42 {dimension_numbers = #tpu.dot_dimension_numbers<[1], [0], [0], [1], [0, 0, 1, 1], [], []>} : vector<2x256xf32>, vector<256x128xf32>, vector<2x128xf32> -> vector<2x128xf32>
    %c0_43 = arith.constant 0 : index
    %c0_44 = arith.constant 0 : index
    %c2_45 = arith.constant 2 : index
    %c0_46 = arith.constant 0 : index
    %42 = vector.load %arg1[%c0_43, %c0_44, %c2_45, %c0_46] : memref<2x3x3x256xf32, #tpu.memory_space<vmem>>, vector<2x1x1x256xf32>
    %43 = vector.shape_cast %42 : vector<2x1x1x256xf32> to vector<2x256xf32>
    %c1_47 = arith.constant 1 : index
    %c0_48 = arith.constant 0 : index
    %c0_49 = arith.constant 0 : index
    %44 = vector.load %arg2[%c1_47, %c0_48, %c0_49] : memref<4x256x128xf32, #tpu.memory_space<vmem>>, vector<1x256x128xf32>
    %45 = vector.shape_cast %44 : vector<1x256x128xf32> to vector<256x128xf32>
    %cst_50 = arith.constant dense<0.000000e+00> : vector<2x128xf32>
    %46 = tpu.matmul %43, %45, %cst_50 {dimension_numbers = #tpu.dot_dimension_numbers<[1], [0], [0], [1], [0, 0, 1, 1], [], []>} : vector<2x256xf32>, vector<256x128xf32>, vector<2x128xf32> -> vector<2x128xf32>
    %47 = arith.addf %41, %46 : vector<2x128xf32>
    %c0_51 = arith.constant 0 : index
    %c1_52 = arith.constant 1 : index
    %c1_53 = arith.constant 1 : index
    %c0_54 = arith.constant 0 : index
    %48 = vector.load %arg1[%c0_51, %c1_52, %c1_53, %c0_54] : memref<2x3x3x256xf32, #tpu.memory_space<vmem>>, vector<2x1x1x256xf32>
    %49 = vector.shape_cast %48 : vector<2x1x1x256xf32> to vector<2x256xf32>
    %c2_55 = arith.constant 2 : index
    %c0_56 = arith.constant 0 : index
    %c0_57 = arith.constant 0 : index
    %50 = vector.load %arg2[%c2_55, %c0_56, %c0_57] : memref<4x256x128xf32, #tpu.memory_space<vmem>>, vector<1x256x128xf32>
    %51 = vector.shape_cast %50 : vector<1x256x128xf32> to vector<256x128xf32>
    %cst_58 = arith.constant dense<0.000000e+00> : vector<2x128xf32>
    %52 = tpu.matmul %49, %51, %cst_58 {dimension_numbers = #tpu.dot_dimension_numbers<[1], [0], [0], [1], [0, 0, 1, 1], [], []>} : vector<2x256xf32>, vector<256x128xf32>, vector<2x128xf32> -> vector<2x128xf32>
    %53 = arith.addf %47, %52 : vector<2x128xf32>
    %c0_59 = arith.constant 0 : index
    %c1_60 = arith.constant 1 : index
    %c2_61 = arith.constant 2 : index
    %c0_62 = arith.constant 0 : index
    %54 = vector.load %arg1[%c0_59, %c1_60, %c2_61, %c0_62] : memref<2x3x3x256xf32, #tpu.memory_space<vmem>>, vector<2x1x1x256xf32>
    %55 = vector.shape_cast %54 : vector<2x1x1x256xf32> to vector<2x256xf32>
    %c3_63 = arith.constant 3 : index
    %c0_64 = arith.constant 0 : index
    %c0_65 = arith.constant 0 : index
    %56 = vector.load %arg2[%c3_63, %c0_64, %c0_65] : memref<4x256x128xf32, #tpu.memory_space<vmem>>, vector<1x256x128xf32>
    %57 = vector.shape_cast %56 : vector<1x256x128xf32> to vector<256x128xf32>
    %cst_66 = arith.constant dense<0.000000e+00> : vector<2x128xf32>
    %58 = tpu.matmul %55, %57, %cst_66 {dimension_numbers = #tpu.dot_dimension_numbers<[1], [0], [0], [1], [0, 0, 1, 1], [], []>} : vector<2x256xf32>, vector<256x128xf32>, vector<2x128xf32> -> vector<2x128xf32>
    %59 = arith.addf %53, %58 : vector<2x128xf32>
    %60 = vector.broadcast %0 : vector<1x128xf32> to vector<2x128xf32>
    %61 = arith.addf %59, %60 : vector<2x128xf32>
    %cst_67 = arith.constant 0.000000e+00 : f32
    %62 = vector.broadcast %cst_67 : f32 to vector<2x128xf32>
    %63 = arith.cmpf oge, %61, %62 : vector<2x128xf32>
    %cst_68 = arith.constant 2.000000e-01 : f32
    %64 = vector.broadcast %cst_68 : f32 to vector<2x128xf32>
    %65 = arith.mulf %64, %61 : vector<2x128xf32>
    %66 = arith.select %63, %61, %65 : vector<2x128xi1>, vector<2x128xf32>
    %67 = vector.broadcast %1 : vector<1x128xf32> to vector<2x128xf32>
    %68 = arith.mulf %66, %67 : vector<2x128xf32>
    %69 = vector.broadcast %2 : vector<1x128xf32> to vector<2x128xf32>
    %70 = arith.addf %68, %69 : vector<2x128xf32>
    %c0_69 = arith.constant 0 : index
    %c1_70 = arith.constant 1 : index
    %c0_71 = arith.constant 0 : index
    %c0_72 = arith.constant 0 : index
    %71 = vector.load %arg1[%c0_69, %c1_70, %c0_71, %c0_72] : memref<2x3x3x256xf32, #tpu.memory_space<vmem>>, vector<2x1x1x256xf32>
    %72 = vector.shape_cast %71 : vector<2x1x1x256xf32> to vector<2x256xf32>
    %c0_73 = arith.constant 0 : index
    %c0_74 = arith.constant 0 : index
    %c0_75 = arith.constant 0 : index
    %73 = vector.load %arg2[%c0_73, %c0_74, %c0_75] : memref<4x256x128xf32, #tpu.memory_space<vmem>>, vector<1x256x128xf32>
    %74 = vector.shape_cast %73 : vector<1x256x128xf32> to vector<256x128xf32>
    %cst_76 = arith.constant dense<0.000000e+00> : vector<2x128xf32>
    %75 = tpu.matmul %72, %74, %cst_76 {dimension_numbers = #tpu.dot_dimension_numbers<[1], [0], [0], [1], [0, 0, 1, 1], [], []>} : vector<2x256xf32>, vector<256x128xf32>, vector<2x128xf32> -> vector<2x128xf32>
    %c0_77 = arith.constant 0 : index
    %c1_78 = arith.constant 1 : index
    %c1_79 = arith.constant 1 : index
    %c0_80 = arith.constant 0 : index
    %76 = vector.load %arg1[%c0_77, %c1_78, %c1_79, %c0_80] : memref<2x3x3x256xf32, #tpu.memory_space<vmem>>, vector<2x1x1x256xf32>
    %77 = vector.shape_cast %76 : vector<2x1x1x256xf32> to vector<2x256xf32>
    %c1_81 = arith.constant 1 : index
    %c0_82 = arith.constant 0 : index
    %c0_83 = arith.constant 0 : index
    %78 = vector.load %arg2[%c1_81, %c0_82, %c0_83] : memref<4x256x128xf32, #tpu.memory_space<vmem>>, vector<1x256x128xf32>
    %79 = vector.shape_cast %78 : vector<1x256x128xf32> to vector<256x128xf32>
    %cst_84 = arith.constant dense<0.000000e+00> : vector<2x128xf32>
    %80 = tpu.matmul %77, %79, %cst_84 {dimension_numbers = #tpu.dot_dimension_numbers<[1], [0], [0], [1], [0, 0, 1, 1], [], []>} : vector<2x256xf32>, vector<256x128xf32>, vector<2x128xf32> -> vector<2x128xf32>
    %81 = arith.addf %75, %80 : vector<2x128xf32>
    %c0_85 = arith.constant 0 : index
    %c2_86 = arith.constant 2 : index
    %c0_87 = arith.constant 0 : index
    %c0_88 = arith.constant 0 : index
    %82 = vector.load %arg1[%c0_85, %c2_86, %c0_87, %c0_88] : memref<2x3x3x256xf32, #tpu.memory_space<vmem>>, vector<2x1x1x256xf32>
    %83 = vector.shape_cast %82 : vector<2x1x1x256xf32> to vector<2x256xf32>
    %c2_89 = arith.constant 2 : index
    %c0_90 = arith.constant 0 : index
    %c0_91 = arith.constant 0 : index
    %84 = vector.load %arg2[%c2_89, %c0_90, %c0_91] : memref<4x256x128xf32, #tpu.memory_space<vmem>>, vector<1x256x128xf32>
    %85 = vector.shape_cast %84 : vector<1x256x128xf32> to vector<256x128xf32>
    %cst_92 = arith.constant dense<0.000000e+00> : vector<2x128xf32>
    %86 = tpu.matmul %83, %85, %cst_92 {dimension_numbers = #tpu.dot_dimension_numbers<[1], [0], [0], [1], [0, 0, 1, 1], [], []>} : vector<2x256xf32>, vector<256x128xf32>, vector<2x128xf32> -> vector<2x128xf32>
    %87 = arith.addf %81, %86 : vector<2x128xf32>
    %c0_93 = arith.constant 0 : index
    %c2_94 = arith.constant 2 : index
    %c1_95 = arith.constant 1 : index
    %c0_96 = arith.constant 0 : index
    %88 = vector.load %arg1[%c0_93, %c2_94, %c1_95, %c0_96] : memref<2x3x3x256xf32, #tpu.memory_space<vmem>>, vector<2x1x1x256xf32>
    %89 = vector.shape_cast %88 : vector<2x1x1x256xf32> to vector<2x256xf32>
    %c3_97 = arith.constant 3 : index
    %c0_98 = arith.constant 0 : index
    %c0_99 = arith.constant 0 : index
    %90 = vector.load %arg2[%c3_97, %c0_98, %c0_99] : memref<4x256x128xf32, #tpu.memory_space<vmem>>, vector<1x256x128xf32>
    %91 = vector.shape_cast %90 : vector<1x256x128xf32> to vector<256x128xf32>
    %cst_100 = arith.constant dense<0.000000e+00> : vector<2x128xf32>
    %92 = tpu.matmul %89, %91, %cst_100 {dimension_numbers = #tpu.dot_dimension_numbers<[1], [0], [0], [1], [0, 0, 1, 1], [], []>} : vector<2x256xf32>, vector<256x128xf32>, vector<2x128xf32> -> vector<2x128xf32>
    %93 = arith.addf %87, %92 : vector<2x128xf32>
    %94 = vector.broadcast %0 : vector<1x128xf32> to vector<2x128xf32>
    %95 = arith.addf %93, %94 : vector<2x128xf32>
    %cst_101 = arith.constant 0.000000e+00 : f32
    %96 = vector.broadcast %cst_101 : f32 to vector<2x128xf32>
    %97 = arith.cmpf oge, %95, %96 : vector<2x128xf32>
    %cst_102 = arith.constant 2.000000e-01 : f32
    %98 = vector.broadcast %cst_102 : f32 to vector<2x128xf32>
    %99 = arith.mulf %98, %95 : vector<2x128xf32>
    %100 = arith.select %97, %95, %99 : vector<2x128xi1>, vector<2x128xf32>
    %101 = vector.broadcast %1 : vector<1x128xf32> to vector<2x128xf32>
    %102 = arith.mulf %100, %101 : vector<2x128xf32>
    %103 = vector.broadcast %2 : vector<1x128xf32> to vector<2x128xf32>
    %104 = arith.addf %102, %103 : vector<2x128xf32>
    %c0_103 = arith.constant 0 : index
    %c1_104 = arith.constant 1 : index
    %c1_105 = arith.constant 1 : index
    %c0_106 = arith.constant 0 : index
    %105 = vector.load %arg1[%c0_103, %c1_104, %c1_105, %c0_106] : memref<2x3x3x256xf32, #tpu.memory_space<vmem>>, vector<2x1x1x256xf32>
    %106 = vector.shape_cast %105 : vector<2x1x1x256xf32> to vector<2x256xf32>
    %c0_107 = arith.constant 0 : index
    %c0_108 = arith.constant 0 : index
    %c0_109 = arith.constant 0 : index
    %107 = vector.load %arg2[%c0_107, %c0_108, %c0_109] : memref<4x256x128xf32, #tpu.memory_space<vmem>>, vector<1x256x128xf32>
    %108 = vector.shape_cast %107 : vector<1x256x128xf32> to vector<256x128xf32>
    %cst_110 = arith.constant dense<0.000000e+00> : vector<2x128xf32>
    %109 = tpu.matmul %106, %108, %cst_110 {dimension_numbers = #tpu.dot_dimension_numbers<[1], [0], [0], [1], [0, 0, 1, 1], [], []>} : vector<2x256xf32>, vector<256x128xf32>, vector<2x128xf32> -> vector<2x128xf32>
    %c0_111 = arith.constant 0 : index
    %c1_112 = arith.constant 1 : index
    %c2_113 = arith.constant 2 : index
    %c0_114 = arith.constant 0 : index
    %110 = vector.load %arg1[%c0_111, %c1_112, %c2_113, %c0_114] : memref<2x3x3x256xf32, #tpu.memory_space<vmem>>, vector<2x1x1x256xf32>
    %111 = vector.shape_cast %110 : vector<2x1x1x256xf32> to vector<2x256xf32>
    %c1_115 = arith.constant 1 : index
    %c0_116 = arith.constant 0 : index
    %c0_117 = arith.constant 0 : index
    %112 = vector.load %arg2[%c1_115, %c0_116, %c0_117] : memref<4x256x128xf32, #tpu.memory_space<vmem>>, vector<1x256x128xf32>
    %113 = vector.shape_cast %112 : vector<1x256x128xf32> to vector<256x128xf32>
    %cst_118 = arith.constant dense<0.000000e+00> : vector<2x128xf32>
    %114 = tpu.matmul %111, %113, %cst_118 {dimension_numbers = #tpu.dot_dimension_numbers<[1], [0], [0], [1], [0, 0, 1, 1], [], []>} : vector<2x256xf32>, vector<256x128xf32>, vector<2x128xf32> -> vector<2x128xf32>
    %115 = arith.addf %109, %114 : vector<2x128xf32>
    %c0_119 = arith.constant 0 : index
    %c2_120 = arith.constant 2 : index
    %c1_121 = arith.constant 1 : index
    %c0_122 = arith.constant 0 : index
    %116 = vector.load %arg1[%c0_119, %c2_120, %c1_121, %c0_122] : memref<2x3x3x256xf32, #tpu.memory_space<vmem>>, vector<2x1x1x256xf32>
    %117 = vector.shape_cast %116 : vector<2x1x1x256xf32> to vector<2x256xf32>
    %c2_123 = arith.constant 2 : index
    %c0_124 = arith.constant 0 : index
    %c0_125 = arith.constant 0 : index
    %118 = vector.load %arg2[%c2_123, %c0_124, %c0_125] : memref<4x256x128xf32, #tpu.memory_space<vmem>>, vector<1x256x128xf32>
    %119 = vector.shape_cast %118 : vector<1x256x128xf32> to vector<256x128xf32>
    %cst_126 = arith.constant dense<0.000000e+00> : vector<2x128xf32>
    %120 = tpu.matmul %117, %119, %cst_126 {dimension_numbers = #tpu.dot_dimension_numbers<[1], [0], [0], [1], [0, 0, 1, 1], [], []>} : vector<2x256xf32>, vector<256x128xf32>, vector<2x128xf32> -> vector<2x128xf32>
    %121 = arith.addf %115, %120 : vector<2x128xf32>
    %c0_127 = arith.constant 0 : index
    %c2_128 = arith.constant 2 : index
    %c2_129 = arith.constant 2 : index
    %c0_130 = arith.constant 0 : index
    %122 = vector.load %arg1[%c0_127, %c2_128, %c2_129, %c0_130] : memref<2x3x3x256xf32, #tpu.memory_space<vmem>>, vector<2x1x1x256xf32>
    %123 = vector.shape_cast %122 : vector<2x1x1x256xf32> to vector<2x256xf32>
    %c3_131 = arith.constant 3 : index
    %c0_132 = arith.constant 0 : index
    %c0_133 = arith.constant 0 : index
    %124 = vector.load %arg2[%c3_131, %c0_132, %c0_133] : memref<4x256x128xf32, #tpu.memory_space<vmem>>, vector<1x256x128xf32>
    %125 = vector.shape_cast %124 : vector<1x256x128xf32> to vector<256x128xf32>
    %cst_134 = arith.constant dense<0.000000e+00> : vector<2x128xf32>
    %126 = tpu.matmul %123, %125, %cst_134 {dimension_numbers = #tpu.dot_dimension_numbers<[1], [0], [0], [1], [0, 0, 1, 1], [], []>} : vector<2x256xf32>, vector<256x128xf32>, vector<2x128xf32> -> vector<2x128xf32>
    %127 = arith.addf %121, %126 : vector<2x128xf32>
    %128 = vector.broadcast %0 : vector<1x128xf32> to vector<2x128xf32>
    %129 = arith.addf %127, %128 : vector<2x128xf32>
    %cst_135 = arith.constant 0.000000e+00 : f32
    %130 = vector.broadcast %cst_135 : f32 to vector<2x128xf32>
    %131 = arith.cmpf oge, %129, %130 : vector<2x128xf32>
    %cst_136 = arith.constant 2.000000e-01 : f32
    %132 = vector.broadcast %cst_136 : f32 to vector<2x128xf32>
    %133 = arith.mulf %132, %129 : vector<2x128xf32>
    %134 = arith.select %131, %129, %133 : vector<2x128xi1>, vector<2x128xf32>
    %135 = vector.broadcast %1 : vector<1x128xf32> to vector<2x128xf32>
    %136 = arith.mulf %134, %135 : vector<2x128xf32>
    %137 = vector.broadcast %2 : vector<1x128xf32> to vector<2x128xf32>
    %138 = arith.addf %136, %137 : vector<2x128xf32>
    %139 = tpu.concatenate %36, %70, %104, %138 in 1 : vector<2x128xf32>, vector<2x128xf32>, vector<2x128xf32>, vector<2x128xf32> -> vector<2x512xf32>
    %c0_137 = arith.constant 0 : index
    %c0_138 = arith.constant 0 : index
    %140 = vector.load %arg6[%c0_137, %c0_138] : memref<512x128xf32, #tpu.memory_space<vmem>>, vector<512x128xf32>
    %cst_139 = arith.constant dense<0.000000e+00> : vector<2x128xf32>
    %141 = tpu.matmul %139, %140, %cst_139 {dimension_numbers = #tpu.dot_dimension_numbers<[1], [0], [0], [1], [0, 0, 1, 1], [], []>} : vector<2x512xf32>, vector<512x128xf32>, vector<2x128xf32> -> vector<2x128xf32>
    %c0_140 = arith.constant 0 : index
    %c0_141 = arith.constant 0 : index
    %142 = vector.load %arg7[%c0_140, %c0_141] : memref<1x128xf32, #tpu.memory_space<vmem>>, vector<1x128xf32>
    %143 = vector.broadcast %142 : vector<1x128xf32> to vector<2x128xf32>
    %144 = arith.addf %141, %143 : vector<2x128xf32>
    %145 = tpu.iota {dimensions = array<i32: 1>} : vector<2x128xi32>
    %cst_142 = arith.constant 0.000000e+00 : f32
    %146 = vector.broadcast %cst_142 : f32 to vector<2x128xf32>
    %147 = arith.subf %146, %144 : vector<2x128xf32>
    %148 = math.exp %147 : vector<2x128xf32>
    %cst_143 = arith.constant 1.000000e+00 : f32
    %149 = vector.broadcast %cst_143 : f32 to vector<2x128xf32>
    %150 = arith.addf %149, %148 : vector<2x128xf32>
    %cst_144 = arith.constant 1.000000e+00 : f32
    %151 = vector.broadcast %cst_144 : f32 to vector<2x128xf32>
    %152 = arith.divf %151, %150 : vector<2x128xf32>
    %c0_i32 = arith.constant 0 : i32
    %153 = vector.broadcast %c0_i32 : i32 to vector<2x128xi32>
    %154 = arith.cmpi eq, %145, %153 : vector<2x128xi32>
    %155 = arith.select %154, %152, %144 : vector<2x128xi1>, vector<2x128xf32>
    %c0_145 = arith.constant 0 : index
    %c0_146 = arith.constant 0 : index
    %156 = vector.load %arg8[%c0_145, %c0_146] : memref<2x128xf32, #tpu.memory_space<vmem>>, vector<2x128xf32>
    tpu.vector_store %arg8[%c0_145, %c0_146], %155 {strides = array<i32>} : memref<2x128xf32, #tpu.memory_space<vmem>>, vector<2x128xf32>,
    return
  }
  func.func @transform_0(%arg0: i32) -> (i32, i32, i32, i32) {
    %c0_i32 = arith.constant 0 : i32
    %c0_i32_0 = arith.constant 0 : i32
    %c0_i32_1 = arith.constant 0 : i32
    %c0_i32_2 = arith.constant 0 : i32
    return %arg0, %c0_i32, %c0_i32_0, %c0_i32_1 : i32, i32, i32, i32
  }
  func.func @transform_1(%arg0: i32) -> (i32, i32, i32) {
    %c0_i32 = arith.constant 0 : i32
    %c0_i32_0 = arith.constant 0 : i32
    %c0_i32_1 = arith.constant 0 : i32
    %c0_i32_2 = arith.constant 0 : i32
    return %c0_i32, %c0_i32_0, %c0_i32_1 : i32, i32, i32
  }
  func.func @transform_2(%arg0: i32) -> (i32, i32) {
    %c0_i32 = arith.constant 0 : i32
    %c0_i32_0 = arith.constant 0 : i32
    %c0_i32_1 = arith.constant 0 : i32
    return %c0_i32, %c0_i32_0 : i32, i32
  }
  func.func @transform_3(%arg0: i32) -> (i32, i32) {
    %c0_i32 = arith.constant 0 : i32
    %c0_i32_0 = arith.constant 0 : i32
    %c0_i32_1 = arith.constant 0 : i32
    return %c0_i32, %c0_i32_0 : i32, i32
  }
  func.func @transform_4(%arg0: i32) -> (i32, i32) {
    %c0_i32 = arith.constant 0 : i32
    %c0_i32_0 = arith.constant 0 : i32
    %c0_i32_1 = arith.constant 0 : i32
    return %c0_i32, %c0_i32_0 : i32, i32
  }
  func.func @transform_5(%arg0: i32) -> (i32, i32) {
    %c0_i32 = arith.constant 0 : i32
    %c0_i32_0 = arith.constant 0 : i32
    %c0_i32_1 = arith.constant 0 : i32
    return %c0_i32, %c0_i32_0 : i32, i32
  }
  func.func @transform_6(%arg0: i32) -> (i32, i32) {
    %c0_i32 = arith.constant 0 : i32
    %c0_i32_0 = arith.constant 0 : i32
    %c0_i32_1 = arith.constant 0 : i32
    return %c0_i32, %c0_i32_0 : i32, i32
  }
  func.func @transform_7(%arg0: i32) -> (i32, i32) {
    %c0_i32 = arith.constant 0 : i32
    %c0_i32_0 = arith.constant 0 : i32
    return %arg0, %c0_i32 : i32, i32
  }
}

</mosaic_0001>

<bundles_post_ra>
// kernel: forward.4
= control target key start
LH: loop header
LB: loop body
LE: loop exit
PB: predicated region body
PF: predicated region fallthrough
CT: control target
= control target key end

     0   :  { %vm346_vm0 = vcmask 1043456   ;;  %vm153_vm1 = vcmask 97280   ;;  %vm4493_vm2 = vmmov 1   ;;  %vm3143_vm6 = vcmask 130048   ;;  %s6190_s1 = inlined_call_operand.vmem [shape: f32[4,12,16], index: 1, kind: input, shape index: {}]   ;;  %s6191_s0 = inlined_call_operand.vmem [shape: f32[2,17,17,12], index: 0, kind: input, shape index: {}]   ;;  %s6192_s2 = inlined_call_operand.vmem [shape: f32[1,16], index: 2, kind: input, shape index: {}]   ;;  %s6193_s3 = inlined_call_operand.vmem [shape: f32[1,16], index: 3, kind: input, shape index: {}]   ;;  %s6194_s4 = inlined_call_operand.vmem [shape: f32[1,16], index: 4, kind: input, shape index: {}]   ;;  %s6195_s5 = inlined_call_operand.vmem [shape: f32[512,16], index: 5, kind: output, shape index: {}]  }
   0x1   :  { %v3212_v0 = vld [vmem:[%s6190_s1 + $0x10] sm:$0xff]  ;;  %v3213_v1 = vld [vmem:[%s6190_s1 + $0x18] sm:$0xf]  ;;  %vm4530_vm3 = vmpackc.low %vm346_vm0, %vm4493_vm2 }
   0x2   :  { %v4273_v3 = vpack.c.bf16 %v3213_v1, %v3212_v0  ;;  %v3408_v4 = vld [vmem:[%s6190_s1 + $0x20] sm:$0xff]  ;;  %v3409_v5 = vld [vmem:[%s6190_s1 + $0x28] sm:$0xf]  ;;  %v4547_v8 = vld [vmem:[%s6191_s0 + $0x18] sm:$0xff] }
   0x3   :  { %v86_v6 = vld [vmem:[%s6191_s0 + $0x1] sm:$0xff]  ;;  %v4285_v7 = vpack.c.bf16 %v3409_v5, %v3408_v4  ;;  %4077 = vmatprep.mubr.msk.f32.mxu0 %vm153_vm1, %v4547_v8  ;;  %v3539_v11 = vld [vmem:[%s6190_s1 + $0x30] sm:$0xff]  ;;  %v3540_v14 = vld [vmem:[%s6190_s1 + $0x38] sm:$0xf] }
   0x4   :  { %3877 = vmatprep.mubr.msk.f32.mxu1 %vm153_vm1, %v86_v6  ;;  %v84_v9 = vld [vmem:[%s6190_s1] sm:$0xff]  ;;  %4275 = vmatprep.subr.msk.bf16.mxu1 %vm4530_vm3, %v4273_v3  ;;  %v85_v10 = vld [vmem:[%s6190_s1 + $0x8] sm:$0xf]  ;;  %v4291_v16 = vpack.c.bf16 %v3540_v14, %v3539_v11  ;;  %v4592_v18 = vld [vmem:[%s6191_s0 + $0x30] sm:$0xff] }
   0x5   :  { %4287 = vmatprep.subr.msk.bf16.mxu0 %vm4530_vm3, %v4285_v7  ;;  %4278 = vmatpush3.bf16.msk.msra.mxu1 %vm4530_vm3, %v4273_v3  ;;  %v87_v12 = vld [vmem:[%s6191_s0 + $0x9] sm:$0xff]  ;;  %v4279_v13 = vpack.c.bf16 %v85_v10, %v84_v9  ;;  %v4577_v15 = vld [vmem:[%s6191_s0 + $0x20] sm:$0xff]  ;;  %v4610_v20 = vld [vmem:[%s6191_s0 + $0x38] sm:$0xff] }
   0x6   :  { %4290 = vmatpush3.bf16.msk.msra.mxu0 %vm4530_vm3, %v4285_v7  ;;  %v4584_v17 = vld [vmem:[%s6191_s0 + $0x19] sm:$0xff]  ;;  %v4601_v19 = vld [vmem:[%s6191_s0 + $0x21] sm:$0xff]  ;;  %v4615_v21 = vld [vmem:[%s6191_s0 + $0x31] sm:$0xff] }
   0x7   :  { %4281 = vmatprep.subr.msk.bf16.mxu1 %vm4530_vm3, %v4279_v13  ;;  %4293 = vmatprep.subr.msk.bf16.mxu0 %vm4530_vm3, %v4291_v16  ;;  %v4622_v22 = vld [vmem:[%s6191_s0 + $0x48] sm:$0xff]  ;;  %v4633_v23 = vld [vmem:[%s6191_s0 + $0x39] sm:$0xff]  ;;  %v4640_v24 = vld [vmem:[%s6191_s0 + $0x50] sm:$0xff] }
   0x8   :  { %3878 = vmatmul.mubr.msk.f32.vlgmr.msra.gmra.mrb[0].mxu1 %vm153_vm1, %v87_v12  ;;  %v4645_v25 = vld [vmem:[%s6191_s0 + $0x49] sm:$0xff]  ;;  %v4650_v26 = vld [vmem:[%s6191_s0 + $0x60] sm:$0xff]  ;;  %v4661_v27 = vld [vmem:[%s6191_s0 + $0x51] sm:$0xff] }
   0x9   :  { %4078 = vmatmul.mubr.msk.f32.vlgmr.msra.gmra.mrb[0].mxu0 %vm153_vm1, %v4577_v15  ;;  %4284 = vmatpush3.bf16.msk.msra.mxu1 %vm4530_vm3, %v4279_v13  ;;  %v4668_v28 = vld [vmem:[%s6191_s0 + $0x68] sm:$0xff]  ;;  %v4678_v30 = vld [vmem:[%s6191_s0 + $0x78] sm:$0xff]  ;;  %v4696_v32 = vld [vmem:[%s6191_s0 + $0x80] sm:$0xff] }
   0xa   :  { %4296 = vmatpush3.bf16.msk.msra.mxu0 %vm4530_vm3, %v4291_v16  ;;  %3880 = vmatprep.mubr.msk.f32.mxu1 %vm153_vm1, %v4584_v17  ;;  %v4673_v29 = vld [vmem:[%s6191_s0 + $0x61] sm:$0xff]  ;;  %v4689_v31 = vld [vmem:[%s6191_s0 + $0x69] sm:$0xff]  ;;  %v4701_v33 = vld [vmem:[%s6191_s0 + $0x79] sm:$0xff] }
   0xb   :  { %4080 = vmatprep.mubr.msk.f32.mxu0 %vm153_vm1, %v4592_v18  ;;  %v4706_v34 = vld [vmem:[%s6191_s0 + $0x90] sm:$0xff]  ;;  %v4717_v35 = vld [vmem:[%s6191_s0 + $0x81] sm:$0xff]  ;;  %v4724_v36 = vld [vmem:[%s6191_s0 + $0x98] sm:$0xff] }
   0xc   :  { %3881 = vmatmul.mubr.msk.f32.gmra.mrb[2].mxu1 %vm153_vm1, %v4601_v19  ;;  %v4729_v37 = vld [vmem:[%s6191_s0 + $0x91] sm:$0xff]  ;;  %v4734_v38 = vld [vmem:[%s6191_s0 + $0xa8] sm:$0xff]  ;;  %v4745_v39 = vld [vmem:[%s6191_s0 + $0x99] sm:$0xff] }
   0xd   :  { %4081 = vmatmul.mubr.msk.f32.gmra.mrb[2].mxu0 %vm153_vm1, %v4610_v20  ;;  %3883 = vmatprep.mubr.msk.f32.mxu1 %vm153_vm1, %v4615_v21  ;;  %v4752_v40 = vld [vmem:[%s6191_s0 + $0xb0] sm:$0xff]  ;;  %v4762_v42 = vld [vmem:[%s6191_s0 + $0xc0] sm:$0xff]  ;;  %v4780_v44 = vld [vmem:[%s6191_s0 + $0xc8] sm:$0xff] }
   0xe   :  { %4083 = vmatprep.mubr.msk.f32.mxu0 %vm153_vm1, %v4622_v22  ;;  %v4757_v41 = vld [vmem:[%s6191_s0 + $0xa9] sm:$0xff]  ;;  %v4773_v43 = vld [vmem:[%s6191_s0 + $0xb1] sm:$0xff]  ;;  %v4785_v45 = vld [vmem:[%s6191_s0 + $0xc1] sm:$0xff] }
   0xf   :  { %v4790_v46 = vld [vmem:[%s6191_s0 + $0xd8] sm:$0xff]  ;;  %v4801_v47 = vld [vmem:[%s6191_s0 + $0xc9] sm:$0xff]  ;;  %v4808_v48 = vld [vmem:[%s6191_s0 + $0xe0] sm:$0xff] }
  0x10   :  { %3884 = vmatmul.mubr.msk.f32.gmra.mrb[4].mxu1 %vm153_vm1, %v4633_v23  ;;  %v4813_v49 = vld [vmem:[%s6191_s0 + $0xd9] sm:$0xff]  ;;  %v4818_v50 = vld [vmem:[%s6191_s0 + $0xf0] sm:$0xff]  ;;  %v4829_v51 = vld [vmem:[%s6191_s0 + $0xe1] sm:$0xff] }
  0x11   :  { %4084 = vmatmul.mubr.msk.f32.gmra.mrb[4].mxu0 %vm153_vm1, %v4640_v24  ;;  %3886 = vmatprep.mubr.msk.f32.mxu1 %vm153_vm1, %v4645_v25  ;;  %v4836_v52 = vld [vmem:[%s6191_s0 + $0xf8] sm:$0xff]  ;;  %v4846_v54 = vld [vmem:[%s6191_s0 + $0x108] sm:$0xff]  ;;  %v4864_v56 = vld [vmem:[%s6191_s0 + $0x110] sm:$0xff] }
  0x12   :  { %4086 = vmatprep.mubr.msk.f32.mxu0 %vm153_vm1, %v4650_v26  ;;  %v4841_v53 = vld [vmem:[%s6191_s0 + $0xf1] sm:$0xff]  ;;  %v4857_v55 = vld [vmem:[%s6191_s0 + $0xf9] sm:$0xff]  ;;  %v4869_v57 = vld [vmem:[%s6191_s0 + $0x109] sm:$0xff] }
  0x13   :  { %v4874_v58 = vld [vmem:[%s6191_s0 + $0x120] sm:$0xff]  ;;  %v4885_v59 = vld [vmem:[%s6191_s0 + $0x111] sm:$0xff]  ;;  %v4892_v60 = vld [vmem:[%s6191_s0 + $0x128] sm:$0xff] }
  0x14   :  { %3887 = vmatmul.mubr.msk.f32.gmra.mrb[6].mxu1 %vm153_vm1, %v4661_v27  ;;  %v4897_v61 = vld [vmem:[%s6191_s0 + $0x121] sm:$0xff]  ;;  %v4902_v62 = vld [vmem:[%s6191_s0 + $0x138] sm:$0xff]  ;;  %v4913_v63 = vld [vmem:[%s6191_s0 + $0x129] sm:$0xff] }
  0x15   :  { %4087 = vmatmul.mubr.msk.f32.gmra.mrb[6].mxu0 %vm153_vm1, %v4668_v28  ;;  %3889 = vmatprep.mubr.msk.f32.mxu1 %vm153_vm1, %v4673_v29  ;;  %v4920_v0 = vld [vmem:[%s6191_s0 + $0x140] sm:$0xff]  ;;  %v4930_v2 = vld [vmem:[%s6191_s0 + $0x150] sm:$0xff]  ;;  %v4948_v4 = vld [vmem:[%s6191_s0 + $0x158] sm:$0xff] }
  0x16   :  { %4089 = vmatprep.mubr.msk.f32.mxu0 %vm153_vm1, %v4678_v30  ;;  %v4925_v1 = vld [vmem:[%s6191_s0 + $0x139] sm:$0xff]  ;;  %v4941_v3 = vld [vmem:[%s6191_s0 + $0x141] sm:$0xff]  ;;  %v4953_v5 = vld [vmem:[%s6191_s0 + $0x151] sm:$0xff] }
  0x17   :  { %v4958_v6 = vld [vmem:[%s6191_s0 + $0x168] sm:$0xff]  ;;  %v4969_v7 = vld [vmem:[%s6191_s0 + $0x159] sm:$0xff]  ;;  %v4976_v9 = vld [vmem:[%s6191_s0 + $0x170] sm:$0xff] }
  0x18   :  { %3890 = vmatmul.mubr.msk.f32.gmra.mrb[8].mxu1 %vm153_vm1, %v4689_v31  ;;  %6258 = vst [vmem:[#allocation2_spill] sm:$0xff] %v4958_v6  ;;  %6259 = vst [vmem:[#allocation3_spill] sm:$0xff] %v4976_v9  ;;  %v4981_v10 = vld [vmem:[%s6191_s0 + $0x169] sm:$0xff]  ;;  %v3374_v11 = vld [vmem:[%s6191_s0 + $0x180] sm:$0xff] }
  0x19   :  { %4090 = vmatmul.mubr.msk.f32.gmra.mrb[8].mxu0 %vm153_vm1, %v4696_v32  ;;  %3892 = vmatprep.mubr.msk.f32.mxu1 %vm153_vm1, %v4701_v33  ;;  %v4995_v12 = vld [vmem:[%s6191_s0 + $0x171] sm:$0xff]  ;;  %v3375_v13 = vld [vmem:[%s6191_s0 + $0x188] sm:$0xff]  ;;  %v118_v14 = vld [vmem:[%s6191_s0 + $0x199] sm:$0xff] }
  0x1a   :  { %4092 = vmatprep.mubr.msk.f32.mxu0 %vm153_vm1, %v4706_v34  ;;  %v5007_v16 = vld [vmem:[%s6191_s0 + $0x1b0] sm:$0xff] }
  0x1b   :  { %6260 = vst [vmem:[#allocation4_spill] sm:$0xff] %v5007_v16 }
  0x1c   :  { %3893 = vmatmul.mubr.msk.f32.gmra.mrb[10].mxu1 %vm153_vm1, %v4717_v35 }
  0x1d   :  { %4093 = vmatmul.mubr.msk.f32.gmra.mrb[10].mxu0 %vm153_vm1, %v4724_v36  ;;  %3895 = vmatprep.mubr.msk.f32.mxu1 %vm153_vm1, %v4729_v37 }
  0x1e   :  { %4095 = vmatprep.mubr.msk.f32.mxu0 %vm153_vm1, %v4734_v38 }
  0x20   :  { %3896 = vmatmul.mubr.msk.f32.gmra.mrb[12].mxu1 %vm153_vm1, %v4745_v39 }
  0x21   :  { %4096 = vmatmul.mubr.msk.f32.gmra.mrb[12].mxu0 %vm153_vm1, %v4752_v40  ;;  %3898 = vmatprep.mubr.msk.f32.mxu1 %vm153_vm1, %v4757_v41 }
  0x22   :  { %4098 = vmatprep.mubr.msk.f32.mxu0 %vm153_vm1, %v4762_v42 }
  0x24   :  { %3899 = vmatmul.mubr.msk.f32.gmra.mrb[14].mxu1 %vm153_vm1, %v4773_v43 }
  0x25   :  { %4099 = vmatmul.mubr.msk.f32.gmra.mrb[14].mxu0 %vm153_vm1, %v4780_v44  ;;  %3901 = vmatprep.mubr.msk.f32.mxu1 %vm153_vm1, %v4785_v45 }
  0x26   :  { %4101 = vmatprep.mubr.msk.f32.mxu0 %vm153_vm1, %v4790_v46 }
  0x28   :  { %3902 = vmatmul.mubr.msk.f32.gmra.mrb[16].mxu1 %vm153_vm1, %v4801_v47 }
  0x29   :  { %4102 = vmatmul.mubr.msk.f32.gmra.mrb[16].mxu0 %vm153_vm1, %v4808_v48  ;;  %3904 = vmatprep.mubr.msk.f32.mxu1 %vm153_vm1, %v4813_v49 }
  0x2a   :  { %4104 = vmatprep.mubr.msk.f32.mxu0 %vm153_vm1, %v4818_v50 }
  0x2c   :  { %3905 = vmatmul.mubr.msk.f32.gmra.mrb[18].mxu1 %vm153_vm1, %v4829_v51 }
  0x2d   :  { %4105 = vmatmul.mubr.msk.f32.gmra.mrb[18].mxu0 %vm153_vm1, %v4836_v52  ;;  %3907 = vmatprep.mubr.msk.f32.mxu1 %vm153_vm1, %v4841_v53 }
  0x2e   :  { %4107 = vmatprep.mubr.msk.f32.mxu0 %vm153_vm1, %v4846_v54 }
  0x30   :  { %3908 = vmatmul.mubr.msk.f32.gmra.mrb[20].mxu1 %vm153_vm1, %v4857_v55 }
  0x31   :  { %4108 = vmatmul.mubr.msk.f32.gmra.mrb[20].mxu0 %vm153_vm1, %v4864_v56  ;;  %3910 = vmatprep.mubr.msk.f32.mxu1 %vm153_vm1, %v4869_v57 }
  0x32   :  { %4110 = vmatprep.mubr.msk.f32.mxu0 %vm153_vm1, %v4874_v58 }
  0x34   :  { %3911 = vmatmul.mubr.msk.f32.gmra.mrb[22].mxu1 %vm153_vm1, %v4885_v59 }
  0x35   :  { %4111 = vmatmul.mubr.msk.f32.gmra.mrb[22].mxu0 %vm153_vm1, %v4892_v60  ;;  %3913 = vmatprep.mubr.msk.f32.mxu1 %vm153_vm1, %v4897_v61 }
  0x36   :  { %4113 = vmatprep.mubr.msk.f32.mxu0 %vm153_vm1, %v4902_v62 }
  0x38   :  { %3914 = vmatmul.mubr.msk.f32.gmra.mrb[24].mxu1 %vm153_vm1, %v4913_v63 }
  0x39   :  { %4114 = vmatmul.mubr.msk.f32.gmra.mrb[24].mxu0 %vm153_vm1, %v4920_v0  ;;  %3916 = vmatprep.mubr.msk.f32.mxu1 %vm153_vm1, %v4925_v1 }
  0x3a   :  { %4116 = vmatprep.mubr.msk.f32.mxu0 %vm153_vm1, %v4930_v2 }
  0x3c   :  { %3917 = vmatmul.mubr.msk.f32.gmra.mrb[26].mxu1 %vm153_vm1, %v4941_v3 }
  0x3d   :  { %4117 = vmatmul.mubr.msk.f32.gmra.mrb[26].mxu0 %vm153_vm1, %v4948_v4  ;;  %3919 = vmatprep.mubr.msk.f32.mxu1 %vm153_vm1, %v4953_v5 }
  0x3e   :  { %4119 = vmatprep.mubr.msk.f32.mxu0 %vm153_vm1, %v4958_v6  ;;  %v5026_v6 = vld [vmem:[%s6191_s0 + $0x1b1] sm:$0xff] }
  0x3f   :  { %6262 = vst [vmem:[#allocation6_spill] sm:$0xff] %v5026_v6 }
  0x40   :  { %3920 = vmatmul.mubr.msk.f32.gmra.mrb[28].mxu1 %vm153_vm1, %v4969_v7 }
  0x41   :  { %4120 = vmatmul.mubr.msk.f32.gmra.mrb[28].mxu0 %vm153_vm1, %v4976_v9  ;;  %3922 = vmatprep.mubr.msk.f32.mxu1 %vm153_vm1, %v4981_v10  ;;  %v5021_v9 = vld [vmem:[%s6191_s0 + $0x1b8] sm:$0xff] }
  0x42   :  { %4122 = vmatprep.mubr.msk.f32.mxu0 %vm153_vm1, %v3374_v11  ;;  %v119_v11 = vld [vmem:[%s6191_s0 + $0x1a1] sm:$0xff]  ;;  %6261 = vst [vmem:[#allocation5_spill] sm:$0xff] %v5021_v9 }
  0x44   :  { %3923 = vmatmul.mubr.msk.f32.gmra.mrb[30].mxu1 %vm153_vm1, %v4995_v12 }
  0x45   :  { %4123 = vmatmul.mubr.msk.f32.gmra.mrb[30].mxu0 %vm153_vm1, %v3375_v13  ;;  %3925 = vmatprep.mubr.msk.f32.mxu1 %vm153_vm1, %v118_v14  ;;  %v5031_v13 = vld [vmem:[%s6191_s0 + $0x1c8] sm:$0xff]  ;;  %v5041_v14 = vld [vmem:[%s6191_s0 + $0x1b9] sm:$0xff] }
  0x46   :  { %4125 = vmatprep.mubr.msk.f32.mxu0 %vm153_vm1, %v5007_v16  ;;  %6263 = vst [vmem:[#allocation7_spill] sm:$0xff] %v5031_v13  ;;  %6264 = vst [vmem:[#allocation8_spill] sm:$0xff] %v5041_v14  ;;  %v5048_v16 = vld [vmem:[%s6191_s0 + $0x1d0] sm:$0xff] }
  0x47   :  { %6265 = vst [vmem:[#allocation9_spill] sm:$0xff] %v5048_v16 }
  0x48   :  { %3926 = vmatmul.mubr.msk.f32.gmra.mrb[32].mxu1 %vm153_vm1, %v119_v11  ;;  %v5053_v11 = vld [vmem:[%s6191_s0 + $0x1c9] sm:$0xff] }
  0x49   :  { %4126 = vmatmul.mubr.msk.f32.gmra.mrb[32].mxu0 %vm153_vm1, %v5021_v9  ;;  %3928 = vmatprep.mubr.msk.f32.mxu1 %vm153_vm1, %v5026_v6  ;;  %6266 = vst [vmem:[#allocation10_spill] sm:$0xff] %v5053_v11  ;;  %v5058_v9 = vld [vmem:[%s6191_s0 + $0x1e0] sm:$0xff]  ;;  %v5076_v6 = vld [vmem:[%s6191_s0 + $0x1e8] sm:$0xff] }
  0x4a   :  { %4128 = vmatprep.mubr.msk.f32.mxu0 %vm153_vm1, %v5031_v13  ;;  %6267 = vst [vmem:[#allocation11_spill] sm:$0xff] %v5058_v9  ;;  %v5069_v13 = vld [vmem:[%s6191_s0 + $0x1d1] sm:$0xff]  ;;  %6269 = vst [vmem:[#allocation13_spill] sm:$0xff] %v5076_v6 }
  0x4b   :  { %6268 = vst [vmem:[#allocation12_spill] sm:$0xff] %v5069_v13 }
  0x4c   :  { %3929 = vmatmul.mubr.msk.f32.gmra.mrb[34].mxu1 %vm153_vm1, %v5041_v14  ;;  %v5104_v14 = vld [vmem:[%s6191_s0 + $0x200] sm:$0xff] }
  0x4d   :  { %4129 = vmatmul.mubr.msk.f32.gmra.mrb[34].mxu0 %vm153_vm1, %v5048_v16  ;;  %3931 = vmatprep.mubr.msk.f32.mxu1 %vm153_vm1, %v5053_v11  ;;  %v5081_v16 = vld [vmem:[%s6191_s0 + $0x1e1] sm:$0xff]  ;;  %v5086_v11 = vld [vmem:[%s6191_s0 + $0x1f8] sm:$0xff]  ;;  %6273 = vst [vmem:[#allocation17_spill] sm:$0xff] %v5104_v14 }
  0x4e   :  { %4131 = vmatprep.mubr.msk.f32.mxu0 %vm153_vm1, %v5058_v9  ;;  %6270 = vst [vmem:[#allocation14_spill] sm:$0xff] %v5081_v16  ;;  %6271 = vst [vmem:[#allocation15_spill] sm:$0xff] %v5086_v11  ;;  %v5097_v9 = vld [vmem:[%s6191_s0 + $0x1e9] sm:$0xff] }
  0x4f   :  { %6272 = vst [vmem:[#allocation16_spill] sm:$0xff] %v5097_v9 }
  0x50   :  { %3932 = vmatmul.mubr.msk.f32.gmra.mrb[36].mxu1 %vm153_vm1, %v5069_v13  ;;  %v5132_v13 = vld [vmem:[%s6191_s0 + $0x218] sm:$0xff] }
  0x51   :  { %4132 = vmatmul.mubr.msk.f32.gmra.mrb[36].mxu0 %vm153_vm1, %v5076_v6  ;;  %3934 = vmatprep.mubr.msk.f32.mxu1 %vm153_vm1, %v5081_v16  ;;  %v5109_v6 = vld [vmem:[%s6191_s0 + $0x1f9] sm:$0xff]  ;;  %v5114_v16 = vld [vmem:[%s6191_s0 + $0x210] sm:$0xff]  ;;  %6277 = vst [vmem:[#allocation21_spill] sm:$0xff] %v5132_v13 }
  0x52   :  { %4134 = vmatprep.mubr.msk.f32.mxu0 %vm153_vm1, %v5086_v11  ;;  %6274 = vst [vmem:[#allocation18_spill] sm:$0xff] %v5109_v6  ;;  %6275 = vst [vmem:[#allocation19_spill] sm:$0xff] %v5114_v16  ;;  %v5125_v11 = vld [vmem:[%s6191_s0 + $0x201] sm:$0xff] }
  0x53   :  { %6276 = vst [vmem:[#allocation20_spill] sm:$0xff] %v5125_v11 }
  0x54   :  { %3935 = vmatmul.mubr.msk.f32.gmra.mrb[38].mxu1 %vm153_vm1, %v5097_v9  ;;  %v5160_v9 = vld [vmem:[%s6191_s0 + $0x230] sm:$0xff] }
  0x55   :  { %4135 = vmatmul.mubr.msk.f32.gmra.mrb[38].mxu0 %vm153_vm1, %v5104_v14  ;;  %3937 = vmatprep.mubr.msk.f32.mxu1 %vm153_vm1, %v5109_v6  ;;  %v5137_v14 = vld [vmem:[%s6191_s0 + $0x211] sm:$0xff]  ;;  %v5142_v6 = vld [vmem:[%s6191_s0 + $0x228] sm:$0xff]  ;;  %6281 = vst [vmem:[#allocation25_spill] sm:$0xff] %v5160_v9 }
  0x56   :  { %4137 = vmatprep.mubr.msk.f32.mxu0 %vm153_vm1, %v5114_v16  ;;  %6278 = vst [vmem:[#allocation22_spill] sm:$0xff] %v5137_v14  ;;  %6279 = vst [vmem:[#allocation23_spill] sm:$0xff] %v5142_v6  ;;  %v5153_v16 = vld [vmem:[%s6191_s0 + $0x219] sm:$0xff] }
  0x57   :  { %6280 = vst [vmem:[#allocation24_spill] sm:$0xff] %v5153_v16 }
  0x58   :  { %3938 = vmatmul.mubr.msk.f32.gmra.mrb[40].mxu1 %vm153_vm1, %v5125_v11  ;;  %v5188_v11 = vld [vmem:[%s6191_s0 + $0x248] sm:$0xff] }
  0x59   :  { %4138 = vmatmul.mubr.msk.f32.gmra.mrb[40].mxu0 %vm153_vm1, %v5132_v13  ;;  %3940 = vmatprep.mubr.msk.f32.mxu1 %vm153_vm1, %v5137_v14  ;;  %v5165_v13 = vld [vmem:[%s6191_s0 + $0x229] sm:$0xff]  ;;  %v5170_v14 = vld [vmem:[%s6191_s0 + $0x240] sm:$0xff]  ;;  %6285 = vst [vmem:[#allocation29_spill] sm:$0xff] %v5188_v11 }
  0x5a   :  { %4140 = vmatprep.mubr.msk.f32.mxu0 %vm153_vm1, %v5142_v6  ;;  %6282 = vst [vmem:[#allocation26_spill] sm:$0xff] %v5165_v13  ;;  %6283 = vst [vmem:[#allocation27_spill] sm:$0xff] %v5170_v14  ;;  %v5181_v6 = vld [vmem:[%s6191_s0 + $0x231] sm:$0xff] }
  0x5b   :  { %6284 = vst [vmem:[#allocation28_spill] sm:$0xff] %v5181_v6 }
  0x5c   :  { %3941 = vmatmul.mubr.msk.f32.gmra.mrb[42].mxu1 %vm153_vm1, %v5153_v16  ;;  %v5216_v16 = vld [vmem:[%s6191_s0 + $0x260] sm:$0xff] }
  0x5d   :  { %4141 = vmatmul.mubr.msk.f32.gmra.mrb[42].mxu0 %vm153_vm1, %v5160_v9  ;;  %3943 = vmatprep.mubr.msk.f32.mxu1 %vm153_vm1, %v5165_v13  ;;  %v5193_v9 = vld [vmem:[%s6191_s0 + $0x241] sm:$0xff]  ;;  %v5198_v13 = vld [vmem:[%s6191_s0 + $0x258] sm:$0xff]  ;;  %6289 = vst [vmem:[#allocation33_spill] sm:$0xff] %v5216_v16 }
  0x5e   :  { %4143 = vmatprep.mubr.msk.f32.mxu0 %vm153_vm1, %v5170_v14  ;;  %6286 = vst [vmem:[#allocation30_spill] sm:$0xff] %v5193_v9  ;;  %6287 = vst [vmem:[#allocation31_spill] sm:$0xff] %v5198_v13  ;;  %v5209_v14 = vld [vmem:[%s6191_s0 + $0x249] sm:$0xff] }
  0x5f   :  { %6288 = vst [vmem:[#allocation32_spill] sm:$0xff] %v5209_v14 }
  0x60   :  { %3944 = vmatmul.mubr.msk.f32.gmra.mrb[44].mxu1 %vm153_vm1, %v5181_v6  ;;  %v5244_v6 = vld [vmem:[%s6191_s0 + $0x278] sm:$0xff] }
  0x61   :  { %4144 = vmatmul.mubr.msk.f32.gmra.mrb[44].mxu0 %vm153_vm1, %v5188_v11  ;;  %3946 = vmatprep.mubr.msk.f32.mxu1 %vm153_vm1, %v5193_v9  ;;  %v5221_v11 = vld [vmem:[%s6191_s0 + $0x259] sm:$0xff]  ;;  %v5226_v9 = vld [vmem:[%s6191_s0 + $0x270] sm:$0xff]  ;;  %6293 = vst [vmem:[#allocation37_spill] sm:$0xff] %v5244_v6 }
  0x62   :  { %4146 = vmatprep.mubr.msk.f32.mxu0 %vm153_vm1, %v5198_v13  ;;  %6290 = vst [vmem:[#allocation34_spill] sm:$0xff] %v5221_v11  ;;  %6291 = vst [vmem:[#allocation35_spill] sm:$0xff] %v5226_v9  ;;  %v5237_v13 = vld [vmem:[%s6191_s0 + $0x261] sm:$0xff] }
  0x63   :  { %6292 = vst [vmem:[#allocation36_spill] sm:$0xff] %v5237_v13 }
  0x64   :  { %3947 = vmatmul.mubr.msk.f32.gmra.mrb[46].mxu1 %vm153_vm1, %v5209_v14  ;;  %v5272_v14 = vld [vmem:[%s6191_s0 + $0x290] sm:$0xff] }
  0x65   :  { %4147 = vmatmul.mubr.msk.f32.gmra.mrb[46].mxu0 %vm153_vm1, %v5216_v16  ;;  %3949 = vmatprep.mubr.msk.f32.mxu1 %vm153_vm1, %v5221_v11  ;;  %v5249_v16 = vld [vmem:[%s6191_s0 + $0x271] sm:$0xff]  ;;  %v5254_v11 = vld [vmem:[%s6191_s0 + $0x288] sm:$0xff]  ;;  %6297 = vst [vmem:[#allocation41_spill] sm:$0xff] %v5272_v14 }
  0x66   :  { %4149 = vmatprep.mubr.msk.f32.mxu0 %vm153_vm1, %v5226_v9  ;;  %6294 = vst [vmem:[#allocation38_spill] sm:$0xff] %v5249_v16  ;;  %6295 = vst [vmem:[#allocation39_spill] sm:$0xff] %v5254_v11  ;;  %v5265_v9 = vld [vmem:[%s6191_s0 + $0x279] sm:$0xff] }
  0x67   :  { %6296 = vst [vmem:[#allocation40_spill] sm:$0xff] %v5265_v9 }
  0x68   :  { %3950 = vmatmul.mubr.msk.f32.gmra.mrb[48].mxu1 %vm153_vm1, %v5237_v13  ;;  %v5300_v13 = vld [vmem:[%s6191_s0 + $0x2a8] sm:$0xff] }
  0x69   :  { %4150 = vmatmul.mubr.msk.f32.gmra.mrb[48].mxu0 %vm153_vm1, %v5244_v6  ;;  %3952 = vmatprep.mubr.msk.f32.mxu1 %vm153_vm1, %v5249_v16  ;;  %v5277_v6 = vld [vmem:[%s6191_s0 + $0x289] sm:$0xff]  ;;  %v5282_v16 = vld [vmem:[%s6191_s0 + $0x2a0] sm:$0xff]  ;;  %6301 = vst [vmem:[#allocation45_spill] sm:$0xff] %v5300_v13 }
  0x6a   :  { %4152 = vmatprep.mubr.msk.f32.mxu0 %vm153_vm1, %v5254_v11  ;;  %6298 = vst [vmem:[#allocation42_spill] sm:$0xff] %v5277_v6  ;;  %6299 = vst [vmem:[#allocation43_spill] sm:$0xff] %v5282_v16  ;;  %v5293_v11 = vld [vmem:[%s6191_s0 + $0x291] sm:$0xff] }
  0x6b   :  { %6300 = vst [vmem:[#allocation44_spill] sm:$0xff] %v5293_v11 }
  0x6c   :  { %3953 = vmatmul.mubr.msk.f32.gmra.mrb[50].mxu1 %vm153_vm1, %v5265_v9  ;;  %v5328_v9 = vld [vmem:[%s6191_s0 + $0x2c0] sm:$0xff] }
  0x6d   :  { %4153 = vmatmul.mubr.msk.f32.gmra.mrb[50].mxu0 %vm153_vm1, %v5272_v14  ;;  %3955 = vmatprep.mubr.msk.f32.mxu1 %vm153_vm1, %v5277_v6  ;;  %v5305_v14 = vld [vmem:[%s6191_s0 + $0x2a1] sm:$0xff]  ;;  %v5310_v6 = vld [vmem:[%s6191_s0 + $0x2b8] sm:$0xff]  ;;  %6305 = vst [vmem:[#allocation49_spill] sm:$0xff] %v5328_v9 }
  0x6e   :  { %4155 = vmatprep.mubr.msk.f32.mxu0 %vm153_vm1, %v5282_v16  ;;  %6302 = vst [vmem:[#allocation46_spill] sm:$0xff] %v5305_v14  ;;  %6303 = vst [vmem:[#allocation47_spill] sm:$0xff] %v5310_v6  ;;  %v5321_v16 = vld [vmem:[%s6191_s0 + $0x2a9] sm:$0xff] }
  0x6f   :  { %6304 = vst [vmem:[#allocation48_spill] sm:$0xff] %v5321_v16 }
  0x70   :  { %3956 = vmatmul.mubr.msk.f32.gmra.mrb[52].mxu1 %vm153_vm1, %v5293_v11  ;;  %v5356_v11 = vld [vmem:[%s6191_s0 + $0x2d8] sm:$0xff] }
  0x71   :  { %4156 = vmatmul.mubr.msk.f32.gmra.mrb[52].mxu0 %vm153_vm1, %v5300_v13  ;;  %3958 = vmatprep.mubr.msk.f32.mxu1 %vm153_vm1, %v5305_v14  ;;  %v5333_v13 = vld [vmem:[%s6191_s0 + $0x2b9] sm:$0xff]  ;;  %v5338_v14 = vld [vmem:[%s6191_s0 + $0x2d0] sm:$0xff]  ;;  %6309 = vst [vmem:[#allocation53_spill] sm:$0xff] %v5356_v11 }
  0x72   :  { %4158 = vmatprep.mubr.msk.f32.mxu0 %vm153_vm1, %v5310_v6  ;;  %6306 = vst [vmem:[#allocation50_spill] sm:$0xff] %v5333_v13  ;;  %6307 = vst [vmem:[#allocation51_spill] sm:$0xff] %v5338_v14  ;;  %v5349_v6 = vld [vmem:[%s6191_s0 + $0x2c1] sm:$0xff] }
  0x73   :  { %6308 = vst [vmem:[#allocation52_spill] sm:$0xff] %v5349_v6 }
  0x74   :  { %3959 = vmatmul.mubr.msk.f32.gmra.mrb[54].mxu1 %vm153_vm1, %v5321_v16  ;;  %v5384_v16 = vld [vmem:[%s6191_s0 + $0x2f0] sm:$0xff] }
  0x75   :  { %4159 = vmatmul.mubr.msk.f32.gmra.mrb[54].mxu0 %vm153_vm1, %v5328_v9  ;;  %3961 = vmatprep.mubr.msk.f32.mxu1 %vm153_vm1, %v5333_v13  ;;  %v5361_v9 = vld [vmem:[%s6191_s0 + $0x2d1] sm:$0xff]  ;;  %v5366_v13 = vld [vmem:[%s6191_s0 + $0x2e8] sm:$0xff]  ;;  %6313 = vst [vmem:[#allocation57_spill] sm:$0xff] %v5384_v16 }
  0x76   :  { %4161 = vmatprep.mubr.msk.f32.mxu0 %vm153_vm1, %v5338_v14  ;;  %6310 = vst [vmem:[#allocation54_spill] sm:$0xff] %v5361_v9  ;;  %6311 = vst [vmem:[#allocation55_spill] sm:$0xff] %v5366_v13  ;;  %v5377_v14 = vld [vmem:[%s6191_s0 + $0x2d9] sm:$0xff] }
  0x77   :  { %6312 = vst [vmem:[#allocation56_spill] sm:$0xff] %v5377_v14 }
  0x78   :  { %3962 = vmatmul.mubr.msk.f32.gmra.mrb[56].mxu1 %vm153_vm1, %v5349_v6  ;;  %v5412_v6 = vld [vmem:[%s6191_s0 + $0x308] sm:$0xff] }
  0x79   :  { %4162 = vmatmul.mubr.msk.f32.gmra.mrb[56].mxu0 %vm153_vm1, %v5356_v11  ;;  %3964 = vmatprep.mubr.msk.f32.mxu1 %vm153_vm1, %v5361_v9  ;;  %v5389_v11 = vld [vmem:[%s6191_s0 + $0x2e9] sm:$0xff]  ;;  %v5394_v9 = vld [vmem:[%s6191_s0 + $0x300] sm:$0xff]  ;;  %6317 = vst [vmem:[#allocation61_spill] sm:$0xff] %v5412_v6 }
  0x7a   :  { %4164 = vmatprep.mubr.msk.f32.mxu0 %vm153_vm1, %v5366_v13  ;;  %6314 = vst [vmem:[#allocation58_spill] sm:$0xff] %v5389_v11  ;;  %6315 = vst [vmem:[#allocation59_spill] sm:$0xff] %v5394_v9  ;;  %v5405_v13 = vld [vmem:[%s6191_s0 + $0x2f1] sm:$0xff] }
  0x7b   :  { %6316 = vst [vmem:[#allocation60_spill] sm:$0xff] %v5405_v13 }
  0x7c   :  { %3965 = vmatmul.mubr.msk.f32.gmra.mrb[58].mxu1 %vm153_vm1, %v5377_v14  ;;  %v3407_v14 = vld [vmem:[%s6191_s0 + $0x320] sm:$0xff] }
  0x7d   :  { %4165 = vmatmul.mubr.msk.f32.gmra.mrb[58].mxu0 %vm153_vm1, %v5384_v16  ;;  %3967 = vmatprep.mubr.msk.f32.mxu1 %vm153_vm1, %v5389_v11  ;;  %v5417_v16 = vld [vmem:[%s6191_s0 + $0x301] sm:$0xff]  ;;  %v3406_v11 = vld [vmem:[%s6191_s0 + $0x318] sm:$0xff] }
  0x7e   :  { %4167 = vmatprep.mubr.msk.f32.mxu0 %vm153_vm1, %v5394_v9  ;;  %v5431_v9 = vld [vmem:[%s6191_s0 + $0x309] sm:$0xff] }
  0x80   :  { %3968 = vmatmul.mubr.msk.f32.gmra.mrb[60].mxu1 %vm153_vm1, %v5405_v13  ;;  %v20_v13 = vld [vmem:[%s6191_s0] sm:$0xff] }
  0x81   :  { %4168 = vmatmul.mubr.msk.f32.gmra.mrb[60].mxu0 %vm153_vm1, %v5412_v6  ;;  %3970 = vmatprep.mubr.msk.f32.mxu1 %vm153_vm1, %v5417_v16  ;;  %v21_v6 = vld [vmem:[%s6191_s0 + $0x8] sm:$0xff] }
  0x82   :  { %4170 = vmatprep.mubr.msk.f32.mxu0 %vm153_vm1, %v3406_v11  ;;  %v3537_v11 = vld [vmem:[%s6191_s0 + $0x319] sm:$0xff] }
  0x84   :  { %3971 = vmatmul.mubr.msk.f32.gmra.mrb[62].mxu1 %vm153_vm1, %v5431_v9 }
  0x85   :  { %4171 = vmatmul.mubr.msk.f32.gmra.mrb[62].mxu0 %vm153_vm1, %v3407_v14  ;;  %3977 = vmatprep.mubr.msk.f32.mxu1 %vm153_vm1, %v20_v13  ;;  %v6373_v13 = vld [vmem:[#allocation60_spill] sm:$0xff]  ;;  %v6374_v14 = vld [vmem:[#allocation55_spill] sm:$0xff] }
  0x86   :  { %4177 = vmatprep.mubr.msk.f32.mxu0 %vm153_vm1, %v4584_v17  ;;  %v3506_v17 = vld [vmem:[%s6191_s0 + $0x189] sm:$0xff] }
  0x88   :  { %3978 = vmatmul.mubr.msk.f32.vlgmr.msra.gmra.mrb[0].mxu1 %vm153_vm1, %v21_v6  ;;  %v6369_v6 = vld [vmem:[#allocation56_spill] sm:$0xff] }
  0x89   :  { %4178 = vmatmul.mubr.msk.f32.vlgmr.msra.gmra.mrb[0].mxu0 %vm153_vm1, %v4601_v19  ;;  %3980 = vmatprep.mubr.msk.f32.mxu1 %vm153_vm1, %v4547_v8  ;;  %v3505_v8 = vld [vmem:[%s6191_s0 + $0x181] sm:$0xff] }
  0x8a   :  { %4180 = vmatprep.mubr.msk.f32.mxu0 %vm153_vm1, %v4615_v21  ;;  %v6319_v19 = vld [vmem:[#allocation3_spill] sm:$0xff]  ;;  %v6320_v21 = vld [vmem:[#allocation6_spill] sm:$0xff] }
  0x8c   :  { %3981 = vmatmul.mubr.msk.f32.gmra.mrb[2].mxu1 %vm153_vm1, %v4577_v15  ;;  %v6318_v15 = vld [vmem:[#allocation2_spill] sm:$0xff] }
  0x8d   :  { %4181 = vmatmul.mubr.msk.f32.gmra.mrb[2].mxu0 %vm153_vm1, %v4633_v23  ;;  %3983 = vmatprep.mubr.msk.f32.mxu1 %vm153_vm1, %v4592_v18  ;;  %v52_v18 = vld [vmem:[%s6191_s0 + $0x198] sm:$0xff]  ;;  %v6322_v23 = vld [vmem:[#allocation4_spill] sm:$0xff] }
  0x8e   :  { %4183 = vmatprep.mubr.msk.f32.mxu0 %vm153_vm1, %v4645_v25  ;;  %v6324_v25 = vld [vmem:[#allocation5_spill] sm:$0xff] }
  0x90   :  { %3984 = vmatmul.mubr.msk.f32.gmra.mrb[4].mxu1 %vm153_vm1, %v4610_v20  ;;  %v53_v20 = vld [vmem:[%s6191_s0 + $0x1a0] sm:$0xff] }
  0x91   :  { %4184 = vmatmul.mubr.msk.f32.gmra.mrb[4].mxu0 %vm153_vm1, %v4661_v27  ;;  %3986 = vmatprep.mubr.msk.f32.mxu1 %vm153_vm1, %v4622_v22  ;;  %v6321_v22 = vld [vmem:[#allocation8_spill] sm:$0xff]  ;;  %v6326_v27 = vld [vmem:[#allocation7_spill] sm:$0xff] }
  0x92   :  { %4186 = vmatprep.mubr.msk.f32.mxu0 %vm153_vm1, %v4673_v29  ;;  %v6328_v29 = vld [vmem:[#allocation9_spill] sm:$0xff] }
  0x94   :  { %3987 = vmatmul.mubr.msk.f32.gmra.mrb[6].mxu1 %vm153_vm1, %v4640_v24  ;;  %v6323_v24 = vld [vmem:[#allocation10_spill] sm:$0xff] }
  0x95   :  { %4187 = vmatmul.mubr.msk.f32.gmra.mrb[6].mxu0 %vm153_vm1, %v4689_v31  ;;  %3989 = vmatprep.mubr.msk.f32.mxu1 %vm153_vm1, %v4650_v26  ;;  %v6325_v26 = vld [vmem:[#allocation12_spill] sm:$0xff]  ;;  %v6330_v31 = vld [vmem:[#allocation11_spill] sm:$0xff] }
  0x96   :  { %4189 = vmatprep.mubr.msk.f32.mxu0 %vm153_vm1, %v4701_v33  ;;  %v6332_v33 = vld [vmem:[#allocation13_spill] sm:$0xff] }
  0x98   :  { %3990 = vmatmul.mubr.msk.f32.gmra.mrb[8].mxu1 %vm153_vm1, %v4668_v28  ;;  %v6327_v28 = vld [vmem:[#allocation14_spill] sm:$0xff] }
  0x99   :  { %4190 = vmatmul.mubr.msk.f32.gmra.mrb[8].mxu0 %vm153_vm1, %v4717_v35  ;;  %3992 = vmatprep.mubr.msk.f32.mxu1 %vm153_vm1, %v4678_v30  ;;  %v6329_v30 = vld [vmem:[#allocation16_spill] sm:$0xff]  ;;  %v6334_v35 = vld [vmem:[#allocation15_spill] sm:$0xff] }
  0x9a   :  { %4192 = vmatprep.mubr.msk.f32.mxu0 %vm153_vm1, %v4729_v37  ;;  %v6336_v37 = vld [vmem:[#allocation17_spill] sm:$0xff] }
  0x9c   :  { %3993 = vmatmul.mubr.msk.f32.gmra.mrb[10].mxu1 %vm153_vm1, %v4696_v32  ;;  %v6331_v32 = vld [vmem:[#allocation18_spill] sm:$0xff] }
  0x9d   :  { %4193 = vmatmul.mubr.msk.f32.gmra.mrb[10].mxu0 %vm153_vm1, %v4745_v39  ;;  %3995 = vmatprep.mubr.msk.f32.mxu1 %vm153_vm1, %v4706_v34  ;;  %v6333_v34 = vld [vmem:[#allocation20_spill] sm:$0xff]  ;;  %v6338_v39 = vld [vmem:[#allocation19_spill] sm:$0xff] }
  0x9e   :  { %4195 = vmatprep.mubr.msk.f32.mxu0 %vm153_vm1, %v4757_v41  ;;  %v6340_v41 = vld [vmem:[#allocation21_spill] sm:$0xff] }
  0xa0   :  { %3996 = vmatmul.mubr.msk.f32.gmra.mrb[12].mxu1 %vm153_vm1, %v4724_v36  ;;  %v6335_v36 = vld [vmem:[#allocation22_spill] sm:$0xff] }
  0xa1   :  { %4196 = vmatmul.mubr.msk.f32.gmra.mrb[12].mxu0 %vm153_vm1, %v4773_v43  ;;  %3998 = vmatprep.mubr.msk.f32.mxu1 %vm153_vm1, %v4734_v38  ;;  %v6337_v38 = vld [vmem:[#allocation24_spill] sm:$0xff]  ;;  %v6342_v43 = vld [vmem:[#allocation23_spill] sm:$0xff] }
  0xa2   :  { %4198 = vmatprep.mubr.msk.f32.mxu0 %vm153_vm1, %v4785_v45  ;;  %v6344_v45 = vld [vmem:[#allocation25_spill] sm:$0xff] }
  0xa4   :  { %3999 = vmatmul.mubr.msk.f32.gmra.mrb[14].mxu1 %vm153_vm1, %v4752_v40  ;;  %v6339_v40 = vld [vmem:[#allocation26_spill] sm:$0xff] }
  0xa5   :  { %4199 = vmatmul.mubr.msk.f32.gmra.mrb[14].mxu0 %vm153_vm1, %v4801_v47  ;;  %4001 = vmatprep.mubr.msk.f32.mxu1 %vm153_vm1, %v4762_v42  ;;  %v6341_v42 = vld [vmem:[#allocation28_spill] sm:$0xff]  ;;  %v6346_v47 = vld [vmem:[#allocation27_spill] sm:$0xff] }
  0xa6   :  { %4201 = vmatprep.mubr.msk.f32.mxu0 %vm153_vm1, %v4813_v49  ;;  %v6348_v49 = vld [vmem:[#allocation29_spill] sm:$0xff] }
  0xa8   :  { %4002 = vmatmul.mubr.msk.f32.gmra.mrb[16].mxu1 %vm153_vm1, %v4780_v44  ;;  %v6343_v44 = vld [vmem:[#allocation30_spill] sm:$0xff] }
  0xa9   :  { %4202 = vmatmul.mubr.msk.f32.gmra.mrb[16].mxu0 %vm153_vm1, %v4829_v51  ;;  %4004 = vmatprep.mubr.msk.f32.mxu1 %vm153_vm1, %v4790_v46  ;;  %v6345_v46 = vld [vmem:[#allocation32_spill] sm:$0xff]  ;;  %v6350_v51 = vld [vmem:[#allocation31_spill] sm:$0xff] }
  0xaa   :  { %4204 = vmatprep.mubr.msk.f32.mxu0 %vm153_vm1, %v4841_v53  ;;  %v6352_v53 = vld [vmem:[#allocation33_spill] sm:$0xff] }
  0xac   :  { %4005 = vmatmul.mubr.msk.f32.gmra.mrb[18].mxu1 %vm153_vm1, %v4808_v48  ;;  %v6347_v48 = vld [vmem:[#allocation34_spill] sm:$0xff] }
  0xad   :  { %4205 = vmatmul.mubr.msk.f32.gmra.mrb[18].mxu0 %vm153_vm1, %v4857_v55  ;;  %4007 = vmatprep.mubr.msk.f32.mxu1 %vm153_vm1, %v4818_v50  ;;  %v6349_v50 = vld [vmem:[#allocation36_spill] sm:$0xff]  ;;  %v6354_v55 = vld [vmem:[#allocation35_spill] sm:$0xff] }
  0xae   :  { %4207 = vmatprep.mubr.msk.f32.mxu0 %vm153_vm1, %v4869_v57  ;;  %v6356_v57 = vld [vmem:[#allocation37_spill] sm:$0xff] }
  0xb0   :  { %4008 = vmatmul.mubr.msk.f32.gmra.mrb[20].mxu1 %vm153_vm1, %v4836_v52  ;;  %v6351_v52 = vld [vmem:[#allocation38_spill] sm:$0xff] }
  0xb1   :  { %4208 = vmatmul.mubr.msk.f32.gmra.mrb[20].mxu0 %vm153_vm1, %v4885_v59  ;;  %4010 = vmatprep.mubr.msk.f32.mxu1 %vm153_vm1, %v4846_v54  ;;  %v6353_v54 = vld [vmem:[#allocation40_spill] sm:$0xff]  ;;  %v6358_v59 = vld [vmem:[#allocation39_spill] sm:$0xff] }
  0xb2   :  { %4210 = vmatprep.mubr.msk.f32.mxu0 %vm153_vm1, %v4897_v61  ;;  %v6360_v61 = vld [vmem:[#allocation41_spill] sm:$0xff] }
  0xb4   :  { %4011 = vmatmul.mubr.msk.f32.gmra.mrb[22].mxu1 %vm153_vm1, %v4864_v56  ;;  %v6355_v56 = vld [vmem:[#allocation42_spill] sm:$0xff] }
  0xb5   :  { %4211 = vmatmul.mubr.msk.f32.gmra.mrb[22].mxu0 %vm153_vm1, %v4913_v63  ;;  %4013 = vmatprep.mubr.msk.f32.mxu1 %vm153_vm1, %v4874_v58  ;;  %v6357_v58 = vld [vmem:[#allocation44_spill] sm:$0xff]  ;;  %v6362_v63 = vld [vmem:[#allocation43_spill] sm:$0xff] }
  0xb6   :  { %4213 = vmatprep.mubr.msk.f32.mxu0 %vm153_vm1, %v4925_v1  ;;  %v6364_v1 = vld [vmem:[#allocation45_spill] sm:$0xff] }
  0xb8   :  { %4014 = vmatmul.mubr.msk.f32.gmra.mrb[24].mxu1 %vm153_vm1, %v4892_v60  ;;  %v6359_v60 = vld [vmem:[#allocation46_spill] sm:$0xff] }
  0xb9   :  { %4214 = vmatmul.mubr.msk.f32.gmra.mrb[24].mxu0 %vm153_vm1, %v4941_v3  ;;  %4016 = vmatprep.mubr.msk.f32.mxu1 %vm153_vm1, %v4902_v62  ;;  %v6361_v62 = vld [vmem:[#allocation48_spill] sm:$0xff]  ;;  %v6366_v3 = vld [vmem:[#allocation47_spill] sm:$0xff] }
  0xba   :  { %4216 = vmatprep.mubr.msk.f32.mxu0 %vm153_vm1, %v4953_v5  ;;  %v6368_v5 = vld [vmem:[#allocation49_spill] sm:$0xff] }
  0xbc   :  { %4017 = vmatmul.mubr.msk.f32.gmra.mrb[26].mxu1 %vm153_vm1, %v4920_v0  ;;  %v6363_v0 = vld [vmem:[#allocation50_spill] sm:$0xff] }
  0xbd   :  { %4217 = vmatmul.mubr.msk.f32.gmra.mrb[26].mxu0 %vm153_vm1, %v4969_v7  ;;  %4019 = vmatprep.mubr.msk.f32.mxu1 %vm153_vm1, %v4930_v2  ;;  %v6365_v2 = vld [vmem:[#allocation52_spill] sm:$0xff]  ;;  %v6370_v7 = vld [vmem:[#allocation51_spill] sm:$0xff] }
  0xbe   :  { %4219 = vmatprep.mubr.msk.f32.mxu0 %vm153_vm1, %v4981_v10  ;;  %v6371_v10 = vld [vmem:[#allocation58_spill] sm:$0xff] }
  0xc0   :  { %4020 = vmatmul.mubr.msk.f32.gmra.mrb[28].mxu1 %vm153_vm1, %v4948_v4  ;;  %v6367_v4 = vld [vmem:[#allocation54_spill] sm:$0xff] }
  0xc1   :  { %4220 = vmatmul.mubr.msk.f32.gmra.mrb[28].mxu0 %vm153_vm1, %v4995_v12  ;;  %4022 = vmatprep.mubr.msk.f32.mxu1 %vm153_vm1, %v6318_v15  ;;  %v6372_v12 = vld [vmem:[#allocation53_spill] sm:$0xff]  ;;  %v6376_v15 = vld [vmem:[#allocation59_spill] sm:$0xff] }
  0xc2   :  { %4222 = vmatprep.mubr.msk.f32.mxu0 %vm153_vm1, %v3505_v8  ;;  %v6375_v8 = vld [vmem:[#allocation57_spill] sm:$0xff] }
  0xc4   :  { %4023 = vmatmul.mubr.msk.f32.gmra.mrb[30].mxu1 %vm153_vm1, %v6319_v19 }
  0xc5   :  { %4223 = vmatmul.mubr.msk.f32.gmra.mrb[30].mxu0 %vm153_vm1, %v3506_v17  ;;  %4025 = vmatprep.mubr.msk.f32.mxu1 %vm153_vm1, %v52_v18  ;;  %v3538_v17 = vld [vmem:[%s6191_s0 + $0x321] sm:$0xff] }
  0xc6   :  { %4225 = vmatprep.mubr.msk.f32.mxu0 %vm153_vm1, %v6320_v21 }
  0xc8   :  { %4026 = vmatmul.mubr.msk.f32.gmra.mrb[32].mxu1 %vm153_vm1, %v53_v20 }
  0xc9   :  { %4226 = vmatmul.mubr.msk.f32.gmra.mrb[32].mxu0 %vm153_vm1, %v6321_v22  ;;  %4028 = vmatprep.mubr.msk.f32.mxu1 %vm153_vm1, %v6322_v23 }
  0xca   :  { %4228 = vmatprep.mubr.msk.f32.mxu0 %vm153_vm1, %v6323_v24 }
  0xcc   :  { %4029 = vmatmul.mubr.msk.f32.gmra.mrb[34].mxu1 %vm153_vm1, %v6324_v25 }
  0xcd   :  { %4229 = vmatmul.mubr.msk.f32.gmra.mrb[34].mxu0 %vm153_vm1, %v6325_v26  ;;  %4031 = vmatprep.mubr.msk.f32.mxu1 %vm153_vm1, %v6326_v27 }
  0xce   :  { %4231 = vmatprep.mubr.msk.f32.mxu0 %vm153_vm1, %v6327_v28 }
  0xd0   :  { %4032 = vmatmul.mubr.msk.f32.gmra.mrb[36].mxu1 %vm153_vm1, %v6328_v29 }
  0xd1   :  { %4232 = vmatmul.mubr.msk.f32.gmra.mrb[36].mxu0 %vm153_vm1, %v6329_v30  ;;  %4034 = vmatprep.mubr.msk.f32.mxu1 %vm153_vm1, %v6330_v31  ;;  %v5722_v30 = vld [vmem:[%s6193_s3] ss:$0 sm:$0xff] }
  0xd2   :  { %4234 = vmatprep.mubr.msk.f32.mxu0 %vm153_vm1, %v6331_v32 }
  0xd4   :  { %4035 = vmatmul.mubr.msk.f32.gmra.mrb[38].mxu1 %vm153_vm1, %v6332_v33 }
  0xd5   :  { %4235 = vmatmul.mubr.msk.f32.gmra.mrb[38].mxu0 %vm153_vm1, %v6333_v34  ;;  %4037 = vmatprep.mubr.msk.f32.mxu1 %vm153_vm1, %v6334_v35 }
  0xd6   :  { %4237 = vmatprep.mubr.msk.f32.mxu0 %vm153_vm1, %v6335_v36  ;;  %v5727_v36 = vld [vmem:[%s6194_s4] ss:$0 sm:$0xff] }
  0xd8   :  { %4038 = vmatmul.mubr.msk.f32.gmra.mrb[40].mxu1 %vm153_vm1, %v6336_v37 }
  0xd9   :  { %4238 = vmatmul.mubr.msk.f32.gmra.mrb[40].mxu0 %vm153_vm1, %v6337_v38  ;;  %4040 = vmatprep.mubr.msk.f32.mxu1 %vm153_vm1, %v6338_v39 }
  0xda   :  { %4240 = vmatprep.mubr.msk.f32.mxu0 %vm153_vm1, %v6339_v40 }
  0xdc   :  { %4041 = vmatmul.mubr.msk.f32.gmra.mrb[42].mxu1 %vm153_vm1, %v6340_v41 }
  0xdd   :  { %4241 = vmatmul.mubr.msk.f32.gmra.mrb[42].mxu0 %vm153_vm1, %v6341_v42  ;;  %4043 = vmatprep.mubr.msk.f32.mxu1 %vm153_vm1, %v6342_v43 }
  0xde   :  { %4243 = vmatprep.mubr.msk.f32.mxu0 %vm153_vm1, %v6343_v44 }
  0xe0   :  { %4044 = vmatmul.mubr.msk.f32.gmra.mrb[44].mxu1 %vm153_vm1, %v6344_v45 }
  0xe1   :  { %4244 = vmatmul.mubr.msk.f32.gmra.mrb[44].mxu0 %vm153_vm1, %v6345_v46  ;;  %4046 = vmatprep.mubr.msk.f32.mxu1 %vm153_vm1, %v6346_v47 }
  0xe2   :  { %4246 = vmatprep.mubr.msk.f32.mxu0 %vm153_vm1, %v6347_v48 }
  0xe4   :  { %4047 = vmatmul.mubr.msk.f32.gmra.mrb[46].mxu1 %vm153_vm1, %v6348_v49 }
  0xe5   :  { %4247 = vmatmul.mubr.msk.f32.gmra.mrb[46].mxu0 %vm153_vm1, %v6349_v50  ;;  %4049 = vmatprep.mubr.msk.f32.mxu1 %vm153_vm1, %v6350_v51 }
  0xe6   :  { %4249 = vmatprep.mubr.msk.f32.mxu0 %vm153_vm1, %v6351_v52 }
  0xe8   :  { %4050 = vmatmul.mubr.msk.f32.gmra.mrb[48].mxu1 %vm153_vm1, %v6352_v53 }
  0xe9   :  { %4250 = vmatmul.mubr.msk.f32.gmra.mrb[48].mxu0 %vm153_vm1, %v6353_v54  ;;  %4052 = vmatprep.mubr.msk.f32.mxu1 %vm153_vm1, %v6354_v55 }
  0xea   :  { %4252 = vmatprep.mubr.msk.f32.mxu0 %vm153_vm1, %v6355_v56 }
  0xec   :  { %4053 = vmatmul.mubr.msk.f32.gmra.mrb[50].mxu1 %vm153_vm1, %v6356_v57 }
  0xed   :  { %4253 = vmatmul.mubr.msk.f32.gmra.mrb[50].mxu0 %vm153_vm1, %v6357_v58  ;;  %4055 = vmatprep.mubr.msk.f32.mxu1 %vm153_vm1, %v6358_v59 }
  0xee   :  { %4255 = vmatprep.mubr.msk.f32.mxu0 %vm153_vm1, %v6359_v60 }
  0xf0   :  { %4056 = vmatmul.mubr.msk.f32.gmra.mrb[52].mxu1 %vm153_vm1, %v6360_v61 }
  0xf1   :  { %4256 = vmatmul.mubr.msk.f32.gmra.mrb[52].mxu0 %vm153_vm1, %v6361_v62  ;;  %4058 = vmatprep.mubr.msk.f32.mxu1 %vm153_vm1, %v6362_v63 }
  0xf2   :  { %4258 = vmatprep.mubr.msk.f32.mxu0 %vm153_vm1, %v6363_v0 }
  0xf4   :  { %4059 = vmatmul.mubr.msk.f32.gmra.mrb[54].mxu1 %vm153_vm1, %v6364_v1 }
  0xf5   :  { %4259 = vmatmul.mubr.msk.f32.gmra.mrb[54].mxu0 %vm153_vm1, %v6365_v2  ;;  %4061 = vmatprep.mubr.msk.f32.mxu1 %vm153_vm1, %v6366_v3 }
  0xf6   :  { %4261 = vmatprep.mubr.msk.f32.mxu0 %vm153_vm1, %v6367_v4 }
  0xf8   :  { %4062 = vmatmul.mubr.msk.f32.gmra.mrb[56].mxu1 %vm153_vm1, %v6368_v5 }
  0xf9   :  { %4262 = vmatmul.mubr.msk.f32.gmra.mrb[56].mxu0 %vm153_vm1, %v6369_v6  ;;  %4064 = vmatprep.mubr.msk.f32.mxu1 %vm153_vm1, %v6370_v7 }
  0xfa   :  { %4264 = vmatprep.mubr.msk.f32.mxu0 %vm153_vm1, %v6371_v10 }
  0xfc   :  { %4065 = vmatmul.mubr.msk.f32.gmra.mrb[58].mxu1 %vm153_vm1, %v6372_v12 }
  0xfd   :  { %4265 = vmatmul.mubr.msk.f32.gmra.mrb[58].mxu0 %vm153_vm1, %v6373_v13  ;;  %4067 = vmatprep.mubr.msk.f32.mxu1 %vm153_vm1, %v6374_v14 }
  0xfe   :  { %4267 = vmatprep.mubr.msk.f32.mxu0 %vm153_vm1, %v5417_v16  ;;  %v6377_v16 = vld [vmem:[#allocation61_spill] sm:$0xff] }
 0x100   :  { %4068 = vmatmul.mubr.msk.f32.gmra.mrb[60].mxu1 %vm153_vm1, %v6375_v8 }
 0x101   :  { %4268 = vmatmul.mubr.msk.f32.gmra.mrb[60].mxu0 %vm153_vm1, %v5431_v9  ;;  %4070 = vmatprep.mubr.msk.f32.mxu1 %vm153_vm1, %v6376_v15  ;;  %v5715_v9 = vld [vmem:[%s6192_s2] ss:$0 sm:$0xff] }
 0x102   :  { %4270 = vmatprep.mubr.msk.f32.mxu0 %vm153_vm1, %v3537_v11 }
 0x104   :  { %4071 = vmatmul.mubr.msk.f32.gmra.mrb[62].mxu1 %vm153_vm1, %v6377_v16 }
 0x105   :  { %4271 = vmatmul.mubr.msk.f32.gmra.mrb[62].mxu0 %vm153_vm1, %v3538_v17 }
 0x15b   :  { %v3979_v18 = vpop.f32.mrb[0].mxu1 }
 0x15c   :  { %v4179_v19 = vpop.f32.mrb[0].mxu0  ;;  %v996_v20 = vpop.f32.mrb[1].mxu1 }
 0x15d   :  { %v4297_v21 = vadd.f32 %v4179_v19, %v3979_v18  ;;  %v2355_v22 = vpop.f32.mrb[1].mxu0 }
 0x15e   :  { %v4298_v23 = vadd.f32 %v2355_v22, %v996_v20 }
 0x15f   :  { %v2746_v24 = vadd.f32 %v4297_v21, %v5715_v9  ;;  %v3982_v25 = vpop.f32.mrb[2].mxu1 }
 0x160   :  { %v2745_v26 = vadd.f32 %v4298_v23, %v5715_v9  ;;  %v4182_v27 = vpop.f32.mrb[2].mxu0  ;;  %v1006_v28 = vpop.f32.mrb[3].mxu1 }
 0x161   :  { %vm2810_vm4 = vcmp.ge.f32.partialorder %v2746_v24, 0.0  ;;  %v2874_v29 = vmul.f32 0.2, %v2746_v24  ;;  %v4299_v31 = vadd.f32 %v4182_v27, %v3982_v25  ;;  %v2365_v32 = vpop.f32.mrb[3].mxu0 }
 0x162   :  { %vm2809_vm5 = vcmp.ge.f32.partialorder %v2745_v26, 0.0  ;;  %v2873_v33 = vmul.f32 0.2, %v2745_v26  ;;  %v4300_v34 = vadd.f32 %v2365_v32, %v1006_v28 }
 0x163   :  { %v2938_v35 = vsel %vm2810_vm4, %v2746_v24, %v2874_v29  ;;  %v2748_v37 = vadd.f32 %v4299_v31, %v5715_v9  ;;  %v3985_v38 = vpop.f32.mrb[4].mxu1 }
 0x164   :  { %v3009_v39 = vmul.f32 %v5722_v30, %v2938_v35  ;;  %v2937_v40 = vsel %vm2809_vm5, %v2745_v26, %v2873_v33  ;;  %v2747_v41 = vadd.f32 %v4300_v34, %v5715_v9  ;;  %v4185_v42 = vpop.f32.mrb[4].mxu0  ;;  %v1016_v43 = vpop.f32.mrb[5].mxu1 }
 0x165   :  { %v3008_v44 = vmul.f32 %v5722_v30, %v2937_v40  ;;  %vm2812_vm7 = vcmp.ge.f32.partialorder %v2748_v37, 0.0  ;;  %v2876_v45 = vmul.f32 0.2, %v2748_v37  ;;  %v4301_v46 = vadd.f32 %v4185_v42, %v3985_v38  ;;  %v2375_v47 = vpop.f32.mrb[5].mxu0 }
 0x166   :  { %v3080_v48 = vadd.f32 %v5727_v36, %v3009_v39  ;;  %vm2811_vm8 = vcmp.ge.f32.partialorder %v2747_v41, 0.0  ;;  %v2875_v49 = vmul.f32 0.2, %v2747_v41  ;;  %v4302_v50 = vadd.f32 %v2375_v47, %v1016_v43 }
 0x167   :  { %v3079_v51 = vadd.f32 %v5727_v36, %v3008_v44  ;;  %v2940_v52 = vsel %vm2812_vm7, %v2748_v37, %v2876_v45  ;;  %v2750_v53 = vadd.f32 %v4301_v46, %v5715_v9  ;;  %v3988_v54 = vpop.f32.mrb[6].mxu1 }
 0x168   :  { %3145 = vst.msk [vmem:[%s6195_s5 + $0x8] sm:$0xff] %vm3143_vm6, %v3080_v48  ;;  %v3011_v55 = vmul.f32 %v5722_v30, %v2940_v52  ;;  %v2939_v56 = vsel %vm2811_vm8, %v2747_v41, %v2875_v49  ;;  %v2749_v57 = vadd.f32 %v4302_v50, %v5715_v9  ;;  %v4188_v58 = vpop.f32.mrb[6].mxu0  ;;  %v1026_v59 = vpop.f32.mrb[7].mxu1 }
 0x169   :  { %3144 = vst.msk [vmem:[%s6195_s5] sm:$0xff] %vm3143_vm6, %v3079_v51  ;;  %v3010_v60 = vmul.f32 %v5722_v30, %v2939_v56  ;;  %vm2814_vm9 = vcmp.ge.f32.partialorder %v2750_v53, 0.0  ;;  %v2878_v61 = vmul.f32 0.2, %v2750_v53  ;;  %v4303_v62 = vadd.f32 %v4188_v58, %v3988_v54  ;;  %v2385_v63 = vpop.f32.mrb[7].mxu0 }
 0x16a   :  { %v3082_v0 = vadd.f32 %v5727_v36, %v3011_v55  ;;  %vm2813_vm10 = vcmp.ge.f32.partialorder %v2749_v57, 0.0  ;;  %v2877_v1 = vmul.f32 0.2, %v2749_v57  ;;  %v4304_v2 = vadd.f32 %v2385_v63, %v1026_v59 }
 0x16b   :  { %v3081_v3 = vadd.f32 %v5727_v36, %v3010_v60  ;;  %v2942_v4 = vsel %vm2814_vm9, %v2750_v53, %v2878_v61  ;;  %v2752_v5 = vadd.f32 %v4303_v62, %v5715_v9  ;;  %v3991_v6 = vpop.f32.mrb[8].mxu1 }
 0x16c   :  { %3147 = vst.msk [vmem:[%s6195_s5 + $0x18] sm:$0xff] %vm3143_vm6, %v3082_v0  ;;  %v3013_v7 = vmul.f32 %v5722_v30, %v2942_v4  ;;  %v2941_v10 = vsel %vm2813_vm10, %v2749_v57, %v2877_v1  ;;  %v2751_v12 = vadd.f32 %v4304_v2, %v5715_v9  ;;  %v4191_v13 = vpop.f32.mrb[8].mxu0  ;;  %v1036_v14 = vpop.f32.mrb[9].mxu1 }
 0x16d   :  { %3146 = vst.msk [vmem:[%s6195_s5 + $0x10] sm:$0xff] %vm3143_vm6, %v3081_v3  ;;  %v3012_v11 = vmul.f32 %v5722_v30, %v2941_v10  ;;  %vm2816_vm11 = vcmp.ge.f32.partialorder %v2752_v5, 0.0  ;;  %v2880_v8 = vmul.f32 0.2, %v2752_v5  ;;  %v4305_v15 = vadd.f32 %v4191_v13, %v3991_v6  ;;  %v2395_v17 = vpop.f32.mrb[9].mxu0 }
 0x16e   :  { %v3084_v16 = vadd.f32 %v5727_v36, %v3013_v7  ;;  %vm2815_vm12 = vcmp.ge.f32.partialorder %v2751_v12, 0.0  ;;  %v2879_v18 = vmul.f32 0.2, %v2751_v12  ;;  %v4306_v19 = vadd.f32 %v2395_v17, %v1036_v14 }
 0x16f   :  { %v3083_v20 = vadd.f32 %v5727_v36, %v3012_v11  ;;  %v2944_v21 = vsel %vm2816_vm11, %v2752_v5, %v2880_v8  ;;  %v2754_v22 = vadd.f32 %v4305_v15, %v5715_v9  ;;  %v3994_v23 = vpop.f32.mrb[10].mxu1 }
 0x170   :  { %3149 = vst.msk [vmem:[%s6195_s5 + $0x28] sm:$0xff] %vm3143_vm6, %v3084_v16  ;;  %v3015_v24 = vmul.f32 %v5722_v30, %v2944_v21  ;;  %v2943_v25 = vsel %vm2815_vm12, %v2751_v12, %v2879_v18  ;;  %v2753_v26 = vadd.f32 %v4306_v19, %v5715_v9  ;;  %v4194_v27 = vpop.f32.mrb[10].mxu0  ;;  %v1046_v28 = vpop.f32.mrb[11].mxu1 }
 0x171   :  { %3148 = vst.msk [vmem:[%s6195_s5 + $0x20] sm:$0xff] %vm3143_vm6, %v3083_v20  ;;  %v3014_v29 = vmul.f32 %v5722_v30, %v2943_v25  ;;  %vm2818_vm13 = vcmp.ge.f32.partialorder %v2754_v22, 0.0  ;;  %v2882_v31 = vmul.f32 0.2, %v2754_v22  ;;  %v4307_v32 = vadd.f32 %v4194_v27, %v3994_v23  ;;  %v2405_v33 = vpop.f32.mrb[11].mxu0 }
 0x172   :  { %v3086_v34 = vadd.f32 %v5727_v36, %v3015_v24  ;;  %vm2817_vm14 = vcmp.ge.f32.partialorder %v2753_v26, 0.0  ;;  %v2881_v35 = vmul.f32 0.2, %v2753_v26  ;;  %v4308_v37 = vadd.f32 %v2405_v33, %v1046_v28 }
 0x173   :  { %v3085_v38 = vadd.f32 %v5727_v36, %v3014_v29  ;;  %v2946_v39 = vsel %vm2818_vm13, %v2754_v22, %v2882_v31  ;;  %v2756_v40 = vadd.f32 %v4307_v32, %v5715_v9  ;;  %v3997_v41 = vpop.f32.mrb[12].mxu1 }
 0x174   :  { %3151 = vst.msk [vmem:[%s6195_s5 + $0x38] sm:$0xff] %vm3143_vm6, %v3086_v34  ;;  %v3017_v42 = vmul.f32 %v5722_v30, %v2946_v39  ;;  %v2945_v43 = vsel %vm2817_vm14, %v2753_v26, %v2881_v35  ;;  %v2755_v44 = vadd.f32 %v4308_v37, %v5715_v9  ;;  %v4197_v45 = vpop.f32.mrb[12].mxu0  ;;  %v1056_v46 = vpop.f32.mrb[13].mxu1 }
 0x175   :  { %3150 = vst.msk [vmem:[%s6195_s5 + $0x30] sm:$0xff] %vm3143_vm6, %v3085_v38  ;;  %v3016_v47 = vmul.f32 %v5722_v30, %v2945_v43  ;;  %vm2820_vm15 = vcmp.ge.f32.partialorder %v2756_v40, 0.0  ;;  %v2884_v48 = vmul.f32 0.2, %v2756_v40  ;;  %v4309_v49 = vadd.f32 %v4197_v45, %v3997_v41  ;;  %v2415_v50 = vpop.f32.mrb[13].mxu0 }
 0x176   :  { %v3088_v51 = vadd.f32 %v5727_v36, %v3017_v42  ;;  %vm2819_vm0 = vcmp.ge.f32.partialorder %v2755_v44, 0.0  ;;  %v2883_v52 = vmul.f32 0.2, %v2755_v44  ;;  %v4310_v53 = vadd.f32 %v2415_v50, %v1056_v46 }
 0x177   :  { %v3087_v54 = vadd.f32 %v5727_v36, %v3016_v47  ;;  %v2948_v55 = vsel %vm2820_vm15, %v2756_v40, %v2884_v48  ;;  %v2758_v56 = vadd.f32 %v4309_v49, %v5715_v9  ;;  %v4000_v57 = vpop.f32.mrb[14].mxu1 }
 0x178   :  { %3153 = vst.msk [vmem:[%s6195_s5 + $0x48] sm:$0xff] %vm3143_vm6, %v3088_v51  ;;  %v3019_v58 = vmul.f32 %v5722_v30, %v2948_v55  ;;  %v2947_v59 = vsel %vm2819_vm0, %v2755_v44, %v2883_v52  ;;  %v2757_v60 = vadd.f32 %v4310_v53, %v5715_v9  ;;  %v4200_v61 = vpop.f32.mrb[14].mxu0  ;;  %v1066_v62 = vpop.f32.mrb[15].mxu1 }
 0x179   :  { %3152 = vst.msk [vmem:[%s6195_s5 + $0x40] sm:$0xff] %vm3143_vm6, %v3087_v54  ;;  %v3018_v63 = vmul.f32 %v5722_v30, %v2947_v59  ;;  %vm2822_vm1 = vcmp.ge.f32.partialorder %v2758_v56, 0.0  ;;  %v2886_v0 = vmul.f32 0.2, %v2758_v56  ;;  %v4311_v1 = vadd.f32 %v4200_v61, %v4000_v57  ;;  %v2425_v2 = vpop.f32.mrb[15].mxu0 }
 0x17a   :  { %v3090_v3 = vadd.f32 %v5727_v36, %v3019_v58  ;;  %vm2821_vm2 = vcmp.ge.f32.partialorder %v2757_v60, 0.0  ;;  %v2885_v4 = vmul.f32 0.2, %v2757_v60  ;;  %v4312_v5 = vadd.f32 %v2425_v2, %v1066_v62 }
 0x17b   :  { %v3089_v6 = vadd.f32 %v5727_v36, %v3018_v63  ;;  %v2950_v7 = vsel %vm2822_vm1, %v2758_v56, %v2886_v0  ;;  %v2760_v10 = vadd.f32 %v4311_v1, %v5715_v9  ;;  %v4003_v12 = vpop.f32.mrb[16].mxu1 }
 0x17c   :  { %3155 = vst.msk [vmem:[%s6195_s5 + $0x58] sm:$0xff] %vm3143_vm6, %v3090_v3  ;;  %v3021_v13 = vmul.f32 %v5722_v30, %v2950_v7  ;;  %v2949_v14 = vsel %vm2821_vm2, %v2757_v60, %v2885_v4  ;;  %v2759_v11 = vadd.f32 %v4312_v5, %v5715_v9  ;;  %v4203_v8 = vpop.f32.mrb[16].mxu0  ;;  %v1076_v15 = vpop.f32.mrb[17].mxu1 }
 0x17d   :  { %3154 = vst.msk [vmem:[%s6195_s5 + $0x50] sm:$0xff] %vm3143_vm6, %v3089_v6  ;;  %v3020_v17 = vmul.f32 %v5722_v30, %v2949_v14  ;;  %vm2824_vm3 = vcmp.ge.f32.partialorder %v2760_v10, 0.0  ;;  %v2888_v16 = vmul.f32 0.2, %v2760_v10  ;;  %v4313_v18 = vadd.f32 %v4203_v8, %v4003_v12  ;;  %v2435_v19 = vpop.f32.mrb[17].mxu0 }
 0x17e   :  { %v3092_v20 = vadd.f32 %v5727_v36, %v3021_v13  ;;  %vm2823_vm4 = vcmp.ge.f32.partialorder %v2759_v11, 0.0  ;;  %v2887_v21 = vmul.f32 0.2, %v2759_v11  ;;  %v4314_v22 = vadd.f32 %v2435_v19, %v1076_v15 }
 0x17f   :  { %v3091_v23 = vadd.f32 %v5727_v36, %v3020_v17  ;;  %v2952_v24 = vsel %vm2824_vm3, %v2760_v10, %v2888_v16  ;;  %v2762_v25 = vadd.f32 %v4313_v18, %v5715_v9  ;;  %v4006_v26 = vpop.f32.mrb[18].mxu1 }
 0x180   :  { %3157 = vst.msk [vmem:[%s6195_s5 + $0x68] sm:$0xff] %vm3143_vm6, %v3092_v20  ;;  %v3023_v27 = vmul.f32 %v5722_v30, %v2952_v24  ;;  %v2951_v28 = vsel %vm2823_vm4, %v2759_v11, %v2887_v21  ;;  %v2761_v29 = vadd.f32 %v4314_v22, %v5715_v9  ;;  %v4206_v31 = vpop.f32.mrb[18].mxu0  ;;  %v1086_v32 = vpop.f32.mrb[19].mxu1 }
 0x181   :  { %3156 = vst.msk [vmem:[%s6195_s5 + $0x60] sm:$0xff] %vm3143_vm6, %v3091_v23  ;;  %v3022_v33 = vmul.f32 %v5722_v30, %v2951_v28  ;;  %vm2826_vm5 = vcmp.ge.f32.partialorder %v2762_v25, 0.0  ;;  %v2890_v34 = vmul.f32 0.2, %v2762_v25  ;;  %v4315_v35 = vadd.f32 %v4206_v31, %v4006_v26  ;;  %v2445_v37 = vpop.f32.mrb[19].mxu0 }
 0x182   :  { %v3094_v38 = vadd.f32 %v5727_v36, %v3023_v27  ;;  %vm2825_vm7 = vcmp.ge.f32.partialorder %v2761_v29, 0.0  ;;  %v2889_v39 = vmul.f32 0.2, %v2761_v29  ;;  %v4316_v40 = vadd.f32 %v2445_v37, %v1086_v32 }
 0x183   :  { %v3093_v41 = vadd.f32 %v5727_v36, %v3022_v33  ;;  %v2954_v42 = vsel %vm2826_vm5, %v2762_v25, %v2890_v34  ;;  %v2764_v43 = vadd.f32 %v4315_v35, %v5715_v9  ;;  %v4009_v44 = vpop.f32.mrb[20].mxu1 }
 0x184   :  { %3159 = vst.msk [vmem:[%s6195_s5 + $0x78] sm:$0xff] %vm3143_vm6, %v3094_v38  ;;  %v3025_v45 = vmul.f32 %v5722_v30, %v2954_v42  ;;  %v2953_v46 = vsel %vm2825_vm7, %v2761_v29, %v2889_v39  ;;  %v2763_v47 = vadd.f32 %v4316_v40, %v5715_v9  ;;  %v4209_v48 = vpop.f32.mrb[20].mxu0  ;;  %v1096_v49 = vpop.f32.mrb[21].mxu1 }
 0x185   :  { %3158 = vst.msk [vmem:[%s6195_s5 + $0x70] sm:$0xff] %vm3143_vm6, %v3093_v41  ;;  %v3024_v50 = vmul.f32 %v5722_v30, %v2953_v46  ;;  %vm2828_vm8 = vcmp.ge.f32.partialorder %v2764_v43, 0.0  ;;  %v2892_v51 = vmul.f32 0.2, %v2764_v43  ;;  %v4317_v52 = vadd.f32 %v4209_v48, %v4009_v44  ;;  %v2455_v53 = vpop.f32.mrb[21].mxu0 }
 0x186   :  { %v3096_v54 = vadd.f32 %v5727_v36, %v3025_v45  ;;  %vm2827_vm9 = vcmp.ge.f32.partialorder %v2763_v47, 0.0  ;;  %v2891_v55 = vmul.f32 0.2, %v2763_v47  ;;  %v4318_v56 = vadd.f32 %v2455_v53, %v1096_v49 }
 0x187   :  { %v3095_v57 = vadd.f32 %v5727_v36, %v3024_v50  ;;  %v2956_v58 = vsel %vm2828_vm8, %v2764_v43, %v2892_v51  ;;  %v2766_v59 = vadd.f32 %v4317_v52, %v5715_v9  ;;  %v4012_v60 = vpop.f32.mrb[22].mxu1 }
 0x188   :  { %3161 = vst.msk [vmem:[%s6195_s5 + $0x88] sm:$0xff] %vm3143_vm6, %v3096_v54  ;;  %v3027_v61 = vmul.f32 %v5722_v30, %v2956_v58  ;;  %v2955_v62 = vsel %vm2827_vm9, %v2763_v47, %v2891_v55  ;;  %v2765_v63 = vadd.f32 %v4318_v56, %v5715_v9  ;;  %v4212_v0 = vpop.f32.mrb[22].mxu0  ;;  %v1106_v1 = vpop.f32.mrb[23].mxu1 }
 0x189   :  { %3160 = vst.msk [vmem:[%s6195_s5 + $0x80] sm:$0xff] %vm3143_vm6, %v3095_v57  ;;  %v3026_v2 = vmul.f32 %v5722_v30, %v2955_v62  ;;  %vm2830_vm10 = vcmp.ge.f32.partialorder %v2766_v59, 0.0  ;;  %v2894_v3 = vmul.f32 0.2, %v2766_v59  ;;  %v4319_v4 = vadd.f32 %v4212_v0, %v4012_v60  ;;  %v2465_v5 = vpop.f32.mrb[23].mxu0 }
 0x18a   :  { %v3098_v6 = vadd.f32 %v5727_v36, %v3027_v61  ;;  %vm2829_vm11 = vcmp.ge.f32.partialorder %v2765_v63, 0.0  ;;  %v2893_v7 = vmul.f32 0.2, %v2765_v63  ;;  %v4320_v10 = vadd.f32 %v2465_v5, %v1106_v1 }
 0x18b   :  { %v3097_v12 = vadd.f32 %v5727_v36, %v3026_v2  ;;  %v2958_v13 = vsel %vm2830_vm10, %v2766_v59, %v2894_v3  ;;  %v2768_v14 = vadd.f32 %v4319_v4, %v5715_v9  ;;  %v4015_v11 = vpop.f32.mrb[24].mxu1 }
 0x18c   :  { %3163 = vst.msk [vmem:[%s6195_s5 + $0x98] sm:$0xff] %vm3143_vm6, %v3098_v6  ;;  %v3029_v8 = vmul.f32 %v5722_v30, %v2958_v13  ;;  %v2957_v15 = vsel %vm2829_vm11, %v2765_v63, %v2893_v7  ;;  %v2767_v17 = vadd.f32 %v4320_v10, %v5715_v9  ;;  %v4215_v16 = vpop.f32.mrb[24].mxu0  ;;  %v1116_v18 = vpop.f32.mrb[25].mxu1 }
 0x18d   :  { %3162 = vst.msk [vmem:[%s6195_s5 + $0x90] sm:$0xff] %vm3143_vm6, %v3097_v12  ;;  %v3028_v19 = vmul.f32 %v5722_v30, %v2957_v15  ;;  %vm2832_vm12 = vcmp.ge.f32.partialorder %v2768_v14, 0.0  ;;  %v2896_v20 = vmul.f32 0.2, %v2768_v14  ;;  %v4321_v21 = vadd.f32 %v4215_v16, %v4015_v11  ;;  %v2475_v22 = vpop.f32.mrb[25].mxu0 }
 0x18e   :  { %v3100_v23 = vadd.f32 %v5727_v36, %v3029_v8  ;;  %vm2831_vm13 = vcmp.ge.f32.partialorder %v2767_v17, 0.0  ;;  %v2895_v24 = vmul.f32 0.2, %v2767_v17  ;;  %v4322_v25 = vadd.f32 %v2475_v22, %v1116_v18 }
 0x18f   :  { %v3099_v26 = vadd.f32 %v5727_v36, %v3028_v19  ;;  %v2960_v27 = vsel %vm2832_vm12, %v2768_v14, %v2896_v20  ;;  %v2770_v28 = vadd.f32 %v4321_v21, %v5715_v9  ;;  %v4018_v29 = vpop.f32.mrb[26].mxu1 }
 0x190   :  { %3165 = vst.msk [vmem:[%s6195_s5 + $0xa8] sm:$0xff] %vm3143_vm6, %v3100_v23  ;;  %v3031_v31 = vmul.f32 %v5722_v30, %v2960_v27  ;;  %v2959_v32 = vsel %vm2831_vm13, %v2767_v17, %v2895_v24  ;;  %v2769_v33 = vadd.f32 %v4322_v25, %v5715_v9  ;;  %v4218_v34 = vpop.f32.mrb[26].mxu0  ;;  %v1126_v35 = vpop.f32.mrb[27].mxu1 }
 0x191   :  { %3164 = vst.msk [vmem:[%s6195_s5 + $0xa0] sm:$0xff] %vm3143_vm6, %v3099_v26  ;;  %v3030_v37 = vmul.f32 %v5722_v30, %v2959_v32  ;;  %vm2834_vm14 = vcmp.ge.f32.partialorder %v2770_v28, 0.0  ;;  %v2898_v38 = vmul.f32 0.2, %v2770_v28  ;;  %v4323_v39 = vadd.f32 %v4218_v34, %v4018_v29  ;;  %v2485_v40 = vpop.f32.mrb[27].mxu0 }
 0x192   :  { %v3102_v41 = vadd.f32 %v5727_v36, %v3031_v31  ;;  %vm2833_vm15 = vcmp.ge.f32.partialorder %v2769_v33, 0.0  ;;  %v2897_v42 = vmul.f32 0.2, %v2769_v33  ;;  %v4324_v43 = vadd.f32 %v2485_v40, %v1126_v35 }
 0x193   :  { %v3101_v44 = vadd.f32 %v5727_v36, %v3030_v37  ;;  %v2962_v45 = vsel %vm2834_vm14, %v2770_v28, %v2898_v38  ;;  %v2772_v46 = vadd.f32 %v4323_v39, %v5715_v9  ;;  %v4021_v47 = vpop.f32.mrb[28].mxu1 }
 0x194   :  { %3167 = vst.msk [vmem:[%s6195_s5 + $0xb8] sm:$0xff] %vm3143_vm6, %v3102_v41  ;;  %v3033_v48 = vmul.f32 %v5722_v30, %v2962_v45  ;;  %v2961_v49 = vsel %vm2833_vm15, %v2769_v33, %v2897_v42  ;;  %v2771_v50 = vadd.f32 %v4324_v43, %v5715_v9  ;;  %v4221_v51 = vpop.f32.mrb[28].mxu0  ;;  %v1136_v52 = vpop.f32.mrb[29].mxu1 }
 0x195   :  { %3166 = vst.msk [vmem:[%s6195_s5 + $0xb0] sm:$0xff] %vm3143_vm6, %v3101_v44  ;;  %v3032_v53 = vmul.f32 %v5722_v30, %v2961_v49  ;;  %vm2836_vm0 = vcmp.ge.f32.partialorder %v2772_v46, 0.0  ;;  %v2900_v54 = vmul.f32 0.2, %v2772_v46  ;;  %v4325_v55 = vadd.f32 %v4221_v51, %v4021_v47  ;;  %v2495_v56 = vpop.f32.mrb[29].mxu0 }
 0x196   :  { %v3104_v57 = vadd.f32 %v5727_v36, %v3033_v48  ;;  %vm2835_vm1 = vcmp.ge.f32.partialorder %v2771_v50, 0.0  ;;  %v2899_v58 = vmul.f32 0.2, %v2771_v50  ;;  %v4326_v59 = vadd.f32 %v2495_v56, %v1136_v52 }
 0x197   :  { %v3103_v60 = vadd.f32 %v5727_v36, %v3032_v53  ;;  %v2964_v61 = vsel %vm2836_vm0, %v2772_v46, %v2900_v54  ;;  %v2774_v62 = vadd.f32 %v4325_v55, %v5715_v9  ;;  %v4024_v63 = vpop.f32.mrb[30].mxu1 }
 0x198   :  { %3169 = vst.msk [vmem:[%s6195_s5 + $0xc8] sm:$0xff] %vm3143_vm6, %v3104_v57  ;;  %v3035_v0 = vmul.f32 %v5722_v30, %v2964_v61  ;;  %v2963_v1 = vsel %vm2835_vm1, %v2771_v50, %v2899_v58  ;;  %v2773_v2 = vadd.f32 %v4326_v59, %v5715_v9  ;;  %v4224_v3 = vpop.f32.mrb[30].mxu0  ;;  %v1146_v4 = vpop.f32.mrb[31].mxu1 }
 0x199   :  { %3168 = vst.msk [vmem:[%s6195_s5 + $0xc0] sm:$0xff] %vm3143_vm6, %v3103_v60  ;;  %v3034_v5 = vmul.f32 %v5722_v30, %v2963_v1  ;;  %vm2838_vm2 = vcmp.ge.f32.partialorder %v2774_v62, 0.0  ;;  %v2902_v6 = vmul.f32 0.2, %v2774_v62  ;;  %v4327_v7 = vadd.f32 %v4224_v3, %v4024_v63  ;;  %v2505_v10 = vpop.f32.mrb[31].mxu0 }
 0x19a   :  { %v3106_v12 = vadd.f32 %v5727_v36, %v3035_v0  ;;  %vm2837_vm3 = vcmp.ge.f32.partialorder %v2773_v2, 0.0  ;;  %v2901_v13 = vmul.f32 0.2, %v2773_v2  ;;  %v4328_v14 = vadd.f32 %v2505_v10, %v1146_v4 }
 0x19b   :  { %v3105_v11 = vadd.f32 %v5727_v36, %v3034_v5  ;;  %v2966_v8 = vsel %vm2838_vm2, %v2774_v62, %v2902_v6  ;;  %v2776_v15 = vadd.f32 %v4327_v7, %v5715_v9  ;;  %v4027_v17 = vpop.f32.mrb[32].mxu1 }
 0x19c   :  { %3171 = vst.msk [vmem:[%s6195_s5 + $0xd8] sm:$0xff] %vm3143_vm6, %v3106_v12  ;;  %v3037_v16 = vmul.f32 %v5722_v30, %v2966_v8  ;;  %v2965_v18 = vsel %vm2837_vm3, %v2773_v2, %v2901_v13  ;;  %v2775_v19 = vadd.f32 %v4328_v14, %v5715_v9  ;;  %v4227_v20 = vpop.f32.mrb[32].mxu0  ;;  %v1156_v21 = vpop.f32.mrb[33].mxu1 }
 0x19d   :  { %3170 = vst.msk [vmem:[%s6195_s5 + $0xd0] sm:$0xff] %vm3143_vm6, %v3105_v11  ;;  %v3036_v22 = vmul.f32 %v5722_v30, %v2965_v18  ;;  %vm2840_vm4 = vcmp.ge.f32.partialorder %v2776_v15, 0.0  ;;  %v2904_v23 = vmul.f32 0.2, %v2776_v15  ;;  %v4329_v24 = vadd.f32 %v4227_v20, %v4027_v17  ;;  %v2515_v25 = vpop.f32.mrb[33].mxu0 }
 0x19e   :  { %v3108_v26 = vadd.f32 %v5727_v36, %v3037_v16  ;;  %vm2839_vm5 = vcmp.ge.f32.partialorder %v2775_v19, 0.0  ;;  %v2903_v27 = vmul.f32 0.2, %v2775_v19  ;;  %v4330_v28 = vadd.f32 %v2515_v25, %v1156_v21 }
 0x19f   :  { %v3107_v29 = vadd.f32 %v5727_v36, %v3036_v22  ;;  %v2968_v31 = vsel %vm2840_vm4, %v2776_v15, %v2904_v23  ;;  %v2778_v32 = vadd.f32 %v4329_v24, %v5715_v9  ;;  %v4030_v33 = vpop.f32.mrb[34].mxu1 }
 0x1a0   :  { %3173 = vst.msk [vmem:[%s6195_s5 + $0xe8] sm:$0xff] %vm3143_vm6, %v3108_v26  ;;  %v3039_v34 = vmul.f32 %v5722_v30, %v2968_v31  ;;  %v2967_v35 = vsel %vm2839_vm5, %v2775_v19, %v2903_v27  ;;  %v2777_v37 = vadd.f32 %v4330_v28, %v5715_v9  ;;  %v4230_v38 = vpop.f32.mrb[34].mxu0  ;;  %v1166_v39 = vpop.f32.mrb[35].mxu1 }
 0x1a1   :  { %3172 = vst.msk [vmem:[%s6195_s5 + $0xe0] sm:$0xff] %vm3143_vm6, %v3107_v29  ;;  %v3038_v40 = vmul.f32 %v5722_v30, %v2967_v35  ;;  %vm2842_vm7 = vcmp.ge.f32.partialorder %v2778_v32, 0.0  ;;  %v2906_v41 = vmul.f32 0.2, %v2778_v32  ;;  %v4331_v42 = vadd.f32 %v4230_v38, %v4030_v33  ;;  %v2525_v43 = vpop.f32.mrb[35].mxu0 }
 0x1a2   :  { %v3110_v44 = vadd.f32 %v5727_v36, %v3039_v34  ;;  %vm2841_vm8 = vcmp.ge.f32.partialorder %v2777_v37, 0.0  ;;  %v2905_v45 = vmul.f32 0.2, %v2777_v37  ;;  %v4332_v46 = vadd.f32 %v2525_v43, %v1166_v39 }
 0x1a3   :  { %v3109_v47 = vadd.f32 %v5727_v36, %v3038_v40  ;;  %v2970_v48 = vsel %vm2842_vm7, %v2778_v32, %v2906_v41  ;;  %v2780_v49 = vadd.f32 %v4331_v42, %v5715_v9  ;;  %v4033_v50 = vpop.f32.mrb[36].mxu1 }
 0x1a4   :  { %3175 = vst.msk [vmem:[%s6195_s5 + $0xf8] sm:$0xff] %vm3143_vm6, %v3110_v44  ;;  %v3041_v51 = vmul.f32 %v5722_v30, %v2970_v48  ;;  %v2969_v52 = vsel %vm2841_vm8, %v2777_v37, %v2905_v45  ;;  %v2779_v53 = vadd.f32 %v4332_v46, %v5715_v9  ;;  %v4233_v54 = vpop.f32.mrb[36].mxu0  ;;  %v1176_v55 = vpop.f32.mrb[37].mxu1 }
 0x1a5   :  { %3174 = vst.msk [vmem:[%s6195_s5 + $0xf0] sm:$0xff] %vm3143_vm6, %v3109_v47  ;;  %v3040_v56 = vmul.f32 %v5722_v30, %v2969_v52  ;;  %vm2844_vm9 = vcmp.ge.f32.partialorder %v2780_v49, 0.0  ;;  %v2908_v57 = vmul.f32 0.2, %v2780_v49  ;;  %v4333_v58 = vadd.f32 %v4233_v54, %v4033_v50  ;;  %v2535_v59 = vpop.f32.mrb[37].mxu0 }
 0x1a6   :  { %v3112_v60 = vadd.f32 %v5727_v36, %v3041_v51  ;;  %vm2843_vm10 = vcmp.ge.f32.partialorder %v2779_v53, 0.0  ;;  %v2907_v61 = vmul.f32 0.2, %v2779_v53  ;;  %v4334_v62 = vadd.f32 %v2535_v59, %v1176_v55 }
 0x1a7   :  { %v3111_v63 = vadd.f32 %v5727_v36, %v3040_v56  ;;  %v2972_v0 = vsel %vm2844_vm9, %v2780_v49, %v2908_v57  ;;  %v2782_v1 = vadd.f32 %v4333_v58, %v5715_v9  ;;  %v4036_v2 = vpop.f32.mrb[38].mxu1 }
 0x1a8   :  { %3177 = vst.msk [vmem:[%s6195_s5 + $0x108] sm:$0xff] %vm3143_vm6, %v3112_v60  ;;  %v3043_v3 = vmul.f32 %v5722_v30, %v2972_v0  ;;  %v2971_v4 = vsel %vm2843_vm10, %v2779_v53, %v2907_v61  ;;  %v2781_v5 = vadd.f32 %v4334_v62, %v5715_v9  ;;  %v4236_v6 = vpop.f32.mrb[38].mxu0  ;;  %v1186_v7 = vpop.f32.mrb[39].mxu1 }
 0x1a9   :  { %3176 = vst.msk [vmem:[%s6195_s5 + $0x100] sm:$0xff] %vm3143_vm6, %v3111_v63  ;;  %v3042_v10 = vmul.f32 %v5722_v30, %v2971_v4  ;;  %vm2846_vm11 = vcmp.ge.f32.partialorder %v2782_v1, 0.0  ;;  %v2910_v12 = vmul.f32 0.2, %v2782_v1  ;;  %v4335_v13 = vadd.f32 %v4236_v6, %v4036_v2  ;;  %v2545_v14 = vpop.f32.mrb[39].mxu0 }
 0x1aa   :  { %v3114_v11 = vadd.f32 %v5727_v36, %v3043_v3  ;;  %vm2845_vm12 = vcmp.ge.f32.partialorder %v2781_v5, 0.0  ;;  %v2909_v8 = vmul.f32 0.2, %v2781_v5  ;;  %v4336_v15 = vadd.f32 %v2545_v14, %v1186_v7 }
 0x1ab   :  { %v3113_v17 = vadd.f32 %v5727_v36, %v3042_v10  ;;  %v2974_v16 = vsel %vm2846_vm11, %v2782_v1, %v2910_v12  ;;  %v2784_v18 = vadd.f32 %v4335_v13, %v5715_v9  ;;  %v4039_v19 = vpop.f32.mrb[40].mxu1 }
 0x1ac   :  { %3179 = vst.msk [vmem:[%s6195_s5 + $0x118] sm:$0xff] %vm3143_vm6, %v3114_v11  ;;  %v3045_v20 = vmul.f32 %v5722_v30, %v2974_v16  ;;  %v2973_v21 = vsel %vm2845_vm12, %v2781_v5, %v2909_v8  ;;  %v2783_v22 = vadd.f32 %v4336_v15, %v5715_v9  ;;  %v4239_v23 = vpop.f32.mrb[40].mxu0  ;;  %v1196_v24 = vpop.f32.mrb[41].mxu1 }
 0x1ad   :  { %3178 = vst.msk [vmem:[%s6195_s5 + $0x110] sm:$0xff] %vm3143_vm6, %v3113_v17  ;;  %v3044_v25 = vmul.f32 %v5722_v30, %v2973_v21  ;;  %vm2848_vm13 = vcmp.ge.f32.partialorder %v2784_v18, 0.0  ;;  %v2912_v26 = vmul.f32 0.2, %v2784_v18  ;;  %v4337_v27 = vadd.f32 %v4239_v23, %v4039_v19  ;;  %v2555_v28 = vpop.f32.mrb[41].mxu0 }
 0x1ae   :  { %v3116_v29 = vadd.f32 %v5727_v36, %v3045_v20  ;;  %vm2847_vm14 = vcmp.ge.f32.partialorder %v2783_v22, 0.0  ;;  %v2911_v31 = vmul.f32 0.2, %v2783_v22  ;;  %v4338_v32 = vadd.f32 %v2555_v28, %v1196_v24 }
 0x1af   :  { %v3115_v33 = vadd.f32 %v5727_v36, %v3044_v25  ;;  %v2976_v34 = vsel %vm2848_vm13, %v2784_v18, %v2912_v26  ;;  %v2786_v35 = vadd.f32 %v4337_v27, %v5715_v9  ;;  %v4042_v37 = vpop.f32.mrb[42].mxu1 }
 0x1b0   :  { %3181 = vst.msk [vmem:[%s6195_s5 + $0x128] sm:$0xff] %vm3143_vm6, %v3116_v29  ;;  %v3047_v38 = vmul.f32 %v5722_v30, %v2976_v34  ;;  %v2975_v39 = vsel %vm2847_vm14, %v2783_v22, %v2911_v31  ;;  %v2785_v40 = vadd.f32 %v4338_v32, %v5715_v9  ;;  %v4242_v41 = vpop.f32.mrb[42].mxu0  ;;  %v1206_v42 = vpop.f32.mrb[43].mxu1 }
 0x1b1   :  { %3180 = vst.msk [vmem:[%s6195_s5 + $0x120] sm:$0xff] %vm3143_vm6, %v3115_v33  ;;  %v3046_v43 = vmul.f32 %v5722_v30, %v2975_v39  ;;  %vm2850_vm15 = vcmp.ge.f32.partialorder %v2786_v35, 0.0  ;;  %v2914_v44 = vmul.f32 0.2, %v2786_v35  ;;  %v4339_v45 = vadd.f32 %v4242_v41, %v4042_v37  ;;  %v2565_v46 = vpop.f32.mrb[43].mxu0 }
 0x1b2   :  { %v3118_v47 = vadd.f32 %v5727_v36, %v3047_v38  ;;  %vm2849_vm0 = vcmp.ge.f32.partialorder %v2785_v40, 0.0  ;;  %v2913_v48 = vmul.f32 0.2, %v2785_v40  ;;  %v4340_v49 = vadd.f32 %v2565_v46, %v1206_v42 }
 0x1b3   :  { %v3117_v50 = vadd.f32 %v5727_v36, %v3046_v43  ;;  %v2978_v51 = vsel %vm2850_vm15, %v2786_v35, %v2914_v44  ;;  %v2788_v52 = vadd.f32 %v4339_v45, %v5715_v9  ;;  %v4045_v53 = vpop.f32.mrb[44].mxu1 }
 0x1b4   :  { %3183 = vst.msk [vmem:[%s6195_s5 + $0x138] sm:$0xff] %vm3143_vm6, %v3118_v47  ;;  %v3049_v54 = vmul.f32 %v5722_v30, %v2978_v51  ;;  %v2977_v55 = vsel %vm2849_vm0, %v2785_v40, %v2913_v48  ;;  %v2787_v56 = vadd.f32 %v4340_v49, %v5715_v9  ;;  %v4245_v57 = vpop.f32.mrb[44].mxu0  ;;  %v1216_v58 = vpop.f32.mrb[45].mxu1 }
 0x1b5   :  { %3182 = vst.msk [vmem:[%s6195_s5 + $0x130] sm:$0xff] %vm3143_vm6, %v3117_v50  ;;  %v3048_v59 = vmul.f32 %v5722_v30, %v2977_v55  ;;  %vm2852_vm1 = vcmp.ge.f32.partialorder %v2788_v52, 0.0  ;;  %v2916_v60 = vmul.f32 0.2, %v2788_v52  ;;  %v4341_v61 = vadd.f32 %v4245_v57, %v4045_v53  ;;  %v2575_v62 = vpop.f32.mrb[45].mxu0 }
 0x1b6   :  { %v3120_v63 = vadd.f32 %v5727_v36, %v3049_v54  ;;  %vm2851_vm2 = vcmp.ge.f32.partialorder %v2787_v56, 0.0  ;;  %v2915_v0 = vmul.f32 0.2, %v2787_v56  ;;  %v4342_v1 = vadd.f32 %v2575_v62, %v1216_v58 }
 0x1b7   :  { %v3119_v2 = vadd.f32 %v5727_v36, %v3048_v59  ;;  %v2980_v3 = vsel %vm2852_vm1, %v2788_v52, %v2916_v60  ;;  %v2790_v4 = vadd.f32 %v4341_v61, %v5715_v9  ;;  %v4048_v5 = vpop.f32.mrb[46].mxu1 }
 0x1b8   :  { %3185 = vst.msk [vmem:[%s6195_s5 + $0x148] sm:$0xff] %vm3143_vm6, %v3120_v63  ;;  %v3051_v6 = vmul.f32 %v5722_v30, %v2980_v3  ;;  %v2979_v7 = vsel %vm2851_vm2, %v2787_v56, %v2915_v0  ;;  %v2789_v10 = vadd.f32 %v4342_v1, %v5715_v9  ;;  %v4248_v12 = vpop.f32.mrb[46].mxu0  ;;  %v1226_v13 = vpop.f32.mrb[47].mxu1 }
 0x1b9   :  { %3184 = vst.msk [vmem:[%s6195_s5 + $0x140] sm:$0xff] %vm3143_vm6, %v3119_v2  ;;  %v3050_v14 = vmul.f32 %v5722_v30, %v2979_v7  ;;  %vm2854_vm3 = vcmp.ge.f32.partialorder %v2790_v4, 0.0  ;;  %v2918_v11 = vmul.f32 0.2, %v2790_v4  ;;  %v4343_v8 = vadd.f32 %v4248_v12, %v4048_v5  ;;  %v2585_v15 = vpop.f32.mrb[47].mxu0 }
 0x1ba   :  { %v3122_v17 = vadd.f32 %v5727_v36, %v3051_v6  ;;  %vm2853_vm4 = vcmp.ge.f32.partialorder %v2789_v10, 0.0  ;;  %v2917_v16 = vmul.f32 0.2, %v2789_v10  ;;  %v4344_v18 = vadd.f32 %v2585_v15, %v1226_v13  ;;  %v6074_v6 = vld [vmem:[%s6192_s2] ss:$0 sm:$0xff] }
 0x1bb   :  { %v3121_v19 = vadd.f32 %v5727_v36, %v3050_v14  ;;  %v2982_v20 = vsel %vm2854_vm3, %v2790_v4, %v2918_v11  ;;  %v2792_v21 = vadd.f32 %v4343_v8, %v5715_v9  ;;  %v4051_v22 = vpop.f32.mrb[48].mxu1  ;;  %v6090_v8 = vld [vmem:[%s6193_s3] ss:$0 sm:$0xff] }
 0x1bc   :  { %3187 = vst.msk [vmem:[%s6195_s5 + $0x158] sm:$0xff] %vm3143_vm6, %v3122_v17  ;;  %v3053_v23 = vmul.f32 %v5722_v30, %v2982_v20  ;;  %v2981_v24 = vsel %vm2853_vm4, %v2789_v10, %v2917_v16  ;;  %v2791_v25 = vadd.f32 %v4344_v18, %v5715_v9  ;;  %v4251_v26 = vpop.f32.mrb[48].mxu0  ;;  %v1236_v27 = vpop.f32.mrb[49].mxu1  ;;  %v6096_v18 = vld [vmem:[%s6194_s4] ss:$0 sm:$0xff] }
 0x1bd   :  { %3186 = vst.msk [vmem:[%s6195_s5 + $0x150] sm:$0xff] %vm3143_vm6, %v3121_v19  ;;  %v3052_v28 = vmul.f32 %v5722_v30, %v2981_v24  ;;  %vm2856_vm5 = vcmp.ge.f32.partialorder %v2792_v21, 0.0  ;;  %v2920_v29 = vmul.f32 0.2, %v2792_v21  ;;  %v4345_v31 = vadd.f32 %v4251_v26, %v4051_v22  ;;  %v2595_v32 = vpop.f32.mrb[49].mxu0 }
 0x1be   :  { %v3124_v33 = vadd.f32 %v5727_v36, %v3053_v23  ;;  %vm2855_vm7 = vcmp.ge.f32.partialorder %v2791_v25, 0.0  ;;  %v2919_v34 = vmul.f32 0.2, %v2791_v25  ;;  %v4346_v35 = vadd.f32 %v2595_v32, %v1236_v27 }
 0x1bf   :  { %v3123_v37 = vadd.f32 %v5727_v36, %v3052_v28  ;;  %v2984_v38 = vsel %vm2856_vm5, %v2792_v21, %v2920_v29  ;;  %v2794_v39 = vadd.f32 %v4345_v31, %v5715_v9  ;;  %v4054_v40 = vpop.f32.mrb[50].mxu1 }
 0x1c0   :  { %3189 = vst.msk [vmem:[%s6195_s5 + $0x168] sm:$0xff] %vm3143_vm6, %v3124_v33  ;;  %v3055_v41 = vmul.f32 %v5722_v30, %v2984_v38  ;;  %v2983_v42 = vsel %vm2855_vm7, %v2791_v25, %v2919_v34  ;;  %v2793_v43 = vadd.f32 %v4346_v35, %v5715_v9  ;;  %v4254_v44 = vpop.f32.mrb[50].mxu0  ;;  %v1246_v45 = vpop.f32.mrb[51].mxu1 }
 0x1c1   :  { %3188 = vst.msk [vmem:[%s6195_s5 + $0x160] sm:$0xff] %vm3143_vm6, %v3123_v37  ;;  %v3054_v46 = vmul.f32 %v5722_v30, %v2983_v42  ;;  %vm2858_vm8 = vcmp.ge.f32.partialorder %v2794_v39, 0.0  ;;  %v2922_v47 = vmul.f32 0.2, %v2794_v39  ;;  %v4347_v48 = vadd.f32 %v4254_v44, %v4054_v40  ;;  %v2605_v49 = vpop.f32.mrb[51].mxu0 }
 0x1c2   :  { %v3126_v50 = vadd.f32 %v5727_v36, %v3055_v41  ;;  %vm2857_vm9 = vcmp.ge.f32.partialorder %v2793_v43, 0.0  ;;  %v2921_v51 = vmul.f32 0.2, %v2793_v43  ;;  %v4348_v52 = vadd.f32 %v2605_v49, %v1246_v45 }
 0x1c3   :  { %v3125_v53 = vadd.f32 %v5727_v36, %v3054_v46  ;;  %v2986_v54 = vsel %vm2858_vm8, %v2794_v39, %v2922_v47  ;;  %v2796_v55 = vadd.f32 %v4347_v48, %v5715_v9  ;;  %v4057_v56 = vpop.f32.mrb[52].mxu1 }
 0x1c4   :  { %3191 = vst.msk [vmem:[%s6195_s5 + $0x178] sm:$0xff] %vm3143_vm6, %v3126_v50  ;;  %v3057_v57 = vmul.f32 %v5722_v30, %v2986_v54  ;;  %v2985_v58 = vsel %vm2857_vm9, %v2793_v43, %v2921_v51  ;;  %v2795_v59 = vadd.f32 %v4348_v52, %v5715_v9  ;;  %v4257_v60 = vpop.f32.mrb[52].mxu0  ;;  %v1256_v61 = vpop.f32.mrb[53].mxu1 }
 0x1c5   :  { %3190 = vst.msk [vmem:[%s6195_s5 + $0x170] sm:$0xff] %vm3143_vm6, %v3125_v53  ;;  %v3056_v62 = vmul.f32 %v5722_v30, %v2985_v58  ;;  %vm2860_vm10 = vcmp.ge.f32.partialorder %v2796_v55, 0.0  ;;  %v2924_v63 = vmul.f32 0.2, %v2796_v55  ;;  %v4349_v0 = vadd.f32 %v4257_v60, %v4057_v56  ;;  %v2615_v1 = vpop.f32.mrb[53].mxu0 }
 0x1c6   :  { %v3128_v2 = vadd.f32 %v5727_v36, %v3057_v57  ;;  %vm2859_vm11 = vcmp.ge.f32.partialorder %v2795_v59, 0.0  ;;  %v2923_v3 = vmul.f32 0.2, %v2795_v59  ;;  %v4350_v4 = vadd.f32 %v2615_v1, %v1256_v61 }
 0x1c7   :  { %v3127_v9 = vadd.f32 %v5727_v36, %v3056_v62  ;;  %v2988_v5 = vsel %vm2860_vm10, %v2796_v55, %v2924_v63  ;;  %v2798_v7 = vadd.f32 %v6074_v6, %v4349_v0  ;;  %v4060_v10 = vpop.f32.mrb[54].mxu1 }
 0x1c8   :  { %3193 = vst.msk [vmem:[%s6195_s5 + $0x188] sm:$0xff] %vm3143_vm6, %v3128_v2  ;;  %v3059_v12 = vmul.f32 %v5722_v30, %v2988_v5  ;;  %v2987_v13 = vsel %vm2859_vm11, %v2795_v59, %v2923_v3  ;;  %v2797_v14 = vadd.f32 %v6074_v6, %v4350_v4  ;;  %v4260_v36 = vpop.f32.mrb[54].mxu0  ;;  %v1266_v11 = vpop.f32.mrb[55].mxu1 }
 0x1c9   :  { %3192 = vst.msk [vmem:[%s6195_s5 + $0x180] sm:$0xff] %vm3143_vm6, %v3127_v9  ;;  %v3058_v15 = vmul.f32 %v6090_v8, %v2987_v13  ;;  %vm2862_vm12 = vcmp.ge.f32.partialorder %v2798_v7, 0.0  ;;  %v2926_v17 = vmul.f32 0.2, %v2798_v7  ;;  %v4351_v30 = vadd.f32 %v4260_v36, %v4060_v10  ;;  %v2625_v16 = vpop.f32.mrb[55].mxu0 }
 0x1ca   :  { %v3130_v19 = vadd.f32 %v6096_v18, %v3059_v12  ;;  %vm2861_vm13 = vcmp.ge.f32.partialorder %v2797_v14, 0.0  ;;  %v2925_v20 = vmul.f32 0.2, %v2797_v14  ;;  %v4352_v21 = vadd.f32 %v2625_v16, %v1266_v11 }
 0x1cb   :  { %v3129_v22 = vadd.f32 %v6096_v18, %v3058_v15  ;;  %v2990_v23 = vsel %vm2862_vm12, %v2798_v7, %v2926_v17  ;;  %v2800_v24 = vadd.f32 %v6074_v6, %v4351_v30  ;;  %v4063_v25 = vpop.f32.mrb[56].mxu1 }
 0x1cc   :  { %3195 = vst.msk [vmem:[%s6195_s5 + $0x198] sm:$0xff] %vm3143_vm6, %v3130_v19  ;;  %v3061_v26 = vmul.f32 %v6090_v8, %v2990_v23  ;;  %v2989_v27 = vsel %vm2861_vm13, %v2797_v14, %v2925_v20  ;;  %v2799_v28 = vadd.f32 %v6074_v6, %v4352_v21  ;;  %v4263_v29 = vpop.f32.mrb[56].mxu0  ;;  %v1276_v31 = vpop.f32.mrb[57].mxu1 }
 0x1cd   :  { %3194 = vst.msk [vmem:[%s6195_s5 + $0x190] sm:$0xff] %vm3143_vm6, %v3129_v22  ;;  %v3060_v32 = vmul.f32 %v6090_v8, %v2989_v27  ;;  %vm2864_vm14 = vcmp.ge.f32.partialorder %v2800_v24, 0.0  ;;  %v2928_v33 = vmul.f32 0.2, %v2800_v24  ;;  %v4353_v34 = vadd.f32 %v4263_v29, %v4063_v25  ;;  %v2635_v35 = vpop.f32.mrb[57].mxu0 }
 0x1ce   :  { %v3132_v37 = vadd.f32 %v6096_v18, %v3061_v26  ;;  %vm2863_vm15 = vcmp.ge.f32.partialorder %v2799_v28, 0.0  ;;  %v2927_v38 = vmul.f32 0.2, %v2799_v28  ;;  %v4354_v39 = vadd.f32 %v2635_v35, %v1276_v31 }
 0x1cf   :  { %v3131_v40 = vadd.f32 %v6096_v18, %v3060_v32  ;;  %v2992_v41 = vsel %vm2864_vm14, %v2800_v24, %v2928_v33  ;;  %v2802_v42 = vadd.f32 %v6074_v6, %v4353_v34  ;;  %v4066_v43 = vpop.f32.mrb[58].mxu1 }
 0x1d0   :  { %3197 = vst.msk [vmem:[%s6195_s5 + $0x1a8] sm:$0xff] %vm3143_vm6, %v3132_v37  ;;  %v3063_v44 = vmul.f32 %v6090_v8, %v2992_v41  ;;  %v2991_v45 = vsel %vm2863_vm15, %v2799_v28, %v2927_v38  ;;  %v2801_v46 = vadd.f32 %v6074_v6, %v4354_v39  ;;  %v4266_v47 = vpop.f32.mrb[58].mxu0  ;;  %v1286_v48 = vpop.f32.mrb[59].mxu1 }
 0x1d1   :  { %3196 = vst.msk [vmem:[%s6195_s5 + $0x1a0] sm:$0xff] %vm3143_vm6, %v3131_v40  ;;  %v3062_v49 = vmul.f32 %v6090_v8, %v2991_v45  ;;  %vm2866_vm0 = vcmp.ge.f32.partialorder %v2802_v42, 0.0  ;;  %v2930_v50 = vmul.f32 0.2, %v2802_v42  ;;  %v4355_v51 = vadd.f32 %v4266_v47, %v4066_v43  ;;  %v2645_v52 = vpop.f32.mrb[59].mxu0 }
 0x1d2   :  { %v3134_v53 = vadd.f32 %v6096_v18, %v3063_v44  ;;  %vm2865_vm1 = vcmp.ge.f32.partialorder %v2801_v46, 0.0  ;;  %v2929_v54 = vmul.f32 0.2, %v2801_v46  ;;  %v4356_v55 = vadd.f32 %v2645_v52, %v1286_v48 }
 0x1d3   :  { %v3133_v56 = vadd.f32 %v6096_v18, %v3062_v49  ;;  %v2994_v57 = vsel %vm2866_vm0, %v2802_v42, %v2930_v50  ;;  %v2804_v58 = vadd.f32 %v6074_v6, %v4355_v51  ;;  %v4069_v59 = vpop.f32.mrb[60].mxu1 }
 0x1d4   :  { %3199 = vst.msk [vmem:[%s6195_s5 + $0x1b8] sm:$0xff] %vm3143_vm6, %v3134_v53  ;;  %v3065_v60 = vmul.f32 %v6090_v8, %v2994_v57  ;;  %v2993_v61 = vsel %vm2865_vm1, %v2801_v46, %v2929_v54  ;;  %v2803_v62 = vadd.f32 %v6074_v6, %v4356_v55  ;;  %v4269_v63 = vpop.f32.mrb[60].mxu0  ;;  %v1296_v0 = vpop.f32.mrb[61].mxu1 }
 0x1d5   :  { %3198 = vst.msk [vmem:[%s6195_s5 + $0x1b0] sm:$0xff] %vm3143_vm6, %v3133_v56  ;;  %v3064_v1 = vmul.f32 %v6090_v8, %v2993_v61  ;;  %vm2868_vm2 = vcmp.ge.f32.partialorder %v2804_v58, 0.0  ;;  %v2932_v2 = vmul.f32 0.2, %v2804_v58  ;;  %v4357_v3 = vadd.f32 %v4269_v63, %v4069_v59  ;;  %v2655_v4 = vpop.f32.mrb[61].mxu0 }
 0x1d6   :  { %v3136_v9 = vadd.f32 %v6096_v18, %v3065_v60  ;;  %vm2867_vm3 = vcmp.ge.f32.partialorder %v2803_v62, 0.0  ;;  %v2931_v5 = vmul.f32 0.2, %v2803_v62  ;;  %v4358_v7 = vadd.f32 %v2655_v4, %v1296_v0 }
 0x1d7   :  { %v3135_v10 = vadd.f32 %v6096_v18, %v3064_v1  ;;  %v2996_v12 = vsel %vm2868_vm2, %v2804_v58, %v2932_v2  ;;  %v2806_v13 = vadd.f32 %v6074_v6, %v4357_v3  ;;  %v4072_v14 = vpop.f32.mrb[62].mxu1 }
 0x1d8   :  { %3201 = vst.msk [vmem:[%s6195_s5 + $0x1c8] sm:$0xff] %vm3143_vm6, %v3136_v9  ;;  %v3067_v36 = vmul.f32 %v6090_v8, %v2996_v12  ;;  %v2995_v11 = vsel %vm2867_vm3, %v2803_v62, %v2931_v5  ;;  %v2805_v15 = vadd.f32 %v6074_v6, %v4358_v7  ;;  %v4272_v17 = vpop.f32.mrb[62].mxu0  ;;  %v1306_v30 = vpop.f32.mrb[63].mxu1 }
 0x1d9   :  { %3200 = vst.msk [vmem:[%s6195_s5 + $0x1c0] sm:$0xff] %vm3143_vm6, %v3135_v10  ;;  %v3066_v16 = vmul.f32 %v6090_v8, %v2995_v11  ;;  %vm2870_vm4 = vcmp.ge.f32.partialorder %v2806_v13, 0.0  ;;  %v2934_v19 = vmul.f32 0.2, %v2806_v13  ;;  %v4359_v20 = vadd.f32 %v4272_v17, %v4072_v14  ;;  %v2665_v21 = vpop.f32.mrb[63].mxu0 }
 0x1da   :  { %v3138_v22 = vadd.f32 %v6096_v18, %v3067_v36  ;;  %vm2869_vm5 = vcmp.ge.f32.partialorder %v2805_v15, 0.0  ;;  %v2933_v23 = vmul.f32 0.2, %v2805_v15  ;;  %v4360_v24 = vadd.f32 %v2665_v21, %v1306_v30 }
 0x1db   :  { %v3137_v25 = vadd.f32 %v6096_v18, %v3066_v16  ;;  %v2998_v26 = vsel %vm2870_vm4, %v2806_v13, %v2934_v19  ;;  %v2808_v27 = vadd.f32 %v6074_v6, %v4359_v20 }
 0x1dc   :  { %3203 = vst.msk [vmem:[%s6195_s5 + $0x1d8] sm:$0xff] %vm3143_vm6, %v3138_v22  ;;  %v3069_v28 = vmul.f32 %v6090_v8, %v2998_v26  ;;  %v2997_v29 = vsel %vm2869_vm5, %v2805_v15, %v2933_v23  ;;  %v2807_v31 = vadd.f32 %v6074_v6, %v4360_v24 }
 0x1dd   :  { %3202 = vst.msk [vmem:[%s6195_s5 + $0x1d0] sm:$0xff] %vm3143_vm6, %v3137_v25  ;;  %v3068_v32 = vmul.f32 %v6090_v8, %v2997_v29  ;;  %vm2872_vm7 = vcmp.ge.f32.partialorder %v2808_v27, 0.0  ;;  %v2936_v33 = vmul.f32 0.2, %v2808_v27 }
 0x1de   :  { %v3140_v34 = vadd.f32 %v6096_v18, %v3069_v28  ;;  %vm2871_vm8 = vcmp.ge.f32.partialorder %v2807_v31, 0.0  ;;  %v2935_v35 = vmul.f32 0.2, %v2807_v31 }
 0x1df   :  { %v3139_v37 = vadd.f32 %v6096_v18, %v3068_v32  ;;  %v3000_v38 = vsel %vm2872_vm7, %v2808_v27, %v2936_v33 }
 0x1e0   :  { %3205 = vst.msk [vmem:[%s6195_s5 + $0x1e8] sm:$0xff] %vm3143_vm6, %v3140_v34  ;;  %v3071_v6 = vmul.f32 %v6090_v8, %v3000_v38  ;;  %v2999_v39 = vsel %vm2871_vm8, %v2807_v31, %v2935_v35 }
 0x1e1   :  { %3204 = vst.msk [vmem:[%s6195_s5 + $0x1e0] sm:$0xff] %vm3143_vm6, %v3139_v37  ;;  %v3070_v40 = vmul.f32 %v6090_v8, %v2999_v39 }
 0x1e2   :  { %v3142_v41 = vadd.f32 %v6096_v18, %v3071_v6 }
 0x1e3   :  { %v3141_v42 = vadd.f32 %v6096_v18, %v3070_v40 }
 0x1e4   :  { %3207 = vst.msk [vmem:[%s6195_s5 + $0x1f8] sm:$0xff] %vm3143_vm6, %v3142_v41 }
 0x1e5   :  { %3206 = vst.msk [vmem:[%s6195_s5 + $0x1f0] sm:$0xff] %vm3143_vm6, %v3141_v42 }

// kernel: forward.5
= control target key start
LH: loop header
LB: loop body
LE: loop exit
PB: predicated region body
PF: predicated region fallthrough
CT: control target
= control target key end

     0   :  { %vm69_vm0 = vcmask 523264   ;;  %vm1042_vm3 = vcmask 261120   ;;  %s2031_s1 = inlined_call_operand.vmem [shape: f32[4,64,32], index: 1, kind: input, shape index: {}]   ;;  %s2032_s0 = inlined_call_operand.vmem [shape: f32[2,9,9,64], index: 0, kind: input, shape index: {}]   ;;  %s2033_s2 = inlined_call_operand.vmem [shape: f32[1,32], index: 2, kind: input, shape index: {}]   ;;  %s2034_s3 = inlined_call_operand.vmem [shape: f32[1,32], index: 3, kind: input, shape index: {}]   ;;  %s2035_s4 = inlined_call_operand.vmem [shape: f32[1,32], index: 4, kind: input, shape index: {}]   ;;  %s2036_s5 = inlined_call_operand.vmem [shape: f32[128,32], index: 5, kind: output, shape index: {}]  }
   0x1   :  { %v1063_v0 = vld [vmem:[%s2031_s1 + $0x40] sm:$0xff]  ;;  %v1064_v1 = vld [vmem:[%s2031_s1 + $0x48] sm:$0xff]  ;;  %v1065_v5 = vld [vmem:[%s2031_s1 + $0x50] sm:$0xff] }
   0x2   :  { %v1119_v2 = vld [vmem:[%s2031_s1 + $0x80] sm:$0xff]  ;;  %v1442_v3 = vpack.c.bf16 %v1064_v1, %v1063_v0  ;;  %v1120_v4 = vld [vmem:[%s2031_s1 + $0x88] sm:$0xff]  ;;  %v1066_v6 = vld [vmem:[%s2031_s1 + $0x58] sm:$0xff] }
   0x3   :  { %v1474_v7 = vpack.c.bf16 %v1120_v4, %v1119_v2  ;;  %v1446_v8 = vpack.c.bf16 %v1066_v6, %v1065_v5  ;;  %v1121_v9 = vld [vmem:[%s2031_s1 + $0x90] sm:$0xff]  ;;  %v1122_v10 = vld [vmem:[%s2031_s1 + $0x98] sm:$0xff]  ;;  %v1067_v11 = vld [vmem:[%s2031_s1 + $0x60] sm:$0xff] }
   0x4   :  { %1443 = vmatprep.subr.bf16.mxu1 %v1442_v3  ;;  %v1478_v12 = vpack.c.bf16 %v1122_v10, %v1121_v9  ;;  %v1068_v13 = vld [vmem:[%s2031_s1 + $0x68] sm:$0xff]  ;;  %v1123_v14 = vld [vmem:[%s2031_s1 + $0xa0] sm:$0xff]  ;;  %v1626_v18 = vld [vmem:[%s2032_s0 + $0x10] sm:$0xff] }
   0x5   :  { %v1124_v15 = vld [vmem:[%s2031_s1 + $0xa8] sm:$0xff]  ;;  %1475 = vmatprep.subr.bf16.mxu0 %v1474_v7  ;;  %1445 = vmatpush3.bf16.msra.mxu1 %v1442_v3  ;;  %v1450_v16 = vpack.c.bf16 %v1068_v13, %v1067_v11  ;;  %v1069_v20 = vld [vmem:[%s2031_s1 + $0x70] sm:$0xff]  ;;  %v1070_v21 = vld [vmem:[%s2031_s1 + $0x78] sm:$0xff] }
   0x6   :  { %1477 = vmatpush3.bf16.msra.mxu0 %v1474_v7  ;;  %1447 = vmatprep.subr.bf16.mxu1 %v1446_v8  ;;  %v44_v17 = vld [vmem:[%s2032_s0 + $0x1] sm:$0xff]  ;;  %v1482_v19 = vpack.c.bf16 %v1124_v15, %v1123_v14  ;;  %v1125_v22 = vld [vmem:[%s2031_s1 + $0xb0] sm:$0xff]  ;;  %v1126_v23 = vld [vmem:[%s2031_s1 + $0xb8] sm:$0xff]  ;;  %v1454_v24 = vpack.c.bf16 %v1070_v21, %v1069_v20 }
   0x7   :  { %1479 = vmatprep.subr.bf16.mxu0 %v1478_v12  ;;  %1298 = vmatprep.mubr.msk.f32.mxu1 %vm69_vm0, %v44_v17  ;;  %v1486_v25 = vpack.c.bf16 %v1126_v23, %v1125_v22  ;;  %v36_v26 = vld [vmem:[%s2031_s1] sm:$0xff]  ;;  %v37_v27 = vld [vmem:[%s2031_s1 + $0x8] sm:$0xff]  ;;  %v38_v32 = vld [vmem:[%s2031_s1 + $0x10] sm:$0xff] }
   0x8   :  { %1378 = vmatprep.mubr.msk.f32.mxu0 %vm69_vm0, %v1626_v18  ;;  %v1159_v28 = vld [vmem:[%s2031_s1 + $0xc0] sm:$0xff]  ;;  %v1160_v29 = vld [vmem:[%s2031_s1 + $0xc8] sm:$0xff]  ;;  %v1458_v30 = vpack.c.bf16 %v37_v27, %v36_v26  ;;  %v39_v33 = vld [vmem:[%s2031_s1 + $0x18] sm:$0xff] }
   0x9   :  { %1449 = vmatpush3.bf16.msra.mxu1 %v1446_v8  ;;  %v1490_v31 = vpack.c.bf16 %v1160_v29, %v1159_v28  ;;  %v1664_v34 = vld [vmem:[%s2032_s0 + $0x11] sm:$0xff]  ;;  %v1675_v37 = vld [vmem:[%s2032_s0 + $0x20] sm:$0xff]  ;;  %v1462_v39 = vpack.c.bf16 %v39_v33, %v38_v32  ;;  %v41_v43 = vld [vmem:[%s2031_s1 + $0x28] sm:$0xff] }
   0xa   :  { %1481 = vmatpush3.bf16.msra.mxu0 %v1478_v12  ;;  %1451 = vmatprep.subr.bf16.mxu1 %v1450_v16  ;;  %v1161_v35 = vld [vmem:[%s2031_s1 + $0xd0] sm:$0xff]  ;;  %v1162_v36 = vld [vmem:[%s2031_s1 + $0xd8] sm:$0xff]  ;;  %v1680_v38 = vld [vmem:[%s2032_s0 + $0x21] sm:$0xff] }
   0xb   :  { %1483 = vmatprep.subr.bf16.mxu0 %v1482_v19  ;;  %v1687_v40 = vld [vmem:[%s2032_s0 + $0x30] sm:$0xff]  ;;  %v1494_v41 = vpack.c.bf16 %v1162_v36, %v1161_v35  ;;  %v40_v42 = vld [vmem:[%s2031_s1 + $0x20] sm:$0xff]  ;;  %v1164_v46 = vld [vmem:[%s2031_s1 + $0xe8] sm:$0xff] }
   0xc   :  { %v1700_v44 = vld [vmem:[%s2032_s0 + $0x31] sm:$0xff]  ;;  %v1163_v45 = vld [vmem:[%s2031_s1 + $0xe0] sm:$0xff]  ;;  %v1466_v50 = vpack.c.bf16 %v41_v43, %v40_v42 }
   0xd   :  { %1453 = vmatpush3.bf16.msra.mxu1 %v1450_v16  ;;  %v1713_v47 = vld [vmem:[%s2032_s0 + $0x40] sm:$0xff]  ;;  %v1725_v49 = vld [vmem:[%s2032_s0 + $0x50] sm:$0xff]  ;;  %v1498_v51 = vpack.c.bf16 %v1164_v46, %v1163_v45  ;;  %v43_v53 = vld [vmem:[%s2031_s1 + $0x38] sm:$0xff] }
   0xe   :  { %1485 = vmatpush3.bf16.msra.mxu0 %v1482_v19  ;;  %1455 = vmatprep.subr.bf16.mxu1 %v1454_v24  ;;  %v1718_v48 = vld [vmem:[%s2032_s0 + $0x41] sm:$0xff]  ;;  %v42_v52 = vld [vmem:[%s2031_s1 + $0x30] sm:$0xff]  ;;  %v1166_v56 = vld [vmem:[%s2031_s1 + $0xf8] sm:$0xff] }
   0xf   :  { %1487 = vmatprep.subr.bf16.mxu0 %v1486_v25  ;;  %v1742_v54 = vld [vmem:[%s2032_s0 + $0x51] sm:$0xff]  ;;  %v1755_v57 = vld [vmem:[%s2032_s0 + $0x60] sm:$0xff]  ;;  %v1470_v60 = vpack.c.bf16 %v43_v53, %v42_v52 }
  0x10   :  { %v1165_v55 = vld [vmem:[%s2031_s1 + $0xf0] sm:$0xff]  ;;  %v1760_v58 = vld [vmem:[%s2032_s0 + $0x61] sm:$0xff]  ;;  %v1907_v22 = vld [vmem:[%s2033_s2] ss:$0 sm:$0xff] }
  0x11   :  { %1457 = vmatpush3.bf16.msra.mxu1 %v1454_v24  ;;  %v1765_v59 = vld [vmem:[%s2032_s0 + $0x70] sm:$0xff]  ;;  %v1502_v61 = vpack.c.bf16 %v1166_v56, %v1165_v55  ;;  %v1110_v63 = vld [vmem:[%s2032_s0 + $0x80] sm:$0xff] }
  0x12   :  { %1489 = vmatpush3.bf16.msra.mxu0 %v1486_v25  ;;  %1459 = vmatprep.subr.bf16.mxu1 %v1458_v30  ;;  %v51_v62 = vld [vmem:[%s2032_s0 + $0x71] sm:$0xff]  ;;  %v1111_v1 = vld [vmem:[%s2032_s0 + $0xa0] sm:$0xff] }
  0x13   :  { %1491 = vmatprep.subr.bf16.mxu0 %v1490_v31  ;;  %v52_v0 = vld [vmem:[%s2032_s0 + $0x91] sm:$0xff]  ;;  %v53_v2 = vld [vmem:[%s2032_s0 + $0xa1] sm:$0xff]  ;;  %v1914_v33 = vld [vmem:[%s2034_s3] ss:$0 sm:$0xff] }
  0x14   :  { %1299 = vmatmul.mubr.msk.f32.vlgmr.msra.gmra.mrb[0].mxu1 %vm69_vm0, %v1664_v34  ;;  %v1112_v3 = vld [vmem:[%s2032_s0 + $0xb0] sm:$0xff]  ;;  %v1113_v5 = vld [vmem:[%s2032_s0 + $0xc0] sm:$0xff] }
  0x15   :  { %1379 = vmatmul.mubr.msk.f32.vlgmr.msra.gmra.mrb[0].mxu0 %vm69_vm0, %v1675_v37  ;;  %1461 = vmatpush3.bf16.msra.mxu1 %v1458_v30  ;;  %v54_v4 = vld [vmem:[%s2032_s0 + $0xb1] sm:$0xff]  ;;  %v55_v6 = vld [vmem:[%s2032_s0 + $0xc1] sm:$0xff] }
  0x16   :  { %1493 = vmatpush3.bf16.msra.mxu0 %v1490_v31  ;;  %1301 = vmatprep.mubr.msk.f32.mxu1 %vm69_vm0, %v1680_v38  ;;  %v1114_v7 = vld [vmem:[%s2032_s0 + $0xd0] sm:$0xff]  ;;  %v1115_v9 = vld [vmem:[%s2032_s0 + $0xe0] sm:$0xff] }
  0x17   :  { %1381 = vmatprep.mubr.msk.f32.mxu0 %vm69_vm0, %v1687_v40  ;;  %1463 = vmatprep.subr.bf16.mxu1 %v1462_v39  ;;  %v56_v8 = vld [vmem:[%s2032_s0 + $0xd1] sm:$0xff]  ;;  %v57_v10 = vld [vmem:[%s2032_s0 + $0xe1] sm:$0xff] }
  0x18   :  { %1302 = vmatmul.mubr.msk.f32.gmra.mrb[2].mxu1 %vm69_vm0, %v1700_v44  ;;  %1495 = vmatprep.subr.bf16.mxu0 %v1494_v41  ;;  %v1116_v11 = vld [vmem:[%s2032_s0 + $0xf0] sm:$0xff]  ;;  %v1117_v13 = vld [vmem:[%s2032_s0 + $0x100] sm:$0xff] }
  0x19   :  { %1382 = vmatmul.mubr.msk.f32.gmra.mrb[2].mxu0 %vm69_vm0, %v1713_v47  ;;  %1304 = vmatprep.mubr.msk.f32.mxu1 %vm69_vm0, %v1718_v48  ;;  %v58_v12 = vld [vmem:[%s2032_s0 + $0xf1] sm:$0xff]  ;;  %v59_v14 = vld [vmem:[%s2032_s0 + $0x101] sm:$0xff] }
  0x1a   :  { %1384 = vmatprep.mubr.msk.f32.mxu0 %vm69_vm0, %v1725_v49  ;;  %1465 = vmatpush3.bf16.msra.mxu1 %v1462_v39  ;;  %v1118_v15 = vld [vmem:[%s2032_s0 + $0x110] sm:$0xff]  ;;  %v20_v16 = vld [vmem:[%s2032_s0] sm:$0xff] }
  0x1b   :  { %1497 = vmatpush3.bf16.msra.mxu0 %v1494_v41  ;;  %1467 = vmatprep.subr.bf16.mxu1 %v1466_v50  ;;  %v1150_v17 = vld [vmem:[%s2032_s0 + $0x81] sm:$0xff]  ;;  %v1158_v19 = vld [vmem:[%s2032_s0 + $0x111] sm:$0xff]  ;;  %v1919_v39 = vld [vmem:[%s2035_s4] ss:$0 sm:$0xff] }
  0x1c   :  { %1305 = vmatmul.mubr.msk.f32.gmra.mrb[4].mxu1 %vm69_vm0, %v1742_v54  ;;  %1499 = vmatprep.subr.bf16.mxu0 %v1498_v51 }
  0x1d   :  { %1385 = vmatmul.mubr.msk.f32.gmra.mrb[4].mxu0 %vm69_vm0, %v1755_v57  ;;  %1307 = vmatprep.mubr.msk.f32.mxu1 %vm69_vm0, %v1760_v58 }
  0x1e   :  { %1387 = vmatprep.mubr.msk.f32.mxu0 %vm69_vm0, %v1765_v59  ;;  %1469 = vmatpush3.bf16.msra.mxu1 %v1466_v50 }
  0x1f   :  { %1501 = vmatpush3.bf16.msra.mxu0 %v1498_v51  ;;  %1471 = vmatprep.subr.bf16.mxu1 %v1470_v60 }
  0x20   :  { %1308 = vmatmul.mubr.msk.f32.gmra.mrb[6].mxu1 %vm69_vm0, %v51_v62  ;;  %1503 = vmatprep.subr.bf16.mxu0 %v1502_v61 }
  0x21   :  { %1388 = vmatmul.mubr.msk.f32.gmra.mrb[6].mxu0 %vm69_vm0, %v1110_v63  ;;  %1310 = vmatprep.mubr.msk.f32.mxu1 %vm69_vm0, %v52_v0 }
  0x22   :  { %1390 = vmatprep.mubr.msk.f32.mxu0 %vm69_vm0, %v1111_v1  ;;  %1473 = vmatpush3.bf16.msra.mxu1 %v1470_v60 }
  0x23   :  { %1505 = vmatpush3.bf16.msra.mxu0 %v1502_v61 }
  0x24   :  { %1311 = vmatmul.mubr.msk.f32.gmra.mrb[8].mxu1 %vm69_vm0, %v53_v2 }
  0x25   :  { %1391 = vmatmul.mubr.msk.f32.gmra.mrb[8].mxu0 %vm69_vm0, %v1112_v3  ;;  %1313 = vmatprep.mubr.msk.f32.mxu1 %vm69_vm0, %v54_v4 }
  0x26   :  { %1393 = vmatprep.mubr.msk.f32.mxu0 %vm69_vm0, %v1113_v5 }
  0x28   :  { %1314 = vmatmul.mubr.msk.f32.gmra.mrb[10].mxu1 %vm69_vm0, %v55_v6 }
  0x29   :  { %1394 = vmatmul.mubr.msk.f32.gmra.mrb[10].mxu0 %vm69_vm0, %v1114_v7  ;;  %1316 = vmatprep.mubr.msk.f32.mxu1 %vm69_vm0, %v56_v8 }
  0x2a   :  { %1396 = vmatprep.mubr.msk.f32.mxu0 %vm69_vm0, %v1115_v9 }
  0x2c   :  { %1317 = vmatmul.mubr.msk.f32.gmra.mrb[12].mxu1 %vm69_vm0, %v57_v10 }
  0x2d   :  { %1397 = vmatmul.mubr.msk.f32.gmra.mrb[12].mxu0 %vm69_vm0, %v1116_v11  ;;  %1319 = vmatprep.mubr.msk.f32.mxu1 %vm69_vm0, %v58_v12 }
  0x2e   :  { %1399 = vmatprep.mubr.msk.f32.mxu0 %vm69_vm0, %v1117_v13 }
  0x30   :  { %1320 = vmatmul.mubr.msk.f32.gmra.mrb[14].mxu1 %vm69_vm0, %v59_v14 }
  0x31   :  { %1400 = vmatmul.mubr.msk.f32.gmra.mrb[14].mxu0 %vm69_vm0, %v1118_v15  ;;  %1338 = vmatprep.mubr.msk.f32.mxu1 %vm69_vm0, %v20_v16 }
  0x32   :  { %1418 = vmatprep.mubr.msk.f32.mxu0 %vm69_vm0, %v1664_v34 }
  0x34   :  { %1339 = vmatmul.mubr.msk.f32.vlgmr.msra.gmra.mrb[0].mxu1 %vm69_vm0, %v1626_v18  ;;  %v28_v18 = vld [vmem:[%s2032_s0 + $0x90] sm:$0xff] }
  0x35   :  { %1419 = vmatmul.mubr.msk.f32.vlgmr.msra.gmra.mrb[0].mxu0 %vm69_vm0, %v1680_v38  ;;  %1341 = vmatprep.mubr.msk.f32.mxu1 %vm69_vm0, %v1675_v37 }
  0x36   :  { %1421 = vmatprep.mubr.msk.f32.mxu0 %vm69_vm0, %v1700_v44 }
  0x38   :  { %1342 = vmatmul.mubr.msk.f32.gmra.mrb[2].mxu1 %vm69_vm0, %v1687_v40 }
  0x39   :  { %1422 = vmatmul.mubr.msk.f32.gmra.mrb[2].mxu0 %vm69_vm0, %v1718_v48  ;;  %1344 = vmatprep.mubr.msk.f32.mxu1 %vm69_vm0, %v1713_v47 }
  0x3a   :  { %1424 = vmatprep.mubr.msk.f32.mxu0 %vm69_vm0, %v1742_v54 }
  0x3c   :  { %1345 = vmatmul.mubr.msk.f32.gmra.mrb[4].mxu1 %vm69_vm0, %v1725_v49 }
  0x3d   :  { %1425 = vmatmul.mubr.msk.f32.gmra.mrb[4].mxu0 %vm69_vm0, %v1760_v58  ;;  %1347 = vmatprep.mubr.msk.f32.mxu1 %vm69_vm0, %v1755_v57 }
  0x3e   :  { %1427 = vmatprep.mubr.msk.f32.mxu0 %vm69_vm0, %v51_v62 }
  0x40   :  { %1348 = vmatmul.mubr.msk.f32.gmra.mrb[6].mxu1 %vm69_vm0, %v1765_v59 }
  0x41   :  { %1428 = vmatmul.mubr.msk.f32.gmra.mrb[6].mxu0 %vm69_vm0, %v1150_v17  ;;  %1350 = vmatprep.mubr.msk.f32.mxu1 %vm69_vm0, %v28_v18 }
  0x42   :  { %1430 = vmatprep.mubr.msk.f32.mxu0 %vm69_vm0, %v53_v2 }
  0x44   :  { %1351 = vmatmul.mubr.msk.f32.gmra.mrb[8].mxu1 %vm69_vm0, %v1111_v1 }
  0x45   :  { %1431 = vmatmul.mubr.msk.f32.gmra.mrb[8].mxu0 %vm69_vm0, %v54_v4  ;;  %1353 = vmatprep.mubr.msk.f32.mxu1 %vm69_vm0, %v1112_v3 }
  0x46   :  { %1433 = vmatprep.mubr.msk.f32.mxu0 %vm69_vm0, %v55_v6 }
  0x48   :  { %1354 = vmatmul.mubr.msk.f32.gmra.mrb[10].mxu1 %vm69_vm0, %v1113_v5 }
  0x49   :  { %1434 = vmatmul.mubr.msk.f32.gmra.mrb[10].mxu0 %vm69_vm0, %v56_v8  ;;  %1356 = vmatprep.mubr.msk.f32.mxu1 %vm69_vm0, %v1114_v7 }
  0x4a   :  { %1436 = vmatprep.mubr.msk.f32.mxu0 %vm69_vm0, %v57_v10 }
  0x4c   :  { %1357 = vmatmul.mubr.msk.f32.gmra.mrb[12].mxu1 %vm69_vm0, %v1115_v9 }
  0x4d   :  { %1437 = vmatmul.mubr.msk.f32.gmra.mrb[12].mxu0 %vm69_vm0, %v58_v12  ;;  %1359 = vmatprep.mubr.msk.f32.mxu1 %vm69_vm0, %v1116_v11 }
  0x4e   :  { %1439 = vmatprep.mubr.msk.f32.mxu0 %vm69_vm0, %v59_v14 }
  0x50   :  { %1360 = vmatmul.mubr.msk.f32.gmra.mrb[14].mxu1 %vm69_vm0, %v1117_v13 }
  0x51   :  { %1440 = vmatmul.mubr.msk.f32.gmra.mrb[14].mxu0 %vm69_vm0, %v1158_v19 }
 0x107   :  { %v1340_v20 = vpop.f32.mrb[0].mxu1 }
 0x108   :  { %v1420_v21 = vpop.f32.mrb[0].mxu0  ;;  %v377_v23 = vpop.f32.mrb[1].mxu1 }
 0x109   :  { %v1506_v24 = vadd.f32 %v1420_v21, %v1340_v20  ;;  %v830_v25 = vpop.f32.mrb[1].mxu0 }
 0x10a   :  { %v1507_v26 = vadd.f32 %v830_v25, %v377_v23 }
 0x10b   :  { %v933_v27 = vadd.f32 %v1506_v24, %v1907_v22  ;;  %v1343_v28 = vpop.f32.mrb[2].mxu1 }
 0x10c   :  { %v932_v29 = vadd.f32 %v1507_v26, %v1907_v22  ;;  %v1423_v30 = vpop.f32.mrb[2].mxu0  ;;  %v387_v31 = vpop.f32.mrb[3].mxu1 }
 0x10d   :  { %vm949_vm1 = vcmp.ge.f32.partialorder %v933_v27, 0.0  ;;  %v965_v32 = vmul.f32 0.2, %v933_v27  ;;  %v1508_v34 = vadd.f32 %v1423_v30, %v1343_v28  ;;  %v840_v35 = vpop.f32.mrb[3].mxu0 }
 0x10e   :  { %vm948_vm2 = vcmp.ge.f32.partialorder %v932_v29, 0.0  ;;  %v964_v36 = vmul.f32 0.2, %v932_v29  ;;  %v1509_v37 = vadd.f32 %v840_v35, %v387_v31 }
 0x10f   :  { %v981_v38 = vsel %vm949_vm1, %v933_v27, %v965_v32  ;;  %v935_v40 = vadd.f32 %v1508_v34, %v1907_v22  ;;  %v1346_v41 = vpop.f32.mrb[4].mxu1 }
 0x110   :  { %v1004_v42 = vmul.f32 %v1914_v33, %v981_v38  ;;  %v980_v43 = vsel %vm948_vm2, %v932_v29, %v964_v36  ;;  %v934_v44 = vadd.f32 %v1509_v37, %v1907_v22  ;;  %v1426_v45 = vpop.f32.mrb[4].mxu0  ;;  %v397_v46 = vpop.f32.mrb[5].mxu1 }
 0x111   :  { %v1003_v47 = vmul.f32 %v1914_v33, %v980_v43  ;;  %vm951_vm4 = vcmp.ge.f32.partialorder %v935_v40, 0.0  ;;  %v967_v48 = vmul.f32 0.2, %v935_v40  ;;  %v1510_v49 = vadd.f32 %v1426_v45, %v1346_v41  ;;  %v850_v50 = vpop.f32.mrb[5].mxu0 }
 0x112   :  { %v1027_v51 = vadd.f32 %v1919_v39, %v1004_v42  ;;  %vm950_vm5 = vcmp.ge.f32.partialorder %v934_v44, 0.0  ;;  %v966_v52 = vmul.f32 0.2, %v934_v44  ;;  %v1511_v53 = vadd.f32 %v850_v50, %v397_v46 }
 0x113   :  { %v1026_v54 = vadd.f32 %v1919_v39, %v1003_v47  ;;  %v983_v55 = vsel %vm951_vm4, %v935_v40, %v967_v48  ;;  %v937_v56 = vadd.f32 %v1510_v49, %v1907_v22  ;;  %v1349_v57 = vpop.f32.mrb[6].mxu1 }
 0x114   :  { %1044 = vst.msk [vmem:[%s2036_s5 + $0x8] sm:$0xff] %vm1042_vm3, %v1027_v51  ;;  %v1006_v58 = vmul.f32 %v1914_v33, %v983_v55  ;;  %v982_v59 = vsel %vm950_vm5, %v934_v44, %v966_v52  ;;  %v936_v60 = vadd.f32 %v1511_v53, %v1907_v22  ;;  %v1429_v61 = vpop.f32.mrb[6].mxu0  ;;  %v407_v62 = vpop.f32.mrb[7].mxu1 }
 0x115   :  { %1043 = vst.msk [vmem:[%s2036_s5] sm:$0xff] %vm1042_vm3, %v1026_v54  ;;  %v1005_v63 = vmul.f32 %v1914_v33, %v982_v59  ;;  %vm953_vm6 = vcmp.ge.f32.partialorder %v937_v56, 0.0  ;;  %v969_v0 = vmul.f32 0.2, %v937_v56  ;;  %v1512_v1 = vadd.f32 %v1429_v61, %v1349_v57  ;;  %v860_v2 = vpop.f32.mrb[7].mxu0 }
 0x116   :  { %v1029_v3 = vadd.f32 %v1919_v39, %v1006_v58  ;;  %vm952_vm7 = vcmp.ge.f32.partialorder %v936_v60, 0.0  ;;  %v968_v4 = vmul.f32 0.2, %v936_v60  ;;  %v1513_v5 = vadd.f32 %v860_v2, %v407_v62 }
 0x117   :  { %v1028_v6 = vadd.f32 %v1919_v39, %v1005_v63  ;;  %v985_v7 = vsel %vm953_vm6, %v937_v56, %v969_v0  ;;  %v939_v8 = vadd.f32 %v1512_v1, %v1907_v22  ;;  %v1352_v9 = vpop.f32.mrb[8].mxu1 }
 0x118   :  { %1046 = vst.msk [vmem:[%s2036_s5 + $0x18] sm:$0xff] %vm1042_vm3, %v1029_v3  ;;  %v1008_v10 = vmul.f32 %v1914_v33, %v985_v7  ;;  %v984_v11 = vsel %vm952_vm7, %v936_v60, %v968_v4  ;;  %v938_v12 = vadd.f32 %v1513_v5, %v1907_v22  ;;  %v1432_v13 = vpop.f32.mrb[8].mxu0  ;;  %v417_v14 = vpop.f32.mrb[9].mxu1 }
 0x119   :  { %1045 = vst.msk [vmem:[%s2036_s5 + $0x10] sm:$0xff] %vm1042_vm3, %v1028_v6  ;;  %v1007_v15 = vmul.f32 %v1914_v33, %v984_v11  ;;  %vm955_vm8 = vcmp.ge.f32.partialorder %v939_v8, 0.0  ;;  %v971_v16 = vmul.f32 0.2, %v939_v8  ;;  %v1514_v17 = vadd.f32 %v1432_v13, %v1352_v9  ;;  %v870_v18 = vpop.f32.mrb[9].mxu0 }
 0x11a   :  { %v1031_v19 = vadd.f32 %v1919_v39, %v1008_v10  ;;  %vm954_vm9 = vcmp.ge.f32.partialorder %v938_v12, 0.0  ;;  %v970_v20 = vmul.f32 0.2, %v938_v12  ;;  %v1515_v21 = vadd.f32 %v870_v18, %v417_v14 }
 0x11b   :  { %v1030_v23 = vadd.f32 %v1919_v39, %v1007_v15  ;;  %v987_v24 = vsel %vm955_vm8, %v939_v8, %v971_v16  ;;  %v941_v25 = vadd.f32 %v1514_v17, %v1907_v22  ;;  %v1355_v26 = vpop.f32.mrb[10].mxu1 }
 0x11c   :  { %1048 = vst.msk [vmem:[%s2036_s5 + $0x28] sm:$0xff] %vm1042_vm3, %v1031_v19  ;;  %v1010_v27 = vmul.f32 %v1914_v33, %v987_v24  ;;  %v986_v28 = vsel %vm954_vm9, %v938_v12, %v970_v20  ;;  %v940_v29 = vadd.f32 %v1515_v21, %v1907_v22  ;;  %v1435_v30 = vpop.f32.mrb[10].mxu0  ;;  %v427_v31 = vpop.f32.mrb[11].mxu1 }
 0x11d   :  { %1047 = vst.msk [vmem:[%s2036_s5 + $0x20] sm:$0xff] %vm1042_vm3, %v1030_v23  ;;  %v1009_v32 = vmul.f32 %v1914_v33, %v986_v28  ;;  %vm957_vm10 = vcmp.ge.f32.partialorder %v941_v25, 0.0  ;;  %v973_v34 = vmul.f32 0.2, %v941_v25  ;;  %v1516_v35 = vadd.f32 %v1435_v30, %v1355_v26  ;;  %v880_v36 = vpop.f32.mrb[11].mxu0 }
 0x11e   :  { %v1033_v37 = vadd.f32 %v1919_v39, %v1010_v27  ;;  %vm956_vm11 = vcmp.ge.f32.partialorder %v940_v29, 0.0  ;;  %v972_v38 = vmul.f32 0.2, %v940_v29  ;;  %v1517_v40 = vadd.f32 %v880_v36, %v427_v31 }
 0x11f   :  { %v1032_v41 = vadd.f32 %v1919_v39, %v1009_v32  ;;  %v989_v42 = vsel %vm957_vm10, %v941_v25, %v973_v34  ;;  %v943_v43 = vadd.f32 %v1516_v35, %v1907_v22  ;;  %v1358_v44 = vpop.f32.mrb[12].mxu1 }
 0x120   :  { %1050 = vst.msk [vmem:[%s2036_s5 + $0x38] sm:$0xff] %vm1042_vm3, %v1033_v37  ;;  %v1012_v45 = vmul.f32 %v1914_v33, %v989_v42  ;;  %v988_v46 = vsel %vm956_vm11, %v940_v29, %v972_v38  ;;  %v942_v47 = vadd.f32 %v1517_v40, %v1907_v22  ;;  %v1438_v48 = vpop.f32.mrb[12].mxu0  ;;  %v437_v49 = vpop.f32.mrb[13].mxu1 }
 0x121   :  { %1049 = vst.msk [vmem:[%s2036_s5 + $0x30] sm:$0xff] %vm1042_vm3, %v1032_v41  ;;  %v1011_v50 = vmul.f32 %v1914_v33, %v988_v46  ;;  %vm959_vm12 = vcmp.ge.f32.partialorder %v943_v43, 0.0  ;;  %v975_v51 = vmul.f32 0.2, %v943_v43  ;;  %v1518_v52 = vadd.f32 %v1438_v48, %v1358_v44  ;;  %v890_v53 = vpop.f32.mrb[13].mxu0 }
 0x122   :  { %v1035_v54 = vadd.f32 %v1919_v39, %v1012_v45  ;;  %vm958_vm13 = vcmp.ge.f32.partialorder %v942_v47, 0.0  ;;  %v974_v55 = vmul.f32 0.2, %v942_v47  ;;  %v1519_v56 = vadd.f32 %v890_v53, %v437_v49 }
 0x123   :  { %v1034_v57 = vadd.f32 %v1919_v39, %v1011_v50  ;;  %v991_v58 = vsel %vm959_vm12, %v943_v43, %v975_v51  ;;  %v945_v59 = vadd.f32 %v1518_v52, %v1907_v22  ;;  %v1361_v60 = vpop.f32.mrb[14].mxu1 }
 0x124   :  { %1052 = vst.msk [vmem:[%s2036_s5 + $0x48] sm:$0xff] %vm1042_vm3, %v1035_v54  ;;  %v1014_v61 = vmul.f32 %v1914_v33, %v991_v58  ;;  %v990_v62 = vsel %vm958_vm13, %v942_v47, %v974_v55  ;;  %v944_v63 = vadd.f32 %v1519_v56, %v1907_v22  ;;  %v1441_v0 = vpop.f32.mrb[14].mxu0  ;;  %v447_v1 = vpop.f32.mrb[15].mxu1 }
 0x125   :  { %1051 = vst.msk [vmem:[%s2036_s5 + $0x40] sm:$0xff] %vm1042_vm3, %v1034_v57  ;;  %v1013_v2 = vmul.f32 %v1914_v33, %v990_v62  ;;  %vm961_vm14 = vcmp.ge.f32.partialorder %v945_v59, 0.0  ;;  %v977_v3 = vmul.f32 0.2, %v945_v59  ;;  %v1520_v4 = vadd.f32 %v1441_v0, %v1361_v60  ;;  %v900_v5 = vpop.f32.mrb[15].mxu0 }
 0x126   :  { %v1037_v6 = vadd.f32 %v1919_v39, %v1014_v61  ;;  %vm960_vm15 = vcmp.ge.f32.partialorder %v944_v63, 0.0  ;;  %v976_v7 = vmul.f32 0.2, %v944_v63  ;;  %v1521_v8 = vadd.f32 %v900_v5, %v447_v1 }
 0x127   :  { %v1036_v9 = vadd.f32 %v1919_v39, %v1013_v2  ;;  %v993_v10 = vsel %vm961_vm14, %v945_v59, %v977_v3  ;;  %v947_v11 = vadd.f32 %v1520_v4, %v1907_v22 }
 0x128   :  { %1054 = vst.msk [vmem:[%s2036_s5 + $0x58] sm:$0xff] %vm1042_vm3, %v1037_v6  ;;  %v1016_v12 = vmul.f32 %v1914_v33, %v993_v10  ;;  %v992_v13 = vsel %vm960_vm15, %v944_v63, %v976_v7  ;;  %v946_v14 = vadd.f32 %v1521_v8, %v1907_v22 }
 0x129   :  { %1053 = vst.msk [vmem:[%s2036_s5 + $0x50] sm:$0xff] %vm1042_vm3, %v1036_v9  ;;  %v1015_v15 = vmul.f32 %v1914_v33, %v992_v13  ;;  %vm963_vm0 = vcmp.ge.f32.partialorder %v947_v11, 0.0  ;;  %v979_v16 = vmul.f32 0.2, %v947_v11 }
 0x12a   :  { %v1039_v17 = vadd.f32 %v1919_v39, %v1016_v12  ;;  %vm962_vm1 = vcmp.ge.f32.partialorder %v946_v14, 0.0  ;;  %v978_v18 = vmul.f32 0.2, %v946_v14 }
 0x12b   :  { %v1038_v19 = vadd.f32 %v1919_v39, %v1015_v15  ;;  %v995_v20 = vsel %vm963_vm0, %v947_v11, %v979_v16 }
 0x12c   :  { %1056 = vst.msk [vmem:[%s2036_s5 + $0x68] sm:$0xff] %vm1042_vm3, %v1039_v17  ;;  %v1018_v22 = vmul.f32 %v1914_v33, %v995_v20  ;;  %v994_v21 = vsel %vm962_vm1, %v946_v14, %v978_v18 }
 0x12d   :  { %1055 = vst.msk [vmem:[%s2036_s5 + $0x60] sm:$0xff] %vm1042_vm3, %v1038_v19  ;;  %v1017_v23 = vmul.f32 %v1914_v33, %v994_v21 }
 0x12e   :  { %v1041_v24 = vadd.f32 %v1919_v39, %v1018_v22 }
 0x12f   :  { %v1040_v25 = vadd.f32 %v1919_v39, %v1017_v23 }
 0x130   :  { %1058 = vst.msk [vmem:[%s2036_s5 + $0x78] sm:$0xff] %vm1042_vm3, %v1041_v24 }
 0x131   :  { %1057 = vst.msk [vmem:[%s2036_s5 + $0x70] sm:$0xff] %vm1042_vm3, %v1040_v25 }

// kernel: forward.6
= control target key start
LH: loop header
LB: loop body
LE: loop exit
PB: predicated region body
PF: predicated region fallthrough
CT: control target
= control target key end

     0   :  { %v9953_v0 = vmov 0.0|0.0   ;;  %vm9954_vm0 = vmmov 0   ;;  %v9955_v8 = vmov 0.0   ;;  %vm63_vm1 = vcmask 1041409   ;;  %s9956_s23 = smov 64   ;;  %s11816_s1 = inlined_call_operand.vmem [shape: f32[4,128,64], index: 1, kind: input, shape index: {}]   ;;  %s11817_s0 = inlined_call_operand.vmem [shape: f32[2,5,5,128], index: 0, kind: input, shape index: {}]   ;;  %s11818_s2 = inlined_call_operand.vmem [shape: f32[1,64], index: 2, kind: input, shape index: {}]   ;;  %s11819_s3 = inlined_call_operand.vmem [shape: f32[1,64], index: 3, kind: input, shape index: {}]   ;;  %s11820_s4 = inlined_call_operand.vmem [shape: f32[1,64], index: 4, kind: input, shape index: {}]   ;;  %s11821_s5 = inlined_call_operand.vmem [shape: f32[2,1024], index: 5, kind: output, shape index: {}]  }
   0x1   :  { %8406 = vmatprep.subr.bf16.mxu0 %v9953_v0  ;;  %v4987_v1 = vld [vmem:[%s11816_s1 + $0x80] sm:$0xff]  ;;  %v4988_v2 = vld [vmem:[%s11816_s1 + $0x88] sm:$0xff]  ;;  %8430 = vmatprep.subr.bf16.mxu1 %v9953_v0  ;;  %v4989_v6 = vld [vmem:[%s11816_s1 + $0x90] sm:$0xff]  ;;  %vm4928_vm6 = vcmask 523264  }
   0x2   :  { %v25_v3 = vld [vmem:[%s11816_s1] sm:$0xff]  ;;  %v9999_v4 = vpack.c.bf16 %v4988_v2, %v4987_v1  ;;  %v26_v5 = vld [vmem:[%s11816_s1 + $0x8] sm:$0xff]  ;;  %v4990_v7 = vld [vmem:[%s11816_s1 + $0x98] sm:$0xff]  ;;  %6198 = vmatprep.mubr.msk.f32.mxu0 %vm9954_vm0, %v9955_v8  ;;  %6233 = vmatprep.mubr.msk.f32.mxu1 %vm9954_vm0, %v9955_v8 }
   0x3   :  { %v10014_v9 = vpack.c.bf16 %v26_v5, %v25_v3  ;;  %v27_v10 = vld [vmem:[%s11816_s1 + $0x10] sm:$0xff]  ;;  %v28_v11 = vld [vmem:[%s11816_s1 + $0x18] sm:$0xff]  ;;  %v10023_v12 = vpack.c.bf16 %v4990_v7, %v4989_v6  ;;  %v4991_v14 = vld [vmem:[%s11816_s1 + $0xa0] sm:$0xff] }
   0x4   :  { %8408 = vmatpush3.bf16.msra.mxu0 %v9999_v4  ;;  %v10027_v13 = vpack.c.bf16 %v28_v11, %v27_v10  ;;  %v4992_v15 = vld [vmem:[%s11816_s1 + $0xa8] sm:$0xff]  ;;  %v29_v16 = vld [vmem:[%s11816_s1 + $0x20] sm:$0xff]  ;;  %v4993_v20 = vld [vmem:[%s11816_s1 + $0xb0] sm:$0xff] }
   0x5   :  { %8432 = vmatpush3.bf16.msra.mxu1 %v10014_v9  ;;  %8409 = vmatprep.subr.bf16.mxu0 %v9953_v0  ;;  %v30_v17 = vld [vmem:[%s11816_s1 + $0x28] sm:$0xff]  ;;  %v10043_v18 = vpack.c.bf16 %v4992_v15, %v4991_v14  ;;  %v4994_v21 = vld [vmem:[%s11816_s1 + $0xb8] sm:$0xff]  ;;  %v31_v22 = vld [vmem:[%s11816_s1 + $0x30] sm:$0xff] }
   0x6   :  { %8433 = vmatprep.subr.bf16.mxu1 %v9953_v0  ;;  %v10047_v19 = vpack.c.bf16 %v30_v17, %v29_v16  ;;  %v32_v23 = vld [vmem:[%s11816_s1 + $0x38] sm:$0xff]  ;;  %v10063_v24 = vpack.c.bf16 %v4994_v21, %v4993_v20  ;;  %v4995_v26 = vld [vmem:[%s11816_s1 + $0xc0] sm:$0xff]  ;;  %v4996_v27 = vld [vmem:[%s11816_s1 + $0xc8] sm:$0xff] }
   0x7   :  { %v10067_v25 = vpack.c.bf16 %v32_v23, %v31_v22  ;;  %v33_v28 = vld [vmem:[%s11816_s1 + $0x40] sm:$0xff]  ;;  %v34_v29 = vld [vmem:[%s11816_s1 + $0x48] sm:$0xff]  ;;  %v10083_v30 = vpack.c.bf16 %v4996_v27, %v4995_v26  ;;  %v4997_v32 = vld [vmem:[%s11816_s1 + $0xd0] sm:$0xff] }
   0x8   :  { %8411 = vmatpush3.bf16.msra.mxu0 %v10023_v12  ;;  %v10087_v31 = vpack.c.bf16 %v34_v29, %v33_v28  ;;  %v4998_v33 = vld [vmem:[%s11816_s1 + $0xd8] sm:$0xff]  ;;  %v35_v34 = vld [vmem:[%s11816_s1 + $0x50] sm:$0xff]  ;;  %v4999_v38 = vld [vmem:[%s11816_s1 + $0xe0] sm:$0xff] }
   0x9   :  { %8435 = vmatpush3.bf16.msra.mxu1 %v10027_v13  ;;  %8412 = vmatprep.subr.bf16.mxu0 %v9953_v0  ;;  %v36_v35 = vld [vmem:[%s11816_s1 + $0x58] sm:$0xff]  ;;  %v10103_v36 = vpack.c.bf16 %v4998_v33, %v4997_v32  ;;  %v5000_v39 = vld [vmem:[%s11816_s1 + $0xe8] sm:$0xff]  ;;  %v37_v40 = vld [vmem:[%s11816_s1 + $0x60] sm:$0xff] }
   0xa   :  { %8436 = vmatprep.subr.bf16.mxu1 %v9953_v0  ;;  %v10107_v37 = vpack.c.bf16 %v36_v35, %v35_v34  ;;  %v38_v41 = vld [vmem:[%s11816_s1 + $0x68] sm:$0xff]  ;;  %v10123_v42 = vpack.c.bf16 %v5000_v39, %v4999_v38  ;;  %v5001_v44 = vld [vmem:[%s11816_s1 + $0xf0] sm:$0xff]  ;;  %v5002_v45 = vld [vmem:[%s11816_s1 + $0xf8] sm:$0xff] }
   0xb   :  { %v10127_v43 = vpack.c.bf16 %v38_v41, %v37_v40  ;;  %v42_v46 = vld [vmem:[%s11817_s0 + $0x29] sm:$0x1]  ;;  %v39_v47 = vld [vmem:[%s11816_s1 + $0x70] sm:$0xff]  ;;  %v40_v48 = vld [vmem:[%s11816_s1 + $0x78] sm:$0xff]  ;;  %v10149_v50 = vpack.c.bf16 %v5002_v45, %v5001_v44 }
   0xc   :  { %8414 = vmatpush3.bf16.msra.mxu0 %v10043_v18  ;;  %v24_v49 = vld [vmem:[%s11817_s0 + $0x28] sm:$0x1]  ;;  %v62_v51 = vrot.slane %v42_v46, 7  ;;  %v10153_v52 = vpack.c.bf16 %v40_v48, %v39_v47  ;;  %v41_v53 = vld [vmem:[%s11817_s0 + $0x1] sm:$0x1]  ;;  %v5007_v1 = vld [vmem:[%s11816_s1 + $0x110] sm:$0xff] }
   0xd   :  { %8438 = vmatpush3.bf16.msra.mxu1 %v10047_v19  ;;  %8415 = vmatprep.subr.bf16.mxu0 %v9953_v0  ;;  %v138_v54 = vrot.slane %v24_v49, 7  ;;  %v5005_v55 = vld [vmem:[%s11816_s1 + $0x100] sm:$0xff]  ;;  %v5006_v56 = vld [vmem:[%s11816_s1 + $0x108] sm:$0xff]  ;;  %v5008_v2 = vld [vmem:[%s11816_s1 + $0x118] sm:$0xff] }
   0xe   :  { %8439 = vmatprep.subr.bf16.mxu1 %v9953_v0  ;;  %v23_v57 = vld [vmem:[%s11817_s0] sm:$0x1]  ;;  %v5024_v59 = vld [vmem:[%s11816_s1 + $0x188] sm:$0xff]  ;;  %v10176_v60 = vsel %vm63_vm1, %v62_v51, %v41_v53  ;;  %v10178_v61 = vpack.c.bf16 %v5006_v56, %v5005_v55  ;;  %v5025_v3 = vld [vmem:[%s11816_s1 + $0x190] sm:$0xff]  ;;  %v10200_v6 = vpack.c.bf16 %v5008_v2, %v5007_v1 }
   0xf   :  { %v5023_v58 = vld [vmem:[%s11816_s1 + $0x180] sm:$0xff]  ;;  %v139_v62 = vsel %vm63_vm1, %v138_v54, %v23_v57  ;;  %v5026_v5 = vld [vmem:[%s11816_s1 + $0x198] sm:$0xff]  ;;  %v5010_v11 = vld [vmem:[%s11816_s1 + $0x128] sm:$0xff] }
  0x10   :  { %8417 = vmatpush3.bf16.msra.mxu0 %v10063_v24  ;;  %v10183_v63 = vpack.c.bf16 %v5024_v59, %v5023_v58  ;;  %v10204_v7 = vpack.c.bf16 %v5026_v5, %v5025_v3  ;;  %v5009_v10 = vld [vmem:[%s11816_s1 + $0x120] sm:$0xff]  ;;  %v5028_v15 = vld [vmem:[%s11816_s1 + $0x1a8] sm:$0xff]  ;;  %v5011_v20 = vld [vmem:[%s11816_s1 + $0x130] sm:$0xff] }
  0x11   :  { %8441 = vmatpush3.bf16.msra.mxu1 %v10067_v25  ;;  %8418 = vmatprep.subr.bf16.mxu0 %v9953_v0  ;;  %v5027_v14 = vld [vmem:[%s11816_s1 + $0x1a0] sm:$0xff]  ;;  %v10224_v16 = vpack.c.bf16 %v5010_v11, %v5009_v10  ;;  %v5012_v21 = vld [vmem:[%s11816_s1 + $0x138] sm:$0xff]  ;;  %v5029_v22 = vld [vmem:[%s11816_s1 + $0x1b0] sm:$0xff] }
  0x12   :  { %8442 = vmatprep.subr.bf16.mxu1 %v9953_v0  ;;  %v10228_v17 = vpack.c.bf16 %v5028_v15, %v5027_v14  ;;  %v5030_v23 = vld [vmem:[%s11816_s1 + $0x1b8] sm:$0xff]  ;;  %v10244_v26 = vpack.c.bf16 %v5012_v21, %v5011_v20  ;;  %v5013_v28 = vld [vmem:[%s11816_s1 + $0x140] sm:$0xff]  ;;  %v5014_v29 = vld [vmem:[%s11816_s1 + $0x148] sm:$0xff] }
  0x13   :  { %v10248_v27 = vpack.c.bf16 %v5030_v23, %v5029_v22  ;;  %v5031_v32 = vld [vmem:[%s11816_s1 + $0x1c0] sm:$0xff]  ;;  %v5032_v33 = vld [vmem:[%s11816_s1 + $0x1c8] sm:$0xff]  ;;  %v10264_v34 = vpack.c.bf16 %v5014_v29, %v5013_v28  ;;  %v5015_v38 = vld [vmem:[%s11816_s1 + $0x150] sm:$0xff] }
  0x14   :  { %8420 = vmatpush3.bf16.msra.mxu0 %v10083_v30  ;;  %v10268_v35 = vpack.c.bf16 %v5032_v33, %v5031_v32  ;;  %v5016_v39 = vld [vmem:[%s11816_s1 + $0x158] sm:$0xff]  ;;  %v5033_v40 = vld [vmem:[%s11816_s1 + $0x1d0] sm:$0xff]  ;;  %v5017_v46 = vld [vmem:[%s11816_s1 + $0x160] sm:$0xff] }
  0x15   :  { %8444 = vmatpush3.bf16.msra.mxu1 %v10087_v31  ;;  %8421 = vmatprep.subr.bf16.mxu0 %v9953_v0  ;;  %v5034_v41 = vld [vmem:[%s11816_s1 + $0x1d8] sm:$0xff]  ;;  %v10284_v44 = vpack.c.bf16 %v5016_v39, %v5015_v38  ;;  %v5018_v47 = vld [vmem:[%s11816_s1 + $0x168] sm:$0xff]  ;;  %v5035_v48 = vld [vmem:[%s11816_s1 + $0x1e0] sm:$0xff] }
  0x16   :  { %8445 = vmatprep.subr.bf16.mxu1 %v9953_v0  ;;  %v10288_v45 = vpack.c.bf16 %v5034_v41, %v5033_v40  ;;  %v5036_v49 = vld [vmem:[%s11816_s1 + $0x1e8] sm:$0xff]  ;;  %v10304_v51 = vpack.c.bf16 %v5018_v47, %v5017_v46  ;;  %v5019_v54 = vld [vmem:[%s11816_s1 + $0x170] sm:$0xff]  ;;  %v5020_v55 = vld [vmem:[%s11816_s1 + $0x178] sm:$0xff] }
  0x17   :  { %v10308_v53 = vpack.c.bf16 %v5036_v49, %v5035_v48  ;;  %v5004_v56 = vld [vmem:[%s11817_s0 + $0x30] sm:$0x1]  ;;  %v5038_v58 = vld [vmem:[%s11816_s1 + $0x1f8] sm:$0xff]  ;;  %v5022_v59 = vld [vmem:[%s11817_s0 + $0x31] sm:$0x1] }
  0x18   :  { %8423 = vmatpush3.bf16.msra.mxu0 %v10103_v36  ;;  %v5037_v57 = vld [vmem:[%s11816_s1 + $0x1f0] sm:$0xff]  ;;  %v233_v1 = vrot.slane %v5004_v56, 7  ;;  %v5003_v3 = vld [vmem:[%s11817_s0 + $0x8] sm:$0x1]  ;;  %v328_v5 = vrot.slane %v5022_v59, 7 }
  0x19   :  { %8447 = vmatpush3.bf16.msra.mxu1 %v10107_v37  ;;  %8424 = vmatprep.subr.bf16.mxu0 %v9953_v0  ;;  %v10334_v2 = vpack.c.bf16 %v5038_v58, %v5037_v57  ;;  %v5021_v10 = vld [vmem:[%s11817_s0 + $0x9] sm:$0x1]  ;;  %v427_v15 = vld [vmem:[%s11817_s0 + $0x2a] sm:$0x1]  ;;  %v426_v21 = vld [vmem:[%s11817_s0 + $0x2] sm:$0x1] }
  0x1a   :  { %8448 = vmatprep.subr.bf16.mxu1 %v9953_v0  ;;  %v10345_v11 = vsel %vm63_vm1, %v233_v1, %v5003_v3  ;;  %v10350_v14 = vsel %vm63_vm1, %v328_v5, %v5021_v10  ;;  %v430_v20 = vrot.slane %v427_v15, 7  ;;  %v5042_v28 = vld [vmem:[%s11817_s0 + $0xa] sm:$0x1]  ;;  %v729_v32 = vld [vmem:[%s11817_s0 + $0x2b] sm:$0x1] }
  0x1b   :  { %v732_v33 = vrot.slane %v729_v32, 7  ;;  %v728_v38 = vld [vmem:[%s11817_s0 + $0x3] sm:$0x1]  ;;  %v5045_v40 = vld [vmem:[%s11817_s0 + $0x33] sm:$0x1] }
  0x1c   :  { %8426 = vmatpush3.bf16.msra.mxu0 %v10123_v42  ;;  %v10395_v22 = vsel %vm63_vm1, %v430_v20, %v426_v21  ;;  %v950_v41 = vrot.slane %v5045_v40, 7  ;;  %v5044_v46 = vld [vmem:[%s11817_s0 + $0xb] sm:$0x1]  ;;  %v1031_v48 = vld [vmem:[%s11817_s0 + $0x2c] sm:$0x1] }
  0x1d   :  { %8450 = vmatpush3.bf16.msra.mxu1 %v10127_v43  ;;  %8427 = vmatprep.subr.bf16.mxu0 %v9953_v0  ;;  %v10489_v39 = vsel %vm63_vm1, %v732_v33, %v728_v38  ;;  %v1034_v49 = vrot.slane %v1031_v48, 7  ;;  %v5047_v3 = vld [vmem:[%s11817_s0 + $0x34] sm:$0x1]  ;;  %v5046_v10 = vld [vmem:[%s11817_s0 + $0xc] sm:$0x1] }
  0x1e   :  { %8451 = vmatprep.subr.bf16.mxu1 %v9953_v0  ;;  %v10538_v47 = vsel %vm63_vm1, %v950_v41, %v5044_v46  ;;  %v1252_v5 = vrot.slane %v5047_v3, 7  ;;  %v5049_v40 = vld [vmem:[%s11817_s0 + $0x38] sm:$0x1]  ;;  %v5051_v41 = vld [vmem:[%s11817_s0 + $0x39] sm:$0x1] }
  0x1f   :  { %v1477_v46 = vrot.slane %v5049_v40, 7  ;;  %v5048_v48 = vld [vmem:[%s11817_s0 + $0x10] sm:$0x1] }
  0x20   :  { %8429 = vmatpush3.bf16.msra.mxu0 %v10149_v50  ;;  %v10629_v15 = vsel %vm63_vm1, %v1252_v5, %v5046_v10  ;;  %v10760_v10 = vld [vmem:[%s11818_s2] ss:$0 sm:$0xff] }
  0x21   :  { %8453 = vmatpush3.bf16.msra.mxu1 %v10153_v52  ;;  %8454 = vmatprep.subr.bf16.mxu0 %v9953_v0 }
  0x22   :  { %8478 = vmatprep.subr.bf16.mxu1 %v9953_v0 }
  0x23   :  { %6199 = vmatmul.mubr.f32.vlgmr.msra.gmra.mrb[0].mxu0 %v10176_v60 }
  0x24   :  { %6234 = vmatmul.mubr.f32.vlgmr.msra.gmra.mrb[0].mxu1 %v139_v62  ;;  %8456 = vmatpush3.bf16.msra.mxu0 %v10178_v61  ;;  %v10330_v62 = vpack.c.bf16 %v5020_v55, %v5019_v54  ;;  %v1030_v54 = vld [vmem:[%s11817_s0 + $0x4] sm:$0x1] }
  0x25   :  { %8480 = vmatpush3.bf16.msra.mxu1 %v10183_v63  ;;  %8457 = vmatprep.subr.bf16.mxu0 %v9953_v0  ;;  %v1035_v55 = vsel %vm63_vm1, %v1034_v49, %v1030_v54  ;;  %v1555_v49 = vrot.slane %v5051_v41, 7  ;;  %v5050_v54 = vld [vmem:[%s11817_s0 + $0x11] sm:$0x1]  ;;  %v5053_v41 = vld [vmem:[%s11817_s0 + $0x3a] sm:$0x1] }
  0x26   :  { %8481 = vmatprep.subr.bf16.mxu1 %v9953_v0  ;;  %6268 = vmatprep.mubr.msk.f32.mxu0 %vm9954_vm0, %v9955_v8 }
  0x27   :  { %6303 = vmatprep.mubr.msk.f32.mxu1 %vm9954_vm0, %v9955_v8 }
  0x28   :  { %8459 = vmatpush3.bf16.msra.mxu0 %v10200_v6 }
  0x29   :  { %8483 = vmatpush3.bf16.msra.mxu1 %v10204_v7  ;;  %8460 = vmatprep.subr.bf16.mxu0 %v9953_v0 }
  0x2a   :  { %8484 = vmatprep.subr.bf16.mxu1 %v9953_v0 }
  0x2c   :  { %8462 = vmatpush3.bf16.msra.mxu0 %v10224_v16 }
  0x2d   :  { %8486 = vmatpush3.bf16.msra.mxu1 %v10228_v17  ;;  %8463 = vmatprep.subr.bf16.mxu0 %v9953_v0 }
  0x2e   :  { %8487 = vmatprep.subr.bf16.mxu1 %v9953_v0 }
  0x30   :  { %8465 = vmatpush3.bf16.msra.mxu0 %v10244_v26 }
  0x31   :  { %8489 = vmatpush3.bf16.msra.mxu1 %v10248_v27  ;;  %8466 = vmatprep.subr.bf16.mxu0 %v9953_v0 }
  0x32   :  { %8490 = vmatprep.subr.bf16.mxu1 %v9953_v0 }
  0x34   :  { %8468 = vmatpush3.bf16.msra.mxu0 %v10264_v34 }
  0x35   :  { %8492 = vmatpush3.bf16.msra.mxu1 %v10268_v35  ;;  %8469 = vmatprep.subr.bf16.mxu0 %v9953_v0 }
  0x36   :  { %8493 = vmatprep.subr.bf16.mxu1 %v9953_v0 }
  0x38   :  { %8471 = vmatpush3.bf16.msra.mxu0 %v10284_v44 }
  0x39   :  { %8495 = vmatpush3.bf16.msra.mxu1 %v10288_v45  ;;  %8472 = vmatprep.subr.bf16.mxu0 %v9953_v0 }
  0x3a   :  { %8496 = vmatprep.subr.bf16.mxu1 %v9953_v0 }
  0x3c   :  { %8474 = vmatpush3.bf16.msra.mxu0 %v10304_v51 }
  0x3d   :  { %8498 = vmatpush3.bf16.msra.mxu1 %v10308_v53  ;;  %8475 = vmatprep.subr.bf16.mxu0 %v9953_v0 }
  0x3e   :  { %8499 = vmatprep.subr.bf16.mxu1 %v9953_v0 }
  0x40   :  { %8477 = vmatpush3.bf16.msra.mxu0 %v10330_v62 }
  0x41   :  { %8501 = vmatpush3.bf16.msra.mxu1 %v10334_v2  ;;  %8502 = vmatprep.subr.bf16.mxu0 %v9953_v0 }
  0x42   :  { %8526 = vmatprep.subr.bf16.mxu1 %v9953_v0 }
  0x43   :  { %6269 = vmatmul.mubr.f32.vlgmr.msra.gmra.mrb[2].mxu0 %v10345_v11 }
  0x44   :  { %8504 = vmatpush3.bf16.msra.mxu0 %v9999_v4  ;;  %6304 = vmatmul.mubr.f32.vlgmr.msra.gmra.mrb[2].mxu1 %v10350_v14 }
  0x45   :  { %8528 = vmatpush3.bf16.msra.mxu1 %v10014_v9  ;;  %8505 = vmatprep.subr.bf16.mxu0 %v9953_v0 }
  0x46   :  { %8529 = vmatprep.subr.bf16.mxu1 %v9953_v0  ;;  %6338 = vmatprep.mubr.msk.f32.mxu0 %vm9954_vm0, %v9955_v8 }
  0x47   :  { %6373 = vmatprep.mubr.msk.f32.mxu1 %vm9954_vm0, %v9955_v8 }
  0x48   :  { %8507 = vmatpush3.bf16.msra.mxu0 %v10023_v12 }
  0x49   :  { %8531 = vmatpush3.bf16.msra.mxu1 %v10027_v13  ;;  %8508 = vmatprep.subr.bf16.mxu0 %v9953_v0 }
  0x4a   :  { %8532 = vmatprep.subr.bf16.mxu1 %v9953_v0 }
  0x4c   :  { %8510 = vmatpush3.bf16.msra.mxu0 %v10043_v18 }
  0x4d   :  { %8534 = vmatpush3.bf16.msra.mxu1 %v10047_v19  ;;  %8511 = vmatprep.subr.bf16.mxu0 %v9953_v0 }
  0x4e   :  { %8535 = vmatprep.subr.bf16.mxu1 %v9953_v0 }
  0x50   :  { %8513 = vmatpush3.bf16.msra.mxu0 %v10063_v24 }
  0x51   :  { %8537 = vmatpush3.bf16.msra.mxu1 %v10067_v25  ;;  %8514 = vmatprep.subr.bf16.mxu0 %v9953_v0 }
  0x52   :  { %8538 = vmatprep.subr.bf16.mxu1 %v9953_v0 }
  0x54   :  { %8516 = vmatpush3.bf16.msra.mxu0 %v10083_v30 }
  0x55   :  { %8540 = vmatpush3.bf16.msra.mxu1 %v10087_v31  ;;  %8517 = vmatprep.subr.bf16.mxu0 %v9953_v0 }
  0x56   :  { %8541 = vmatprep.subr.bf16.mxu1 %v9953_v0 }
  0x58   :  { %8519 = vmatpush3.bf16.msra.mxu0 %v10103_v36 }
  0x59   :  { %8543 = vmatpush3.bf16.msra.mxu1 %v10107_v37  ;;  %8520 = vmatprep.subr.bf16.mxu0 %v9953_v0 }
  0x5a   :  { %8544 = vmatprep.subr.bf16.mxu1 %v9953_v0 }
  0x5c   :  { %8522 = vmatpush3.bf16.msra.mxu0 %v10123_v42 }
  0x5d   :  { %8546 = vmatpush3.bf16.msra.mxu1 %v10127_v43  ;;  %8523 = vmatprep.subr.bf16.mxu0 %v9953_v0 }
  0x5e   :  { %8547 = vmatprep.subr.bf16.mxu1 %v9953_v0 }
  0x60   :  { %8525 = vmatpush3.bf16.msra.mxu0 %v10149_v50 }
  0x61   :  { %8549 = vmatpush3.bf16.msra.mxu1 %v10153_v52  ;;  %8550 = vmatprep.subr.bf16.mxu0 %v9953_v0 }
  0x62   :  { %8574 = vmatprep.subr.bf16.mxu1 %v9953_v0 }
  0x63   :  { %6339 = vmatmul.mubr.f32.vlgmr.msra.gmra.mrb[4].mxu0 %v10395_v22 }
  0x64   :  { %6374 = vmatmul.mubr.f32.vlgmr.msra.gmra.mrb[4].mxu1 %v10176_v60  ;;  %8552 = vmatpush3.bf16.msra.mxu0 %v10178_v61  ;;  %v5043_v60 = vld [vmem:[%s11817_s0 + $0x32] sm:$0x1] }
  0x65   :  { %8576 = vmatpush3.bf16.msra.mxu1 %v10183_v63  ;;  %8553 = vmatprep.subr.bf16.mxu0 %v9953_v0  ;;  %v648_v23 = vrot.slane %v5043_v60, 7 }
  0x66   :  { %8577 = vmatprep.subr.bf16.mxu1 %v9953_v0  ;;  %6408 = vmatprep.mubr.msk.f32.mxu0 %vm9954_vm0, %v9955_v8 }
  0x67   :  { %6443 = vmatprep.mubr.msk.f32.mxu1 %vm9954_vm0, %v9955_v8  ;;  %v10444_v29 = vsel %vm63_vm1, %v648_v23, %v5042_v28 }
  0x68   :  { %8555 = vmatpush3.bf16.msra.mxu0 %v10200_v6 }
  0x69   :  { %8579 = vmatpush3.bf16.msra.mxu1 %v10204_v7  ;;  %8556 = vmatprep.subr.bf16.mxu0 %v9953_v0 }
  0x6a   :  { %8580 = vmatprep.subr.bf16.mxu1 %v9953_v0 }
  0x6c   :  { %8558 = vmatpush3.bf16.msra.mxu0 %v10224_v16 }
  0x6d   :  { %8582 = vmatpush3.bf16.msra.mxu1 %v10228_v17  ;;  %8559 = vmatprep.subr.bf16.mxu0 %v9953_v0 }
  0x6e   :  { %8583 = vmatprep.subr.bf16.mxu1 %v9953_v0 }
  0x70   :  { %8561 = vmatpush3.bf16.msra.mxu0 %v10244_v26 }
  0x71   :  { %8585 = vmatpush3.bf16.msra.mxu1 %v10248_v27  ;;  %8562 = vmatprep.subr.bf16.mxu0 %v9953_v0 }
  0x72   :  { %8586 = vmatprep.subr.bf16.mxu1 %v9953_v0 }
  0x74   :  { %8564 = vmatpush3.bf16.msra.mxu0 %v10264_v34 }
  0x75   :  { %8588 = vmatpush3.bf16.msra.mxu1 %v10268_v35  ;;  %8565 = vmatprep.subr.bf16.mxu0 %v9953_v0 }
  0x76   :  { %8589 = vmatprep.subr.bf16.mxu1 %v9953_v0 }
  0x78   :  { %8567 = vmatpush3.bf16.msra.mxu0 %v10284_v44 }
  0x79   :  { %8591 = vmatpush3.bf16.msra.mxu1 %v10288_v45  ;;  %8568 = vmatprep.subr.bf16.mxu0 %v9953_v0 }
  0x7a   :  { %8592 = vmatprep.subr.bf16.mxu1 %v9953_v0 }
  0x7c   :  { %8570 = vmatpush3.bf16.msra.mxu0 %v10304_v51 }
  0x7d   :  { %8594 = vmatpush3.bf16.msra.mxu1 %v10308_v53  ;;  %8571 = vmatprep.subr.bf16.mxu0 %v9953_v0 }
  0x7e   :  { %8595 = vmatprep.subr.bf16.mxu1 %v9953_v0 }
  0x80   :  { %8573 = vmatpush3.bf16.msra.mxu0 %v10330_v62 }
  0x81   :  { %8597 = vmatpush3.bf16.msra.mxu1 %v10334_v2  ;;  %8598 = vmatprep.subr.bf16.mxu0 %v9953_v0 }
  0x82   :  { %8622 = vmatprep.subr.bf16.mxu1 %v9953_v0 }
  0x83   :  { %6409 = vmatmul.mubr.f32.vlgmr.msra.gmra.mrb[6].mxu0 %v10350_v14 }
  0x84   :  { %8600 = vmatpush3.bf16.msra.mxu0 %v9999_v4  ;;  %6444 = vmatmul.mubr.f32.vlgmr.msra.gmra.mrb[6].mxu1 %v10444_v29 }
  0x85   :  { %8624 = vmatpush3.bf16.msra.mxu1 %v10014_v9  ;;  %8601 = vmatprep.subr.bf16.mxu0 %v9953_v0 }
  0x86   :  { %8625 = vmatprep.subr.bf16.mxu1 %v9953_v0  ;;  %6478 = vmatprep.mubr.msk.f32.mxu0 %vm9954_vm0, %v9955_v8 }
  0x87   :  { %6513 = vmatprep.mubr.msk.f32.mxu1 %vm9954_vm0, %v9955_v8 }
  0x88   :  { %8603 = vmatpush3.bf16.msra.mxu0 %v10023_v12 }
  0x89   :  { %8627 = vmatpush3.bf16.msra.mxu1 %v10027_v13  ;;  %8604 = vmatprep.subr.bf16.mxu0 %v9953_v0 }
  0x8a   :  { %8628 = vmatprep.subr.bf16.mxu1 %v9953_v0 }
  0x8c   :  { %8606 = vmatpush3.bf16.msra.mxu0 %v10043_v18 }
  0x8d   :  { %8630 = vmatpush3.bf16.msra.mxu1 %v10047_v19  ;;  %8607 = vmatprep.subr.bf16.mxu0 %v9953_v0 }
  0x8e   :  { %8631 = vmatprep.subr.bf16.mxu1 %v9953_v0 }
  0x90   :  { %8609 = vmatpush3.bf16.msra.mxu0 %v10063_v24 }
  0x91   :  { %8633 = vmatpush3.bf16.msra.mxu1 %v10067_v25  ;;  %8610 = vmatprep.subr.bf16.mxu0 %v9953_v0 }
  0x92   :  { %8634 = vmatprep.subr.bf16.mxu1 %v9953_v0 }
  0x94   :  { %8612 = vmatpush3.bf16.msra.mxu0 %v10083_v30 }
  0x95   :  { %8636 = vmatpush3.bf16.msra.mxu1 %v10087_v31  ;;  %8613 = vmatprep.subr.bf16.mxu0 %v9953_v0 }
  0x96   :  { %8637 = vmatprep.subr.bf16.mxu1 %v9953_v0 }
  0x98   :  { %8615 = vmatpush3.bf16.msra.mxu0 %v10103_v36 }
  0x99   :  { %8639 = vmatpush3.bf16.msra.mxu1 %v10107_v37  ;;  %8616 = vmatprep.subr.bf16.mxu0 %v9953_v0 }
  0x9a   :  { %8640 = vmatprep.subr.bf16.mxu1 %v9953_v0 }
  0x9c   :  { %8618 = vmatpush3.bf16.msra.mxu0 %v10123_v42 }
  0x9d   :  { %8642 = vmatpush3.bf16.msra.mxu1 %v10127_v43  ;;  %8619 = vmatprep.subr.bf16.mxu0 %v9953_v0 }
  0x9e   :  { %8643 = vmatprep.subr.bf16.mxu1 %v9953_v0 }
  0xa0   :  { %8621 = vmatpush3.bf16.msra.mxu0 %v10149_v50 }
  0xa1   :  { %8645 = vmatpush3.bf16.msra.mxu1 %v10153_v52  ;;  %8646 = vmatprep.subr.bf16.mxu0 %v9953_v0 }
  0xa2   :  { %8670 = vmatprep.subr.bf16.mxu1 %v9953_v0 }
  0xa3   :  { %6479 = vmatmul.mubr.f32.vlgmr.msra.gmra.mrb[8].mxu0 %v10489_v39 }
  0xa4   :  { %6514 = vmatmul.mubr.f32.vlgmr.msra.gmra.mrb[8].mxu1 %v10395_v22  ;;  %8648 = vmatpush3.bf16.msra.mxu0 %v10178_v61 }
  0xa5   :  { %8672 = vmatpush3.bf16.msra.mxu1 %v10183_v63  ;;  %8649 = vmatprep.subr.bf16.mxu0 %v9953_v0 }
  0xa6   :  { %8673 = vmatprep.subr.bf16.mxu1 %v9953_v0  ;;  %6548 = vmatprep.mubr.msk.f32.mxu0 %vm9954_vm0, %v9955_v8 }
  0xa7   :  { %6583 = vmatprep.mubr.msk.f32.mxu1 %vm9954_vm0, %v9955_v8 }
  0xa8   :  { %8651 = vmatpush3.bf16.msra.mxu0 %v10200_v6 }
  0xa9   :  { %8675 = vmatpush3.bf16.msra.mxu1 %v10204_v7  ;;  %8652 = vmatprep.subr.bf16.mxu0 %v9953_v0 }
  0xaa   :  { %8676 = vmatprep.subr.bf16.mxu1 %v9953_v0 }
  0xac   :  { %8654 = vmatpush3.bf16.msra.mxu0 %v10224_v16 }
  0xad   :  { %8678 = vmatpush3.bf16.msra.mxu1 %v10228_v17  ;;  %8655 = vmatprep.subr.bf16.mxu0 %v9953_v0 }
  0xae   :  { %8679 = vmatprep.subr.bf16.mxu1 %v9953_v0 }
  0xb0   :  { %8657 = vmatpush3.bf16.msra.mxu0 %v10244_v26 }
  0xb1   :  { %8681 = vmatpush3.bf16.msra.mxu1 %v10248_v27  ;;  %8658 = vmatprep.subr.bf16.mxu0 %v9953_v0 }
  0xb2   :  { %8682 = vmatprep.subr.bf16.mxu1 %v9953_v0 }
  0xb4   :  { %8660 = vmatpush3.bf16.msra.mxu0 %v10264_v34 }
  0xb5   :  { %8684 = vmatpush3.bf16.msra.mxu1 %v10268_v35  ;;  %8661 = vmatprep.subr.bf16.mxu0 %v9953_v0 }
  0xb6   :  { %8685 = vmatprep.subr.bf16.mxu1 %v9953_v0 }
  0xb8   :  { %8663 = vmatpush3.bf16.msra.mxu0 %v10284_v44 }
  0xb9   :  { %8687 = vmatpush3.bf16.msra.mxu1 %v10288_v45  ;;  %8664 = vmatprep.subr.bf16.mxu0 %v9953_v0 }
  0xba   :  { %8688 = vmatprep.subr.bf16.mxu1 %v9953_v0 }
  0xbc   :  { %8666 = vmatpush3.bf16.msra.mxu0 %v10304_v51 }
  0xbd   :  { %8690 = vmatpush3.bf16.msra.mxu1 %v10308_v53  ;;  %8667 = vmatprep.subr.bf16.mxu0 %v9953_v0 }
  0xbe   :  { %8691 = vmatprep.subr.bf16.mxu1 %v9953_v0 }
  0xc0   :  { %8669 = vmatpush3.bf16.msra.mxu0 %v10330_v62 }
  0xc1   :  { %8693 = vmatpush3.bf16.msra.mxu1 %v10334_v2  ;;  %8694 = vmatprep.subr.bf16.mxu0 %v9953_v0 }
  0xc2   :  { %8718 = vmatprep.subr.bf16.mxu1 %v9953_v0 }
  0xc3   :  { %6549 = vmatmul.mubr.f32.vlgmr.msra.gmra.mrb[10].mxu0 %v10444_v29 }
  0xc4   :  { %8696 = vmatpush3.bf16.msra.mxu0 %v9999_v4  ;;  %6584 = vmatmul.mubr.f32.vlgmr.msra.gmra.mrb[10].mxu1 %v10538_v47 }
  0xc5   :  { %8720 = vmatpush3.bf16.msra.mxu1 %v10014_v9  ;;  %8697 = vmatprep.subr.bf16.mxu0 %v9953_v0 }
  0xc6   :  { %8721 = vmatprep.subr.bf16.mxu1 %v9953_v0  ;;  %6618 = vmatprep.mubr.msk.f32.mxu0 %vm9954_vm0, %v9955_v8 }
  0xc7   :  { %6653 = vmatprep.mubr.msk.f32.mxu1 %vm9954_vm0, %v9955_v8 }
  0xc8   :  { %8699 = vmatpush3.bf16.msra.mxu0 %v10023_v12 }
  0xc9   :  { %8723 = vmatpush3.bf16.msra.mxu1 %v10027_v13  ;;  %8700 = vmatprep.subr.bf16.mxu0 %v9953_v0 }
  0xca   :  { %8724 = vmatprep.subr.bf16.mxu1 %v9953_v0 }
  0xcc   :  { %8702 = vmatpush3.bf16.msra.mxu0 %v10043_v18 }
  0xcd   :  { %8726 = vmatpush3.bf16.msra.mxu1 %v10047_v19  ;;  %8703 = vmatprep.subr.bf16.mxu0 %v9953_v0 }
  0xce   :  { %8727 = vmatprep.subr.bf16.mxu1 %v9953_v0 }
  0xd0   :  { %8705 = vmatpush3.bf16.msra.mxu0 %v10063_v24 }
  0xd1   :  { %8729 = vmatpush3.bf16.msra.mxu1 %v10067_v25  ;;  %8706 = vmatprep.subr.bf16.mxu0 %v9953_v0 }
  0xd2   :  { %8730 = vmatprep.subr.bf16.mxu1 %v9953_v0 }
  0xd4   :  { %8708 = vmatpush3.bf16.msra.mxu0 %v10083_v30 }
  0xd5   :  { %8732 = vmatpush3.bf16.msra.mxu1 %v10087_v31  ;;  %8709 = vmatprep.subr.bf16.mxu0 %v9953_v0 }
  0xd6   :  { %8733 = vmatprep.subr.bf16.mxu1 %v9953_v0 }
  0xd8   :  { %8711 = vmatpush3.bf16.msra.mxu0 %v10103_v36 }
  0xd9   :  { %8735 = vmatpush3.bf16.msra.mxu1 %v10107_v37  ;;  %8712 = vmatprep.subr.bf16.mxu0 %v9953_v0 }
  0xda   :  { %8736 = vmatprep.subr.bf16.mxu1 %v9953_v0 }
  0xdc   :  { %8714 = vmatpush3.bf16.msra.mxu0 %v10123_v42 }
  0xdd   :  { %8738 = vmatpush3.bf16.msra.mxu1 %v10127_v43  ;;  %8715 = vmatprep.subr.bf16.mxu0 %v9953_v0 }
  0xde   :  { %8739 = vmatprep.subr.bf16.mxu1 %v9953_v0 }
  0xe0   :  { %8717 = vmatpush3.bf16.msra.mxu0 %v10149_v50 }
  0xe1   :  { %8741 = vmatpush3.bf16.msra.mxu1 %v10153_v52  ;;  %8742 = vmatprep.subr.bf16.mxu0 %v9953_v0 }
  0xe2   :  { %8766 = vmatprep.subr.bf16.mxu1 %v9953_v0 }
  0xe3   :  { %6619 = vmatmul.mubr.f32.vlgmr.msra.gmra.mrb[12].mxu0 %v1035_v55  ;;  %v10720_v55 = vsel %vm63_vm1, %v1477_v46, %v5048_v48  ;;  %v1850_v46 = vrot.slane %v5053_v41, 7  ;;  %v5052_v48 = vld [vmem:[%s11817_s0 + $0x12] sm:$0x1] }
  0xe4   :  { %6654 = vmatmul.mubr.f32.vlgmr.msra.gmra.mrb[12].mxu1 %v10489_v39  ;;  %8744 = vmatpush3.bf16.msra.mxu0 %v10178_v61 }
  0xe5   :  { %8768 = vmatpush3.bf16.msra.mxu1 %v10183_v63  ;;  %8745 = vmatprep.subr.bf16.mxu0 %v9953_v0 }
  0xe6   :  { %8769 = vmatprep.subr.bf16.mxu1 %v9953_v0  ;;  %6688 = vmatprep.mubr.msk.f32.mxu0 %vm9954_vm0, %v9955_v8 }
  0xe7   :  { %6723 = vmatprep.mubr.msk.f32.mxu1 %vm9954_vm0, %v9955_v8 }
  0xe8   :  { %8747 = vmatpush3.bf16.msra.mxu0 %v10200_v6 }
  0xe9   :  { %8771 = vmatpush3.bf16.msra.mxu1 %v10204_v7  ;;  %8748 = vmatprep.subr.bf16.mxu0 %v9953_v0 }
  0xea   :  { %8772 = vmatprep.subr.bf16.mxu1 %v9953_v0 }
  0xec   :  { %8750 = vmatpush3.bf16.msra.mxu0 %v10224_v16 }
  0xed   :  { %8774 = vmatpush3.bf16.msra.mxu1 %v10228_v17  ;;  %8751 = vmatprep.subr.bf16.mxu0 %v9953_v0 }
  0xee   :  { %8775 = vmatprep.subr.bf16.mxu1 %v9953_v0 }
  0xf0   :  { %8753 = vmatpush3.bf16.msra.mxu0 %v10244_v26 }
  0xf1   :  { %8777 = vmatpush3.bf16.msra.mxu1 %v10248_v27  ;;  %8754 = vmatprep.subr.bf16.mxu0 %v9953_v0 }
  0xf2   :  { %8778 = vmatprep.subr.bf16.mxu1 %v9953_v0 }
  0xf4   :  { %8756 = vmatpush3.bf16.msra.mxu0 %v10264_v34 }
  0xf5   :  { %8780 = vmatpush3.bf16.msra.mxu1 %v10268_v35  ;;  %8757 = vmatprep.subr.bf16.mxu0 %v9953_v0 }
  0xf6   :  { %v132_v56 = vpop.f32.mrb[0].mxu0  ;;  %8781 = vmatprep.subr.bf16.mxu1 %v9953_v0 }
  0xf7   :  { %v6200_v57 = vpop.f32.mrb[1].mxu0  ;;  %v207_v58 = vpop.f32.mrb[0].mxu1 }
  0xf8   :  { %v208_v59 = vadd.f32 %v207_v58, %v132_v56  ;;  %8759 = vmatpush3.bf16.msra.mxu0 %v10284_v44  ;;  %v6235_v1 = vpop.f32.mrb[1].mxu1  ;;  %v10725_v56 = vsel %vm63_vm1, %v1555_v49, %v5050_v54  ;;  %v10829_v49 = vsel %vm63_vm1, %v1850_v46, %v5052_v48 }
  0xf9   :  { %8783 = vmatpush3.bf16.msra.mxu1 %v10288_v45  ;;  %8760 = vmatprep.subr.bf16.mxu0 %v9953_v0 }
  0xfa   :  { %8784 = vmatprep.subr.bf16.mxu1 %v9953_v0 }
  0xfc   :  { %8762 = vmatpush3.bf16.msra.mxu0 %v10304_v51 }
  0xfd   :  { %8786 = vmatpush3.bf16.msra.mxu1 %v10308_v53  ;;  %8763 = vmatprep.subr.bf16.mxu0 %v9953_v0 }
  0xfe   :  { %8787 = vmatprep.subr.bf16.mxu1 %v9953_v0 }
 0x100   :  { %8765 = vmatpush3.bf16.msra.mxu0 %v10330_v62 }
 0x101   :  { %8789 = vmatpush3.bf16.msra.mxu1 %v10334_v2  ;;  %8790 = vmatprep.subr.bf16.mxu0 %v9953_v0 }
 0x102   :  { %8814 = vmatprep.subr.bf16.mxu1 %v9953_v0 }
 0x103   :  { %6689 = vmatmul.mubr.f32.vlgmr.msra.gmra.mrb[14].mxu0 %v10538_v47 }
 0x104   :  { %8792 = vmatpush3.bf16.msra.mxu0 %v9999_v4  ;;  %6724 = vmatmul.mubr.f32.vlgmr.msra.gmra.mrb[14].mxu1 %v10629_v15 }
 0x105   :  { %8816 = vmatpush3.bf16.msra.mxu1 %v10014_v9  ;;  %8793 = vmatprep.subr.bf16.mxu0 %v9953_v0 }
 0x106   :  { %8817 = vmatprep.subr.bf16.mxu1 %v9953_v0  ;;  %6758 = vmatprep.mubr.msk.f32.mxu0 %vm9954_vm0, %v9955_v8 }
 0x107   :  { %6793 = vmatprep.mubr.msk.f32.mxu1 %vm9954_vm0, %v9955_v8 }
 0x108   :  { %8795 = vmatpush3.bf16.msra.mxu0 %v10023_v12 }
 0x109   :  { %8819 = vmatpush3.bf16.msra.mxu1 %v10027_v13  ;;  %8796 = vmatprep.subr.bf16.mxu0 %v9953_v0 }
 0x10a   :  { %8820 = vmatprep.subr.bf16.mxu1 %v9953_v0 }
 0x10c   :  { %8798 = vmatpush3.bf16.msra.mxu0 %v10043_v18 }
 0x10d   :  { %8822 = vmatpush3.bf16.msra.mxu1 %v10047_v19  ;;  %8799 = vmatprep.subr.bf16.mxu0 %v9953_v0 }
 0x10e   :  { %8823 = vmatprep.subr.bf16.mxu1 %v9953_v0 }
 0x110   :  { %8801 = vmatpush3.bf16.msra.mxu0 %v10063_v24 }
 0x111   :  { %8825 = vmatpush3.bf16.msra.mxu1 %v10067_v25  ;;  %8802 = vmatprep.subr.bf16.mxu0 %v9953_v0 }
 0x112   :  { %8826 = vmatprep.subr.bf16.mxu1 %v9953_v0 }
 0x114   :  { %8804 = vmatpush3.bf16.msra.mxu0 %v10083_v30 }
 0x115   :  { %8828 = vmatpush3.bf16.msra.mxu1 %v10087_v31  ;;  %8805 = vmatprep.subr.bf16.mxu0 %v9953_v0 }
 0x116   :  { %v302_v20 = vpop.f32.mrb[2].mxu0  ;;  %8829 = vmatprep.subr.bf16.mxu1 %v9953_v0 }
 0x117   :  { %v306_v21 = vadd.f32 %v302_v20, %v208_v59  ;;  %v6270_v22 = vpop.f32.mrb[3].mxu0  ;;  %v397_v60 = vpop.f32.mrb[2].mxu1 }
 0x118   :  { %8807 = vmatpush3.bf16.msra.mxu0 %v10103_v36  ;;  %v6305_v23 = vpop.f32.mrb[3].mxu1  ;;  %v10771_v22 = vld [vmem:[%s11819_s3] ss:$0 sm:$0xff] }
 0x119   :  { %v10659_v28 = vadd.f32 %v397_v60, %v306_v21  ;;  %8831 = vmatpush3.bf16.msra.mxu1 %v10107_v37  ;;  %8808 = vmatprep.subr.bf16.mxu0 %v9953_v0 }
 0x11a   :  { %8832 = vmatprep.subr.bf16.mxu1 %v9953_v0 }
 0x11c   :  { %8810 = vmatpush3.bf16.msra.mxu0 %v10123_v42 }
 0x11d   :  { %8834 = vmatpush3.bf16.msra.mxu1 %v10127_v43  ;;  %8811 = vmatprep.subr.bf16.mxu0 %v9953_v0 }
 0x11e   :  { %8835 = vmatprep.subr.bf16.mxu1 %v9953_v0 }
 0x120   :  { %8813 = vmatpush3.bf16.msra.mxu0 %v10149_v50 }
 0x121   :  { %8837 = vmatpush3.bf16.msra.mxu1 %v10153_v52  ;;  %8838 = vmatprep.subr.bf16.mxu0 %v9953_v0 }
 0x122   :  { %8862 = vmatprep.subr.bf16.mxu1 %v9953_v0 }
 0x123   :  { %6759 = vmatmul.mubr.f32.vlgmr.msra.gmra.mrb[16].mxu0 %v10350_v14 }
 0x124   :  { %6794 = vmatmul.mubr.f32.vlgmr.msra.gmra.mrb[16].mxu1 %v10345_v11  ;;  %8840 = vmatpush3.bf16.msra.mxu0 %v10178_v61 }
 0x125   :  { %8864 = vmatpush3.bf16.msra.mxu1 %v10183_v63  ;;  %8841 = vmatprep.subr.bf16.mxu0 %v9953_v0 }
 0x126   :  { %8865 = vmatprep.subr.bf16.mxu1 %v9953_v0  ;;  %6828 = vmatprep.mubr.msk.f32.mxu0 %vm9954_vm0, %v9955_v8 }
 0x127   :  { %6863 = vmatprep.mubr.msk.f32.mxu1 %vm9954_vm0, %v9955_v8 }
 0x128   :  { %8843 = vmatpush3.bf16.msra.mxu0 %v10200_v6 }
 0x129   :  { %8867 = vmatpush3.bf16.msra.mxu1 %v10204_v7  ;;  %8844 = vmatprep.subr.bf16.mxu0 %v9953_v0 }
 0x12a   :  { %8868 = vmatprep.subr.bf16.mxu1 %v9953_v0 }
 0x12c   :  { %8846 = vmatpush3.bf16.msra.mxu0 %v10224_v16 }
 0x12d   :  { %8870 = vmatpush3.bf16.msra.mxu1 %v10228_v17  ;;  %8847 = vmatprep.subr.bf16.mxu0 %v9953_v0 }
 0x12e   :  { %8871 = vmatprep.subr.bf16.mxu1 %v9953_v0 }
 0x130   :  { %8849 = vmatpush3.bf16.msra.mxu0 %v10244_v26 }
 0x131   :  { %8873 = vmatpush3.bf16.msra.mxu1 %v10248_v27  ;;  %8850 = vmatprep.subr.bf16.mxu0 %v9953_v0 }
 0x132   :  { %8874 = vmatprep.subr.bf16.mxu1 %v9953_v0 }
 0x134   :  { %8852 = vmatpush3.bf16.msra.mxu0 %v10264_v34 }
 0x135   :  { %8876 = vmatpush3.bf16.msra.mxu1 %v10268_v35  ;;  %8853 = vmatprep.subr.bf16.mxu0 %v9953_v0 }
 0x136   :  { %v499_v11 = vpop.f32.mrb[4].mxu0  ;;  %8877 = vmatprep.subr.bf16.mxu1 %v9953_v0 }
 0x137   :  { %v6340_v32 = vpop.f32.mrb[5].mxu0  ;;  %v569_v33 = vpop.f32.mrb[4].mxu1 }
 0x138   :  { %v570_v38 = vadd.f32 %v569_v33, %v499_v11  ;;  %8855 = vmatpush3.bf16.msra.mxu0 %v10284_v44  ;;  %v6375_v39 = vpop.f32.mrb[5].mxu1  ;;  %v10780_v11 = vld [vmem:[%s11820_s4] ss:$0 sm:$0xff] }
 0x139   :  { %8879 = vmatpush3.bf16.msra.mxu1 %v10288_v45  ;;  %8856 = vmatprep.subr.bf16.mxu0 %v9953_v0 }
 0x13a   :  { %8880 = vmatprep.subr.bf16.mxu1 %v9953_v0 }
 0x13c   :  { %8858 = vmatpush3.bf16.msra.mxu0 %v10304_v51 }
 0x13d   :  { %8882 = vmatpush3.bf16.msra.mxu1 %v10308_v53  ;;  %8859 = vmatprep.subr.bf16.mxu0 %v9953_v0 }
 0x13e   :  { %8883 = vmatprep.subr.bf16.mxu1 %v9953_v0 }
 0x140   :  { %8861 = vmatpush3.bf16.msra.mxu0 %v10330_v62 }
 0x141   :  { %8885 = vmatpush3.bf16.msra.mxu1 %v10334_v2  ;;  %8886 = vmatprep.subr.bf16.mxu0 %v9953_v0 }
 0x142   :  { %8910 = vmatprep.subr.bf16.mxu1 %v9953_v0 }
 0x143   :  { %6829 = vmatmul.mubr.f32.vlgmr.msra.gmra.mrb[18].mxu0 %v10720_v55 }
 0x144   :  { %8888 = vmatpush3.bf16.msra.mxu0 %v9999_v4  ;;  %6864 = vmatmul.mubr.f32.vlgmr.msra.gmra.mrb[18].mxu1 %v10725_v56 }
 0x145   :  { %8912 = vmatpush3.bf16.msra.mxu1 %v10014_v9  ;;  %8889 = vmatprep.subr.bf16.mxu0 %v9953_v0 }
 0x146   :  { %8913 = vmatprep.subr.bf16.mxu1 %v9953_v0  ;;  %6898 = vmatprep.mubr.msk.f32.mxu0 %vm9954_vm0, %v9955_v8 }
 0x147   :  { %6933 = vmatprep.mubr.msk.f32.mxu1 %vm9954_vm0, %v9955_v8 }
 0x148   :  { %8891 = vmatpush3.bf16.msra.mxu0 %v10023_v12 }
 0x149   :  { %8915 = vmatpush3.bf16.msra.mxu1 %v10027_v13  ;;  %8892 = vmatprep.subr.bf16.mxu0 %v9953_v0 }
 0x14a   :  { %8916 = vmatprep.subr.bf16.mxu1 %v9953_v0 }
 0x14c   :  { %8894 = vmatpush3.bf16.msra.mxu0 %v10043_v18 }
 0x14d   :  { %8918 = vmatpush3.bf16.msra.mxu1 %v10047_v19  ;;  %8895 = vmatprep.subr.bf16.mxu0 %v9953_v0 }
 0x14e   :  { %8919 = vmatprep.subr.bf16.mxu1 %v9953_v0 }
 0x150   :  { %8897 = vmatpush3.bf16.msra.mxu0 %v10063_v24 }
 0x151   :  { %8921 = vmatpush3.bf16.msra.mxu1 %v10067_v25  ;;  %8898 = vmatprep.subr.bf16.mxu0 %v9953_v0 }
 0x152   :  { %8922 = vmatprep.subr.bf16.mxu1 %v9953_v0 }
 0x154   :  { %8900 = vmatpush3.bf16.msra.mxu0 %v10083_v30 }
 0x155   :  { %8924 = vmatpush3.bf16.msra.mxu1 %v10087_v31  ;;  %8901 = vmatprep.subr.bf16.mxu0 %v9953_v0 }
 0x156   :  { %v639_v57 = vpop.f32.mrb[6].mxu0  ;;  %8925 = vmatprep.subr.bf16.mxu1 %v9953_v0 }
 0x157   :  { %v643_v58 = vadd.f32 %v639_v57, %v570_v38  ;;  %v6410_v59 = vpop.f32.mrb[7].mxu0  ;;  %v717_v1 = vpop.f32.mrb[6].mxu1 }
 0x158   :  { %8903 = vmatpush3.bf16.msra.mxu0 %v10103_v36  ;;  %v6445_v3 = vpop.f32.mrb[7].mxu1 }
 0x159   :  { %v721_v5 = vadd.f32 %v717_v1, %v643_v58  ;;  %8927 = vmatpush3.bf16.msra.mxu1 %v10107_v37  ;;  %8904 = vmatprep.subr.bf16.mxu0 %v9953_v0 }
 0x15a   :  { %8928 = vmatprep.subr.bf16.mxu1 %v9953_v0 }
 0x15b   :  { %v722_v20 = vadd.f32 %v10760_v10, %v721_v5 }
 0x15c   :  { %8906 = vmatpush3.bf16.msra.mxu0 %v10123_v42 }
 0x15d   :  { %v724_v21 = vmul.f32 0.2, %v722_v20  ;;  %8930 = vmatpush3.bf16.msra.mxu1 %v10127_v43  ;;  %8907 = vmatprep.subr.bf16.mxu0 %v9953_v0  ;;  %vm723_vm2 = vcmp.ge.f32.partialorder %v722_v20, 0.0 }
 0x15e   :  { %8931 = vmatprep.subr.bf16.mxu1 %v9953_v0 }
 0x15f   :  { %v725_v60 = vsel %vm723_vm2, %v722_v20, %v724_v21 }
 0x160   :  { %8909 = vmatpush3.bf16.msra.mxu0 %v10149_v50  ;;  %v726_v23 = vmul.f32 %v10771_v22, %v725_v60 }
 0x161   :  { %8933 = vmatpush3.bf16.msra.mxu1 %v10153_v52  ;;  %8934 = vmatprep.subr.bf16.mxu0 %v9953_v0 }
 0x162   :  { %8958 = vmatprep.subr.bf16.mxu1 %v9953_v0  ;;  %v727_v32 = vadd.f32 %v10780_v11, %v726_v23  ;;  %v5055_v23 = vld [vmem:[%s11817_s0 + $0x3b] sm:$0x1] }
 0x163   :  { %6899 = vmatmul.mubr.f32.vlgmr.msra.gmra.mrb[20].mxu0 %v10444_v29 }
 0x164   :  { %6934 = vmatmul.mubr.f32.vlgmr.msra.gmra.mrb[20].mxu1 %v10350_v14  ;;  %8936 = vmatpush3.bf16.msra.mxu0 %v10178_v61 }
 0x165   :  { %4897 = vrot.lane.b32.xlu0 %v727_v32, %s9956_s23  ;;  %8960 = vmatpush3.bf16.msra.mxu1 %v10183_v63  ;;  %v2145_v32 = vrot.slane %v5055_v23, 7  ;;  %v5056_v23 = vld [vmem:[%s11817_s0 + $0x14] sm:$0x1] }
 0x166   :  { %8937 = vmatprep.subr.bf16.mxu0 %v9953_v0  ;;  %8961 = vmatprep.subr.bf16.mxu1 %v9953_v0 }
 0x167   :  { %6968 = vmatprep.mubr.msk.f32.mxu0 %vm9954_vm0, %v9955_v8  ;;  %7003 = vmatprep.mubr.msk.f32.mxu1 %vm9954_vm0, %v9955_v8 }
 0x168   :  { %8939 = vmatpush3.bf16.msra.mxu0 %v10200_v6 }
 0x169   :  { %8963 = vmatpush3.bf16.msra.mxu1 %v10204_v7  ;;  %8940 = vmatprep.subr.bf16.mxu0 %v9953_v0 }
 0x16a   :  { %8964 = vmatprep.subr.bf16.mxu1 %v9953_v0 }
 0x16c   :  { %8942 = vmatpush3.bf16.msra.mxu0 %v10224_v16 }
 0x16d   :  { %8966 = vmatpush3.bf16.msra.mxu1 %v10228_v17  ;;  %8943 = vmatprep.subr.bf16.mxu0 %v9953_v0 }
 0x16e   :  { %8967 = vmatprep.subr.bf16.mxu1 %v9953_v0 }
 0x170   :  { %8945 = vmatpush3.bf16.msra.mxu0 %v10244_v26 }
 0x171   :  { %8969 = vmatpush3.bf16.msra.mxu1 %v10248_v27  ;;  %8946 = vmatprep.subr.bf16.mxu0 %v9953_v0 }
 0x172   :  { %8970 = vmatprep.subr.bf16.mxu1 %v9953_v0 }
 0x174   :  { %8948 = vmatpush3.bf16.msra.mxu0 %v10264_v34 }
 0x175   :  { %8972 = vmatpush3.bf16.msra.mxu1 %v10268_v35  ;;  %8949 = vmatprep.subr.bf16.mxu0 %v9953_v0 }
 0x176   :  { %v801_v14 = vpop.f32.mrb[8].mxu0  ;;  %8973 = vmatprep.subr.bf16.mxu1 %v9953_v0 }
 0x177   :  { %v6480_v33 = vpop.f32.mrb[9].mxu0  ;;  %v871_v38 = vpop.f32.mrb[8].mxu1 }
 0x178   :  { %v872_v39 = vadd.f32 %v871_v38, %v801_v14  ;;  %8951 = vmatpush3.bf16.msra.mxu0 %v10284_v44  ;;  %v6515_v40 = vpop.f32.mrb[9].mxu1  ;;  %v5054_v14 = vld [vmem:[%s11817_s0 + $0x13] sm:$0x1] }
 0x179   :  { %8975 = vmatpush3.bf16.msra.mxu1 %v10288_v45  ;;  %8952 = vmatprep.subr.bf16.mxu0 %v9953_v0  ;;  %v10916_v33 = vsel %vm63_vm1, %v2145_v32, %v5054_v14 }
 0x17a   :  { %8976 = vmatprep.subr.bf16.mxu1 %v9953_v0 }
 0x17c   :  { %8954 = vmatpush3.bf16.msra.mxu0 %v10304_v51 }
 0x17d   :  { %8978 = vmatpush3.bf16.msra.mxu1 %v10308_v53  ;;  %8955 = vmatprep.subr.bf16.mxu0 %v9953_v0 }
 0x17e   :  { %8979 = vmatprep.subr.bf16.mxu1 %v9953_v0 }
 0x180   :  { %8957 = vmatpush3.bf16.msra.mxu0 %v10330_v62 }
 0x181   :  { %8981 = vmatpush3.bf16.msra.mxu1 %v10334_v2  ;;  %8982 = vmatprep.subr.bf16.mxu0 %v9953_v0 }
 0x182   :  { %9006 = vmatprep.subr.bf16.mxu1 %v9953_v0 }
 0x183   :  { %6969 = vmatmul.mubr.f32.vlgmr.msra.gmra.mrb[22].mxu0 %v10725_v56 }
 0x184   :  { %8984 = vmatpush3.bf16.msra.mxu0 %v9999_v4  ;;  %7004 = vmatmul.mubr.f32.vlgmr.msra.gmra.mrb[22].mxu1 %v10829_v49 }
 0x185   :  { %9008 = vmatpush3.bf16.msra.mxu1 %v10014_v9  ;;  %8985 = vmatprep.subr.bf16.mxu0 %v9953_v0 }
 0x186   :  { %9009 = vmatprep.subr.bf16.mxu1 %v9953_v0  ;;  %7038 = vmatprep.mubr.msk.f32.mxu0 %vm9954_vm0, %v9955_v8 }
 0x187   :  { %7073 = vmatprep.mubr.msk.f32.mxu1 %vm9954_vm0, %v9955_v8 }
 0x188   :  { %8987 = vmatpush3.bf16.msra.mxu0 %v10023_v12 }
 0x189   :  { %9011 = vmatpush3.bf16.msra.mxu1 %v10027_v13  ;;  %8988 = vmatprep.subr.bf16.mxu0 %v9953_v0 }
 0x18a   :  { %9012 = vmatprep.subr.bf16.mxu1 %v9953_v0 }
 0x18c   :  { %8990 = vmatpush3.bf16.msra.mxu0 %v10043_v18 }
 0x18d   :  { %9014 = vmatpush3.bf16.msra.mxu1 %v10047_v19  ;;  %8991 = vmatprep.subr.bf16.mxu0 %v9953_v0 }
 0x18e   :  { %9015 = vmatprep.subr.bf16.mxu1 %v9953_v0 }
 0x190   :  { %8993 = vmatpush3.bf16.msra.mxu0 %v10063_v24 }
 0x191   :  { %9017 = vmatpush3.bf16.msra.mxu1 %v10067_v25  ;;  %8994 = vmatprep.subr.bf16.mxu0 %v9953_v0 }
 0x192   :  { %9018 = vmatprep.subr.bf16.mxu1 %v9953_v0 }
 0x194   :  { %8996 = vmatpush3.bf16.msra.mxu0 %v10083_v30 }
 0x195   :  { %9020 = vmatpush3.bf16.msra.mxu1 %v10087_v31  ;;  %8997 = vmatprep.subr.bf16.mxu0 %v9953_v0 }
 0x196   :  { %v941_v54 = vpop.f32.mrb[10].mxu0  ;;  %9021 = vmatprep.subr.bf16.mxu1 %v9953_v0 }
 0x197   :  { %v945_v57 = vadd.f32 %v941_v54, %v872_v39  ;;  %v6550_v58 = vpop.f32.mrb[11].mxu0  ;;  %v1019_v59 = vpop.f32.mrb[10].mxu1 }
 0x198   :  { %8999 = vmatpush3.bf16.msra.mxu0 %v10103_v36  ;;  %v6585_v1 = vpop.f32.mrb[11].mxu1 }
 0x199   :  { %v10859_v3 = vadd.f32 %v1019_v59, %v945_v57  ;;  %9023 = vmatpush3.bf16.msra.mxu1 %v10107_v37  ;;  %9000 = vmatprep.subr.bf16.mxu0 %v9953_v0 }
 0x19a   :  { %9024 = vmatprep.subr.bf16.mxu1 %v9953_v0 }
 0x19c   :  { %9002 = vmatpush3.bf16.msra.mxu0 %v10123_v42 }
 0x19d   :  { %9026 = vmatpush3.bf16.msra.mxu1 %v10127_v43  ;;  %9003 = vmatprep.subr.bf16.mxu0 %v9953_v0 }
 0x19e   :  { %9027 = vmatprep.subr.bf16.mxu1 %v9953_v0 }
 0x1a0   :  { %9005 = vmatpush3.bf16.msra.mxu0 %v10149_v50 }
 0x1a1   :  { %9029 = vmatpush3.bf16.msra.mxu1 %v10153_v52  ;;  %9030 = vmatprep.subr.bf16.mxu0 %v9953_v0 }
 0x1a2   :  { %9054 = vmatprep.subr.bf16.mxu1 %v9953_v0 }
 0x1a3   :  { %7039 = vmatmul.mubr.f32.vlgmr.msra.gmra.mrb[24].mxu0 %v10538_v47 }
 0x1a4   :  { %7074 = vmatmul.mubr.f32.vlgmr.msra.gmra.mrb[24].mxu1 %v10444_v29  ;;  %9032 = vmatpush3.bf16.msra.mxu0 %v10178_v61 }
 0x1a5   :  { %9056 = vmatpush3.bf16.msra.mxu1 %v10183_v63  ;;  %9033 = vmatprep.subr.bf16.mxu0 %v9953_v0 }
 0x1a6   :  { %9057 = vmatprep.subr.bf16.mxu1 %v9953_v0  ;;  %7108 = vmatprep.mubr.msk.f32.mxu0 %vm9954_vm0, %v9955_v8 }
 0x1a7   :  { %7143 = vmatprep.mubr.msk.f32.mxu1 %vm9954_vm0, %v9955_v8 }
 0x1a8   :  { %9035 = vmatpush3.bf16.msra.mxu0 %v10200_v6 }
 0x1a9   :  { %9059 = vmatpush3.bf16.msra.mxu1 %v10204_v7  ;;  %9036 = vmatprep.subr.bf16.mxu0 %v9953_v0 }
 0x1aa   :  { %9060 = vmatprep.subr.bf16.mxu1 %v9953_v0 }
 0x1ac   :  { %9038 = vmatpush3.bf16.msra.mxu0 %v10224_v16 }
 0x1ad   :  { %9062 = vmatpush3.bf16.msra.mxu1 %v10228_v17  ;;  %9039 = vmatprep.subr.bf16.mxu0 %v9953_v0 }
 0x1ae   :  { %9063 = vmatprep.subr.bf16.mxu1 %v9953_v0 }
 0x1b0   :  { %9041 = vmatpush3.bf16.msra.mxu0 %v10244_v26 }
 0x1b1   :  { %9065 = vmatpush3.bf16.msra.mxu1 %v10248_v27  ;;  %9042 = vmatprep.subr.bf16.mxu0 %v9953_v0 }
 0x1b2   :  { %9066 = vmatprep.subr.bf16.mxu1 %v9953_v0 }
 0x1b4   :  { %9044 = vmatpush3.bf16.msra.mxu0 %v10264_v34 }
 0x1b5   :  { %9068 = vmatpush3.bf16.msra.mxu1 %v10268_v35  ;;  %9045 = vmatprep.subr.bf16.mxu0 %v9953_v0 }
 0x1b6   :  { %v1103_v29 = vpop.f32.mrb[12].mxu0  ;;  %9069 = vmatprep.subr.bf16.mxu1 %v9953_v0 }
 0x1b7   :  { %v6620_v5 = vpop.f32.mrb[13].mxu0  ;;  %v1173_v20 = vpop.f32.mrb[12].mxu1 }
 0x1b8   :  { %v1174_v21 = vadd.f32 %v1173_v20, %v1103_v29  ;;  %9047 = vmatpush3.bf16.msra.mxu0 %v10284_v44  ;;  %v6655_v60 = vpop.f32.mrb[13].mxu1 }
 0x1b9   :  { %9071 = vmatpush3.bf16.msra.mxu1 %v10288_v45  ;;  %9048 = vmatprep.subr.bf16.mxu0 %v9953_v0 }
 0x1ba   :  { %9072 = vmatprep.subr.bf16.mxu1 %v9953_v0 }
 0x1bc   :  { %9050 = vmatpush3.bf16.msra.mxu0 %v10304_v51 }
 0x1bd   :  { %9074 = vmatpush3.bf16.msra.mxu1 %v10308_v53  ;;  %9051 = vmatprep.subr.bf16.mxu0 %v9953_v0 }
 0x1be   :  { %9075 = vmatprep.subr.bf16.mxu1 %v9953_v0 }
 0x1c0   :  { %9053 = vmatpush3.bf16.msra.mxu0 %v10330_v62 }
 0x1c1   :  { %9077 = vmatpush3.bf16.msra.mxu1 %v10334_v2  ;;  %9078 = vmatprep.subr.bf16.mxu0 %v9953_v0 }
 0x1c2   :  { %9102 = vmatprep.subr.bf16.mxu1 %v9953_v0 }
 0x1c3   :  { %7109 = vmatmul.mubr.f32.vlgmr.msra.gmra.mrb[26].mxu0 %v10829_v49 }
 0x1c4   :  { %9080 = vmatpush3.bf16.msra.mxu0 %v9999_v4  ;;  %7144 = vmatmul.mubr.f32.vlgmr.msra.gmra.mrb[26].mxu1 %v10916_v33 }
 0x1c5   :  { %9104 = vmatpush3.bf16.msra.mxu1 %v10014_v9  ;;  %9081 = vmatprep.subr.bf16.mxu0 %v9953_v0 }
 0x1c6   :  { %9105 = vmatprep.subr.bf16.mxu1 %v9953_v0  ;;  %7178 = vmatprep.mubr.msk.f32.mxu0 %vm9954_vm0, %v9955_v8 }
 0x1c7   :  { %7213 = vmatprep.mubr.msk.f32.mxu1 %vm9954_vm0, %v9955_v8 }
 0x1c8   :  { %9083 = vmatpush3.bf16.msra.mxu0 %v10023_v12 }
 0x1c9   :  { %9107 = vmatpush3.bf16.msra.mxu1 %v10027_v13  ;;  %9084 = vmatprep.subr.bf16.mxu0 %v9953_v0 }
 0x1ca   :  { %9108 = vmatprep.subr.bf16.mxu1 %v9953_v0 }
 0x1cc   :  { %9086 = vmatpush3.bf16.msra.mxu0 %v10043_v18 }
 0x1cd   :  { %9110 = vmatpush3.bf16.msra.mxu1 %v10047_v19  ;;  %9087 = vmatprep.subr.bf16.mxu0 %v9953_v0 }
 0x1ce   :  { %9111 = vmatprep.subr.bf16.mxu1 %v9953_v0 }
 0x1d0   :  { %9089 = vmatpush3.bf16.msra.mxu0 %v10063_v24 }
 0x1d1   :  { %9113 = vmatpush3.bf16.msra.mxu1 %v10067_v25  ;;  %9090 = vmatprep.subr.bf16.mxu0 %v9953_v0 }
 0x1d2   :  { %9114 = vmatprep.subr.bf16.mxu1 %v9953_v0 }
 0x1d4   :  { %9092 = vmatpush3.bf16.msra.mxu0 %v10083_v30 }
 0x1d5   :  { %9116 = vmatpush3.bf16.msra.mxu1 %v10087_v31  ;;  %9093 = vmatprep.subr.bf16.mxu0 %v9953_v0 }
 0x1d6   :  { %v1243_v38 = vpop.f32.mrb[14].mxu0  ;;  %9117 = vmatprep.subr.bf16.mxu1 %v9953_v0 }
 0x1d7   :  { %v1247_v39 = vadd.f32 %v1243_v38, %v1174_v21  ;;  %v6690_v40 = vpop.f32.mrb[15].mxu0  ;;  %v1321_v41 = vpop.f32.mrb[14].mxu1  ;;  %v5057_v21 = vld [vmem:[%s11817_s0 + $0x3c] sm:$0x1] }
 0x1d8   :  { %9095 = vmatpush3.bf16.msra.mxu0 %v10103_v36  ;;  %v6725_v48 = vpop.f32.mrb[15].mxu1  ;;  %v2440_v60 = vrot.slane %v5057_v21, 7 }
 0x1d9   :  { %v1325_v46 = vadd.f32 %v1321_v41, %v1247_v39  ;;  %9119 = vmatpush3.bf16.msra.mxu1 %v10107_v37  ;;  %9096 = vmatprep.subr.bf16.mxu0 %v9953_v0 }
 0x1da   :  { %9120 = vmatprep.subr.bf16.mxu1 %v9953_v0  ;;  %v11005_v32 = vsel %vm63_vm1, %v2440_v60, %v5056_v23  ;;  %v408_v60 = vadd.f32 %v10760_v10, %v10659_v28  ;;  %v1024_v23 = vadd.f32 %v10760_v10, %v10859_v3 }
 0x1db   :  { %v1326_v54 = vadd.f32 %v10760_v10, %v1325_v46 }
 0x1dc   :  { %9098 = vmatpush3.bf16.msra.mxu0 %v10123_v42  ;;  %vm409_vm4 = vcmp.ge.f32.partialorder %v408_v60, 0.0  ;;  %vm1025_vm5 = vcmp.ge.f32.partialorder %v1024_v23, 0.0 }
 0x1dd   :  { %vm1327_vm3 = vcmp.ge.f32.partialorder %v1326_v54, 0.0  ;;  %v1328_v57 = vmul.f32 0.2, %v1326_v54  ;;  %9122 = vmatpush3.bf16.msra.mxu1 %v10127_v43  ;;  %9099 = vmatprep.subr.bf16.mxu0 %v9953_v0 }
 0x1de   :  { %9123 = vmatprep.subr.bf16.mxu1 %v9953_v0 }
 0x1df   :  { %v1329_v58 = vsel %vm1327_vm3, %v1326_v54, %v1328_v57 }
 0x1e0   :  { %9101 = vmatpush3.bf16.msra.mxu0 %v10149_v50  ;;  %v1330_v59 = vmul.f32 %v10771_v22, %v1329_v58 }
 0x1e1   :  { %9125 = vmatpush3.bf16.msra.mxu1 %v10153_v52  ;;  %9126 = vmatprep.subr.bf16.mxu0 %v9953_v0 }
 0x1e2   :  { %9150 = vmatprep.subr.bf16.mxu1 %v9953_v0  ;;  %v1331_v1 = vadd.f32 %v10780_v11, %v1330_v59  ;;  %v5059_v59 = vld [vmem:[%s11817_s0 + $0x40] sm:$0x1] }
 0x1e3   :  { %7179 = vmatmul.mubr.f32.vlgmr.msra.gmra.mrb[28].mxu0 %v10629_v15 }
 0x1e4   :  { %7214 = vmatmul.mubr.f32.vlgmr.msra.gmra.mrb[28].mxu1 %v10538_v47  ;;  %9128 = vmatpush3.bf16.msra.mxu0 %v10178_v61 }
 0x1e5   :  { %4901 = vrot.lane.b32.xlu0 %v1331_v1, %s9956_s23  ;;  %9152 = vmatpush3.bf16.msra.mxu1 %v10183_v63  ;;  %v5061_v1 = vld [vmem:[%s11817_s0 + $0x41] sm:$0x1] }
 0x1e6   :  { %9129 = vmatprep.subr.bf16.mxu0 %v9953_v0  ;;  %9153 = vmatprep.subr.bf16.mxu1 %v9953_v0 }
 0x1e7   :  { %7248 = vmatprep.mubr.msk.f32.mxu0 %vm9954_vm0, %v9955_v8  ;;  %7283 = vmatprep.mubr.msk.f32.mxu1 %vm9954_vm0, %v9955_v8 }
 0x1e8   :  { %9131 = vmatpush3.bf16.msra.mxu0 %v10200_v6 }
 0x1e9   :  { %9155 = vmatpush3.bf16.msra.mxu1 %v10204_v7  ;;  %9132 = vmatprep.subr.bf16.mxu0 %v9953_v0 }
 0x1ea   :  { %9156 = vmatprep.subr.bf16.mxu1 %v9953_v0 }
 0x1ec   :  { %9134 = vmatpush3.bf16.msra.mxu0 %v10224_v16 }
 0x1ed   :  { %9158 = vmatpush3.bf16.msra.mxu1 %v10228_v17  ;;  %9135 = vmatprep.subr.bf16.mxu0 %v9953_v0 }
 0x1ee   :  { %9159 = vmatprep.subr.bf16.mxu1 %v9953_v0 }
 0x1f0   :  { %9137 = vmatpush3.bf16.msra.mxu0 %v10244_v26 }
 0x1f1   :  { %9161 = vmatpush3.bf16.msra.mxu1 %v10248_v27  ;;  %9138 = vmatprep.subr.bf16.mxu0 %v9953_v0 }
 0x1f2   :  { %9162 = vmatprep.subr.bf16.mxu1 %v9953_v0 }
 0x1f4   :  { %9140 = vmatpush3.bf16.msra.mxu0 %v10264_v34 }
 0x1f5   :  { %9164 = vmatpush3.bf16.msra.mxu1 %v10268_v35  ;;  %9141 = vmatprep.subr.bf16.mxu0 %v9953_v0 }
 0x1f6   :  { %v1398_v47 = vpop.f32.mrb[16].mxu0  ;;  %9165 = vmatprep.subr.bf16.mxu1 %v9953_v0 }
 0x1f7   :  { %v6760_v15 = vpop.f32.mrb[17].mxu0  ;;  %v1468_v29 = vpop.f32.mrb[16].mxu1 }
 0x1f8   :  { %v1469_v5 = vadd.f32 %v1468_v29, %v1398_v47  ;;  %9143 = vmatpush3.bf16.msra.mxu0 %v10284_v44  ;;  %v6795_v20 = vpop.f32.mrb[17].mxu1  ;;  %v2665_v47 = vrot.slane %v5059_v59, 7  ;;  %v5058_v15 = vld [vmem:[%s11817_s0 + $0x18] sm:$0x1]  ;;  %v2743_v29 = vrot.slane %v5061_v1, 7 }
 0x1f9   :  { %9167 = vmatpush3.bf16.msra.mxu1 %v10288_v45  ;;  %9144 = vmatprep.subr.bf16.mxu0 %v9953_v0 }
 0x1fa   :  { %9168 = vmatprep.subr.bf16.mxu1 %v9953_v0  ;;  %v11096_v20 = vsel %vm63_vm1, %v2665_v47, %v5058_v15 }
 0x1fc   :  { %9146 = vmatpush3.bf16.msra.mxu0 %v10304_v51 }
 0x1fd   :  { %9170 = vmatpush3.bf16.msra.mxu1 %v10308_v53  ;;  %9147 = vmatprep.subr.bf16.mxu0 %v9953_v0 }
 0x1fe   :  { %9171 = vmatprep.subr.bf16.mxu1 %v9953_v0 }
 0x200   :  { %9149 = vmatpush3.bf16.msra.mxu0 %v10330_v62 }
 0x201   :  { %9173 = vmatpush3.bf16.msra.mxu1 %v10334_v2  ;;  %9174 = vmatprep.subr.bf16.mxu0 %v9953_v0 }
 0x202   :  { %9198 = vmatprep.subr.bf16.mxu1 %v9953_v0 }
 0x203   :  { %7249 = vmatmul.mubr.f32.vlgmr.msra.gmra.mrb[30].mxu0 %v10916_v33 }
 0x204   :  { %9176 = vmatpush3.bf16.msra.mxu0 %v9999_v4  ;;  %7284 = vmatmul.mubr.f32.vlgmr.msra.gmra.mrb[30].mxu1 %v11005_v32 }
 0x205   :  { %9200 = vmatpush3.bf16.msra.mxu1 %v10014_v9  ;;  %9177 = vmatprep.subr.bf16.mxu0 %v9953_v0 }
 0x206   :  { %9201 = vmatprep.subr.bf16.mxu1 %v9953_v0  ;;  %7318 = vmatprep.mubr.msk.f32.mxu0 %vm9954_vm0, %v9955_v8 }
 0x207   :  { %7353 = vmatprep.mubr.msk.f32.mxu1 %vm9954_vm0, %v9955_v8 }
 0x208   :  { %9179 = vmatpush3.bf16.msra.mxu0 %v10023_v12 }
 0x209   :  { %9203 = vmatpush3.bf16.msra.mxu1 %v10027_v13  ;;  %9180 = vmatprep.subr.bf16.mxu0 %v9953_v0 }
 0x20a   :  { %9204 = vmatprep.subr.bf16.mxu1 %v9953_v0 }
 0x20c   :  { %9182 = vmatpush3.bf16.msra.mxu0 %v10043_v18 }
 0x20d   :  { %9206 = vmatpush3.bf16.msra.mxu1 %v10047_v19  ;;  %9183 = vmatprep.subr.bf16.mxu0 %v9953_v0 }
 0x20e   :  { %9207 = vmatprep.subr.bf16.mxu1 %v9953_v0 }
 0x210   :  { %9185 = vmatpush3.bf16.msra.mxu0 %v10063_v24 }
 0x211   :  { %9209 = vmatpush3.bf16.msra.mxu1 %v10067_v25  ;;  %9186 = vmatprep.subr.bf16.mxu0 %v9953_v0 }
 0x212   :  { %9210 = vmatprep.subr.bf16.mxu1 %v9953_v0 }
 0x214   :  { %9188 = vmatpush3.bf16.msra.mxu0 %v10083_v30 }
 0x215   :  { %9212 = vmatpush3.bf16.msra.mxu1 %v10087_v31  ;;  %9189 = vmatprep.subr.bf16.mxu0 %v9953_v0 }
 0x216   :  { %v1546_v14 = vpop.f32.mrb[18].mxu0  ;;  %9213 = vmatprep.subr.bf16.mxu1 %v9953_v0 }
 0x217   :  { %v1550_v38 = vadd.f32 %v1546_v14, %v1469_v5  ;;  %v6830_v39 = vpop.f32.mrb[19].mxu0  ;;  %v1624_v40 = vpop.f32.mrb[18].mxu1  ;;  %v5060_v5 = vld [vmem:[%s11817_s0 + $0x19] sm:$0x1]  ;;  %v410_v14 = vmul.f32 0.2, %v408_v60 }
 0x218   :  { %9191 = vmatpush3.bf16.msra.mxu0 %v10103_v36  ;;  %v6865_v41 = vpop.f32.mrb[19].mxu1  ;;  %v11101_v21 = vsel %vm63_vm1, %v2743_v29, %v5060_v5 }
 0x219   :  { %v11035_v46 = vadd.f32 %v1624_v40, %v1550_v38  ;;  %9215 = vmatpush3.bf16.msra.mxu1 %v10107_v37  ;;  %9192 = vmatprep.subr.bf16.mxu0 %v9953_v0  ;;  %v1026_v38 = vmul.f32 0.2, %v1024_v23  ;;  %v411_v28 = vsel %vm409_vm4, %v408_v60, %v410_v14  ;;  %v4898_v41 = vpop.permute.xlu0 %4897 }
 0x21a   :  { %9216 = vmatprep.subr.bf16.mxu1 %v9953_v0  ;;  %v418_v39 = vmul.f32 %v10771_v22, %v411_v28 }
 0x21b   :  { %v1027_v3 = vsel %vm1025_vm5, %v1024_v23, %v1026_v38 }
 0x21c   :  { %9194 = vmatpush3.bf16.msra.mxu0 %v10123_v42  ;;  %v1028_v40 = vmul.f32 %v10771_v22, %v1027_v3 }
 0x21d   :  { %9218 = vmatpush3.bf16.msra.mxu1 %v10127_v43  ;;  %9195 = vmatprep.subr.bf16.mxu0 %v9953_v0 }
 0x21e   :  { %9219 = vmatprep.subr.bf16.mxu1 %v9953_v0 }
 0x220   :  { %9197 = vmatpush3.bf16.msra.mxu0 %v10149_v50 }
 0x221   :  { %9221 = vmatpush3.bf16.msra.mxu1 %v10153_v52  ;;  %9222 = vmatprep.subr.bf16.mxu0 %v9953_v0 }
 0x222   :  { %9246 = vmatprep.subr.bf16.mxu1 %v9953_v0 }
 0x223   :  { %7319 = vmatmul.mubr.f32.vlgmr.msra.gmra.mrb[32].mxu0 %v10725_v56 }
 0x224   :  { %7354 = vmatmul.mubr.f32.vlgmr.msra.gmra.mrb[32].mxu1 %v10720_v55  ;;  %9224 = vmatpush3.bf16.msra.mxu0 %v10178_v61 }
 0x225   :  { %9248 = vmatpush3.bf16.msra.mxu1 %v10183_v63  ;;  %9225 = vmatprep.subr.bf16.mxu0 %v9953_v0 }
 0x226   :  { %9249 = vmatprep.subr.bf16.mxu1 %v9953_v0  ;;  %7388 = vmatprep.mubr.msk.f32.mxu0 %vm9954_vm0, %v9955_v8 }
 0x227   :  { %7423 = vmatprep.mubr.msk.f32.mxu1 %vm9954_vm0, %v9955_v8 }
 0x228   :  { %9227 = vmatpush3.bf16.msra.mxu0 %v10200_v6 }
 0x229   :  { %9251 = vmatpush3.bf16.msra.mxu1 %v10204_v7  ;;  %9228 = vmatprep.subr.bf16.mxu0 %v9953_v0 }
 0x22a   :  { %9252 = vmatprep.subr.bf16.mxu1 %v9953_v0 }
 0x22c   :  { %9230 = vmatpush3.bf16.msra.mxu0 %v10224_v16 }
 0x22d   :  { %9254 = vmatpush3.bf16.msra.mxu1 %v10228_v17  ;;  %9231 = vmatprep.subr.bf16.mxu0 %v9953_v0 }
 0x22e   :  { %9255 = vmatprep.subr.bf16.mxu1 %v9953_v0 }
 0x230   :  { %9233 = vmatpush3.bf16.msra.mxu0 %v10244_v26 }
 0x231   :  { %9257 = vmatpush3.bf16.msra.mxu1 %v10248_v27  ;;  %9234 = vmatprep.subr.bf16.mxu0 %v9953_v0 }
 0x232   :  { %9258 = vmatprep.subr.bf16.mxu1 %v9953_v0 }
 0x234   :  { %9236 = vmatpush3.bf16.msra.mxu0 %v10264_v34 }
 0x235   :  { %9260 = vmatpush3.bf16.msra.mxu1 %v10268_v35  ;;  %9237 = vmatprep.subr.bf16.mxu0 %v9953_v0 }
 0x236   :  { %v1701_v55 = vpop.f32.mrb[20].mxu0  ;;  %9261 = vmatprep.subr.bf16.mxu1 %v9953_v0 }
 0x237   :  { %v6900_v48 = vpop.f32.mrb[21].mxu0  ;;  %v1771_v54 = vpop.f32.mrb[20].mxu1 }
 0x238   :  { %v1772_v57 = vadd.f32 %v1771_v54, %v1701_v55  ;;  %9239 = vmatpush3.bf16.msra.mxu0 %v10284_v44  ;;  %v6935_v58 = vpop.f32.mrb[21].mxu1  ;;  %v425_v55 = vadd.f32 %v10780_v11, %v418_v39  ;;  %v1029_v54 = vadd.f32 %v10780_v11, %v1028_v40  ;;  %v5063_v40 = vld [vmem:[%s11817_s0 + $0x42] sm:$0x1] }
 0x239   :  { %9263 = vmatpush3.bf16.msra.mxu1 %v10288_v45  ;;  %9240 = vmatprep.subr.bf16.mxu0 %v9953_v0 }
 0x23a   :  { %9264 = vmatprep.subr.bf16.mxu1 %v9953_v0  ;;  %v11139_v47 = vsel %vm4928_vm6, %v425_v55, %v4898_v41  ;;  %v3038_v41 = vrot.slane %v5063_v40, 7  ;;  %v5062_v55 = vld [vmem:[%s11817_s0 + $0x1a] sm:$0x1] }
 0x23c   :  { %9242 = vmatpush3.bf16.msra.mxu0 %v10304_v51 }
 0x23d   :  { %9266 = vmatpush3.bf16.msra.mxu1 %v10308_v53  ;;  %9243 = vmatprep.subr.bf16.mxu0 %v9953_v0 }
 0x23e   :  { %9267 = vmatprep.subr.bf16.mxu1 %v9953_v0 }
 0x240   :  { %9245 = vmatpush3.bf16.msra.mxu0 %v10330_v62 }
 0x241   :  { %9269 = vmatpush3.bf16.msra.mxu1 %v10334_v2  ;;  %9270 = vmatprep.subr.bf16.mxu0 %v9953_v0 }
 0x242   :  { %9294 = vmatprep.subr.bf16.mxu1 %v9953_v0 }
 0x243   :  { %7389 = vmatmul.mubr.f32.vlgmr.msra.gmra.mrb[34].mxu0 %v11096_v20 }
 0x244   :  { %9272 = vmatpush3.bf16.msra.mxu0 %v9999_v4  ;;  %7424 = vmatmul.mubr.f32.vlgmr.msra.gmra.mrb[34].mxu1 %v11101_v21 }
 0x245   :  { %9296 = vmatpush3.bf16.msra.mxu1 %v10014_v9  ;;  %9273 = vmatprep.subr.bf16.mxu0 %v9953_v0 }
 0x246   :  { %9297 = vmatprep.subr.bf16.mxu1 %v9953_v0  ;;  %7458 = vmatprep.mubr.msk.f32.mxu0 %vm9954_vm0, %v9955_v8 }
 0x247   :  { %7493 = vmatprep.mubr.msk.f32.mxu1 %vm9954_vm0, %v9955_v8 }
 0x248   :  { %9275 = vmatpush3.bf16.msra.mxu0 %v10023_v12 }
 0x249   :  { %9299 = vmatpush3.bf16.msra.mxu1 %v10027_v13  ;;  %9276 = vmatprep.subr.bf16.mxu0 %v9953_v0 }
 0x24a   :  { %9300 = vmatprep.subr.bf16.mxu1 %v9953_v0 }
 0x24c   :  { %9278 = vmatpush3.bf16.msra.mxu0 %v10043_v18 }
 0x24d   :  { %9302 = vmatpush3.bf16.msra.mxu1 %v10047_v19  ;;  %9279 = vmatprep.subr.bf16.mxu0 %v9953_v0 }
 0x24e   :  { %9303 = vmatprep.subr.bf16.mxu1 %v9953_v0 }
 0x250   :  { %9281 = vmatpush3.bf16.msra.mxu0 %v10063_v24 }
 0x251   :  { %9305 = vmatpush3.bf16.msra.mxu1 %v10067_v25  ;;  %9282 = vmatprep.subr.bf16.mxu0 %v9953_v0 }
 0x252   :  { %9306 = vmatprep.subr.bf16.mxu1 %v9953_v0 }
 0x254   :  { %9284 = vmatpush3.bf16.msra.mxu0 %v10083_v30 }
 0x255   :  { %9308 = vmatpush3.bf16.msra.mxu1 %v10087_v31  ;;  %9285 = vmatprep.subr.bf16.mxu0 %v9953_v0 }
 0x256   :  { %v1841_v48 = vpop.f32.mrb[22].mxu0  ;;  %9309 = vmatprep.subr.bf16.mxu1 %v9953_v0 }
 0x257   :  { %v1845_v58 = vadd.f32 %v1841_v48, %v1772_v57  ;;  %v4902_v59 = vpop.permute.xlu0 %4901  ;;  %v6970_v1 = vpop.f32.mrb[23].mxu0  ;;  %v11206_v48 = vsel %vm63_vm1, %v3038_v41, %v5062_v55 }
 0x258   :  { %v11142_v15 = vsel %vm4928_vm6, %v1029_v54, %v4902_v59  ;;  %v1919_v29 = vpop.f32.mrb[22].mxu1  ;;  %9287 = vmatpush3.bf16.msra.mxu0 %v10103_v36 }
 0x259   :  { %v4945_v5 = vcombine.low %v11139_v47, %v11142_v15  ;;  %v1923_v60 = vadd.f32 %v1919_v29, %v1845_v58  ;;  %v7005_v23 = vpop.f32.mrb[23].mxu1  ;;  %9311 = vmatpush3.bf16.msra.mxu1 %v10107_v37  ;;  %9288 = vmatprep.subr.bf16.mxu0 %v9953_v0 }
 0x25a   :  { %9312 = vmatprep.subr.bf16.mxu1 %v9953_v0 }
 0x25b   :  { %v1924_v57 = vadd.f32 %v10760_v10, %v1923_v60 }
 0x25c   :  { %9290 = vmatpush3.bf16.msra.mxu0 %v10123_v42 }
 0x25d   :  { %v1926_v14 = vmul.f32 0.2, %v1924_v57  ;;  %9314 = vmatpush3.bf16.msra.mxu1 %v10127_v43  ;;  %9291 = vmatprep.subr.bf16.mxu0 %v9953_v0  ;;  %vm1925_vm7 = vcmp.ge.f32.partialorder %v1924_v57, 0.0 }
 0x25e   :  { %9315 = vmatprep.subr.bf16.mxu1 %v9953_v0 }
 0x25f   :  { %v1927_v38 = vsel %vm1925_vm7, %v1924_v57, %v1926_v14 }
 0x260   :  { %9293 = vmatpush3.bf16.msra.mxu0 %v10149_v50  ;;  %v1928_v28 = vmul.f32 %v10771_v22, %v1927_v38 }
 0x261   :  { %9317 = vmatpush3.bf16.msra.mxu1 %v10153_v52  ;;  %9318 = vmatprep.subr.bf16.mxu0 %v9953_v0 }
 0x262   :  { %9342 = vmatprep.subr.bf16.mxu1 %v9953_v0  ;;  %v1929_v10 = vadd.f32 %v10780_v11, %v1928_v28  ;;  %v5065_v28 = vld [vmem:[%s11817_s0 + $0x43] sm:$0x1] }
 0x263   :  { %7459 = vmatmul.mubr.f32.vlgmr.msra.gmra.mrb[36].mxu0 %v10829_v49 }
 0x264   :  { %7494 = vmatmul.mubr.f32.vlgmr.msra.gmra.mrb[36].mxu1 %v10725_v56  ;;  %9320 = vmatpush3.bf16.msra.mxu0 %v10178_v61 }
 0x265   :  { %4905 = vrot.lane.b32.xlu1 %v1929_v10, %s9956_s23  ;;  %9344 = vmatpush3.bf16.msra.mxu1 %v10183_v63  ;;  %v3333_v10 = vrot.slane %v5065_v28, 7 }
 0x266   :  { %9321 = vmatprep.subr.bf16.mxu0 %v9953_v0  ;;  %9345 = vmatprep.subr.bf16.mxu1 %v9953_v0 }
 0x267   :  { %7528 = vmatprep.mubr.msk.f32.mxu0 %vm9954_vm0, %v9955_v8  ;;  %7563 = vmatprep.mubr.msk.f32.mxu1 %vm9954_vm0, %v9955_v8 }
 0x268   :  { %9323 = vmatpush3.bf16.msra.mxu0 %v10200_v6 }
 0x269   :  { %9347 = vmatpush3.bf16.msra.mxu1 %v10204_v7  ;;  %9324 = vmatprep.subr.bf16.mxu0 %v9953_v0 }
 0x26a   :  { %9348 = vmatprep.subr.bf16.mxu1 %v9953_v0 }
 0x26c   :  { %9326 = vmatpush3.bf16.msra.mxu0 %v10224_v16 }
 0x26d   :  { %9350 = vmatpush3.bf16.msra.mxu1 %v10228_v17  ;;  %9327 = vmatprep.subr.bf16.mxu0 %v9953_v0 }
 0x26e   :  { %9351 = vmatprep.subr.bf16.mxu1 %v9953_v0 }
 0x270   :  { %9329 = vmatpush3.bf16.msra.mxu0 %v10244_v26 }
 0x271   :  { %9353 = vmatpush3.bf16.msra.mxu1 %v10248_v27  ;;  %9330 = vmatprep.subr.bf16.mxu0 %v9953_v0 }
 0x272   :  { %9354 = vmatprep.subr.bf16.mxu1 %v9953_v0 }
 0x274   :  { %9332 = vmatpush3.bf16.msra.mxu0 %v10264_v34 }
 0x275   :  { %9356 = vmatpush3.bf16.msra.mxu1 %v10268_v35  ;;  %9333 = vmatprep.subr.bf16.mxu0 %v9953_v0 }
 0x276   :  { %v1996_v56 = vpop.f32.mrb[24].mxu0  ;;  %9357 = vmatprep.subr.bf16.mxu1 %v9953_v0 }
 0x277   :  { %v7040_v22 = vpop.f32.mrb[25].mxu0  ;;  %v2066_v11 = vpop.f32.mrb[24].mxu1 }
 0x278   :  { %v2067_v3 = vadd.f32 %v2066_v11, %v1996_v56  ;;  %9335 = vmatpush3.bf16.msra.mxu0 %v10284_v44  ;;  %v7075_v39 = vpop.f32.mrb[25].mxu1  ;;  %v5064_v56 = vld [vmem:[%s11817_s0 + $0x1b] sm:$0x1] }
 0x279   :  { %9359 = vmatpush3.bf16.msra.mxu1 %v10288_v45  ;;  %9336 = vmatprep.subr.bf16.mxu0 %v9953_v0  ;;  %v11293_v22 = vsel %vm63_vm1, %v3333_v10, %v5064_v56  ;;  %v5067_v10 = vld [vmem:[%s11817_s0 + $0x44] sm:$0x1] }
 0x27a   :  { %9360 = vmatprep.subr.bf16.mxu1 %v9953_v0  ;;  %v3628_v56 = vrot.slane %v5067_v10, 7 }
 0x27c   :  { %9338 = vmatpush3.bf16.msra.mxu0 %v10304_v51 }
 0x27d   :  { %9362 = vmatpush3.bf16.msra.mxu1 %v10308_v53  ;;  %9339 = vmatprep.subr.bf16.mxu0 %v9953_v0 }
 0x27e   :  { %9363 = vmatprep.subr.bf16.mxu1 %v9953_v0 }
 0x280   :  { %9341 = vmatpush3.bf16.msra.mxu0 %v10330_v62 }
 0x281   :  { %9365 = vmatpush3.bf16.msra.mxu1 %v10334_v2  ;;  %9366 = vmatprep.subr.bf16.mxu0 %v9953_v0 }
 0x282   :  { %9390 = vmatprep.subr.bf16.mxu1 %v9953_v0 }
 0x283   :  { %7529 = vmatmul.mubr.f32.vlgmr.msra.gmra.mrb[38].mxu0 %v11101_v21 }
 0x284   :  { %9368 = vmatpush3.bf16.msra.mxu0 %v9999_v4  ;;  %7564 = vmatmul.mubr.f32.vlgmr.msra.gmra.mrb[38].mxu1 %v11206_v48 }
 0x285   :  { %9392 = vmatpush3.bf16.msra.mxu1 %v10014_v9  ;;  %9369 = vmatprep.subr.bf16.mxu0 %v9953_v0 }
 0x286   :  { %9393 = vmatprep.subr.bf16.mxu1 %v9953_v0  ;;  %7598 = vmatprep.mubr.msk.f32.mxu0 %vm9954_vm0, %v9955_v8 }
 0x287   :  { %7633 = vmatprep.mubr.msk.f32.mxu1 %vm9954_vm0, %v9955_v8 }
 0x288   :  { %9371 = vmatpush3.bf16.msra.mxu0 %v10023_v12 }
 0x289   :  { %9395 = vmatpush3.bf16.msra.mxu1 %v10027_v13  ;;  %9372 = vmatprep.subr.bf16.mxu0 %v9953_v0 }
 0x28a   :  { %9396 = vmatprep.subr.bf16.mxu1 %v9953_v0 }
 0x28c   :  { %9374 = vmatpush3.bf16.msra.mxu0 %v10043_v18 }
 0x28d   :  { %9398 = vmatpush3.bf16.msra.mxu1 %v10047_v19  ;;  %9375 = vmatprep.subr.bf16.mxu0 %v9953_v0 }
 0x28e   :  { %9399 = vmatprep.subr.bf16.mxu1 %v9953_v0 }
 0x290   :  { %9377 = vmatpush3.bf16.msra.mxu0 %v10063_v24 }
 0x291   :  { %9401 = vmatpush3.bf16.msra.mxu1 %v10067_v25  ;;  %9378 = vmatprep.subr.bf16.mxu0 %v9953_v0 }
 0x292   :  { %9402 = vmatprep.subr.bf16.mxu1 %v9953_v0 }
 0x294   :  { %9380 = vmatpush3.bf16.msra.mxu0 %v10083_v30 }
 0x295   :  { %9404 = vmatpush3.bf16.msra.mxu1 %v10087_v31  ;;  %9381 = vmatprep.subr.bf16.mxu0 %v9953_v0 }
 0x296   :  { %v2136_v54 = vpop.f32.mrb[26].mxu0  ;;  %9405 = vmatprep.subr.bf16.mxu1 %v9953_v0 }
 0x297   :  { %v2140_v58 = vadd.f32 %v2136_v54, %v2067_v3  ;;  %v7110_v59 = vpop.f32.mrb[27].mxu0  ;;  %v2214_v1 = vpop.f32.mrb[26].mxu1  ;;  %v11329_v54 = vld [vmem:[%s11818_s2] ss:$0 sm:$0xff] }
 0x298   :  { %9383 = vmatpush3.bf16.msra.mxu0 %v10103_v36  ;;  %v7145_v29 = vpop.f32.mrb[27].mxu1 }
 0x299   :  { %v11236_v60 = vadd.f32 %v2214_v1, %v2140_v58  ;;  %9407 = vmatpush3.bf16.msra.mxu1 %v10107_v37  ;;  %9384 = vmatprep.subr.bf16.mxu0 %v9953_v0  ;;  %v11340_v29 = vld [vmem:[%s11819_s3] ss:$0 sm:$0xff] }
 0x29a   :  { %9408 = vmatprep.subr.bf16.mxu1 %v9953_v0 }
 0x29c   :  { %9386 = vmatpush3.bf16.msra.mxu0 %v10123_v42 }
 0x29d   :  { %9410 = vmatpush3.bf16.msra.mxu1 %v10127_v43  ;;  %9387 = vmatprep.subr.bf16.mxu0 %v9953_v0 }
 0x29e   :  { %9411 = vmatprep.subr.bf16.mxu1 %v9953_v0 }
 0x2a0   :  { %9389 = vmatpush3.bf16.msra.mxu0 %v10149_v50 }
 0x2a1   :  { %9413 = vmatpush3.bf16.msra.mxu1 %v10153_v52  ;;  %9414 = vmatprep.subr.bf16.mxu0 %v9953_v0 }
 0x2a2   :  { %9438 = vmatprep.subr.bf16.mxu1 %v9953_v0 }
 0x2a3   :  { %7599 = vmatmul.mubr.f32.vlgmr.msra.gmra.mrb[40].mxu0 %v10916_v33 }
 0x2a4   :  { %7634 = vmatmul.mubr.f32.vlgmr.msra.gmra.mrb[40].mxu1 %v10829_v49  ;;  %9416 = vmatpush3.bf16.msra.mxu0 %v10178_v61 }
 0x2a5   :  { %9440 = vmatpush3.bf16.msra.mxu1 %v10183_v63  ;;  %9417 = vmatprep.subr.bf16.mxu0 %v9953_v0 }
 0x2a6   :  { %9441 = vmatprep.subr.bf16.mxu1 %v9953_v0  ;;  %7668 = vmatprep.mubr.msk.f32.mxu0 %vm9954_vm0, %v9955_v8 }
 0x2a7   :  { %7703 = vmatprep.mubr.msk.f32.mxu1 %vm9954_vm0, %v9955_v8 }
 0x2a8   :  { %9419 = vmatpush3.bf16.msra.mxu0 %v10200_v6 }
 0x2a9   :  { %9443 = vmatpush3.bf16.msra.mxu1 %v10204_v7  ;;  %9420 = vmatprep.subr.bf16.mxu0 %v9953_v0 }
 0x2aa   :  { %9444 = vmatprep.subr.bf16.mxu1 %v9953_v0 }
 0x2ac   :  { %9422 = vmatpush3.bf16.msra.mxu0 %v10224_v16 }
 0x2ad   :  { %9446 = vmatpush3.bf16.msra.mxu1 %v10228_v17  ;;  %9423 = vmatprep.subr.bf16.mxu0 %v9953_v0 }
 0x2ae   :  { %9447 = vmatprep.subr.bf16.mxu1 %v9953_v0 }
 0x2b0   :  { %9425 = vmatpush3.bf16.msra.mxu0 %v10244_v26 }
 0x2b1   :  { %9449 = vmatpush3.bf16.msra.mxu1 %v10248_v27  ;;  %9426 = vmatprep.subr.bf16.mxu0 %v9953_v0 }
 0x2b2   :  { %9450 = vmatprep.subr.bf16.mxu1 %v9953_v0 }
 0x2b4   :  { %9428 = vmatpush3.bf16.msra.mxu0 %v10264_v34 }
 0x2b5   :  { %9452 = vmatpush3.bf16.msra.mxu1 %v10268_v35  ;;  %9429 = vmatprep.subr.bf16.mxu0 %v9953_v0 }
 0x2b6   :  { %v2291_v49 = vpop.f32.mrb[28].mxu0  ;;  %9453 = vmatprep.subr.bf16.mxu1 %v9953_v0 }
 0x2b7   :  { %v7180_v23 = vpop.f32.mrb[29].mxu0  ;;  %v2361_v57 = vpop.f32.mrb[28].mxu1 }
 0x2b8   :  { %v2362_v14 = vadd.f32 %v2361_v57, %v2291_v49  ;;  %9431 = vmatpush3.bf16.msra.mxu0 %v10284_v44  ;;  %v7215_v38 = vpop.f32.mrb[29].mxu1  ;;  %v11349_v23 = vld [vmem:[%s11820_s4] ss:$0 sm:$0xff] }
 0x2b9   :  { %9455 = vmatpush3.bf16.msra.mxu1 %v10288_v45  ;;  %9432 = vmatprep.subr.bf16.mxu0 %v9953_v0 }
 0x2ba   :  { %9456 = vmatprep.subr.bf16.mxu1 %v9953_v0 }
 0x2bc   :  { %9434 = vmatpush3.bf16.msra.mxu0 %v10304_v51 }
 0x2bd   :  { %9458 = vmatpush3.bf16.msra.mxu1 %v10308_v53  ;;  %9435 = vmatprep.subr.bf16.mxu0 %v9953_v0 }
 0x2be   :  { %9459 = vmatprep.subr.bf16.mxu1 %v9953_v0 }
 0x2c0   :  { %9437 = vmatpush3.bf16.msra.mxu0 %v10330_v62 }
 0x2c1   :  { %9461 = vmatpush3.bf16.msra.mxu1 %v10334_v2  ;;  %9462 = vmatprep.subr.bf16.mxu0 %v9953_v0 }
 0x2c2   :  { %9486 = vmatprep.subr.bf16.mxu1 %v9953_v0 }
 0x2c3   :  { %7669 = vmatmul.mubr.f32.vlgmr.msra.gmra.mrb[42].mxu0 %v11206_v48 }
 0x2c4   :  { %9464 = vmatpush3.bf16.msra.mxu0 %v9999_v4  ;;  %7704 = vmatmul.mubr.f32.vlgmr.msra.gmra.mrb[42].mxu1 %v11293_v22 }
 0x2c5   :  { %9488 = vmatpush3.bf16.msra.mxu1 %v10014_v9  ;;  %9465 = vmatprep.subr.bf16.mxu0 %v9953_v0 }
 0x2c6   :  { %9489 = vmatprep.subr.bf16.mxu1 %v9953_v0  ;;  %7738 = vmatprep.mubr.msk.f32.mxu0 %vm9954_vm0, %v9955_v8 }
 0x2c7   :  { %7773 = vmatprep.mubr.msk.f32.mxu1 %vm9954_vm0, %v9955_v8 }
 0x2c8   :  { %9467 = vmatpush3.bf16.msra.mxu0 %v10023_v12 }
 0x2c9   :  { %9491 = vmatpush3.bf16.msra.mxu1 %v10027_v13  ;;  %9468 = vmatprep.subr.bf16.mxu0 %v9953_v0 }
 0x2ca   :  { %9492 = vmatprep.subr.bf16.mxu1 %v9953_v0 }
 0x2cc   :  { %9470 = vmatpush3.bf16.msra.mxu0 %v10043_v18 }
 0x2cd   :  { %9494 = vmatpush3.bf16.msra.mxu1 %v10047_v19  ;;  %9471 = vmatprep.subr.bf16.mxu0 %v9953_v0 }
 0x2ce   :  { %9495 = vmatprep.subr.bf16.mxu1 %v9953_v0 }
 0x2d0   :  { %9473 = vmatpush3.bf16.msra.mxu0 %v10063_v24 }
 0x2d1   :  { %9497 = vmatpush3.bf16.msra.mxu1 %v10067_v25  ;;  %9474 = vmatprep.subr.bf16.mxu0 %v9953_v0 }
 0x2d2   :  { %9498 = vmatprep.subr.bf16.mxu1 %v9953_v0 }
 0x2d4   :  { %9476 = vmatpush3.bf16.msra.mxu0 %v10083_v30 }
 0x2d5   :  { %9500 = vmatpush3.bf16.msra.mxu1 %v10087_v31  ;;  %9477 = vmatprep.subr.bf16.mxu0 %v9953_v0 }
 0x2d6   :  { %v2431_v11 = vpop.f32.mrb[30].mxu0  ;;  %9501 = vmatprep.subr.bf16.mxu1 %v9953_v0 }
 0x2d7   :  { %v2435_v3 = vadd.f32 %v2431_v11, %v2362_v14  ;;  %v7250_v39 = vpop.f32.mrb[31].mxu0  ;;  %v2509_v40 = vpop.f32.mrb[30].mxu1  ;;  %v5066_v11 = vld [vmem:[%s11817_s0 + $0x1c] sm:$0x1] }
 0x2d8   :  { %9479 = vmatpush3.bf16.msra.mxu0 %v10103_v36  ;;  %v7285_v55 = vpop.f32.mrb[31].mxu1 }
 0x2d9   :  { %v2513_v41 = vadd.f32 %v2509_v40, %v2435_v3  ;;  %9503 = vmatpush3.bf16.msra.mxu1 %v10107_v37  ;;  %9480 = vmatprep.subr.bf16.mxu0 %v9953_v0  ;;  %v11397_v3 = vsel %vm63_vm1, %v3628_v56, %v5066_v11  ;;  %v5070_v56 = vld [vmem:[%s11817_s0 + $0x21] sm:$0x1] }
 0x2da   :  { %9504 = vmatprep.subr.bf16.mxu1 %v9953_v0 }
 0x2db   :  { %v2514_v58 = vadd.f32 %v11329_v54, %v2513_v41 }
 0x2dc   :  { %9482 = vmatpush3.bf16.msra.mxu0 %v10123_v42 }
 0x2dd   :  { %vm2515_vm8 = vcmp.ge.f32.partialorder %v2514_v58, 0.0  ;;  %v2516_v59 = vmul.f32 0.2, %v2514_v58  ;;  %9506 = vmatpush3.bf16.msra.mxu1 %v10127_v43  ;;  %9483 = vmatprep.subr.bf16.mxu0 %v9953_v0 }
 0x2de   :  { %9507 = vmatprep.subr.bf16.mxu1 %v9953_v0 }
 0x2df   :  { %v2517_v1 = vsel %vm2515_vm8, %v2514_v58, %v2516_v59 }
 0x2e0   :  { %9485 = vmatpush3.bf16.msra.mxu0 %v10149_v50  ;;  %v2518_v49 = vmul.f32 %v11340_v29, %v2517_v1 }
 0x2e1   :  { %9509 = vmatpush3.bf16.msra.mxu1 %v10153_v52  ;;  %9510 = vmatprep.subr.bf16.mxu0 %v9953_v0 }
 0x2e2   :  { %9534 = vmatprep.subr.bf16.mxu1 %v9953_v0  ;;  %v2519_v57 = vadd.f32 %v11349_v23, %v2518_v49 }
 0x2e3   :  { %7739 = vmatmul.mubr.f32.vlgmr.msra.gmra.mrb[44].mxu0 %v11005_v32 }
 0x2e4   :  { %7774 = vmatmul.mubr.f32.vlgmr.msra.gmra.mrb[44].mxu1 %v10916_v33  ;;  %9512 = vmatpush3.bf16.msra.mxu0 %v10178_v61 }
 0x2e5   :  { %4909 = vrot.lane.b32.xlu1 %v2519_v57, %s9956_s23  ;;  %9536 = vmatpush3.bf16.msra.mxu1 %v10183_v63 }
 0x2e6   :  { %9513 = vmatprep.subr.bf16.mxu0 %v9953_v0  ;;  %9537 = vmatprep.subr.bf16.mxu1 %v9953_v0 }
 0x2e7   :  { %7808 = vmatprep.mubr.msk.f32.mxu0 %vm9954_vm0, %v9955_v8  ;;  %7843 = vmatprep.mubr.msk.f32.mxu1 %vm9954_vm0, %v9955_v8 }
 0x2e8   :  { %9515 = vmatpush3.bf16.msra.mxu0 %v10200_v6 }
 0x2e9   :  { %9539 = vmatpush3.bf16.msra.mxu1 %v10204_v7  ;;  %9516 = vmatprep.subr.bf16.mxu0 %v9953_v0 }
 0x2ea   :  { %9540 = vmatprep.subr.bf16.mxu1 %v9953_v0 }
 0x2ec   :  { %9518 = vmatpush3.bf16.msra.mxu0 %v10224_v16 }
 0x2ed   :  { %9542 = vmatpush3.bf16.msra.mxu1 %v10228_v17  ;;  %9519 = vmatprep.subr.bf16.mxu0 %v9953_v0 }
 0x2ee   :  { %9543 = vmatprep.subr.bf16.mxu1 %v9953_v0 }
 0x2f0   :  { %9521 = vmatpush3.bf16.msra.mxu0 %v10244_v26 }
 0x2f1   :  { %9545 = vmatpush3.bf16.msra.mxu1 %v10248_v27  ;;  %9522 = vmatprep.subr.bf16.mxu0 %v9953_v0 }
 0x2f2   :  { %9546 = vmatprep.subr.bf16.mxu1 %v9953_v0 }
 0x2f4   :  { %9524 = vmatpush3.bf16.msra.mxu0 %v10264_v34 }
 0x2f5   :  { %9548 = vmatpush3.bf16.msra.mxu1 %v10268_v35  ;;  %9525 = vmatprep.subr.bf16.mxu0 %v9953_v0 }
 0x2f6   :  { %v2586_v33 = vpop.f32.mrb[32].mxu0  ;;  %9549 = vmatprep.subr.bf16.mxu1 %v9953_v0 }
 0x2f7   :  { %v7320_v32 = vpop.f32.mrb[33].mxu0  ;;  %v2656_v14 = vpop.f32.mrb[32].mxu1 }
 0x2f8   :  { %v2657_v38 = vadd.f32 %v2656_v14, %v2586_v33  ;;  %9527 = vmatpush3.bf16.msra.mxu0 %v10284_v44  ;;  %v7355_v28 = vpop.f32.mrb[33].mxu1  ;;  %v5069_v32 = vld [vmem:[%s11817_s0 + $0x48] sm:$0x1]  ;;  %v5071_v14 = vld [vmem:[%s11817_s0 + $0x49] sm:$0x1] }
 0x2f9   :  { %9551 = vmatpush3.bf16.msra.mxu1 %v10288_v45  ;;  %9528 = vmatprep.subr.bf16.mxu0 %v9953_v0  ;;  %v5068_v28 = vld [vmem:[%s11817_s0 + $0x20] sm:$0x1]  ;;  %v3931_v10 = vrot.slane %v5071_v14, 7 }
 0x2fa   :  { %9552 = vmatprep.subr.bf16.mxu1 %v9953_v0 }
 0x2fc   :  { %9530 = vmatpush3.bf16.msra.mxu0 %v10304_v51 }
 0x2fd   :  { %9554 = vmatpush3.bf16.msra.mxu1 %v10308_v53  ;;  %9531 = vmatprep.subr.bf16.mxu0 %v9953_v0 }
 0x2fe   :  { %9555 = vmatprep.subr.bf16.mxu1 %v9953_v0 }
 0x300   :  { %9533 = vmatpush3.bf16.msra.mxu0 %v10330_v62 }
 0x301   :  { %9557 = vmatpush3.bf16.msra.mxu1 %v10334_v2  ;;  %9558 = vmatprep.subr.bf16.mxu0 %v9953_v0 }
 0x302   :  { %9582 = vmatprep.subr.bf16.mxu1 %v9953_v0 }
 0x303   :  { %7809 = vmatmul.mubr.f32.vlgmr.msra.gmra.mrb[46].mxu0 %v11293_v22 }
 0x304   :  { %9560 = vmatpush3.bf16.msra.mxu0 %v9999_v4  ;;  %7844 = vmatmul.mubr.f32.vlgmr.msra.gmra.mrb[46].mxu1 %v11397_v3 }
 0x305   :  { %9584 = vmatpush3.bf16.msra.mxu1 %v10014_v9  ;;  %9561 = vmatprep.subr.bf16.mxu0 %v9953_v0 }
 0x306   :  { %9585 = vmatprep.subr.bf16.mxu1 %v9953_v0  ;;  %7878 = vmatprep.mubr.msk.f32.mxu0 %vm9954_vm0, %v9955_v8 }
 0x307   :  { %7913 = vmatprep.mubr.msk.f32.mxu1 %vm9954_vm0, %v9955_v8 }
 0x308   :  { %9563 = vmatpush3.bf16.msra.mxu0 %v10023_v12 }
 0x309   :  { %9587 = vmatpush3.bf16.msra.mxu1 %v10027_v13  ;;  %9564 = vmatprep.subr.bf16.mxu0 %v9953_v0 }
 0x30a   :  { %9588 = vmatprep.subr.bf16.mxu1 %v9953_v0 }
 0x30c   :  { %9566 = vmatpush3.bf16.msra.mxu0 %v10043_v18 }
 0x30d   :  { %9590 = vmatpush3.bf16.msra.mxu1 %v10047_v19  ;;  %9567 = vmatprep.subr.bf16.mxu0 %v9953_v0 }
 0x30e   :  { %9591 = vmatprep.subr.bf16.mxu1 %v9953_v0 }
 0x310   :  { %9569 = vmatpush3.bf16.msra.mxu0 %v10063_v24 }
 0x311   :  { %9593 = vmatpush3.bf16.msra.mxu1 %v10067_v25  ;;  %9570 = vmatprep.subr.bf16.mxu0 %v9953_v0 }
 0x312   :  { %9594 = vmatprep.subr.bf16.mxu1 %v9953_v0 }
 0x314   :  { %9572 = vmatpush3.bf16.msra.mxu0 %v10083_v30 }
 0x315   :  { %9596 = vmatpush3.bf16.msra.mxu1 %v10087_v31  ;;  %9573 = vmatprep.subr.bf16.mxu0 %v9953_v0 }
 0x316   :  { %v2734_v39 = vpop.f32.mrb[34].mxu0  ;;  %9597 = vmatprep.subr.bf16.mxu1 %v9953_v0 }
 0x317   :  { %v2738_v40 = vadd.f32 %v2734_v39, %v2657_v38  ;;  %v7390_v41 = vpop.f32.mrb[35].mxu0  ;;  %v2812_v55 = vpop.f32.mrb[34].mxu1  ;;  %v3853_v38 = vrot.slane %v5069_v32, 7  ;;  %v11493_v39 = vsel %vm63_vm1, %v3931_v10, %v5070_v56 }
 0x318   :  { %9575 = vmatpush3.bf16.msra.mxu0 %v10103_v36  ;;  %v7425_v58 = vpop.f32.mrb[35].mxu1  ;;  %v2219_v41 = vadd.f32 %v11329_v54, %v11236_v60  ;;  %v9957_v60 = vmov 1983009808  }
 0x319   :  { %v11427_v59 = vadd.f32 %v2812_v55, %v2738_v40  ;;  %9599 = vmatpush3.bf16.msra.mxu1 %v10107_v37  ;;  %9576 = vmatprep.subr.bf16.mxu0 %v9953_v0  ;;  %v3854_v11 = vsel %vm63_vm1, %v3853_v38, %v5068_v28  ;;  %v1629_v40 = vadd.f32 %v11329_v54, %v11035_v46  ;;  %v4906_v28 = vpop.permute.xlu1 %4905 }
 0x31a   :  { %9600 = vmatprep.subr.bf16.mxu1 %v9953_v0  ;;  %v2221_v58 = vmul.f32 0.2, %v2219_v41  ;;  %vm2220_vm10 = vcmp.ge.f32.partialorder %v2219_v41, 0.0 }
 0x31b   :  { %v1631_v55 = vmul.f32 0.2, %v1629_v40  ;;  %vm1630_vm9 = vcmp.ge.f32.partialorder %v1629_v40, 0.0 }
 0x31c   :  { %9578 = vmatpush3.bf16.msra.mxu0 %v10123_v42 }
 0x31d   :  { %9602 = vmatpush3.bf16.msra.mxu1 %v10127_v43  ;;  %9579 = vmatprep.subr.bf16.mxu0 %v9953_v0  ;;  %v1632_v46 = vsel %vm1630_vm9, %v1629_v40, %v1631_v55 }
 0x31e   :  { %9603 = vmatprep.subr.bf16.mxu1 %v9953_v0 }
 0x320   :  { %9581 = vmatpush3.bf16.msra.mxu0 %v10149_v50 }
 0x321   :  { %9605 = vmatpush3.bf16.msra.mxu1 %v10153_v52  ;;  %9606 = vmatprep.subr.bf16.mxu0 %v9953_v0 }
 0x322   :  { %9630 = vmatprep.subr.bf16.mxu1 %v9953_v0 }
 0x323   :  { %7879 = vmatmul.mubr.f32.vlgmr.msra.gmra.mrb[48].mxu0 %v11101_v21 }
 0x324   :  { %7914 = vmatmul.mubr.f32.vlgmr.msra.gmra.mrb[48].mxu1 %v11096_v20  ;;  %9608 = vmatpush3.bf16.msra.mxu0 %v10178_v61 }
 0x325   :  { %9632 = vmatpush3.bf16.msra.mxu1 %v10183_v63  ;;  %9609 = vmatprep.subr.bf16.mxu0 %v9953_v0 }
 0x326   :  { %9633 = vmatprep.subr.bf16.mxu1 %v9953_v0  ;;  %7948 = vmatprep.mubr.msk.f32.mxu0 %vm9954_vm0, %v9955_v8 }
 0x327   :  { %7983 = vmatprep.mubr.msk.f32.mxu1 %vm9954_vm0, %v9955_v8 }
 0x328   :  { %9611 = vmatpush3.bf16.msra.mxu0 %v10200_v6 }
 0x329   :  { %9635 = vmatpush3.bf16.msra.mxu1 %v10204_v7  ;;  %9612 = vmatprep.subr.bf16.mxu0 %v9953_v0 }
 0x32a   :  { %9636 = vmatprep.subr.bf16.mxu1 %v9953_v0 }
 0x32c   :  { %9614 = vmatpush3.bf16.msra.mxu0 %v10224_v16 }
 0x32d   :  { %9638 = vmatpush3.bf16.msra.mxu1 %v10228_v17  ;;  %9615 = vmatprep.subr.bf16.mxu0 %v9953_v0 }
 0x32e   :  { %9639 = vmatprep.subr.bf16.mxu1 %v9953_v0 }
 0x330   :  { %9617 = vmatpush3.bf16.msra.mxu0 %v10244_v26 }
 0x331   :  { %9641 = vmatpush3.bf16.msra.mxu1 %v10248_v27  ;;  %9618 = vmatprep.subr.bf16.mxu0 %v9953_v0 }
 0x332   :  { %9642 = vmatprep.subr.bf16.mxu1 %v9953_v0 }
 0x334   :  { %9620 = vmatpush3.bf16.msra.mxu0 %v10264_v34 }
 0x335   :  { %9644 = vmatpush3.bf16.msra.mxu1 %v10268_v35  ;;  %9621 = vmatprep.subr.bf16.mxu0 %v9953_v0 }
 0x336   :  { %v2889_v20 = vpop.f32.mrb[36].mxu0  ;;  %9645 = vmatprep.subr.bf16.mxu1 %v9953_v0 }
 0x337   :  { %v7460_v1 = vpop.f32.mrb[37].mxu0  ;;  %v2959_v49 = vpop.f32.mrb[36].mxu1 }
 0x338   :  { %v11466_v57 = vadd.f32 %v2959_v49, %v2889_v20  ;;  %9623 = vmatpush3.bf16.msra.mxu0 %v10284_v44  ;;  %v7495_v33 = vpop.f32.mrb[37].mxu1  ;;  %v4948_v20 = vunpack.c.l.s4 %v9957_v60  ;;  %v4950_v1 = vlaneseq  ;;  %v2222_v49 = vsel %vm2220_vm10, %v2219_v41, %v2221_v58 }
 0x339   :  { %9647 = vmatpush3.bf16.msra.mxu1 %v10288_v45  ;;  %9624 = vmatprep.subr.bf16.mxu0 %v9953_v0  ;;  %v1633_v33 = vmul.f32 %v11340_v29, %v1632_v46  ;;  %v2223_v32 = vmul.f32 %v11340_v29, %v2222_v49 }
 0x33a   :  { %9648 = vmatprep.subr.bf16.mxu1 %v9953_v0  ;;  %v4949_v14 = vunpack.c.0.s8 %v4948_v20  ;;  %v4951_v38 = vshrl.u32 %v4950_v1, 7 }
 0x33b   :  { %v1634_v10 = vadd.f32 %v11349_v23, %v1633_v33 }
 0x33c   :  { %9626 = vmatpush3.bf16.msra.mxu0 %v10304_v51  ;;  %v11529_v40 = vsub.s32 %v4949_v14, %v4951_v38 }
 0x33d   :  { %9650 = vmatpush3.bf16.msra.mxu1 %v10308_v53  ;;  %9627 = vmatprep.subr.bf16.mxu0 %v9953_v0  ;;  %v4931_v46 = vsel %vm4928_vm6, %v1634_v10, %v4906_v28 }
 0x33e   :  { %9651 = vmatprep.subr.bf16.mxu1 %v9953_v0 }
 0x340   :  { %9629 = vmatpush3.bf16.msra.mxu0 %v10330_v62 }
 0x341   :  { %9653 = vmatpush3.bf16.msra.mxu1 %v10334_v2  ;;  %9654 = vmatprep.subr.bf16.mxu0 %v9953_v0 }
 0x342   :  { %9678 = vmatprep.subr.bf16.mxu1 %v9953_v0 }
 0x343   :  { %7949 = vmatmul.mubr.f32.vlgmr.msra.gmra.mrb[50].mxu0 %v3854_v11  ;;  %v2224_v11 = vadd.f32 %v11349_v23, %v2223_v32 }
 0x344   :  { %9656 = vmatpush3.bf16.msra.mxu0 %v9999_v4  ;;  %7984 = vmatmul.mubr.f32.vlgmr.msra.gmra.mrb[50].mxu1 %v11493_v39 }
 0x345   :  { %9680 = vmatpush3.bf16.msra.mxu1 %v10014_v9  ;;  %9657 = vmatprep.subr.bf16.mxu0 %v9953_v0 }
 0x346   :  { %9681 = vmatprep.subr.bf16.mxu1 %v9953_v0  ;;  %8018 = vmatprep.mubr.msk.f32.mxu0 %vm9954_vm0, %v9955_v8 }
 0x347   :  { %8053 = vmatprep.mubr.msk.f32.mxu1 %vm9954_vm0, %v9955_v8 }
 0x348   :  { %9659 = vmatpush3.bf16.msra.mxu0 %v10023_v12 }
 0x349   :  { %9683 = vmatpush3.bf16.msra.mxu1 %v10027_v13  ;;  %9660 = vmatprep.subr.bf16.mxu0 %v9953_v0 }
 0x34a   :  { %9684 = vmatprep.subr.bf16.mxu1 %v9953_v0 }
 0x34c   :  { %9662 = vmatpush3.bf16.msra.mxu0 %v10043_v18 }
 0x34d   :  { %9686 = vmatpush3.bf16.msra.mxu1 %v10047_v19  ;;  %9663 = vmatprep.subr.bf16.mxu0 %v9953_v0 }
 0x34e   :  { %9687 = vmatprep.subr.bf16.mxu1 %v9953_v0 }
 0x350   :  { %9665 = vmatpush3.bf16.msra.mxu0 %v10063_v24 }
 0x351   :  { %9689 = vmatpush3.bf16.msra.mxu1 %v10067_v25  ;;  %9666 = vmatprep.subr.bf16.mxu0 %v9953_v0 }
 0x352   :  { %9690 = vmatprep.subr.bf16.mxu1 %v9953_v0 }
 0x354   :  { %9668 = vmatpush3.bf16.msra.mxu0 %v10083_v30 }
 0x355   :  { %9692 = vmatpush3.bf16.msra.mxu1 %v10087_v31  ;;  %9669 = vmatprep.subr.bf16.mxu0 %v9953_v0 }
 0x356   :  { %v3029_v56 = vpop.f32.mrb[38].mxu0  ;;  %9693 = vmatprep.subr.bf16.mxu1 %v9953_v0 }
 0x357   :  { %v3033_v41 = vadd.f32 %v3029_v56, %v11466_v57  ;;  %v4910_v55 = vpop.permute.xlu1 %4909  ;;  %v7530_v58 = vpop.f32.mrb[39].mxu0  ;;  %v4953_v57 = vrot.slane %v4945_v5, %v11529_v40 }
 0x358   :  { %v4932_v60 = vsel %vm4928_vm6, %v2224_v11, %v4910_v55  ;;  %v3107_v20 = vpop.f32.mrb[38].mxu1  ;;  %9671 = vmatpush3.bf16.msra.mxu0 %v10103_v36  ;;  %v5073_v55 = vld [vmem:[%s11817_s0 + $0x4a] sm:$0x1] }
 0x359   :  { %v4946_v1 = vcombine.low %v4931_v46, %v4932_v60  ;;  %v3111_v49 = vadd.f32 %v3107_v20, %v3033_v41  ;;  %v7565_v33 = vpop.f32.mrb[39].mxu1  ;;  %9695 = vmatpush3.bf16.msra.mxu1 %v10107_v37  ;;  %9672 = vmatprep.subr.bf16.mxu0 %v9953_v0  ;;  %v4226_v58 = vrot.slane %v5073_v55, 7  ;;  %v5072_v46 = vld [vmem:[%s11817_s0 + $0x22] sm:$0x1] }
 0x35a   :  { %9696 = vmatprep.subr.bf16.mxu1 %v9953_v0 }
 0x35b   :  { %v4960_v32 = vrot.slane %v4946_v1, %v11529_v40  ;;  %v3112_v14 = vadd.f32 %v11329_v54, %v3111_v49  ;;  %v11602_v60 = vsel %vm63_vm1, %v4226_v58, %v5072_v46 }
 0x35c   :  { %9674 = vmatpush3.bf16.msra.mxu0 %v10123_v42 }
 0x35d   :  { %v4961_v38 = vcombine.low %v4953_v57, %v4960_v32  ;;  %vm3113_vm11 = vcmp.ge.f32.partialorder %v3112_v14, 0.0  ;;  %v3114_v28 = vmul.f32 0.2, %v3112_v14  ;;  %9698 = vmatpush3.bf16.msra.mxu1 %v10127_v43  ;;  %9675 = vmatprep.subr.bf16.mxu0 %v9953_v0 }
 0x35e   :  { %9699 = vmatprep.subr.bf16.mxu1 %v9953_v0 }
 0x35f   :  { %4981 = vst [vmem:[%s11821_s5] sm:$0xff] %v4961_v38  ;;  %v3115_v47 = vsel %vm3113_vm11, %v3112_v14, %v3114_v28 }
 0x360   :  { %9677 = vmatpush3.bf16.msra.mxu0 %v10149_v50  ;;  %v3116_v15 = vmul.f32 %v11340_v29, %v3115_v47  ;;  %v5075_v47 = vld [vmem:[%s11817_s0 + $0x4b] sm:$0x1] }
 0x361   :  { %9701 = vmatpush3.bf16.msra.mxu1 %v10153_v52  ;;  %9702 = vmatprep.subr.bf16.mxu0 %v9953_v0 }
 0x362   :  { %9726 = vmatprep.subr.bf16.mxu1 %v9953_v0  ;;  %v3117_v5 = vadd.f32 %v11349_v23, %v3116_v15  ;;  %v4521_v15 = vrot.slane %v5075_v47, 7 }
 0x363   :  { %8019 = vmatmul.mubr.f32.vlgmr.msra.gmra.mrb[52].mxu0 %v11206_v48 }
 0x364   :  { %8054 = vmatmul.mubr.f32.vlgmr.msra.gmra.mrb[52].mxu1 %v11101_v21  ;;  %9704 = vmatpush3.bf16.msra.mxu0 %v10178_v61 }
 0x365   :  { %4913 = vrot.lane.b32.xlu0 %v3117_v5, %s9956_s23  ;;  %9728 = vmatpush3.bf16.msra.mxu1 %v10183_v63  ;;  %v5074_v5 = vld [vmem:[%s11817_s0 + $0x23] sm:$0x1] }
 0x366   :  { %9705 = vmatprep.subr.bf16.mxu0 %v9953_v0  ;;  %9729 = vmatprep.subr.bf16.mxu1 %v9953_v0 }
 0x367   :  { %8088 = vmatprep.mubr.msk.f32.mxu0 %vm9954_vm0, %v9955_v8  ;;  %8123 = vmatprep.mubr.msk.f32.mxu1 %vm9954_vm0, %v9955_v8 }
 0x368   :  { %9707 = vmatpush3.bf16.msra.mxu0 %v10200_v6 }
 0x369   :  { %9731 = vmatpush3.bf16.msra.mxu1 %v10204_v7  ;;  %9708 = vmatprep.subr.bf16.mxu0 %v9953_v0 }
 0x36a   :  { %9732 = vmatprep.subr.bf16.mxu1 %v9953_v0 }
 0x36c   :  { %9710 = vmatpush3.bf16.msra.mxu0 %v10224_v16 }
 0x36d   :  { %9734 = vmatpush3.bf16.msra.mxu1 %v10228_v17  ;;  %9711 = vmatprep.subr.bf16.mxu0 %v9953_v0 }
 0x36e   :  { %9735 = vmatprep.subr.bf16.mxu1 %v9953_v0 }
 0x370   :  { %9713 = vmatpush3.bf16.msra.mxu0 %v10244_v26 }
 0x371   :  { %9737 = vmatpush3.bf16.msra.mxu1 %v10248_v27  ;;  %9714 = vmatprep.subr.bf16.mxu0 %v9953_v0 }
 0x372   :  { %9738 = vmatprep.subr.bf16.mxu1 %v9953_v0 }
 0x374   :  { %9716 = vmatpush3.bf16.msra.mxu0 %v10264_v34 }
 0x375   :  { %9740 = vmatpush3.bf16.msra.mxu1 %v10268_v35  ;;  %9717 = vmatprep.subr.bf16.mxu0 %v9953_v0 }
 0x376   :  { %v3184_v21 = vpop.f32.mrb[40].mxu0  ;;  %9741 = vmatprep.subr.bf16.mxu1 %v9953_v0 }
 0x377   :  { %v7600_v10 = vpop.f32.mrb[41].mxu0  ;;  %v3254_v56 = vpop.f32.mrb[40].mxu1 }
 0x378   :  { %v3255_v11 = vadd.f32 %v3254_v56, %v3184_v21  ;;  %9719 = vmatpush3.bf16.msra.mxu0 %v10284_v44  ;;  %v7635_v41 = vpop.f32.mrb[41].mxu1  ;;  %v11689_v21 = vsel %vm63_vm1, %v4521_v15, %v5074_v5 }
 0x379   :  { %9743 = vmatpush3.bf16.msra.mxu1 %v10288_v45  ;;  %9720 = vmatprep.subr.bf16.mxu0 %v9953_v0 }
 0x37a   :  { %9744 = vmatprep.subr.bf16.mxu1 %v9953_v0 }
 0x37c   :  { %9722 = vmatpush3.bf16.msra.mxu0 %v10304_v51 }
 0x37d   :  { %9746 = vmatpush3.bf16.msra.mxu1 %v10308_v53  ;;  %9723 = vmatprep.subr.bf16.mxu0 %v9953_v0 }
 0x37e   :  { %9747 = vmatprep.subr.bf16.mxu1 %v9953_v0 }
 0x380   :  { %9725 = vmatpush3.bf16.msra.mxu0 %v10330_v62 }
 0x381   :  { %9749 = vmatpush3.bf16.msra.mxu1 %v10334_v2  ;;  %9750 = vmatprep.subr.bf16.mxu0 %v9953_v0 }
 0x382   :  { %9774 = vmatprep.subr.bf16.mxu1 %v9953_v0 }
 0x383   :  { %8089 = vmatmul.mubr.f32.vlgmr.msra.gmra.mrb[54].mxu0 %v11493_v39 }
 0x384   :  { %9752 = vmatpush3.bf16.msra.mxu0 %v9999_v4  ;;  %8124 = vmatmul.mubr.f32.vlgmr.msra.gmra.mrb[54].mxu1 %v11602_v60 }
 0x385   :  { %9776 = vmatpush3.bf16.msra.mxu1 %v10014_v9  ;;  %9753 = vmatprep.subr.bf16.mxu0 %v9953_v0 }
 0x386   :  { %9777 = vmatprep.subr.bf16.mxu1 %v9953_v0  ;;  %8158 = vmatprep.mubr.msk.f32.mxu0 %vm9954_vm0, %v9955_v8 }
 0x387   :  { %8193 = vmatprep.mubr.msk.f32.mxu1 %vm9954_vm0, %v9955_v8 }
 0x388   :  { %9755 = vmatpush3.bf16.msra.mxu0 %v10023_v12 }
 0x389   :  { %9779 = vmatpush3.bf16.msra.mxu1 %v10027_v13  ;;  %9756 = vmatprep.subr.bf16.mxu0 %v9953_v0 }
 0x38a   :  { %9780 = vmatprep.subr.bf16.mxu1 %v9953_v0 }
 0x38c   :  { %9758 = vmatpush3.bf16.msra.mxu0 %v10043_v18 }
 0x38d   :  { %9782 = vmatpush3.bf16.msra.mxu1 %v10047_v19  ;;  %9759 = vmatprep.subr.bf16.mxu0 %v9953_v0 }
 0x38e   :  { %9783 = vmatprep.subr.bf16.mxu1 %v9953_v0 }
 0x390   :  { %9761 = vmatpush3.bf16.msra.mxu0 %v10063_v24 }
 0x391   :  { %9785 = vmatpush3.bf16.msra.mxu1 %v10067_v25  ;;  %9762 = vmatprep.subr.bf16.mxu0 %v9953_v0 }
 0x392   :  { %9786 = vmatprep.subr.bf16.mxu1 %v9953_v0 }
 0x394   :  { %9764 = vmatpush3.bf16.msra.mxu0 %v10083_v30 }
 0x395   :  { %9788 = vmatpush3.bf16.msra.mxu1 %v10087_v31  ;;  %9765 = vmatprep.subr.bf16.mxu0 %v9953_v0 }
 0x396   :  { %v3324_v39 = vpop.f32.mrb[42].mxu0  ;;  %9789 = vmatprep.subr.bf16.mxu1 %v9953_v0 }
 0x397   :  { %v3328_v20 = vadd.f32 %v3324_v39, %v3255_v11  ;;  %v7670_v1 = vpop.f32.mrb[43].mxu0  ;;  %v3402_v49 = vpop.f32.mrb[42].mxu1 }
 0x398   :  { %9767 = vmatpush3.bf16.msra.mxu0 %v10103_v36  ;;  %v7705_v33 = vpop.f32.mrb[43].mxu1 }
 0x399   :  { %v11632_v57 = vadd.f32 %v3402_v49, %v3328_v20  ;;  %9791 = vmatpush3.bf16.msra.mxu1 %v10107_v37  ;;  %9768 = vmatprep.subr.bf16.mxu0 %v9953_v0 }
 0x39a   :  { %9792 = vmatprep.subr.bf16.mxu1 %v9953_v0 }
 0x39c   :  { %9770 = vmatpush3.bf16.msra.mxu0 %v10123_v42 }
 0x39d   :  { %9794 = vmatpush3.bf16.msra.mxu1 %v10127_v43  ;;  %9771 = vmatprep.subr.bf16.mxu0 %v9953_v0 }
 0x39e   :  { %9795 = vmatprep.subr.bf16.mxu1 %v9953_v0 }
 0x3a0   :  { %9773 = vmatpush3.bf16.msra.mxu0 %v10149_v50 }
 0x3a1   :  { %9797 = vmatpush3.bf16.msra.mxu1 %v10153_v52  ;;  %9798 = vmatprep.subr.bf16.mxu0 %v9953_v0 }
 0x3a2   :  { %9822 = vmatprep.subr.bf16.mxu1 %v9953_v0 }
 0x3a3   :  { %8159 = vmatmul.mubr.f32.vlgmr.msra.gmra.mrb[56].mxu0 %v11293_v22 }
 0x3a4   :  { %8194 = vmatmul.mubr.f32.vlgmr.msra.gmra.mrb[56].mxu1 %v11206_v48  ;;  %9800 = vmatpush3.bf16.msra.mxu0 %v10178_v61 }
 0x3a5   :  { %9824 = vmatpush3.bf16.msra.mxu1 %v10183_v63  ;;  %9801 = vmatprep.subr.bf16.mxu0 %v9953_v0 }
 0x3a6   :  { %9825 = vmatprep.subr.bf16.mxu1 %v9953_v0  ;;  %8228 = vmatprep.mubr.msk.f32.mxu0 %vm9954_vm0, %v9955_v8 }
 0x3a7   :  { %8263 = vmatprep.mubr.msk.f32.mxu1 %vm9954_vm0, %v9955_v8 }
 0x3a8   :  { %9803 = vmatpush3.bf16.msra.mxu0 %v10200_v6 }
 0x3a9   :  { %9827 = vmatpush3.bf16.msra.mxu1 %v10204_v7  ;;  %9804 = vmatprep.subr.bf16.mxu0 %v9953_v0 }
 0x3aa   :  { %9828 = vmatprep.subr.bf16.mxu1 %v9953_v0 }
 0x3ac   :  { %9806 = vmatpush3.bf16.msra.mxu0 %v10224_v16 }
 0x3ad   :  { %9830 = vmatpush3.bf16.msra.mxu1 %v10228_v17  ;;  %9807 = vmatprep.subr.bf16.mxu0 %v9953_v0 }
 0x3ae   :  { %9831 = vmatprep.subr.bf16.mxu1 %v9953_v0 }
 0x3b0   :  { %9809 = vmatpush3.bf16.msra.mxu0 %v10244_v26 }
 0x3b1   :  { %9833 = vmatpush3.bf16.msra.mxu1 %v10248_v27  ;;  %9810 = vmatprep.subr.bf16.mxu0 %v9953_v0 }
 0x3b2   :  { %9834 = vmatprep.subr.bf16.mxu1 %v9953_v0 }
 0x3b4   :  { %9812 = vmatpush3.bf16.msra.mxu0 %v10264_v34 }
 0x3b5   :  { %9836 = vmatpush3.bf16.msra.mxu1 %v10268_v35  ;;  %9813 = vmatprep.subr.bf16.mxu0 %v9953_v0 }
 0x3b6   :  { %v3479_v48 = vpop.f32.mrb[44].mxu0  ;;  %9837 = vmatprep.subr.bf16.mxu1 %v9953_v0 }
 0x3b7   :  { %v7740_v32 = vpop.f32.mrb[45].mxu0  ;;  %v3549_v14 = vpop.f32.mrb[44].mxu1 }
 0x3b8   :  { %v3550_v38 = vadd.f32 %v3549_v14, %v3479_v48  ;;  %9815 = vmatpush3.bf16.msra.mxu0 %v10284_v44  ;;  %v7775_v28 = vpop.f32.mrb[45].mxu1 }
 0x3b9   :  { %9839 = vmatpush3.bf16.msra.mxu1 %v10288_v45  ;;  %9816 = vmatprep.subr.bf16.mxu0 %v9953_v0 }
 0x3ba   :  { %9840 = vmatprep.subr.bf16.mxu1 %v9953_v0 }
 0x3bc   :  { %9818 = vmatpush3.bf16.msra.mxu0 %v10304_v51 }
 0x3bd   :  { %9842 = vmatpush3.bf16.msra.mxu1 %v10308_v53  ;;  %9819 = vmatprep.subr.bf16.mxu0 %v9953_v0 }
 0x3be   :  { %9843 = vmatprep.subr.bf16.mxu1 %v9953_v0 }
 0x3c0   :  { %9821 = vmatpush3.bf16.msra.mxu0 %v10330_v62 }
 0x3c1   :  { %9845 = vmatpush3.bf16.msra.mxu1 %v10334_v2  ;;  %9846 = vmatprep.subr.bf16.mxu0 %v9953_v0 }
 0x3c2   :  { %9870 = vmatprep.subr.bf16.mxu1 %v9953_v0 }
 0x3c3   :  { %8229 = vmatmul.mubr.f32.vlgmr.msra.gmra.mrb[58].mxu0 %v11602_v60 }
 0x3c4   :  { %9848 = vmatpush3.bf16.msra.mxu0 %v9999_v4  ;;  %8264 = vmatmul.mubr.f32.vlgmr.msra.gmra.mrb[58].mxu1 %v11689_v21 }
 0x3c5   :  { %9872 = vmatpush3.bf16.msra.mxu1 %v10014_v9  ;;  %9849 = vmatprep.subr.bf16.mxu0 %v9953_v0 }
 0x3c6   :  { %9873 = vmatprep.subr.bf16.mxu1 %v9953_v0  ;;  %8298 = vmatprep.mubr.msk.f32.mxu0 %vm9954_vm0, %v9955_v8 }
 0x3c7   :  { %8333 = vmatprep.mubr.msk.f32.mxu1 %vm9954_vm0, %v9955_v8 }
 0x3c8   :  { %9851 = vmatpush3.bf16.msra.mxu0 %v10023_v12 }
 0x3c9   :  { %9875 = vmatpush3.bf16.msra.mxu1 %v10027_v13  ;;  %9852 = vmatprep.subr.bf16.mxu0 %v9953_v0 }
 0x3ca   :  { %9876 = vmatprep.subr.bf16.mxu1 %v9953_v0 }
 0x3cc   :  { %9854 = vmatpush3.bf16.msra.mxu0 %v10043_v18 }
 0x3cd   :  { %9878 = vmatpush3.bf16.msra.mxu1 %v10047_v19  ;;  %9855 = vmatprep.subr.bf16.mxu0 %v9953_v0 }
 0x3ce   :  { %9879 = vmatprep.subr.bf16.mxu1 %v9953_v0 }
 0x3d0   :  { %9857 = vmatpush3.bf16.msra.mxu0 %v10063_v24 }
 0x3d1   :  { %9881 = vmatpush3.bf16.msra.mxu1 %v10067_v25  ;;  %9858 = vmatprep.subr.bf16.mxu0 %v9953_v0 }
 0x3d2   :  { %9882 = vmatprep.subr.bf16.mxu1 %v9953_v0 }
 0x3d4   :  { %9860 = vmatpush3.bf16.msra.mxu0 %v10083_v30 }
 0x3d5   :  { %9884 = vmatpush3.bf16.msra.mxu1 %v10087_v31  ;;  %9861 = vmatprep.subr.bf16.mxu0 %v9953_v0 }
 0x3d6   :  { %v3619_v4 = vpop.f32.mrb[46].mxu0  ;;  %9885 = vmatprep.subr.bf16.mxu1 %v9953_v0 }
 0x3d7   :  { %v3623_v9 = vadd.f32 %v3619_v4, %v3550_v38  ;;  %v7810_v12 = vpop.f32.mrb[47].mxu0  ;;  %v3697_v13 = vpop.f32.mrb[46].mxu1 }
 0x3d8   :  { %9863 = vmatpush3.bf16.msra.mxu0 %v10103_v36  ;;  %v7845_v19 = vpop.f32.mrb[47].mxu1  ;;  %v4914_v41 = vpop.permute.xlu0 %4913 }
 0x3d9   :  { %v3701_v18 = vadd.f32 %v3697_v13, %v3623_v9  ;;  %9887 = vmatpush3.bf16.msra.mxu1 %v10107_v37  ;;  %9864 = vmatprep.subr.bf16.mxu0 %v9953_v0 }
 0x3da   :  { %9888 = vmatprep.subr.bf16.mxu1 %v9953_v0 }
 0x3db   :  { %v3702_v24 = vadd.f32 %v11329_v54, %v3701_v18 }
 0x3dc   :  { %9866 = vmatpush3.bf16.msra.mxu0 %v10123_v42 }
 0x3dd   :  { %vm3703_vm12 = vcmp.ge.f32.partialorder %v3702_v24, 0.0  ;;  %v3704_v25 = vmul.f32 0.2, %v3702_v24  ;;  %9890 = vmatpush3.bf16.msra.mxu1 %v10127_v43  ;;  %9867 = vmatprep.subr.bf16.mxu0 %v9953_v0 }
 0x3de   :  { %9891 = vmatprep.subr.bf16.mxu1 %v9953_v0 }
 0x3df   :  { %v3705_v30 = vsel %vm3703_vm12, %v3702_v24, %v3704_v25 }
 0x3e0   :  { %9869 = vmatpush3.bf16.msra.mxu0 %v10149_v50  ;;  %v3706_v31 = vmul.f32 %v11340_v29, %v3705_v30 }
 0x3e1   :  { %9893 = vmatpush3.bf16.msra.mxu1 %v10153_v52  ;;  %9894 = vmatprep.subr.bf16.mxu0 %v9953_v0  ;;  %v5077_v52 = vld [vmem:[%s11817_s0 + $0x4c] sm:$0x1] }
 0x3e2   :  { %9918 = vmatprep.subr.bf16.mxu1 %v9953_v0  ;;  %v3707_v36 = vadd.f32 %v11349_v23, %v3706_v31 }
 0x3e3   :  { %8299 = vmatmul.mubr.f32.vlgmr.msra.gmra.mrb[60].mxu0 %v11397_v3 }
 0x3e4   :  { %8334 = vmatmul.mubr.f32.vlgmr.msra.gmra.mrb[60].mxu1 %v11293_v22  ;;  %9896 = vmatpush3.bf16.msra.mxu0 %v10178_v61  ;;  %v4816_v61 = vrot.slane %v5077_v52, 7 }
 0x3e5   :  { %4917 = vrot.lane.b32.xlu1 %v3707_v36, %s9956_s23  ;;  %9920 = vmatpush3.bf16.msra.mxu1 %v10183_v63  ;;  %v5076_v63 = vld [vmem:[%s11817_s0 + $0x24] sm:$0x1] }
 0x3e6   :  { %9897 = vmatprep.subr.bf16.mxu0 %v9953_v0  ;;  %9921 = vmatprep.subr.bf16.mxu1 %v9953_v0 }
 0x3e7   :  { %8368 = vmatprep.mubr.msk.f32.mxu0 %vm9954_vm0, %v9955_v8  ;;  %8403 = vmatprep.mubr.msk.f32.mxu1 %vm9954_vm0, %v9955_v8 }
 0x3e8   :  { %9899 = vmatpush3.bf16.msra.mxu0 %v10200_v6  ;;  %v4817_v6 = vsel %vm63_vm1, %v4816_v61, %v5076_v63  ;;  %v9950_v61 = vld [vmem:[%s11818_s2] ss:$0 sm:$0xff] }
 0x3e9   :  { %9923 = vmatpush3.bf16.msra.mxu1 %v10204_v7  ;;  %9900 = vmatprep.subr.bf16.mxu0 %v9953_v0 }
 0x3ea   :  { %9924 = vmatprep.subr.bf16.mxu1 %v9953_v0 }
 0x3ec   :  { %9902 = vmatpush3.bf16.msra.mxu0 %v10224_v16 }
 0x3ed   :  { %9926 = vmatpush3.bf16.msra.mxu1 %v10228_v17  ;;  %9903 = vmatprep.subr.bf16.mxu0 %v9953_v0 }
 0x3ee   :  { %9927 = vmatprep.subr.bf16.mxu1 %v9953_v0 }
 0x3f0   :  { %9905 = vmatpush3.bf16.msra.mxu0 %v10244_v26 }
 0x3f1   :  { %9929 = vmatpush3.bf16.msra.mxu1 %v10248_v27  ;;  %9906 = vmatprep.subr.bf16.mxu0 %v9953_v0 }
 0x3f2   :  { %9930 = vmatprep.subr.bf16.mxu1 %v9953_v0 }
 0x3f4   :  { %9908 = vmatpush3.bf16.msra.mxu0 %v10264_v34 }
 0x3f5   :  { %9932 = vmatpush3.bf16.msra.mxu1 %v10268_v35  ;;  %9909 = vmatprep.subr.bf16.mxu0 %v9953_v0 }
 0x3f6   :  { %v3774_v8 = vpop.f32.mrb[48].mxu0  ;;  %9933 = vmatprep.subr.bf16.mxu1 %v9953_v0 }
 0x3f7   :  { %v7880_v37 = vpop.f32.mrb[49].mxu0  ;;  %v3844_v42 = vpop.f32.mrb[48].mxu1 }
 0x3f8   :  { %v3845_v43 = vadd.f32 %v3844_v42, %v3774_v8  ;;  %9911 = vmatpush3.bf16.msra.mxu0 %v10284_v44  ;;  %v7915_v50 = vpop.f32.mrb[49].mxu1 }
 0x3f9   :  { %9935 = vmatpush3.bf16.msra.mxu1 %v10288_v45  ;;  %9912 = vmatprep.subr.bf16.mxu0 %v9953_v0 }
 0x3fa   :  { %9936 = vmatprep.subr.bf16.mxu1 %v9953_v0 }
 0x3fc   :  { %9914 = vmatpush3.bf16.msra.mxu0 %v10304_v51 }
 0x3fd   :  { %9938 = vmatpush3.bf16.msra.mxu1 %v10308_v53  ;;  %9915 = vmatprep.subr.bf16.mxu0 %v9953_v0  ;;  %v2817_v53 = vadd.f32 %v11329_v54, %v11427_v59 }
 0x3fe   :  { %9939 = vmatprep.subr.bf16.mxu1 %v9953_v0 }
 0x3ff   :  { %vm2818_vm13 = vcmp.ge.f32.partialorder %v2817_v53, 0.0 }
 0x400   :  { %9917 = vmatpush3.bf16.msra.mxu0 %v10330_v62  ;;  %v3407_v62 = vadd.f32 %v11329_v54, %v11632_v57 }
 0x401   :  { %9941 = vmatpush3.bf16.msra.mxu1 %v10334_v2  ;;  %v2819_v2 = vmul.f32 0.2, %v2817_v53 }
 0x402   :  { %v3409_v22 = vmul.f32 0.2, %v3407_v62  ;;  %vm3408_vm14 = vcmp.ge.f32.partialorder %v3407_v62, 0.0 }
 0x403   :  { %8369 = vmatmul.mubr.f32.vlgmr.msra.gmra.mrb[62].mxu0 %v11689_v21  ;;  %v2820_v3 = vsel %vm2818_vm13, %v2817_v53, %v2819_v2 }
 0x404   :  { %8404 = vmatmul.mubr.f32.vlgmr.msra.gmra.mrb[62].mxu1 %v4817_v6  ;;  %v3410_v10 = vsel %vm3408_vm14, %v3407_v62, %v3409_v22  ;;  %v2821_v56 = vmul.f32 %v11340_v29, %v2820_v3  ;;  %v9952_v22 = vld [vmem:[%s11820_s4] ss:$0 sm:$0xff] }
 0x405   :  { %v3411_v11 = vmul.f32 %v11340_v29, %v3410_v10 }
 0x406   :  { %v2822_v55 = vadd.f32 %v11349_v23, %v2821_v56 }
 0x407   :  { %v3412_v46 = vadd.f32 %v11349_v23, %v3411_v11 }
 0x408   :  { %v11789_v20 = vsel %vm4928_vm6, %v2822_v55, %v4914_v41 }
 0x416   :  { %v3922_v7 = vpop.f32.mrb[50].mxu0 }
 0x417   :  { %v3926_v16 = vadd.f32 %v3922_v7, %v3845_v43  ;;  %v7950_v17 = vpop.f32.mrb[51].mxu0  ;;  %v4000_v26 = vpop.f32.mrb[50].mxu1 }
 0x418   :  { %v7985_v27 = vpop.f32.mrb[51].mxu1 }
 0x419   :  { %v11778_v34 = vadd.f32 %v4000_v26, %v3926_v16  ;;  %v9951_v16 = vld [vmem:[%s11819_s3] ss:$0 sm:$0xff] }
 0x41b   :  { %v4005_v27 = vadd.f32 %v9950_v61, %v11778_v34 }
 0x41d   :  { %vm4006_vm1 = vcmp.ge.f32.partialorder %v4005_v27, 0.0 }
 0x436   :  { %v4077_v0 = vpop.f32.mrb[52].mxu0 }
 0x437   :  { %v8020_v35 = vpop.f32.mrb[53].mxu0  ;;  %v4147_v44 = vpop.f32.mrb[52].mxu1 }
 0x438   :  { %v4148_v45 = vadd.f32 %v4147_v44, %v4077_v0  ;;  %v8055_v51 = vpop.f32.mrb[53].mxu1  ;;  %v4007_v35 = vmul.f32 0.2, %v4005_v27 }
 0x456   :  { %v4217_v58 = vpop.f32.mrb[54].mxu0 }
 0x457   :  { %v4221_v59 = vadd.f32 %v4217_v58, %v4148_v45  ;;  %v4918_v60 = vpop.permute.xlu1 %4917  ;;  %v8090_v39 = vpop.f32.mrb[55].mxu0  ;;  %v4008_v45 = vsel %vm4006_vm1, %v4005_v27, %v4007_v35 }
 0x458   :  { %v4934_v1 = vsel %vm4928_vm6, %v3412_v46, %v4918_v60  ;;  %v4295_v49 = vpop.f32.mrb[54].mxu1  ;;  %v4009_v53 = vmul.f32 %v9951_v16, %v4008_v45 }
 0x459   :  { %v4962_v33 = vcombine.low %v11789_v20, %v4934_v1  ;;  %v4299_v57 = vadd.f32 %v4295_v49, %v4221_v59  ;;  %v8125_v48 = vpop.f32.mrb[55].mxu1 }
 0x45a   :  { %v4010_v3 = vadd.f32 %v9952_v22, %v4009_v53 }
 0x45b   :  { %v4300_v32 = vadd.f32 %v11329_v54, %v4299_v57  ;;  %v4970_v41 = vrot.slane %v4962_v33, %v11529_v40 }
 0x45d   :  { %vm4301_vm15 = vcmp.ge.f32.partialorder %v4300_v32, 0.0  ;;  %v4302_v14 = vmul.f32 0.2, %v4300_v32 }
 0x45f   :  { %v4303_v38 = vsel %vm4301_vm15, %v4300_v32, %v4302_v14 }
 0x460   :  { %v4304_v28 = vmul.f32 %v11340_v29, %v4303_v38 }
 0x462   :  { %v4305_v47 = vadd.f32 %v11349_v23, %v4304_v28 }
 0x464   :  { %4921 = vrot.lane.b32.xlu0 %v4305_v47, %s9956_s23 }
 0x476   :  { %v4372_v15 = vpop.f32.mrb[56].mxu0 }
 0x477   :  { %v8160_v5 = vpop.f32.mrb[57].mxu0  ;;  %v4442_v21 = vpop.f32.mrb[56].mxu1 }
 0x478   :  { %v4443_v4 = vadd.f32 %v4442_v21, %v4372_v15  ;;  %v8195_v9 = vpop.f32.mrb[57].mxu1 }
 0x496   :  { %v4512_v12 = vpop.f32.mrb[58].mxu0 }
 0x497   :  { %v4516_v13 = vadd.f32 %v4512_v12, %v4443_v4  ;;  %v8230_v18 = vpop.f32.mrb[59].mxu0  ;;  %v4590_v19 = vpop.f32.mrb[58].mxu1 }
 0x498   :  { %v8265_v24 = vpop.f32.mrb[59].mxu1 }
 0x499   :  { %v4594_v54 = vadd.f32 %v4590_v19, %v4516_v13 }
 0x49b   :  { %v4595_v0 = vadd.f32 %v9950_v61, %v4594_v54 }
 0x49d   :  { %v4597_v44 = vmul.f32 0.2, %v4595_v0  ;;  %vm4596_vm2 = vcmp.ge.f32.partialorder %v4595_v0, 0.0 }
 0x49f   :  { %v4598_v51 = vsel %vm4596_vm2, %v4595_v0, %v4597_v44 }
 0x4a0   :  { %v4599_v62 = vmul.f32 %v9951_v16, %v4598_v51 }
 0x4b6   :  { %v4667_v25 = vpop.f32.mrb[60].mxu0 }
 0x4b7   :  { %v8300_v30 = vpop.f32.mrb[61].mxu0  ;;  %v4737_v31 = vpop.f32.mrb[60].mxu1 }
 0x4b8   :  { %v4738_v36 = vadd.f32 %v4737_v31, %v4667_v25  ;;  %v8335_v29 = vpop.f32.mrb[61].mxu1 }
 0x4d6   :  { %v4807_v8 = vpop.f32.mrb[62].mxu0  ;;  %v4922_v2 = vpop.permute.xlu0 %4921 }
 0x4d7   :  { %v4811_v37 = vadd.f32 %v4807_v8, %v4738_v36  ;;  %v8370_v42 = vpop.f32.mrb[63].mxu0  ;;  %v4885_v43 = vpop.f32.mrb[62].mxu1  ;;  %v4935_v56 = vsel %vm4928_vm6, %v4010_v3, %v4922_v2 }
 0x4d8   :  { %v8405_v50 = vpop.f32.mrb[63].mxu1 }
 0x4d9   :  { %v4889_v52 = vadd.f32 %v4885_v43, %v4811_v37 }
 0x4db   :  { %v4890_v63 = vadd.f32 %v9950_v61, %v4889_v52 }
 0x4dd   :  { %vm4891_vm0 = vcmp.ge.f32.partialorder %v4890_v63, 0.0  ;;  %v4892_v6 = vmul.f32 0.2, %v4890_v63 }
 0x4df   :  { %v4893_v7 = vsel %vm4891_vm0, %v4890_v63, %v4892_v6 }
 0x4e0   :  { %v4894_v17 = vmul.f32 %v9951_v16, %v4893_v7 }
 0x4e2   :  { %v4895_v26 = vadd.f32 %v11349_v23, %v4894_v17  ;;  %v4600_v23 = vadd.f32 %v9952_v22, %v4599_v62 }
 0x4e4   :  { %4925 = vrot.lane.b32.xlu1 %v4895_v26, %s9956_s23 }
 0x556   :  { %v4926_v10 = vpop.permute.xlu1 %4925 }
 0x557   :  { %v4936_v34 = vsel %vm4928_vm6, %v4600_v23, %v4926_v10 }
 0x558   :  { %v4963_v11 = vcombine.low %v4935_v56, %v4936_v34 }
 0x55a   :  { %v4977_v55 = vrot.slane %v4963_v11, %v11529_v40 }
 0x55c   :  { %v4978_v58 = vcombine.low %v4970_v41, %v4977_v55 }
 0x55e   :  { %4982 = vst [vmem:[%s11821_s5 + $0x8] sm:$0xff] %v4978_v58 }

// kernel: forward.7
= control target key start
LH: loop header
LB: loop body
LE: loop exit
PB: predicated region body
PF: predicated region fallthrough
CT: control target
= control target key end

     0   :  { %v3172_v56 = vmov 1966171168   ;;  %v4345_v58 = vlaneseq  ;;  %s4337_s1 = inlined_call_operand.vmem [shape: f32[4,256,128], index: 1, kind: input, shape index: {}]   ;;  %s4338_s0 = inlined_call_operand.vmem [shape: f32[2,3,3,256], index: 0, kind: input, shape index: {}]   ;;  %s4339_s5 = inlined_call_operand.vmem [shape: f32[512,128], index: 5, kind: input, shape index: {}]   ;;  %s4340_s2 = inlined_call_operand.vmem [shape: f32[1,128], index: 2, kind: input, shape index: {}]   ;;  %s4341_s3 = inlined_call_operand.vmem [shape: f32[1,128], index: 3, kind: input, shape index: {}]   ;;  %s4342_s4 = inlined_call_operand.vmem [shape: f32[1,128], index: 4, kind: input, shape index: {}]   ;;  %s4343_s6 = inlined_call_operand.vmem [shape: f32[1,128], index: 6, kind: input, shape index: {}]   ;;  %s4344_s7 = inlined_call_operand.vmem [shape: f32[2,128], index: 7, kind: output, shape index: {}]  }
   0x1   :  { %v1863_v0 = vld [vmem:[%s4337_s1 + $0x180] sm:$0xff]  ;;  %v1864_v1 = vld [vmem:[%s4337_s1 + $0x188] sm:$0xff]  ;;  %v1865_v11 = vld [vmem:[%s4337_s1 + $0x190] sm:$0xff]  ;;  %v105_v57 = vunpack.c.l.s4 %v3172_v56 }
   0x2   :  { %v48_v2 = vld [vmem:[%s4337_s1 + $0x80] sm:$0xff]  ;;  %v3222_v3 = vpack.c.bf16 %v1864_v1, %v1863_v0  ;;  %v49_v4 = vld [vmem:[%s4337_s1 + $0x88] sm:$0xff]  ;;  %v1866_v13 = vld [vmem:[%s4337_s1 + $0x198] sm:$0xff] }
   0x3   :  { %v1847_v5 = vld [vmem:[%s4337_s1 + $0x100] sm:$0xff]  ;;  %v1848_v6 = vld [vmem:[%s4337_s1 + $0x108] sm:$0xff]  ;;  %v3233_v7 = vpack.c.bf16 %v49_v4, %v48_v2  ;;  %v50_v14 = vld [vmem:[%s4337_s1 + $0x90] sm:$0xff]  ;;  %v3260_v16 = vpack.c.bf16 %v1866_v13, %v1865_v11  ;;  %v108_v11 = vshrl.u32 %v4345_v58, 7 }
   0x4   :  { %v3235_v8 = vpack.c.bf16 %v1848_v6, %v1847_v5  ;;  %v32_v9 = vld [vmem:[%s4337_s1] sm:$0xff]  ;;  %v33_v10 = vld [vmem:[%s4337_s1 + $0x8] sm:$0xff]  ;;  %2592 = vmatprep.subr.bf16.mxu0 %v3222_v3  ;;  %v51_v15 = vld [vmem:[%s4337_s1 + $0x98] sm:$0xff] }
   0x5   :  { %v3247_v12 = vpack.c.bf16 %v33_v10, %v32_v9  ;;  %2624 = vmatprep.subr.bf16.mxu1 %v3233_v7  ;;  %v3262_v17 = vpack.c.bf16 %v51_v15, %v50_v14  ;;  %v1849_v18 = vld [vmem:[%s4337_s1 + $0x110] sm:$0xff]  ;;  %v1850_v19 = vld [vmem:[%s4337_s1 + $0x118] sm:$0xff]  ;;  %v1867_v23 = vld [vmem:[%s4337_s1 + $0x1a0] sm:$0xff]  ;;  %v106_v10 = vunpack.c.0.s8 %v105_v57 }
   0x6   :  { %2594 = vmatpush3.bf16.msra.mxu0 %v3235_v8  ;;  %v34_v20 = vld [vmem:[%s4337_s1 + $0x10] sm:$0xff]  ;;  %v3274_v21 = vpack.c.bf16 %v1850_v19, %v1849_v18  ;;  %v35_v22 = vld [vmem:[%s4337_s1 + $0x18] sm:$0xff]  ;;  %v1868_v24 = vld [vmem:[%s4337_s1 + $0x1a8] sm:$0xff] }
   0x7   :  { %2626 = vmatpush3.bf16.msra.mxu1 %v3247_v12  ;;  %2596 = vmatprep.subr.bf16.mxu0 %v3260_v16  ;;  %v3287_v25 = vpack.c.bf16 %v35_v22, %v34_v20  ;;  %v3289_v26 = vpack.c.bf16 %v1868_v24, %v1867_v23  ;;  %v52_v27 = vld [vmem:[%s4337_s1 + $0xa0] sm:$0xff]  ;;  %v53_v28 = vld [vmem:[%s4337_s1 + $0xa8] sm:$0xff]  ;;  %v1869_v35 = vld [vmem:[%s4337_s1 + $0x1b0] sm:$0xff] }
   0x8   :  { %2628 = vmatprep.subr.bf16.mxu1 %v3262_v17  ;;  %v1851_v29 = vld [vmem:[%s4337_s1 + $0x120] sm:$0xff]  ;;  %v3300_v30 = vpack.c.bf16 %v53_v28, %v52_v27  ;;  %v1852_v31 = vld [vmem:[%s4337_s1 + $0x128] sm:$0xff]  ;;  %v1870_v36 = vld [vmem:[%s4337_s1 + $0x1b8] sm:$0xff] }
   0x9   :  { %v36_v32 = vld [vmem:[%s4337_s1 + $0x20] sm:$0xff]  ;;  %v37_v33 = vld [vmem:[%s4337_s1 + $0x28] sm:$0xff]  ;;  %v3312_v34 = vpack.c.bf16 %v1852_v31, %v1851_v29  ;;  %v54_v37 = vld [vmem:[%s4337_s1 + $0xb0] sm:$0xff]  ;;  %v3327_v39 = vpack.c.bf16 %v1870_v36, %v1869_v35  ;;  %v3462_v36 = vsub.s32 %v106_v10, %v108_v11 }
   0xa   :  { %2598 = vmatpush3.bf16.msra.mxu0 %v3274_v21  ;;  %v3325_v38 = vpack.c.bf16 %v37_v33, %v36_v32  ;;  %v55_v40 = vld [vmem:[%s4337_s1 + $0xb8] sm:$0xff]  ;;  %v1853_v41 = vld [vmem:[%s4337_s1 + $0x130] sm:$0xff]  ;;  %v1871_v46 = vld [vmem:[%s4337_s1 + $0x1c0] sm:$0xff] }
   0xb   :  { %2630 = vmatpush3.bf16.msra.mxu1 %v3287_v25  ;;  %2600 = vmatprep.subr.bf16.mxu0 %v3289_v26  ;;  %v1854_v42 = vld [vmem:[%s4337_s1 + $0x138] sm:$0xff]  ;;  %v3339_v43 = vpack.c.bf16 %v55_v40, %v54_v37  ;;  %v38_v44 = vld [vmem:[%s4337_s1 + $0x30] sm:$0xff]  ;;  %v1872_v47 = vld [vmem:[%s4337_s1 + $0x1c8] sm:$0xff] }
   0xc   :  { %2632 = vmatprep.subr.bf16.mxu1 %v3300_v30  ;;  %v39_v45 = vld [vmem:[%s4337_s1 + $0x38] sm:$0xff]  ;;  %v56_v48 = vld [vmem:[%s4337_s1 + $0xc0] sm:$0xff]  ;;  %v57_v49 = vld [vmem:[%s4337_s1 + $0xc8] sm:$0xff]  ;;  %v3360_v50 = vpack.c.bf16 %v1854_v42, %v1853_v41  ;;  %v3366_v52 = vpack.c.bf16 %v1872_v47, %v1871_v46 }
   0xd   :  { %4389 = vst [vmem:[#allocation2_spill] sm:$0xff] %v3339_v43  ;;  %v3364_v51 = vpack.c.bf16 %v39_v45, %v38_v44  ;;  %v1855_v53 = vld [vmem:[%s4337_s1 + $0x140] sm:$0xff]  ;;  %v1856_v54 = vld [vmem:[%s4337_s1 + $0x148] sm:$0xff]  ;;  %v3378_v59 = vpack.c.bf16 %v57_v49, %v56_v48  ;;  %v1873_v61 = vld [vmem:[%s4337_s1 + $0x1d0] sm:$0xff] }
   0xe   :  { %2602 = vmatpush3.bf16.msra.mxu0 %v3312_v34  ;;  %4390 = vst [vmem:[#allocation3_spill] sm:$0xff] %v3360_v50  ;;  %4392 = vst [vmem:[#allocation5_spill] sm:$0xff] %v3366_v52  ;;  %v40_v55 = vld [vmem:[%s4337_s1 + $0x40] sm:$0xff]  ;;  %v41_v60 = vld [vmem:[%s4337_s1 + $0x48] sm:$0xff]  ;;  %v3396_v1 = vpack.c.bf16 %v1856_v54, %v1855_v53 }
   0xf   :  { %2634 = vmatpush3.bf16.msra.mxu1 %v3325_v38  ;;  %2604 = vmatprep.subr.bf16.mxu0 %v3327_v39  ;;  %4391 = vst [vmem:[#allocation4_spill] sm:$0xff] %v3364_v51  ;;  %4393 = vst [vmem:[#allocation6_spill] sm:$0xff] %v3378_v59  ;;  %v1874_v62 = vld [vmem:[%s4337_s1 + $0x1d8] sm:$0xff]  ;;  %v58_v63 = vld [vmem:[%s4337_s1 + $0xd0] sm:$0xff]  ;;  %v3400_v2 = vpack.c.bf16 %v41_v60, %v40_v55 }
  0x10   :  { %2636 = vmatprep.subr.bf16.mxu1 %v3339_v43  ;;  %v59_v0 = vld [vmem:[%s4337_s1 + $0xd8] sm:$0xff]  ;;  %4394 = vst [vmem:[#allocation7_spill] sm:$0xff] %v3396_v1  ;;  %v3402_v4 = vpack.c.bf16 %v1874_v62, %v1873_v61  ;;  %v1857_v5 = vld [vmem:[%s4337_s1 + $0x150] sm:$0xff]  ;;  %v1875_v15 = vld [vmem:[%s4337_s1 + $0x1e0] sm:$0xff] }
  0x11   :  { %v1858_v6 = vld [vmem:[%s4337_s1 + $0x158] sm:$0xff]  ;;  %v42_v9 = vld [vmem:[%s4337_s1 + $0x50] sm:$0xff]  ;;  %v3415_v13 = vpack.c.bf16 %v59_v0, %v58_v63  ;;  %v1876_v18 = vld [vmem:[%s4337_s1 + $0x1e8] sm:$0xff] }
  0x12   :  { %2606 = vmatpush3.bf16.msra.mxu0 %v3360_v50  ;;  %v43_v14 = vld [vmem:[%s4337_s1 + $0x58] sm:$0xff]  ;;  %v60_v19 = vld [vmem:[%s4337_s1 + $0xe0] sm:$0xff]  ;;  %v61_v20 = vld [vmem:[%s4337_s1 + $0xe8] sm:$0xff]  ;;  %v3436_v23 = vpack.c.bf16 %v1858_v6, %v1857_v5  ;;  %v3451_v31 = vpack.c.bf16 %v1876_v18, %v1875_v15 }
  0x13   :  { %2638 = vmatpush3.bf16.msra.mxu1 %v3364_v51  ;;  %2608 = vmatprep.subr.bf16.mxu0 %v3366_v52  ;;  %v1859_v22 = vld [vmem:[%s4337_s1 + $0x160] sm:$0xff]  ;;  %v1860_v24 = vld [vmem:[%s4337_s1 + $0x168] sm:$0xff]  ;;  %v3449_v29 = vpack.c.bf16 %v43_v14, %v42_v9  ;;  %v1877_v32 = vld [vmem:[%s4337_s1 + $0x1f0] sm:$0xff]  ;;  %v3465_v37 = vpack.c.bf16 %v61_v20, %v60_v19 }
  0x14   :  { %2640 = vmatprep.subr.bf16.mxu1 %v3378_v59  ;;  %v44_v27 = vld [vmem:[%s4337_s1 + $0x60] sm:$0xff]  ;;  %v45_v28 = vld [vmem:[%s4337_s1 + $0x68] sm:$0xff]  ;;  %v1878_v33 = vld [vmem:[%s4337_s1 + $0x1f8] sm:$0xff]  ;;  %v3483_v47 = vpack.c.bf16 %v1860_v24, %v1859_v22 }
  0x15   :  { %v1845_v35 = vld [vmem:[%s4338_s0 + $0x1] ss:$4 sm:$0x3]  ;;  %v1846_v40 = vld [vmem:[%s4338_s0 + $0x19] ss:$4 sm:$0x3]  ;;  %v3487_v49 = vpack.c.bf16 %v45_v28, %v44_v27  ;;  %v3489_v53 = vpack.c.bf16 %v1878_v33, %v1877_v32 }
  0x16   :  { %2610 = vmatpush3.bf16.msra.mxu0 %v3396_v1  ;;  %v29_v41 = vld [vmem:[%s4338_s0] ss:$4 sm:$0x3]  ;;  %v62_v42 = vld [vmem:[%s4337_s1 + $0xf0] sm:$0xff]  ;;  %v63_v44 = vld [vmem:[%s4337_s1 + $0xf8] sm:$0xff]  ;;  %v103_v45 = vcombine.low %v1845_v35, %v1846_v40 }
  0x17   :  { %2642 = vmatpush3.bf16.msra.mxu1 %v3400_v2  ;;  %2612 = vmatprep.subr.bf16.mxu0 %v3402_v4  ;;  %v1844_v46 = vld [vmem:[%s4338_s0 + $0x18] ss:$4 sm:$0x3]  ;;  %v1861_v54 = vld [vmem:[%s4337_s1 + $0x170] sm:$0xff]  ;;  %v3502_v60 = vpack.c.bf16 %v63_v44, %v62_v42  ;;  %v1897_v63 = vld [vmem:[%s4337_s1 + $0x280] sm:$0xff] }
  0x18   :  { %2644 = vmatprep.subr.bf16.mxu1 %v3415_v13  ;;  %v200_v48 = vcombine.low %v29_v41, %v1844_v46  ;;  %v1862_v55 = vld [vmem:[%s4337_s1 + $0x178] sm:$0xff]  ;;  %v46_v56 = vld [vmem:[%s4337_s1 + $0x70] sm:$0xff]  ;;  %v110_v57 = vrot.slane %v103_v45, %v3462_v36  ;;  %v1898_v0 = vld [vmem:[%s4337_s1 + $0x288] sm:$0xff] }
  0x19   :  { %v47_v61 = vld [vmem:[%s4337_s1 + $0x78] sm:$0xff]  ;;  %v1931_v6 = vld [vmem:[%s4337_s1 + $0x380] sm:$0xff]  ;;  %v1932_v9 = vld [vmem:[%s4337_s1 + $0x388] sm:$0xff]  ;;  %v3521_v10 = vpack.c.bf16 %v1862_v55, %v1861_v54  ;;  %v3530_v18 = vpack.c.bf16 %v1898_v0, %v1897_v63 }
  0x1a   :  { %2614 = vmatpush3.bf16.msra.mxu0 %v3436_v23  ;;  %v207_v62 = vrot.slane %v200_v48, %v3462_v36  ;;  %v111_v5 = vcombine.high %v110_v57, %v110_v57  ;;  %v3525_v14 = vpack.c.bf16 %v47_v61, %v46_v56  ;;  %v1881_v19 = vld [vmem:[%s4337_s1 + $0x200] sm:$0xff]  ;;  %v1882_v20 = vld [vmem:[%s4337_s1 + $0x208] sm:$0xff]  ;;  %v3543_v27 = vpack.c.bf16 %v1932_v9, %v1931_v6  ;;  %v1899_v32 = vld [vmem:[%s4337_s1 + $0x290] sm:$0xff] }
  0x1b   :  { %2646 = vmatpush3.bf16.msra.mxu1 %v3449_v29  ;;  %2616 = vmatprep.subr.bf16.mxu0 %v3451_v31  ;;  %v1915_v22 = vld [vmem:[%s4337_s1 + $0x300] sm:$0xff]  ;;  %v1916_v28 = vld [vmem:[%s4337_s1 + $0x308] sm:$0xff]  ;;  %v1900_v33 = vld [vmem:[%s4337_s1 + $0x298] sm:$0xff]  ;;  %v3556_v35 = vrot.slane %v110_v57, %v3462_v36  ;;  %v3566_v44 = vpack.c.bf16 %v1882_v20, %v1881_v19 }
  0x1c   :  { %2648 = vmatprep.subr.bf16.mxu1 %v3465_v37  ;;  %v208_v11 = vcombine.high %v207_v62, %v207_v62  ;;  %v3528_v15 = vrot.slane %v111_v5, %v3462_v36  ;;  %4395 = vst [vmem:[#allocation8_spill] sm:$0xff] %v3543_v27  ;;  %v1933_v40 = vld [vmem:[%s4337_s1 + $0x390] sm:$0xff]  ;;  %v1934_v41 = vld [vmem:[%s4337_s1 + $0x398] sm:$0xff]  ;;  %v215_v42 = vrot.slane %v207_v62, %v3462_v36  ;;  %v1901_v61 = vld [vmem:[%s4337_s1 + $0x2a0] sm:$0xff] }
  0x1d   :  { %v3570_v45 = vpack.c.bf16 %v1916_v28, %v1915_v22  ;;  %v3572_v46 = vpack.c.bf16 %v1900_v33, %v1899_v32  ;;  %v1883_v48 = vld [vmem:[%s4337_s1 + $0x210] sm:$0xff]  ;;  %v1884_v54 = vld [vmem:[%s4337_s1 + $0x218] sm:$0xff]  ;;  %v3584_v56 = vpack.c.bf16 %v1934_v41, %v1933_v40  ;;  %v1902_v62 = vld [vmem:[%s4337_s1 + $0x2a8] sm:$0xff] }
  0x1e   :  { %2618 = vmatpush3.bf16.msra.mxu0 %v3483_v47  ;;  %v222_v24 = vrot.slane %v208_v11, %v3462_v36  ;;  %192 = vmatprep.mubr.f32.mxu0 %v3528_v15  ;;  %v1917_v55 = vld [vmem:[%s4337_s1 + $0x310] sm:$0xff]  ;;  %v1918_v57 = vld [vmem:[%s4337_s1 + $0x318] sm:$0xff]  ;;  %v1935_v63 = vld [vmem:[%s4337_s1 + $0x3a0] sm:$0xff]  ;;  %v3603_v5 = vpack.c.bf16 %v1884_v54, %v1883_v48  ;;  %v3609_v9 = vpack.c.bf16 %v1902_v62, %v1901_v61 }
  0x1f   :  { %2650 = vmatpush3.bf16.msra.mxu1 %v3487_v49  ;;  %2620 = vmatprep.subr.bf16.mxu0 %v3489_v53  ;;  %4396 = vst [vmem:[#allocation9_spill] sm:$0xff] %v3572_v46  ;;  %4397 = vst [vmem:[#allocation10_spill] sm:$0xff] %v3584_v56  ;;  %v1936_v0 = vld [vmem:[%s4337_s1 + $0x3a8] sm:$0xff]  ;;  %v3607_v6 = vpack.c.bf16 %v1918_v57, %v1917_v55  ;;  %v1885_v11 = vld [vmem:[%s4337_s1 + $0x220] sm:$0xff] }
  0x20   :  { %2652 = vmatprep.subr.bf16.mxu1 %v3502_v60  ;;  %289 = vmatprep.mubr.f32.mxu1 %v222_v24  ;;  %4398 = vst [vmem:[#allocation11_spill] sm:$0xff] %v3603_v5  ;;  %4400 = vst [vmem:[#allocation13_spill] sm:$0xff] %v3609_v9  ;;  %v1886_v19 = vld [vmem:[%s4337_s1 + $0x228] sm:$0xff]  ;;  %v1919_v20 = vld [vmem:[%s4337_s1 + $0x320] sm:$0xff]  ;;  %v3621_v22 = vpack.c.bf16 %v1936_v0, %v1935_v63 }
  0x21   :  { %4399 = vst [vmem:[#allocation12_spill] sm:$0xff] %v3607_v6  ;;  %v1920_v24 = vld [vmem:[%s4337_s1 + $0x328] sm:$0xff]  ;;  %v1903_v28 = vld [vmem:[%s4337_s1 + $0x2b0] sm:$0xff]  ;;  %v1904_v32 = vld [vmem:[%s4337_s1 + $0x2b8] sm:$0xff]  ;;  %v3639_v41 = vpack.c.bf16 %v1886_v19, %v1885_v11 }
  0x22   :  { %2622 = vmatpush3.bf16.msra.mxu0 %v3521_v10  ;;  %4401 = vst [vmem:[#allocation14_spill] sm:$0xff] %v3621_v22  ;;  %v1937_v33 = vld [vmem:[%s4337_s1 + $0x3b0] sm:$0xff]  ;;  %v1938_v40 = vld [vmem:[%s4337_s1 + $0x3b8] sm:$0xff]  ;;  %v3646_v48 = vpack.c.bf16 %v1920_v24, %v1919_v20  ;;  %v3648_v54 = vpack.c.bf16 %v1904_v32, %v1903_v28  ;;  %v1905_v63 = vld [vmem:[%s4337_s1 + $0x2c0] sm:$0xff] }
  0x23   :  { %2654 = vmatpush3.bf16.msra.mxu1 %v3525_v14  ;;  %2656 = vmatprep.subr.bf16.mxu0 %v3530_v18  ;;  %4402 = vst [vmem:[#allocation15_spill] sm:$0xff] %v3639_v41  ;;  %v1888_v55 = vld [vmem:[%s4337_s1 + $0x238] sm:$0xff]  ;;  %v1921_v57 = vld [vmem:[%s4337_s1 + $0x330] sm:$0xff]  ;;  %v3660_v62 = vpack.c.bf16 %v1938_v40, %v1937_v33  ;;  %v1906_v0 = vld [vmem:[%s4337_s1 + $0x2c8] sm:$0xff] }
  0x24   :  { %2688 = vmatprep.subr.bf16.mxu1 %v3543_v27  ;;  %4403 = vst [vmem:[#allocation16_spill] sm:$0xff] %v3646_v48  ;;  %4404 = vst [vmem:[#allocation17_spill] sm:$0xff] %v3648_v54  ;;  %v1922_v61 = vld [vmem:[%s4337_s1 + $0x338] sm:$0xff]  ;;  %v1939_v11 = vld [vmem:[%s4337_s1 + $0x3c0] sm:$0xff] }
  0x25   :  { %193 = vmatmul.mubr.f32.vlgmr.msra.gmra.mrb[0].mxu0 %v3556_v35  ;;  %4405 = vst [vmem:[#allocation18_spill] sm:$0xff] %v3660_v62  ;;  %v1940_v19 = vld [vmem:[%s4337_s1 + $0x3c8] sm:$0xff]  ;;  %v1889_v20 = vld [vmem:[%s4337_s1 + $0x240] sm:$0xff]  ;;  %v3694_v58 = vpack.c.bf16 %v1922_v61, %v1921_v57  ;;  %v1908_v57 = vld [vmem:[%s4337_s1 + $0x2d8] sm:$0xff] }
  0x26   :  { %290 = vmatmul.mubr.f32.vlgmr.msra.gmra.mrb[0].mxu1 %v215_v42  ;;  %2658 = vmatpush3.bf16.msra.mxu0 %v3566_v44  ;;  %v1887_v42 = vld [vmem:[%s4337_s1 + $0x230] sm:$0xff]  ;;  %v1890_v24 = vld [vmem:[%s4337_s1 + $0x248] sm:$0xff]  ;;  %v1923_v32 = vld [vmem:[%s4337_s1 + $0x340] sm:$0xff] }
  0x27   :  { %2690 = vmatpush3.bf16.msra.mxu1 %v3570_v45  ;;  %2660 = vmatprep.subr.bf16.mxu0 %v3572_v46  ;;  %v3681_v28 = vpack.c.bf16 %v1888_v55, %v1887_v42  ;;  %v1924_v33 = vld [vmem:[%s4337_s1 + $0x348] sm:$0xff]  ;;  %4407 = vst [vmem:[#allocation20_spill] sm:$0xff] %v3694_v58  ;;  %v3696_v42 = vpack.c.bf16 %v1906_v0, %v1905_v63  ;;  %v1880_v55 = vld [vmem:[%s4338_s0 + $0x20] ss:$4 sm:$0x3]  ;;  %v1941_v0 = vld [vmem:[%s4337_s1 + $0x3d0] sm:$0xff] }
  0x28   :  { %2692 = vmatprep.subr.bf16.mxu1 %v3584_v56  ;;  %v1879_v40 = vld [vmem:[%s4338_s0 + $0x8] ss:$4 sm:$0x3]  ;;  %v1914_v63 = vld [vmem:[%s4338_s0 + $0x21] ss:$4 sm:$0x3] }
  0x29   :  { %4406 = vst [vmem:[#allocation19_spill] sm:$0xff] %v3681_v28  ;;  %4408 = vst [vmem:[#allocation21_spill] sm:$0xff] %v3696_v42  ;;  %v334_v61 = vcombine.low %v1879_v40, %v1880_v55  ;;  %v1891_v40 = vld [vmem:[%s4337_s1 + $0x250] sm:$0xff]  ;;  %v1892_v55 = vld [vmem:[%s4337_s1 + $0x258] sm:$0xff] }
  0x2a   :  { %2662 = vmatpush3.bf16.msra.mxu0 %v3603_v5  ;;  %v1893_v5 = vld [vmem:[%s4337_s1 + $0x260] sm:$0xff] }
  0x2b   :  { %2694 = vmatpush3.bf16.msra.mxu1 %v3607_v6  ;;  %2664 = vmatprep.subr.bf16.mxu0 %v3609_v9  ;;  %v3734_v9 = vpack.c.bf16 %v1924_v33, %v1923_v32  ;;  %v1943_v33 = vld [vmem:[%s4337_s1 + $0x3e0] sm:$0xff] }
  0x2c   :  { %2696 = vmatprep.subr.bf16.mxu1 %v3621_v22  ;;  %v3705_v22 = vpack.c.bf16 %v1940_v19, %v1939_v11  ;;  %v1942_v11 = vld [vmem:[%s4337_s1 + $0x3d8] sm:$0xff] }
  0x2d   :  { %v3749_v32 = vpack.c.bf16 %v1942_v11, %v1941_v0  ;;  %v1951_v0 = vld [vmem:[%s4338_s0 + $0x1a] ss:$4 sm:$0x3]  ;;  %v3767_v11 = vpack.c.bf16 %v1892_v55, %v1891_v40  ;;  %v1894_v40 = vld [vmem:[%s4337_s1 + $0x268] sm:$0xff] }
  0x2e   :  { %2666 = vmatpush3.bf16.msra.mxu0 %v3639_v41  ;;  %v1913_v41 = vld [vmem:[%s4338_s0 + $0x9] ss:$4 sm:$0x3]  ;;  %4409 = vst [vmem:[#allocation22_spill] sm:$0xff] %v3705_v22 }
  0x2f   :  { %2698 = vmatpush3.bf16.msra.mxu1 %v3646_v48  ;;  %2668 = vmatprep.subr.bf16.mxu0 %v3648_v54  ;;  %v1907_v54 = vld [vmem:[%s4337_s1 + $0x2d0] sm:$0xff]  ;;  %v469_v19 = vcombine.low %v1913_v41, %v1914_v63  ;;  %v341_v48 = vrot.slane %v334_v61, %v3462_v36  ;;  %v1909_v61 = vld [vmem:[%s4337_s1 + $0x2e0] sm:$0xff]  ;;  %4411 = vst [vmem:[#allocation24_spill] sm:$0xff] %v3749_v32  ;;  %4412 = vst [vmem:[#allocation25_spill] sm:$0xff] %v3767_v11 }
  0x30   :  { %2700 = vmatprep.subr.bf16.mxu1 %v3660_v62  ;;  %v3723_v62 = vpack.c.bf16 %v1890_v24, %v1889_v20  ;;  %v3736_v41 = vpack.c.bf16 %v1908_v57, %v1907_v54  ;;  %v1925_v20 = vld [vmem:[%s4337_s1 + $0x350] sm:$0xff]  ;;  %v1926_v24 = vld [vmem:[%s4337_s1 + $0x358] sm:$0xff]  ;;  %v1910_v54 = vld [vmem:[%s4337_s1 + $0x2e8] sm:$0xff] }
  0x31   :  { %v476_v63 = vrot.slane %v469_v19, %v3462_v36  ;;  %v1944_v57 = vld [vmem:[%s4337_s1 + $0x3e8] sm:$0xff]  ;;  %v1950_v19 = vld [vmem:[%s4338_s0 + $0x2] ss:$4 sm:$0x3]  ;;  %v3776_v6 = vpack.c.bf16 %v1910_v54, %v1909_v61  ;;  %v1911_v61 = vld [vmem:[%s4337_s1 + $0x2f0] sm:$0xff] }
  0x32   :  { %2670 = vmatpush3.bf16.msra.mxu0 %v3681_v28  ;;  %4410 = vst [vmem:[#allocation23_spill] sm:$0xff] %v3736_v41  ;;  %v3774_v28 = vpack.c.bf16 %v1926_v24, %v1925_v20  ;;  %v3791_v20 = vpack.c.bf16 %v1944_v57, %v1943_v33  ;;  %v1928_v24 = vld [vmem:[%s4337_s1 + $0x368] sm:$0xff]  ;;  %v1912_v54 = vld [vmem:[%s4337_s1 + $0x2f8] sm:$0xff]  ;;  %v1945_v33 = vld [vmem:[%s4337_s1 + $0x3f0] sm:$0xff] }
  0x33   :  { %2702 = vmatpush3.bf16.msra.mxu1 %v3694_v58  ;;  %2672 = vmatprep.subr.bf16.mxu0 %v3696_v42  ;;  %v342_v42 = vcombine.high %v341_v48, %v341_v48  ;;  %v477_v58 = vcombine.high %v476_v63, %v476_v63  ;;  %v1946_v57 = vld [vmem:[%s4337_s1 + $0x3f8] sm:$0xff] }
  0x34   :  { %2704 = vmatprep.subr.bf16.mxu1 %v3705_v22 }
  0x35   :  { %v3770_v22 = vrot.slane %v342_v42, %v3462_v36  ;;  %v1927_v42 = vld [vmem:[%s4337_s1 + $0x360] sm:$0xff]  ;;  %v3788_v55 = vrot.slane %v477_v58, %v3462_v36  ;;  %v595_v58 = vcombine.low %v1950_v19, %v1951_v0  ;;  %v3817_v19 = vpack.c.bf16 %v1912_v54, %v1911_v61  ;;  %v1895_v0 = vld [vmem:[%s4337_s1 + $0x270] sm:$0xff] }
  0x36   :  { %2674 = vmatpush3.bf16.msra.mxu0 %v3723_v62 }
  0x37   :  { %4413 = vst [vmem:[#allocation26_spill] sm:$0xff] %v3770_v22  ;;  %2706 = vmatpush3.bf16.msra.mxu1 %v3734_v9  ;;  %2676 = vmatprep.subr.bf16.mxu0 %v3736_v41  ;;  %v1896_v41 = vld [vmem:[%s4337_s1 + $0x278] sm:$0xff] }
  0x38   :  { %2708 = vmatprep.subr.bf16.mxu1 %v3749_v32  ;;  %423 = vmatprep.mubr.f32.mxu0 %v3770_v22  ;;  %v3811_v32 = vpack.c.bf16 %v1894_v40, %v1893_v5  ;;  %v3815_v22 = vpack.c.bf16 %v1928_v24, %v1927_v42  ;;  %v3826_v5 = vpack.c.bf16 %v1946_v57, %v1945_v33  ;;  %v1929_v40 = vld [vmem:[%s4337_s1 + $0x370] sm:$0xff]  ;;  %v1930_v42 = vld [vmem:[%s4337_s1 + $0x378] sm:$0xff] }
  0x39   :  { %558 = vmatprep.mubr.f32.mxu1 %v3788_v55  ;;  %v602_v24 = vrot.slane %v595_v58, %v3462_v36  ;;  %v3836_v61 = vpack.c.bf16 %v1896_v41, %v1895_v0  ;;  %v3840_v54 = vpack.c.bf16 %v1930_v42, %v1929_v40  ;;  %v3844_v57 = vrot.slane %v341_v48, %v3462_v36  ;;  %v1953_v48 = vld [vmem:[%s4338_s0 + $0x22] ss:$4 sm:$0x3] }
  0x3a   :  { %2678 = vmatpush3.bf16.msra.mxu0 %v3767_v11  ;;  %v3848_v58 = vrot.slane %v476_v63, %v3462_v36 }
  0x3b   :  { %2710 = vmatpush3.bf16.msra.mxu1 %v3774_v28  ;;  %2680 = vmatprep.subr.bf16.mxu0 %v3776_v6  ;;  %v603_v33 = vcombine.high %v602_v24, %v602_v24  ;;  %v610_v40 = vrot.slane %v602_v24, %v3462_v36  ;;  %v4415_v24 = vld [vmem:[#allocation11_spill] sm:$0xff] }
  0x3c   :  { %2712 = vmatprep.subr.bf16.mxu1 %v3791_v20 }
  0x3d   :  { %v617_v41 = vrot.slane %v603_v33, %v3462_v36 }
  0x3e   :  { %2682 = vmatpush3.bf16.msra.mxu0 %v3811_v32 }
  0x3f   :  { %2714 = vmatpush3.bf16.msra.mxu1 %v3815_v22  ;;  %2684 = vmatprep.subr.bf16.mxu0 %v3817_v19 }
  0x40   :  { %2716 = vmatprep.subr.bf16.mxu1 %v3826_v5 }
  0x42   :  { %2686 = vmatpush3.bf16.msra.mxu0 %v3836_v61 }
  0x43   :  { %2718 = vmatpush3.bf16.msra.mxu1 %v3840_v54  ;;  %2720 = vmatprep.subr.bf16.mxu0 %v3222_v3 }
  0x44   :  { %2752 = vmatprep.subr.bf16.mxu1 %v3233_v7 }
  0x45   :  { %424 = vmatmul.mubr.f32.vlgmr.msra.gmra.mrb[2].mxu0 %v3844_v57 }
  0x46   :  { %559 = vmatmul.mubr.f32.vlgmr.msra.gmra.mrb[2].mxu1 %v3848_v58  ;;  %2722 = vmatpush3.bf16.msra.mxu0 %v3235_v8 }
  0x47   :  { %2754 = vmatpush3.bf16.msra.mxu1 %v3247_v12  ;;  %2724 = vmatprep.subr.bf16.mxu0 %v3260_v16 }
  0x48   :  { %2756 = vmatprep.subr.bf16.mxu1 %v3262_v17  ;;  %684 = vmatprep.mubr.f32.mxu0 %v617_v41  ;;  %v4416_v41 = vld [vmem:[#allocation12_spill] sm:$0xff] }
  0x49   :  { %754 = vmatprep.mubr.f32.mxu1 %v3528_v15  ;;  %v1952_v15 = vld [vmem:[%s4338_s0 + $0xa] ss:$4 sm:$0x3] }
  0x4a   :  { %2726 = vmatpush3.bf16.msra.mxu0 %v3274_v21  ;;  %v837_v63 = vcombine.low %v1952_v15, %v1953_v48  ;;  %v4417_v15 = vld [vmem:[#allocation13_spill] sm:$0xff]  ;;  %v4418_v48 = vld [vmem:[#allocation14_spill] sm:$0xff] }
  0x4b   :  { %2758 = vmatpush3.bf16.msra.mxu1 %v3287_v25  ;;  %2728 = vmatprep.subr.bf16.mxu0 %v3289_v26 }
  0x4c   :  { %2760 = vmatprep.subr.bf16.mxu1 %v3300_v30  ;;  %v844_v0 = vrot.slane %v837_v63, %v3462_v36  ;;  %v4420_v63 = vld [vmem:[#allocation16_spill] sm:$0xff] }
  0x4e   :  { %2730 = vmatpush3.bf16.msra.mxu0 %v3312_v34  ;;  %v845_v42 = vcombine.high %v844_v0, %v844_v0 }
  0x4f   :  { %2762 = vmatpush3.bf16.msra.mxu1 %v3325_v38  ;;  %2732 = vmatprep.subr.bf16.mxu0 %v3327_v39 }
  0x50   :  { %2764 = vmatprep.subr.bf16.mxu1 %v3339_v43  ;;  %v3898_v33 = vrot.slane %v845_v42, %v3462_v36  ;;  %v4422_v42 = vld [vmem:[#allocation18_spill] sm:$0xff] }
  0x52   :  { %2734 = vmatpush3.bf16.msra.mxu0 %v3360_v50  ;;  %4414 = vst [vmem:[#allocation27_spill] sm:$0xff] %v3898_v33 }
  0x53   :  { %2766 = vmatpush3.bf16.msra.mxu1 %v3364_v51  ;;  %2736 = vmatprep.subr.bf16.mxu0 %v3366_v52 }
  0x54   :  { %2768 = vmatprep.subr.bf16.mxu1 %v3378_v59 }
  0x56   :  { %2738 = vmatpush3.bf16.msra.mxu0 %v3396_v1 }
  0x57   :  { %2770 = vmatpush3.bf16.msra.mxu1 %v3400_v2  ;;  %2740 = vmatprep.subr.bf16.mxu0 %v3402_v4 }
  0x58   :  { %2772 = vmatprep.subr.bf16.mxu1 %v3415_v13 }
  0x5a   :  { %2742 = vmatpush3.bf16.msra.mxu0 %v3436_v23 }
  0x5b   :  { %2774 = vmatpush3.bf16.msra.mxu1 %v3449_v29  ;;  %2744 = vmatprep.subr.bf16.mxu0 %v3451_v31 }
  0x5c   :  { %2776 = vmatprep.subr.bf16.mxu1 %v3465_v37 }
  0x5e   :  { %2746 = vmatpush3.bf16.msra.mxu0 %v3483_v47 }
  0x5f   :  { %2778 = vmatpush3.bf16.msra.mxu1 %v3487_v49  ;;  %2748 = vmatprep.subr.bf16.mxu0 %v3489_v53 }
  0x60   :  { %2780 = vmatprep.subr.bf16.mxu1 %v3502_v60 }
  0x62   :  { %2750 = vmatpush3.bf16.msra.mxu0 %v3521_v10 }
  0x63   :  { %2782 = vmatpush3.bf16.msra.mxu1 %v3525_v14  ;;  %2784 = vmatprep.subr.bf16.mxu0 %v3530_v18 }
  0x64   :  { %2816 = vmatprep.subr.bf16.mxu1 %v3543_v27 }
  0x65   :  { %685 = vmatmul.mubr.f32.vlgmr.msra.gmra.mrb[4].mxu0 %v610_v40  ;;  %v4421_v40 = vld [vmem:[#allocation17_spill] sm:$0xff] }
  0x66   :  { %755 = vmatmul.mubr.f32.vlgmr.msra.gmra.mrb[4].mxu1 %v3556_v35  ;;  %2786 = vmatpush3.bf16.msra.mxu0 %v3566_v44  ;;  %v4419_v35 = vld [vmem:[#allocation15_spill] sm:$0xff] }
  0x67   :  { %2818 = vmatpush3.bf16.msra.mxu1 %v3570_v45  ;;  %2788 = vmatprep.subr.bf16.mxu0 %v3572_v46  ;;  %v4424_v46 = vld [vmem:[#allocation20_spill] sm:$0xff] }
  0x68   :  { %2820 = vmatprep.subr.bf16.mxu1 %v3584_v56  ;;  %824 = vmatprep.mubr.f32.mxu0 %v3788_v55  ;;  %v4423_v56 = vld [vmem:[#allocation19_spill] sm:$0xff] }
  0x69   :  { %926 = vmatprep.mubr.f32.mxu1 %v3898_v33  ;;  %v4425_v33 = vld [vmem:[#allocation21_spill] sm:$0xff] }
  0x6a   :  { %2790 = vmatpush3.bf16.msra.mxu0 %v4415_v24  ;;  %v4426_v24 = vld [vmem:[#allocation22_spill] sm:$0xff] }
  0x6b   :  { %2822 = vmatpush3.bf16.msra.mxu1 %v4416_v41  ;;  %2792 = vmatprep.subr.bf16.mxu0 %v4417_v15 }
  0x6c   :  { %2824 = vmatprep.subr.bf16.mxu1 %v4418_v48  ;;  %v4427_v48 = vld [vmem:[#allocation23_spill] sm:$0xff] }
  0x6e   :  { %2794 = vmatpush3.bf16.msra.mxu0 %v4419_v35  ;;  %v4428_v35 = vld [vmem:[#allocation24_spill] sm:$0xff] }
  0x6f   :  { %2826 = vmatpush3.bf16.msra.mxu1 %v4420_v63  ;;  %2796 = vmatprep.subr.bf16.mxu0 %v4421_v40 }
  0x70   :  { %2828 = vmatprep.subr.bf16.mxu1 %v4422_v42 }
  0x72   :  { %2798 = vmatpush3.bf16.msra.mxu0 %v4423_v56 }
  0x73   :  { %2830 = vmatpush3.bf16.msra.mxu1 %v4424_v46  ;;  %2800 = vmatprep.subr.bf16.mxu0 %v4425_v33 }
  0x74   :  { %2832 = vmatprep.subr.bf16.mxu1 %v4426_v24 }
  0x76   :  { %2802 = vmatpush3.bf16.msra.mxu0 %v3723_v62 }
  0x77   :  { %2834 = vmatpush3.bf16.msra.mxu1 %v3734_v9  ;;  %2804 = vmatprep.subr.bf16.mxu0 %v4427_v48 }
  0x78   :  { %2836 = vmatprep.subr.bf16.mxu1 %v4428_v35  ;;  %v3933_v35 = vrot.slane %v844_v0, %v3462_v36  ;;  %v4430_v0 = vld [vmem:[#allocation26_spill] sm:$0xff] }
  0x7a   :  { %2806 = vmatpush3.bf16.msra.mxu0 %v3767_v11  ;;  %4429 = vst [vmem:[#allocation12_spill] sm:$0xff] %v3933_v35 }
  0x7b   :  { %2838 = vmatpush3.bf16.msra.mxu1 %v3774_v28  ;;  %2808 = vmatprep.subr.bf16.mxu0 %v3776_v6 }
  0x7c   :  { %2840 = vmatprep.subr.bf16.mxu1 %v3791_v20 }
  0x7e   :  { %2810 = vmatpush3.bf16.msra.mxu0 %v3811_v32 }
  0x7f   :  { %2842 = vmatpush3.bf16.msra.mxu1 %v3815_v22  ;;  %2812 = vmatprep.subr.bf16.mxu0 %v3817_v19 }
  0x80   :  { %2844 = vmatprep.subr.bf16.mxu1 %v3826_v5 }
  0x82   :  { %2814 = vmatpush3.bf16.msra.mxu0 %v3836_v61 }
  0x83   :  { %2846 = vmatpush3.bf16.msra.mxu1 %v3840_v54  ;;  %2848 = vmatprep.subr.bf16.mxu0 %v3222_v3 }
  0x84   :  { %2880 = vmatprep.subr.bf16.mxu1 %v3233_v7 }
  0x85   :  { %825 = vmatmul.mubr.f32.vlgmr.msra.gmra.mrb[6].mxu0 %v3848_v58 }
  0x86   :  { %927 = vmatmul.mubr.f32.vlgmr.msra.gmra.mrb[6].mxu1 %v3933_v35  ;;  %2850 = vmatpush3.bf16.msra.mxu0 %v3235_v8  ;;  %v1955_v35 = vld [vmem:[%s4338_s0 + $0x28] ss:$4 sm:$0x3] }
  0x87   :  { %2882 = vmatpush3.bf16.msra.mxu1 %v3247_v12  ;;  %2852 = vmatprep.subr.bf16.mxu0 %v3260_v16 }
  0x88   :  { %2884 = vmatprep.subr.bf16.mxu1 %v3262_v17  ;;  %1003 = vmatprep.mubr.f32.mxu0 %v3788_v55 }
  0x89   :  { %1073 = vmatprep.mubr.f32.mxu1 %v4430_v0  ;;  %v1954_v0 = vld [vmem:[%s4338_s0 + $0x10] ss:$4 sm:$0x3] }
  0x8a   :  { %2854 = vmatpush3.bf16.msra.mxu0 %v3274_v21 }
  0x8b   :  { %2886 = vmatpush3.bf16.msra.mxu1 %v3287_v25  ;;  %2856 = vmatprep.subr.bf16.mxu0 %v3289_v26 }
  0x8c   :  { %2888 = vmatprep.subr.bf16.mxu1 %v3300_v30 }
  0x8e   :  { %2858 = vmatpush3.bf16.msra.mxu0 %v3312_v34 }
  0x8f   :  { %2890 = vmatpush3.bf16.msra.mxu1 %v3325_v38  ;;  %2860 = vmatprep.subr.bf16.mxu0 %v3327_v39 }
  0x90   :  { %2892 = vmatprep.subr.bf16.mxu1 %v3339_v43 }
  0x92   :  { %2862 = vmatpush3.bf16.msra.mxu0 %v3360_v50  ;;  %v1956_v50 = vld [vmem:[%s4338_s0 + $0x11] ss:$4 sm:$0x3] }
  0x93   :  { %2894 = vmatpush3.bf16.msra.mxu1 %v3364_v51  ;;  %2864 = vmatprep.subr.bf16.mxu0 %v3366_v52  ;;  %v1957_v52 = vld [vmem:[%s4338_s0 + $0x29] ss:$4 sm:$0x3] }
  0x94   :  { %2896 = vmatprep.subr.bf16.mxu1 %v3378_v59  ;;  %v1085_v59 = vcombine.low %v1954_v0, %v1955_v35  ;;  %v1187_v51 = vcombine.low %v1956_v50, %v1957_v52  ;;  %v4431_v35 = vld [vmem:[#allocation9_spill] sm:$0xff]  ;;  %v4432_v0 = vld [vmem:[#allocation10_spill] sm:$0xff] }
  0x96   :  { %2866 = vmatpush3.bf16.msra.mxu0 %v3396_v1  ;;  %v1092_v1 = vrot.slane %v1085_v59, %v3462_v36  ;;  %v1194_v43 = vrot.slane %v1187_v51, %v3462_v36 }
  0x97   :  { %2898 = vmatpush3.bf16.msra.mxu1 %v3400_v2  ;;  %2868 = vmatprep.subr.bf16.mxu0 %v3402_v4 }
  0x98   :  { %2900 = vmatprep.subr.bf16.mxu1 %v3415_v13  ;;  %v1093_v50 = vcombine.high %v1092_v1, %v1092_v1  ;;  %v1195_v52 = vcombine.high %v1194_v43, %v1194_v43 }
  0x9a   :  { %2870 = vmatpush3.bf16.msra.mxu0 %v3436_v23  ;;  %v1107_v51 = vrot.slane %v1093_v50, %v3462_v36  ;;  %v3991_v59 = vrot.slane %v1195_v52, %v3462_v36  ;;  %v4434_v50 = vld [vmem:[#allocation14_spill] sm:$0xff]  ;;  %v4436_v52 = vld [vmem:[#allocation24_spill] sm:$0xff] }
  0x9b   :  { %2902 = vmatpush3.bf16.msra.mxu1 %v3449_v29  ;;  %2872 = vmatprep.subr.bf16.mxu0 %v3451_v31 }
  0x9c   :  { %2904 = vmatprep.subr.bf16.mxu1 %v3465_v37 }
  0x9e   :  { %2874 = vmatpush3.bf16.msra.mxu0 %v3483_v47 }
  0x9f   :  { %2906 = vmatpush3.bf16.msra.mxu1 %v3487_v49  ;;  %2876 = vmatprep.subr.bf16.mxu0 %v3489_v53 }
  0xa0   :  { %2908 = vmatprep.subr.bf16.mxu1 %v3502_v60 }
  0xa2   :  { %2878 = vmatpush3.bf16.msra.mxu0 %v3521_v10 }
  0xa3   :  { %2910 = vmatpush3.bf16.msra.mxu1 %v3525_v14  ;;  %2912 = vmatprep.subr.bf16.mxu0 %v3530_v18 }
  0xa4   :  { %2944 = vmatprep.subr.bf16.mxu1 %v3543_v27  ;;  %v4433_v27 = vld [vmem:[#allocation11_spill] sm:$0xff] }
  0xa5   :  { %1004 = vmatmul.mubr.f32.vlgmr.msra.gmra.mrb[8].mxu0 %v3848_v58 }
  0xa6   :  { %1074 = vmatmul.mubr.f32.vlgmr.msra.gmra.mrb[8].mxu1 %v3844_v57  ;;  %2914 = vmatpush3.bf16.msra.mxu0 %v3566_v44  ;;  %v4435_v57 = vld [vmem:[#allocation15_spill] sm:$0xff] }
  0xa7   :  { %2946 = vmatpush3.bf16.msra.mxu1 %v3570_v45  ;;  %2916 = vmatprep.subr.bf16.mxu0 %v4431_v35 }
  0xa8   :  { %2948 = vmatprep.subr.bf16.mxu1 %v4432_v0  ;;  %1174 = vmatprep.mubr.f32.mxu0 %v1107_v51  ;;  %v1100_v51 = vrot.slane %v1092_v1, %v3462_v36  ;;  %v4437_v1 = vld [vmem:[#allocation27_spill] sm:$0xff] }
  0xa9   :  { %1276 = vmatprep.mubr.f32.mxu1 %v3991_v59 }
  0xaa   :  { %2918 = vmatpush3.bf16.msra.mxu0 %v4433_v27 }
  0xab   :  { %2950 = vmatpush3.bf16.msra.mxu1 %v4416_v41  ;;  %2920 = vmatprep.subr.bf16.mxu0 %v4417_v15 }
  0xac   :  { %2952 = vmatprep.subr.bf16.mxu1 %v4434_v50 }
  0xae   :  { %2922 = vmatpush3.bf16.msra.mxu0 %v4435_v57 }
  0xaf   :  { %2954 = vmatpush3.bf16.msra.mxu1 %v4420_v63  ;;  %2924 = vmatprep.subr.bf16.mxu0 %v4421_v40 }
  0xb0   :  { %2956 = vmatprep.subr.bf16.mxu1 %v4422_v42 }
  0xb2   :  { %2926 = vmatpush3.bf16.msra.mxu0 %v4423_v56 }
  0xb3   :  { %2958 = vmatpush3.bf16.msra.mxu1 %v4424_v46  ;;  %2928 = vmatprep.subr.bf16.mxu0 %v4425_v33 }
  0xb4   :  { %2960 = vmatprep.subr.bf16.mxu1 %v4426_v24 }
  0xb6   :  { %2930 = vmatpush3.bf16.msra.mxu0 %v3723_v62 }
  0xb7   :  { %2962 = vmatpush3.bf16.msra.mxu1 %v3734_v9  ;;  %2932 = vmatprep.subr.bf16.mxu0 %v4427_v48 }
  0xb8   :  { %2964 = vmatprep.subr.bf16.mxu1 %v4436_v52 }
  0xba   :  { %2934 = vmatpush3.bf16.msra.mxu0 %v3767_v11  ;;  %v4026_v11 = vrot.slane %v1194_v43, %v3462_v36 }
  0xbb   :  { %2966 = vmatpush3.bf16.msra.mxu1 %v3774_v28  ;;  %2936 = vmatprep.subr.bf16.mxu0 %v3776_v6 }
  0xbc   :  { %2968 = vmatprep.subr.bf16.mxu1 %v3791_v20 }
  0xbe   :  { %2938 = vmatpush3.bf16.msra.mxu0 %v3811_v32 }
  0xbf   :  { %2970 = vmatpush3.bf16.msra.mxu1 %v3815_v22  ;;  %2940 = vmatprep.subr.bf16.mxu0 %v3817_v19 }
  0xc0   :  { %2972 = vmatprep.subr.bf16.mxu1 %v3826_v5 }
  0xc2   :  { %2942 = vmatpush3.bf16.msra.mxu0 %v3836_v61 }
  0xc3   :  { %2974 = vmatpush3.bf16.msra.mxu1 %v3840_v54  ;;  %2976 = vmatprep.subr.bf16.mxu0 %v3222_v3  ;;  %v4438_v3 = vld [vmem:[#allocation2_spill] sm:$0xff] }
  0xc4   :  { %3008 = vmatprep.subr.bf16.mxu1 %v3233_v7  ;;  %v4439_v7 = vld [vmem:[#allocation3_spill] sm:$0xff] }
  0xc5   :  { %1175 = vmatmul.mubr.f32.vlgmr.msra.gmra.mrb[10].mxu0 %v1100_v51  ;;  %v1620_v51 = vld [vmem:[%s4339_s5 + $0x60] sm:$0xff] }
  0xc6   :  { %1277 = vmatmul.mubr.f32.vlgmr.msra.gmra.mrb[10].mxu1 %v4026_v11  ;;  %2978 = vmatpush3.bf16.msra.mxu0 %v3235_v8  ;;  %v4440_v8 = vld [vmem:[#allocation4_spill] sm:$0xff] }
  0xc7   :  { %3010 = vmatpush3.bf16.msra.mxu1 %v3247_v12  ;;  %2980 = vmatprep.subr.bf16.mxu0 %v3260_v16  ;;  %v4441_v12 = vld [vmem:[#allocation5_spill] sm:$0xff]  ;;  %v4442_v16 = vld [vmem:[#allocation6_spill] sm:$0xff] }
  0xc8   :  { %3012 = vmatprep.subr.bf16.mxu1 %v3262_v17  ;;  %1353 = vmatprep.mubr.f32.mxu0 %v4437_v1  ;;  %v4443_v17 = vld [vmem:[#allocation7_spill] sm:$0xff] }
  0xc9   :  { %1423 = vmatprep.mubr.f32.mxu1 %v3788_v55  ;;  %v1630_v55 = vld [vmem:[%s4339_s5 + $0xb0] sm:$0xff]  ;;  %v1621_v1 = vld [vmem:[%s4339_s5 + $0x68] sm:$0xff] }
  0xca   :  { %2982 = vmatpush3.bf16.msra.mxu0 %v3274_v21  ;;  %v1958_v21 = vld [vmem:[%s4338_s0 + $0x12] ss:$4 sm:$0x3] }
  0xcb   :  { %3014 = vmatpush3.bf16.msra.mxu1 %v3287_v25  ;;  %2984 = vmatprep.subr.bf16.mxu0 %v3289_v26  ;;  %v1959_v25 = vld [vmem:[%s4338_s0 + $0x2a] ss:$4 sm:$0x3] }
  0xcc   :  { %3016 = vmatprep.subr.bf16.mxu1 %v3300_v30  ;;  %v1506_v26 = vcombine.low %v1958_v21, %v1959_v25  ;;  %v3129_v25 = vpack.c.bf16 %v1621_v1, %v1620_v51  ;;  %v1667_v51 = vld [vmem:[%s4339_s5 + $0x1d8] sm:$0xff] }
  0xce   :  { %2986 = vmatpush3.bf16.msra.mxu0 %v3312_v34  ;;  %v4065_v30 = vrot.slane %v1506_v26, %v3462_v36 }
  0xcf   :  { %3018 = vmatpush3.bf16.msra.mxu1 %v3325_v38  ;;  %2988 = vmatprep.subr.bf16.mxu0 %v3327_v39  ;;  %v4444_v38 = vld [vmem:[#allocation8_spill] sm:$0xff] }
  0xd0   :  { %3020 = vmatprep.subr.bf16.mxu1 %v4438_v3  ;;  %v1514_v34 = vcombine.high %v4065_v30, %v4065_v30  ;;  %v4445_v39 = vld [vmem:[#allocation12_spill] sm:$0xff] }
  0xd2   :  { %2990 = vmatpush3.bf16.msra.mxu0 %v4439_v7  ;;  %v1528_v43 = vrot.slane %v1514_v34, %v3462_v36  ;;  %v1638_v7 = vld [vmem:[%s4339_s5 + $0xf0] sm:$0xff] }
  0xd3   :  { %3022 = vmatpush3.bf16.msra.mxu1 %v4440_v8  ;;  %2992 = vmatprep.subr.bf16.mxu0 %v4441_v12  ;;  %v1639_v8 = vld [vmem:[%s4339_s5 + $0xf8] sm:$0xff]  ;;  %v1622_v34 = vld [vmem:[%s4339_s5 + $0x70] sm:$0xff] }
  0xd4   :  { %3024 = vmatprep.subr.bf16.mxu1 %v4442_v16 }
  0xd6   :  { %2994 = vmatpush3.bf16.msra.mxu0 %v4443_v17 }
  0xd7   :  { %3026 = vmatpush3.bf16.msra.mxu1 %v3400_v2  ;;  %2996 = vmatprep.subr.bf16.mxu0 %v3402_v4 }
  0xd8   :  { %3028 = vmatprep.subr.bf16.mxu1 %v3415_v13 }
  0xda   :  { %2998 = vmatpush3.bf16.msra.mxu0 %v3436_v23 }
  0xdb   :  { %3030 = vmatpush3.bf16.msra.mxu1 %v3449_v29  ;;  %3000 = vmatprep.subr.bf16.mxu0 %v3451_v31  ;;  %v4446_v31 = vld [vmem:[#allocation25_spill] sm:$0xff] }
  0xdc   :  { %3032 = vmatprep.subr.bf16.mxu1 %v3465_v37 }
  0xde   :  { %3002 = vmatpush3.bf16.msra.mxu0 %v3483_v47  ;;  %v1624_v47 = vld [vmem:[%s4339_s5 + $0x80] sm:$0xff] }
  0xdf   :  { %3034 = vmatpush3.bf16.msra.mxu1 %v3487_v49  ;;  %3004 = vmatprep.subr.bf16.mxu0 %v3489_v53  ;;  %v1625_v49 = vld [vmem:[%s4339_s5 + $0x88] sm:$0xff] }
  0xe0   :  { %3036 = vmatprep.subr.bf16.mxu1 %v3502_v60  ;;  %v3103_v60 = vpack.c.bf16 %v1625_v49, %v1624_v47  ;;  %v1656_v49 = vld [vmem:[%s4339_s5 + $0x180] sm:$0xff] }
  0xe2   :  { %3006 = vmatpush3.bf16.msra.mxu0 %v3521_v10  ;;  %v1608_v10 = vld [vmem:[%s4339_s5] sm:$0xff] }
  0xe3   :  { %3038 = vmatpush3.bf16.msra.mxu1 %v3525_v14  ;;  %3040 = vmatprep.subr.bf16.mxu0 %v3530_v18  ;;  %v1609_v14 = vld [vmem:[%s4339_s5 + $0x8] sm:$0xff]  ;;  %v1626_v18 = vld [vmem:[%s4339_s5 + $0x90] sm:$0xff] }
  0xe4   :  { %3072 = vmatprep.subr.bf16.mxu1 %v4444_v38  ;;  %v1623_v38 = vld [vmem:[%s4339_s5 + $0x78] sm:$0xff] }
  0xe5   :  { %1354 = vmatmul.mubr.f32.vlgmr.msra.gmra.mrb[12].mxu0 %v4445_v39 }
  0xe6   :  { %1424 = vmatmul.mubr.f32.vlgmr.msra.gmra.mrb[12].mxu1 %v3848_v58  ;;  %3042 = vmatpush3.bf16.msra.mxu0 %v3566_v44  ;;  %v1521_v44 = vrot.slane %v4065_v30, %v3462_v36  ;;  %v1629_v36 = vld [vmem:[%s4339_s5 + $0xa8] sm:$0xff]  ;;  %v3131_v30 = vpack.c.bf16 %v1639_v8, %v1638_v7  ;;  %v1650_v7 = vld [vmem:[%s4339_s5 + $0x150] sm:$0xff]  ;;  %v1651_v8 = vld [vmem:[%s4339_s5 + $0x158] sm:$0xff] }
  0xe7   :  { %3074 = vmatpush3.bf16.msra.mxu1 %v3570_v45  ;;  %3044 = vmatprep.subr.bf16.mxu0 %v4431_v35  ;;  %v3105_v45 = vpack.c.bf16 %v1609_v14, %v1608_v10  ;;  %v1633_v58 = vld [vmem:[%s4339_s5 + $0xc8] sm:$0xff]  ;;  %v1619_v35 = vld [vmem:[%s4339_s5 + $0x58] sm:$0xff] }
  0xe8   :  { %3076 = vmatprep.subr.bf16.mxu1 %v4432_v0  ;;  %1493 = vmatprep.mubr.f32.mxu0 %v3991_v59  ;;  %v1618_v59 = vld [vmem:[%s4339_s5 + $0x50] sm:$0xff]  ;;  %v1636_v0 = vld [vmem:[%s4339_s5 + $0xe0] sm:$0xff]  ;;  %v1641_v14 = vld [vmem:[%s4339_s5 + $0x108] sm:$0xff] }
  0xe9   :  { %1595 = vmatprep.mubr.f32.mxu1 %v1528_v43 }
  0xea   :  { %3046 = vmatpush3.bf16.msra.mxu0 %v4433_v27  ;;  %v1627_v27 = vld [vmem:[%s4339_s5 + $0x98] sm:$0xff] }
  0xeb   :  { %3078 = vmatpush3.bf16.msra.mxu1 %v4416_v41  ;;  %3048 = vmatprep.subr.bf16.mxu0 %v4417_v15  ;;  %v1616_v41 = vld [vmem:[%s4339_s5 + $0x40] sm:$0xff]  ;;  %v1617_v15 = vld [vmem:[%s4339_s5 + $0x48] sm:$0xff] }
  0xec   :  { %3080 = vmatprep.subr.bf16.mxu1 %v4434_v50  ;;  %v1637_v50 = vld [vmem:[%s4339_s5 + $0xe8] sm:$0xff] }
  0xee   :  { %3050 = vmatpush3.bf16.msra.mxu0 %v4435_v57  ;;  %v3125_v57 = vpack.c.bf16 %v1619_v35, %v1618_v59 }
  0xef   :  { %3082 = vmatpush3.bf16.msra.mxu1 %v4420_v63  ;;  %3052 = vmatprep.subr.bf16.mxu0 %v4421_v40  ;;  %v1635_v63 = vld [vmem:[%s4339_s5 + $0xd8] sm:$0xff]  ;;  %v3121_v40 = vpack.c.bf16 %v1617_v15, %v1616_v41 }
  0xf0   :  { %3084 = vmatprep.subr.bf16.mxu1 %v4422_v42 }
  0xf2   :  { %3054 = vmatpush3.bf16.msra.mxu0 %v4423_v56  ;;  %v1610_v56 = vld [vmem:[%s4339_s5 + $0x10] sm:$0xff] }
  0xf3   :  { %3086 = vmatpush3.bf16.msra.mxu1 %v4424_v46  ;;  %3056 = vmatprep.subr.bf16.mxu0 %v4425_v33  ;;  %v3107_v46 = vpack.c.bf16 %v1627_v27, %v1626_v18  ;;  %v1658_v18 = vld [vmem:[%s4339_s5 + $0x190] sm:$0xff]  ;;  %v1659_v27 = vld [vmem:[%s4339_s5 + $0x198] sm:$0xff] }
  0xf4   :  { %3088 = vmatprep.subr.bf16.mxu1 %v4426_v24 }
  0xf6   :  { %3058 = vmatpush3.bf16.msra.mxu0 %v3723_v62 }
  0xf7   :  { %3090 = vmatpush3.bf16.msra.mxu1 %v3734_v9  ;;  %3060 = vmatprep.subr.bf16.mxu0 %v4427_v48  ;;  %v1628_v9 = vld [vmem:[%s4339_s5 + $0xa0] sm:$0xff]  ;;  %v1634_v48 = vld [vmem:[%s4339_s5 + $0xd0] sm:$0xff] }
  0xf8   :  { %v1993_v2 = vpop.f32.mrb[0].mxu0  ;;  %3092 = vmatprep.subr.bf16.mxu1 %v4436_v52  ;;  %v3111_v62 = vpack.c.bf16 %v1629_v36, %v1628_v9  ;;  %v3123_v42 = vpack.c.bf16 %v1635_v63, %v1634_v48  ;;  %v3127_v52 = vpack.c.bf16 %v1637_v50, %v1636_v0  ;;  %v1661_v9 = vld [vmem:[%s4339_s5 + $0x1a8] sm:$0xff] }
  0xf9   :  { %v2028_v4 = vpop.f32.mrb[0].mxu1  ;;  %v1994_v13 = vpop.f32.mrb[1].mxu0 }
  0xfa   :  { %v1995_v23 = vadd.f32 %v1994_v13, %v1993_v2  ;;  %v2029_v29 = vpop.f32.mrb[1].mxu1  ;;  %3062 = vmatpush3.bf16.msra.mxu0 %v4446_v31  ;;  %v3133_v2 = vpack.c.bf16 %v1623_v38, %v1622_v34  ;;  %v1652_v38 = vld [vmem:[%s4339_s5 + $0x160] sm:$0xff] }
  0xfb   :  { %v2030_v37 = vadd.f32 %v2029_v29, %v2028_v4  ;;  %3094 = vmatpush3.bf16.msra.mxu1 %v3774_v28  ;;  %3064 = vmatprep.subr.bf16.mxu0 %v3776_v6  ;;  %v1611_v6 = vld [vmem:[%s4339_s5 + $0x18] sm:$0xff]  ;;  %v1612_v28 = vld [vmem:[%s4339_s5 + $0x20] sm:$0xff] }
  0xfc   :  { %3096 = vmatprep.subr.bf16.mxu1 %v3791_v20 }
  0xfd   :  { %v4111_v53 = vadd.f32 %v2030_v37, %v1995_v23 }
  0xfe   :  { %3066 = vmatpush3.bf16.msra.mxu0 %v3811_v32  ;;  %v1613_v32 = vld [vmem:[%s4339_s5 + $0x28] sm:$0xff] }
  0xff   :  { %3098 = vmatpush3.bf16.msra.mxu1 %v3815_v22  ;;  %3068 = vmatprep.subr.bf16.mxu0 %v3817_v19  ;;  %v3109_v22 = vpack.c.bf16 %v1611_v6, %v1610_v56  ;;  %v3113_v20 = vpack.c.bf16 %v1613_v32, %v1612_v28  ;;  %v1643_v56 = vld [vmem:[%s4339_s5 + $0x118] sm:$0xff]  ;;  %v1660_v6 = vld [vmem:[%s4339_s5 + $0x1a0] sm:$0xff]  ;;  %v1645_v28 = vld [vmem:[%s4339_s5 + $0x128] sm:$0xff] }
 0x100   :  { %3100 = vmatprep.subr.bf16.mxu1 %v3826_v5  ;;  %v1614_v5 = vld [vmem:[%s4339_s5 + $0x30] sm:$0xff] }
 0x101   :  { %v1662_v32 = vld [vmem:[%s4339_s5 + $0x1b0] sm:$0xff] }
 0x102   :  { %3070 = vmatpush3.bf16.msra.mxu0 %v3836_v61  ;;  %v1615_v61 = vld [vmem:[%s4339_s5 + $0x38] sm:$0xff] }
 0x103   :  { %3102 = vmatpush3.bf16.msra.mxu1 %v3840_v54  ;;  %3104 = vmatprep.subr.bf16.mxu0 %v3103_v60  ;;  %v1632_v54 = vld [vmem:[%s4339_s5 + $0xc0] sm:$0xff]  ;;  %v3117_v33 = vpack.c.bf16 %v1615_v61, %v1614_v5  ;;  %v1647_v5 = vld [vmem:[%s4339_s5 + $0x138] sm:$0xff] }
 0x104   :  { %v3119_v24 = vpack.c.bf16 %v1633_v58, %v1632_v54  ;;  %v1640_v60 = vld [vmem:[%s4339_s5 + $0x100] sm:$0xff] }
 0x105   :  { %1494 = vmatmul.mubr.f32.vlgmr.msra.gmra.mrb[14].mxu0 %v4026_v11  ;;  %v1631_v11 = vld [vmem:[%s4339_s5 + $0xb8] sm:$0xff]  ;;  %v4264_v54 = vld [vmem:[%s4340_s2] ss:$0 sm:$0xff] }
 0x106   :  { %1596 = vmatmul.mubr.f32.vlgmr.msra.gmra.mrb[14].mxu1 %v1521_v44  ;;  %3106 = vmatpush3.bf16.msra.mxu0 %v3105_v45  ;;  %v3115_v19 = vpack.c.bf16 %v1631_v11, %v1630_v55  ;;  %v3137_v44 = vpack.c.bf16 %v1641_v14, %v1640_v60  ;;  %v3139_v45 = vpack.c.bf16 %v1659_v27, %v1658_v18  ;;  %v1663_v55 = vld [vmem:[%s4339_s5 + $0x1b8] sm:$0xff] }
 0x107   :  { %3108 = vmatprep.subr.bf16.mxu0 %v3107_v46  ;;  %v1642_v46 = vld [vmem:[%s4339_s5 + $0x110] sm:$0xff] }
 0x108   :  { %v3141_v36 = vpack.c.bf16 %v1643_v56, %v1642_v46 }
 0x10a   :  { %3110 = vmatpush3.bf16.msra.mxu0 %v3109_v22  ;;  %v3143_v22 = vpack.c.bf16 %v1661_v9, %v1660_v6 }
 0x10b   :  { %3112 = vmatprep.subr.bf16.mxu0 %v3111_v62  ;;  %v1644_v62 = vld [vmem:[%s4339_s5 + $0x120] sm:$0xff] }
 0x10c   :  { %v3145_v11 = vpack.c.bf16 %v1645_v28, %v1644_v62 }
 0x10e   :  { %3114 = vmatpush3.bf16.msra.mxu0 %v3113_v20  ;;  %v3147_v20 = vpack.c.bf16 %v1663_v55, %v1662_v32 }
 0x10f   :  { %3116 = vmatprep.subr.bf16.mxu0 %v3115_v19  ;;  %v1646_v19 = vld [vmem:[%s4339_s5 + $0x130] sm:$0xff] }
 0x110   :  { %v3149_v61 = vpack.c.bf16 %v1647_v5, %v1646_v19 }
 0x112   :  { %3118 = vmatpush3.bf16.msra.mxu0 %v3117_v33  ;;  %v1664_v33 = vld [vmem:[%s4339_s5 + $0x1c0] sm:$0xff] }
 0x113   :  { %3120 = vmatprep.subr.bf16.mxu0 %v3119_v24  ;;  %v1665_v24 = vld [vmem:[%s4339_s5 + $0x1c8] sm:$0xff] }
 0x114   :  { %v3151_v63 = vpack.c.bf16 %v1665_v24, %v1664_v33 }
 0x116   :  { %3122 = vmatpush3.bf16.msra.mxu0 %v3121_v40  ;;  %v1648_v40 = vld [vmem:[%s4339_s5 + $0x140] sm:$0xff] }
 0x117   :  { %3124 = vmatprep.subr.bf16.mxu0 %v3123_v42  ;;  %v1649_v42 = vld [vmem:[%s4339_s5 + $0x148] sm:$0xff] }
 0x118   :  { %v2063_v3 = vpop.f32.mrb[2].mxu0  ;;  %v3153_v0 = vpack.c.bf16 %v1649_v42, %v1648_v40 }
 0x119   :  { %v2064_v12 = vpop.f32.mrb[3].mxu0  ;;  %v2098_v16 = vpop.f32.mrb[2].mxu1 }
 0x11a   :  { %v2065_v17 = vadd.f32 %v2064_v12, %v2063_v3  ;;  %v2099_v21 = vpop.f32.mrb[3].mxu1  ;;  %3126 = vmatpush3.bf16.msra.mxu0 %v3125_v57 }
 0x11b   :  { %v2100_v26 = vadd.f32 %v2099_v21, %v2098_v16  ;;  %3128 = vmatprep.subr.bf16.mxu0 %v3127_v52  ;;  %v1666_v52 = vld [vmem:[%s4339_s5 + $0x1d0] sm:$0xff]  ;;  %v3157_v16 = vpack.c.bf16 %v1651_v8, %v1650_v7  ;;  %v1668_v21 = vld [vmem:[%s4339_s5 + $0x1e0] sm:$0xff] }
 0x11c   :  { %v429_v39 = vadd.f32 %v2065_v17, %v4111_v53  ;;  %v1657_v53 = vld [vmem:[%s4339_s5 + $0x188] sm:$0xff]  ;;  %v3155_v3 = vpack.c.bf16 %v1667_v51, %v1666_v52 }
 0x11d   :  { %v3135_v10 = vpack.c.bf16 %v1657_v53, %v1656_v49  ;;  %v1949_v53 = vld [vmem:[%s4342_s4] ss:$0 sm:$0xff] }
 0x11e   :  { %v564_v43 = vadd.f32 %v2100_v26, %v429_v39  ;;  %3130 = vmatpush3.bf16.msra.mxu0 %v3129_v25  ;;  %v1669_v25 = vld [vmem:[%s4339_s5 + $0x1e8] sm:$0xff] }
 0x11f   :  { %3132 = vmatprep.subr.bf16.mxu0 %v3131_v30  ;;  %3136 = vmatprep.subr.bf16.mxu1 %v3135_v10  ;;  %v4301_v30 = vld [vmem:[%s4341_s3] ss:$0 sm:$0xff]  ;;  %v3159_v34 = vpack.c.bf16 %v1669_v25, %v1668_v21  ;;  %v1653_v39 = vld [vmem:[%s4339_s5 + $0x168] sm:$0xff] }
 0x120   :  { %3138 = vmatpush3.bf16.msra.mxu1 %v3137_v44  ;;  %v571_v41 = vadd.f32 %v4264_v54, %v564_v43  ;;  %v1960_v25 = vld [vmem:[%s4343_s6] ss:$0 sm:$0xff] }
 0x121   :  { %3140 = vmatprep.subr.bf16.mxu1 %v3139_v45 }
 0x122   :  { %3134 = vmatpush3.bf16.msra.mxu0 %v3133_v2  ;;  %v573_v1 = vmul.f32 0.2, %v571_v41  ;;  %vm572_vm0 = vcmp.ge.f32.partialorder %v571_v41, 0.0  ;;  %v3161_v2 = vpack.c.bf16 %v1653_v39, %v1652_v38 }
 0x124   :  { %3142 = vmatpush3.bf16.msra.mxu1 %v3141_v36  ;;  %v574_v26 = vsel %vm572_vm0, %v571_v41, %v573_v1 }
 0x125   :  { %3144 = vmatprep.subr.bf16.mxu1 %v3143_v22 }
 0x128   :  { %3146 = vmatpush3.bf16.msra.mxu1 %v3145_v11 }
 0x129   :  { %3148 = vmatprep.subr.bf16.mxu1 %v3147_v20 }
 0x12c   :  { %3150 = vmatpush3.bf16.msra.mxu1 %v3149_v61 }
 0x12d   :  { %3152 = vmatprep.subr.bf16.mxu1 %v3151_v63 }
 0x130   :  { %3154 = vmatpush3.bf16.msra.mxu1 %v3153_v0 }
 0x131   :  { %3156 = vmatprep.subr.bf16.mxu1 %v3155_v3 }
 0x134   :  { %3158 = vmatpush3.bf16.msra.mxu1 %v3157_v16 }
 0x135   :  { %3160 = vmatprep.subr.bf16.mxu1 %v3159_v34 }
 0x138   :  { %v2133_v4 = vpop.f32.mrb[4].mxu0  ;;  %3162 = vmatpush3.bf16.msra.mxu1 %v3161_v2 }
 0x139   :  { %v2168_v13 = vpop.f32.mrb[4].mxu1  ;;  %v2134_v23 = vpop.f32.mrb[5].mxu0 }
 0x13a   :  { %v2135_v29 = vadd.f32 %v2134_v23, %v2133_v4  ;;  %v2169_v31 = vpop.f32.mrb[5].mxu1  ;;  %v1670_v4 = vld [vmem:[%s4339_s5 + $0x1f0] sm:$0xff] }
 0x13b   :  { %v2170_v37 = vadd.f32 %v2169_v31, %v2168_v13  ;;  %v1671_v13 = vld [vmem:[%s4339_s5 + $0x1f8] sm:$0xff]  ;;  %v1654_v23 = vld [vmem:[%s4339_s5 + $0x170] sm:$0xff] }
 0x13c   :  { %v1655_v31 = vld [vmem:[%s4339_s5 + $0x178] sm:$0xff] }
 0x13d   :  { %v757_v47 = vadd.f32 %v2170_v37, %v2135_v29  ;;  %v3163_v29 = vpack.c.bf16 %v1671_v13, %v1670_v4  ;;  %v3165_v49 = vpack.c.bf16 %v1655_v31, %v1654_v23  ;;  %v4447_v13 = vlaneseq }
 0x13f   :  { %3164 = vmatprep.subr.bf16.mxu1 %v3163_v29  ;;  %v1820_v23 = vand.u32 127, %v4447_v13 }
 0x140   :  { %3166 = vmatpush3.bf16.msra.mxu1 %v3165_v49 }
 0x141   :  { %vm1827_vm4 = vcmp.eq.s32.totalorder %v1820_v23, 0 }
 0x158   :  { %v2203_v58 = vpop.f32.mrb[6].mxu0 }
 0x159   :  { %v2204_v15 = vpop.f32.mrb[7].mxu0  ;;  %v2238_v48 = vpop.f32.mrb[6].mxu1 }
 0x15a   :  { %v2205_v59 = vadd.f32 %v2204_v15, %v2203_v58  ;;  %v2239_v35 = vpop.f32.mrb[7].mxu1 }
 0x15b   :  { %v2240_v50 = vadd.f32 %v2239_v35, %v2238_v48 }
 0x15c   :  { %v830_v57 = vadd.f32 %v2205_v59, %v757_v47  ;;  %v581_v47 = vmul.f32 %v4301_v30, %v574_v26 }
 0x15e   :  { %v932_v12 = vadd.f32 %v2240_v50, %v830_v57  ;;  %v588_v14 = vadd.f32 %v1949_v53, %v581_v47 }
 0x160   :  { %v933_v17 = vadd.f32 %v4264_v54, %v932_v12 }
 0x162   :  { %vm934_vm1 = vcmp.ge.f32.partialorder %v933_v17, 0.0  ;;  %v935_v43 = vmul.f32 0.2, %v933_v17 }
 0x164   :  { %v936_v37 = vsel %vm934_vm1, %v933_v17, %v935_v43 }
 0x165   :  { %v937_v60 = vmul.f32 %v4301_v30, %v936_v37 }
 0x167   :  { %v938_v10 = vadd.f32 %v1949_v53, %v937_v60 }
 0x169   :  { %1743 = vmatprep.mubr.f32.mxu0 %v938_v10 }
 0x16a   :  { %1744 = vmatmul.mubr.f32.vlgmr.msra.gmra.mrb[16].mxu0 %v588_v14 }
 0x178   :  { %v2273_v18 = vpop.f32.mrb[8].mxu0 }
 0x179   :  { %v2308_v27 = vpop.f32.mrb[8].mxu1  ;;  %v2274_v44 = vpop.f32.mrb[9].mxu0 }
 0x17a   :  { %v2275_v45 = vadd.f32 %v2274_v44, %v2273_v18  ;;  %v2309_v46 = vpop.f32.mrb[9].mxu1 }
 0x17b   :  { %v2310_v56 = vadd.f32 %v2309_v46, %v2308_v27 }
 0x17d   :  { %v1076_v6 = vadd.f32 %v2310_v56, %v2275_v45 }
 0x198   :  { %v2343_v9 = vpop.f32.mrb[10].mxu0 }
 0x199   :  { %v2344_v36 = vpop.f32.mrb[11].mxu0  ;;  %v2378_v22 = vpop.f32.mrb[10].mxu1 }
 0x19a   :  { %v2345_v62 = vadd.f32 %v2344_v36, %v2343_v9  ;;  %v2379_v28 = vpop.f32.mrb[11].mxu1 }
 0x19b   :  { %v2380_v32 = vadd.f32 %v2379_v28, %v2378_v22 }
 0x19c   :  { %v1180_v55 = vadd.f32 %v2345_v62, %v1076_v6 }
 0x19e   :  { %v1282_v11 = vadd.f32 %v2380_v32, %v1180_v55 }
 0x1a0   :  { %v1283_v15 = vadd.f32 %v4264_v54, %v1282_v11 }
 0x1a2   :  { %v1285_v0 = vmul.f32 0.2, %v1283_v15  ;;  %vm1284_vm2 = vcmp.ge.f32.partialorder %v1283_v15, 0.0 }
 0x1a4   :  { %v1286_v52 = vsel %vm1284_vm2, %v1283_v15, %v1285_v0 }
 0x1a5   :  { %v1287_v3 = vmul.f32 %v4301_v30, %v1286_v52 }
 0x1a7   :  { %v1288_v12 = vadd.f32 %v1949_v53, %v1287_v3 }
 0x1b8   :  { %v2413_v20 = vpop.f32.mrb[12].mxu0 }
 0x1b9   :  { %v2448_v19 = vpop.f32.mrb[12].mxu1  ;;  %v2414_v5 = vpop.f32.mrb[13].mxu0 }
 0x1ba   :  { %v2415_v61 = vadd.f32 %v2414_v5, %v2413_v20  ;;  %v2449_v58 = vpop.f32.mrb[13].mxu1 }
 0x1bb   :  { %v2450_v33 = vadd.f32 %v2449_v58, %v2448_v19 }
 0x1bd   :  { %v1426_v24 = vadd.f32 %v2450_v33, %v2415_v61 }
 0x1d8   :  { %v2483_v41 = vpop.f32.mrb[14].mxu0 }
 0x1d9   :  { %v2484_v48 = vpop.f32.mrb[15].mxu0  ;;  %v2518_v63 = vpop.f32.mrb[14].mxu1 }
 0x1da   :  { %v2485_v40 = vadd.f32 %v2484_v48, %v2483_v41  ;;  %v2519_v42 = vpop.f32.mrb[15].mxu1 }
 0x1db   :  { %v2520_v59 = vadd.f32 %v2519_v42, %v2518_v63 }
 0x1dc   :  { %v1499_v35 = vadd.f32 %v2485_v40, %v1426_v24 }
 0x1de   :  { %v1601_v50 = vadd.f32 %v2520_v59, %v1499_v35 }
 0x1e0   :  { %v1602_v57 = vadd.f32 %v4264_v54, %v1601_v50 }
 0x1e2   :  { %vm1603_vm3 = vcmp.ge.f32.partialorder %v1602_v57, 0.0  ;;  %v1604_v51 = vmul.f32 0.2, %v1602_v57 }
 0x1e4   :  { %v1605_v1 = vsel %vm1603_vm3, %v1602_v57, %v1604_v51 }
 0x1e5   :  { %v1606_v7 = vmul.f32 %v4301_v30, %v1605_v1 }
 0x1e7   :  { %v1607_v8 = vadd.f32 %v1949_v53, %v1606_v7 }
 0x1e9   :  { %1813 = vmatprep.mubr.f32.mxu1 %v1607_v8 }
 0x1ea   :  { %1814 = vmatmul.mubr.f32.vlgmr.msra.gmra.mrb[16].mxu1 %v1288_v12 }
 0x23d   :  { %v2553_v16 = vpop.f32.mrb[16].mxu0 }
 0x23e   :  { %v2554_v17 = vpop.f32.mrb[17].mxu0 }
 0x23f   :  { %v2555_v21 = vadd.f32 %v2554_v17, %v2553_v16 }
 0x241   :  { %v1746_v34 = vadd.f32 %v2555_v21, %v1960_v25 }
 0x2bd   :  { %v2588_v54 = vpop.f32.mrb[16].mxu1 }
 0x2be   :  { %v2589_v26 = vpop.f32.mrb[17].mxu1 }
 0x2bf   :  { %v2590_v38 = vadd.f32 %v2589_v26, %v2588_v54 }
 0x2c1   :  { %v1816_v39 = vadd.f32 %v2590_v38, %v1746_v34 }
 0x2c3   :  { %v1821_v43 = vsub.f32 0.0, %v1816_v39 }
 0x2c5   :  { %v1822_v2 = vmul.f32 1.442695, %v1821_v43 }
 0x2c7   :  { %3168 = vpow2.f32 %v1822_v2 }
 0x2d1   :  { %v3169_v30 = vpop.eup %3168 }
 0x2d2   :  { %v1824_v4 = vadd.f32 1.0, %v3169_v30 }
 0x2d4   :  { %3170 = vrcp.f32 %v1824_v4 }
 0x2de   :  { %v3171_v29 = vpop.eup %3170 }
 0x2df   :  { %v1828_v31 = vsel %vm1827_vm4, %v3171_v29, %v1816_v39 }
 0x2e0   :  { %1829 = vst [vmem:[%s4344_s7] sm:$0x3] %v1828_v31 }

</bundles_post_ra>
